<compile_context>
chip_gen: v7x
topology: tpu7x:2x2x1
jax: 0.10.0
libtpu: 0.0.40
codegen_flags: <defaults>
</compile_context>

<pallas_src>
import jax
import jax.numpy as jnp
import numpy as np
from jax.experimental import pallas as pl
from jax.experimental.pallas import tpu as pltpu

# Small, module-consistent shapes.
N, CIN, H, W = 2, 4, 16, 16
COUT = 8
KSIZES = (3, 5, 7)
KMAX = max(KSIZES)                 # 7
PAD = (KMAX - 1) // 2              # 3  (halo for the largest kernel)
HP, WP = H + 2 * PAD, W + 2 * PAD  # 22, 22

CIN8 = 8                           # channels padded 4 -> 8: band stamps tile-aligned
KW_CI = KMAX * CIN8                # 56   rows of one weight strip  (kw, ci8)
K_LANES = WP * CIN8                # 176  contraction width per kh  (wp, ci8)
M_ROWS = N * H                     # 32   output rows  (n, h)
OUT_LANES = W * COUT               # 128  output lanes (w, cout)  == one lane group


def _mcnn_kernel(x_ref, w_ref, b_ref, o_ref, band_ref):
    """Fused 3-branch conv: 7 accumulated MXU matmuls, banded weight built in VMEM.

    x_ref    : (N*HP, WP*CIN8)  = (44, 176)   padded input, lanes = (wp, ci8)
    w_ref    : (KMAX, KW_CI, COUT) = (7, 56, 8) folded weight strip per kh
    b_ref    : (1, OUT_LANES)   = (1, 128)    folded bias tiled over (w, cout)
    o_ref    : (M_ROWS, OUT_LANES) = (32, 128) rows (n,h), lanes (w,cout)
    band_ref : (K_LANES, OUT_LANES) VMEM scratch: per-kh banded weight
    """
    band_ref[...] = jnp.zeros_like(band_ref)
    acc = jnp.zeros((M_ROWS, OUT_LANES), jnp.float32)
    for kh in range(KMAX):
        strip = w_ref[kh]                                      # (56, 8)
        # Stamp the block-Toeplitz band for this kh: output column block w
        # reads taps wp in [w, w+7).  Rows start at 8*w (sublane-tile aligned),
        # columns at 8*w within the single 128-lane group.
        for w in range(W):
            band_ref[8 * w:8 * w + KW_CI, COUT * w:COUT * (w + 1)] = strip
        # H-direction shift: output row (n, h) reads padded input row h + kh.
        xs = jnp.concatenate(
            [x_ref[kh:kh + H, :], x_ref[HP + kh:HP + kh + H, :]], axis=0
        )                                                      # (32, 176)
        acc = acc + jnp.dot(xs, band_ref[...],
                            preferred_element_type=jnp.float32)
    o_ref[...] = acc + b_ref[...]                              # bias broadcast


def _fold_branch_weights(w3, w5, w7, biases):
    """Sum of three 'same' convs == one 7x7 'same' conv; pack for the kernel."""
    w_eff = w7
    w_eff = w_eff.at[1:1 + 5, 1:1 + 5, :, :].add(w5)
    w_eff = w_eff.at[2:2 + 3, 2:2 + 3, :, :].add(w3)
    b_eff = jnp.sum(biases, axis=0)                            # b1 + b2 + b3
    # Pad cin 4->8 with zeros, reshape to per-kh strips (kh, kw*ci8, cout).
    w8 = jnp.pad(w_eff, ((0, 0), (0, 0), (0, CIN8 - CIN), (0, 0)))
    w_strip = w8.reshape(KMAX, KW_CI, COUT).astype(jnp.float32)
    bias_row = jnp.tile(b_eff, W)[None, :].astype(jnp.float32)  # (1, 128)
    return w_strip, bias_row


def _prep_input(x_nchw):
    """NCHW -> zero-padded NHWC, cin padded 4->8, flattened to (N*HP, WP*CIN8)."""
    x = jnp.transpose(x_nchw, (0, 2, 3, 1))                              # NHWC
    x = jnp.pad(x, ((0, 0), (PAD, PAD), (PAD, PAD), (0, CIN8 - CIN)))    # (2,22,22,8)
    return x.reshape(N * HP, K_LANES)                                    # (44, 176)


def mcnn_forward(x_nchw, w3, w5, w7, biases):
    x_flat = _prep_input(x_nchw)                              # ~31 KiB
    w_strip, bias_row = _fold_branch_weights(w3, w5, w7, biases)
    cost = pl.CostEstimate(
        flops=2 * M_ROWS * K_LANES * OUT_LANES * KMAX,
        transcendentals=0,
        bytes_accessed=4 * (x_flat.size + w_strip.size + bias_row.size
                            + M_ROWS * OUT_LANES),
    )
    out = pl.pallas_call(
        _mcnn_kernel,
        out_shape=jax.ShapeDtypeStruct((M_ROWS, OUT_LANES), jnp.float32),
        grid_spec=pltpu.PrefetchScalarGridSpec(
            num_scalar_prefetch=0,
            grid=(1,),                                        # single step, all generations
            in_specs=[
                pl.BlockSpec((N * HP, K_LANES), lambda i: (0, 0)),
                pl.BlockSpec((KMAX, KW_CI, COUT), lambda i: (0, 0, 0)),
                pl.BlockSpec((1, OUT_LANES), lambda i: (0, 0)),
            ],
            out_specs=pl.BlockSpec((M_ROWS, OUT_LANES), lambda i: (0, 0)),
            scratch_shapes=[pltpu.VMEM((K_LANES, OUT_LANES), jnp.float32)],
        ),
        compiler_params=pltpu.CompilerParams(
            dimension_semantics=("arbitrary",)),
        cost_estimate=cost,
    )(x_flat, w_strip, bias_row)
    # rows (n, h), lanes (w, cout)  ->  NCHW
    out = out.reshape(N, H, W, COUT)
    return jnp.transpose(out, (0, 3, 1, 2))


def mcnn_reference(x_nchw, w3, w5, w7, biases):
    """Plain-JAX reference (three lax convs + sum), matching PyTorch semantics."""
    x = jnp.transpose(x_nchw, (0, 2, 3, 1))
    out = jnp.sum(biases, axis=0)[None, None, None, :]
    for w, k in ((w3, 3), (w5, 5), (w7, 7)):
        p = (k - 1) // 2
        out = out + jax.lax.conv_general_dilated(
            x, w, window_strides=(1, 1), padding=[(p, p), (p, p)],
            dimension_numbers=("NHWC", "HWIO", "NHWC"))
    return jnp.transpose(out, (0, 3, 1, 2))


if __name__ == "__main__":
    key = jax.random.PRNGKey(0)
    kx, k3, k5, k7, kb = jax.random.split(key, 5)

    x = jax.random.normal(kx, (N, CIN, H, W), dtype=jnp.float32)      # NCHW, like PyTorch
    # nn.init.normal_ -> standard normal weights/biases, deterministic here.
    w3 = jax.random.normal(k3, (3, 3, CIN, COUT), dtype=jnp.float32)  # HWIO
    w5 = jax.random.normal(k5, (5, 5, CIN, COUT), dtype=jnp.float32)
    w7 = jax.random.normal(k7, (7, 7, CIN, COUT), dtype=jnp.float32)
    biases = jax.random.normal(kb, (3, COUT), dtype=jnp.float32)      # one bias row per branch

    out = jax.block_until_ready(mcnn_forward(x, w3, w5, w7, biases))
    ref = jax.block_until_ready(mcnn_reference(x, w3, w5, w7, biases))

    assert out.shape == (N, COUT, H, W), out.shape
    np.testing.assert_allclose(np.asarray(out), np.asarray(ref), rtol=1e-4, atol=1e-4)
    print("KERNEL_OK")
</pallas_src>

<mosaic_0001>
module attributes {stable_mosaic.version = 11 : i64} {
  func.func @_mcnn_kernel(%arg0: i32, %arg1: memref<44x176xf32, #tpu.memory_space<vmem>>, %arg2: memref<7x56x8xf32, #tpu.memory_space<vmem>>, %arg3: memref<1x128xf32, #tpu.memory_space<vmem>>, %arg4: memref<32x128xf32, #tpu.memory_space<vmem>>, %arg5: memref<176x128xf32, #tpu.memory_space<vmem>>) attributes {dimension_semantics = [#tpu.dimension_semantics<arbitrary>], iteration_bounds = array<i64: 1>, scalar_prefetch = 0 : i64, scratch_operands = 1 : i64, tpu.core_type = #tpu.core_type<tc>, window_params = [{pipeline_mode = #tpu.pipeline_mode<synchronous>, transform_indices = @transform_0, window_bounds = array<i64: 44, 176>}, {pipeline_mode = #tpu.pipeline_mode<synchronous>, transform_indices = @transform_1, window_bounds = array<i64: 7, 56, 8>}, {pipeline_mode = #tpu.pipeline_mode<synchronous>, transform_indices = @transform_2, window_bounds = array<i64: 1, 128>}, {pipeline_mode = #tpu.pipeline_mode<synchronous>, transform_indices = @transform_3, window_bounds = array<i64: 32, 128>}]} {
    %cst = arith.constant 0.000000e+00 : f32
    %0 = vector.broadcast %cst : f32 to vector<176x128xf32>
    %c0 = arith.constant 0 : index
    %c0_0 = arith.constant 0 : index
    %1 = vector.load %arg5[%c0, %c0_0] : memref<176x128xf32, #tpu.memory_space<vmem>>, vector<176x128xf32>
    tpu.vector_store %arg5[%c0, %c0_0], %0 {strides = array<i32>} : memref<176x128xf32, #tpu.memory_space<vmem>>, vector<176x128xf32>,
    %cst_1 = arith.constant 0.000000e+00 : f32
    %2 = vector.broadcast %cst_1 : f32 to vector<32x128xf32>
    %c0_2 = arith.constant 0 : index
    %c0_3 = arith.constant 0 : index
    %c0_4 = arith.constant 0 : index
    %3 = vector.load %arg2[%c0_2, %c0_3, %c0_4] : memref<7x56x8xf32, #tpu.memory_space<vmem>>, vector<1x56x8xf32>
    %4 = vector.shape_cast %3 : vector<1x56x8xf32> to vector<56x8xf32>
    %c0_5 = arith.constant 0 : index
    %c0_6 = arith.constant 0 : index
    %5 = vector.load %arg5[%c0_5, %c0_6] : memref<176x128xf32, #tpu.memory_space<vmem>>, vector<56x8xf32>
    tpu.vector_store %arg5[%c0_5, %c0_6], %4 {strides = array<i32>} : memref<176x128xf32, #tpu.memory_space<vmem>>, vector<56x8xf32>,
    %c8 = arith.constant 8 : index
    %c8_7 = arith.constant 8 : index
    %6 = vector.load %arg5[%c8, %c8_7] : memref<176x128xf32, #tpu.memory_space<vmem>>, vector<56x8xf32>
    tpu.vector_store %arg5[%c8, %c8_7], %4 {strides = array<i32>} : memref<176x128xf32, #tpu.memory_space<vmem>>, vector<56x8xf32>,
    %c16 = arith.constant 16 : index
    %c16_8 = arith.constant 16 : index
    %7 = vector.load %arg5[%c16, %c16_8] : memref<176x128xf32, #tpu.memory_space<vmem>>, vector<56x8xf32>
    tpu.vector_store %arg5[%c16, %c16_8], %4 {strides = array<i32>} : memref<176x128xf32, #tpu.memory_space<vmem>>, vector<56x8xf32>,
    %c24 = arith.constant 24 : index
    %c24_9 = arith.constant 24 : index
    %8 = vector.load %arg5[%c24, %c24_9] : memref<176x128xf32, #tpu.memory_space<vmem>>, vector<56x8xf32>
    tpu.vector_store %arg5[%c24, %c24_9], %4 {strides = array<i32>} : memref<176x128xf32, #tpu.memory_space<vmem>>, vector<56x8xf32>,
    %c32 = arith.constant 32 : index
    %c32_10 = arith.constant 32 : index
    %9 = vector.load %arg5[%c32, %c32_10] : memref<176x128xf32, #tpu.memory_space<vmem>>, vector<56x8xf32>
    tpu.vector_store %arg5[%c32, %c32_10], %4 {strides = array<i32>} : memref<176x128xf32, #tpu.memory_space<vmem>>, vector<56x8xf32>,
    %c40 = arith.constant 40 : index
    %c40_11 = arith.constant 40 : index
    %10 = vector.load %arg5[%c40, %c40_11] : memref<176x128xf32, #tpu.memory_space<vmem>>, vector<56x8xf32>
    tpu.vector_store %arg5[%c40, %c40_11], %4 {strides = array<i32>} : memref<176x128xf32, #tpu.memory_space<vmem>>, vector<56x8xf32>,
    %c48 = arith.constant 48 : index
    %c48_12 = arith.constant 48 : index
    %11 = vector.load %arg5[%c48, %c48_12] : memref<176x128xf32, #tpu.memory_space<vmem>>, vector<56x8xf32>
    tpu.vector_store %arg5[%c48, %c48_12], %4 {strides = array<i32>} : memref<176x128xf32, #tpu.memory_space<vmem>>, vector<56x8xf32>,
    %c56 = arith.constant 56 : index
    %c56_13 = arith.constant 56 : index
    %12 = vector.load %arg5[%c56, %c56_13] : memref<176x128xf32, #tpu.memory_space<vmem>>, vector<56x8xf32>
    tpu.vector_store %arg5[%c56, %c56_13], %4 {strides = array<i32>} : memref<176x128xf32, #tpu.memory_space<vmem>>, vector<56x8xf32>,
    %c64 = arith.constant 64 : index
    %c64_14 = arith.constant 64 : index
    %13 = vector.load %arg5[%c64, %c64_14] : memref<176x128xf32, #tpu.memory_space<vmem>>, vector<56x8xf32>
    tpu.vector_store %arg5[%c64, %c64_14], %4 {strides = array<i32>} : memref<176x128xf32, #tpu.memory_space<vmem>>, vector<56x8xf32>,
    %c72 = arith.constant 72 : index
    %c72_15 = arith.constant 72 : index
    %14 = vector.load %arg5[%c72, %c72_15] : memref<176x128xf32, #tpu.memory_space<vmem>>, vector<56x8xf32>
    tpu.vector_store %arg5[%c72, %c72_15], %4 {strides = array<i32>} : memref<176x128xf32, #tpu.memory_space<vmem>>, vector<56x8xf32>,
    %c80 = arith.constant 80 : index
    %c80_16 = arith.constant 80 : index
    %15 = vector.load %arg5[%c80, %c80_16] : memref<176x128xf32, #tpu.memory_space<vmem>>, vector<56x8xf32>
    tpu.vector_store %arg5[%c80, %c80_16], %4 {strides = array<i32>} : memref<176x128xf32, #tpu.memory_space<vmem>>, vector<56x8xf32>,
    %c88 = arith.constant 88 : index
    %c88_17 = arith.constant 88 : index
    %16 = vector.load %arg5[%c88, %c88_17] : memref<176x128xf32, #tpu.memory_space<vmem>>, vector<56x8xf32>
    tpu.vector_store %arg5[%c88, %c88_17], %4 {strides = array<i32>} : memref<176x128xf32, #tpu.memory_space<vmem>>, vector<56x8xf32>,
    %c96 = arith.constant 96 : index
    %c96_18 = arith.constant 96 : index
    %17 = vector.load %arg5[%c96, %c96_18] : memref<176x128xf32, #tpu.memory_space<vmem>>, vector<56x8xf32>
    tpu.vector_store %arg5[%c96, %c96_18], %4 {strides = array<i32>} : memref<176x128xf32, #tpu.memory_space<vmem>>, vector<56x8xf32>,
    %c104 = arith.constant 104 : index
    %c104_19 = arith.constant 104 : index
    %18 = vector.load %arg5[%c104, %c104_19] : memref<176x128xf32, #tpu.memory_space<vmem>>, vector<56x8xf32>
    tpu.vector_store %arg5[%c104, %c104_19], %4 {strides = array<i32>} : memref<176x128xf32, #tpu.memory_space<vmem>>, vector<56x8xf32>,
    %c112 = arith.constant 112 : index
    %c112_20 = arith.constant 112 : index
    %19 = vector.load %arg5[%c112, %c112_20] : memref<176x128xf32, #tpu.memory_space<vmem>>, vector<56x8xf32>
    tpu.vector_store %arg5[%c112, %c112_20], %4 {strides = array<i32>} : memref<176x128xf32, #tpu.memory_space<vmem>>, vector<56x8xf32>,
    %c120 = arith.constant 120 : index
    %c120_21 = arith.constant 120 : index
    %20 = vector.load %arg5[%c120, %c120_21] : memref<176x128xf32, #tpu.memory_space<vmem>>, vector<56x8xf32>
    tpu.vector_store %arg5[%c120, %c120_21], %4 {strides = array<i32>} : memref<176x128xf32, #tpu.memory_space<vmem>>, vector<56x8xf32>,
    %c0_22 = arith.constant 0 : index
    %c0_23 = arith.constant 0 : index
    %21 = vector.load %arg1[%c0_22, %c0_23] : memref<44x176xf32, #tpu.memory_space<vmem>>, vector<16x176xf32>
    %c22 = arith.constant 22 : index
    %c0_24 = arith.constant 0 : index
    %22 = vector.load %arg1[%c22, %c0_24] : memref<44x176xf32, #tpu.memory_space<vmem>>, vector<16x176xf32>
    %23 = tpu.concatenate %21, %22 in 0 : vector<16x176xf32>, vector<16x176xf32> -> vector<32x176xf32>
    %c0_25 = arith.constant 0 : index
    %c0_26 = arith.constant 0 : index
    %24 = vector.load %arg5[%c0_25, %c0_26] : memref<176x128xf32, #tpu.memory_space<vmem>>, vector<176x128xf32>
    %cst_27 = arith.constant dense<0.000000e+00> : vector<32x128xf32>
    %25 = tpu.matmul %23, %24, %cst_27 {dimension_numbers = #tpu.dot_dimension_numbers<[1], [0], [0], [1], [0, 0, 1, 1], [], []>} : vector<32x176xf32>, vector<176x128xf32>, vector<32x128xf32> -> vector<32x128xf32>
    %26 = arith.addf %2, %25 : vector<32x128xf32>
    %c1 = arith.constant 1 : index
    %c0_28 = arith.constant 0 : index
    %c0_29 = arith.constant 0 : index
    %27 = vector.load %arg2[%c1, %c0_28, %c0_29] : memref<7x56x8xf32, #tpu.memory_space<vmem>>, vector<1x56x8xf32>
    %28 = vector.shape_cast %27 : vector<1x56x8xf32> to vector<56x8xf32>
    %c0_30 = arith.constant 0 : index
    %c0_31 = arith.constant 0 : index
    %29 = vector.load %arg5[%c0_30, %c0_31] : memref<176x128xf32, #tpu.memory_space<vmem>>, vector<56x8xf32>
    tpu.vector_store %arg5[%c0_30, %c0_31], %28 {strides = array<i32>} : memref<176x128xf32, #tpu.memory_space<vmem>>, vector<56x8xf32>,
    %c8_32 = arith.constant 8 : index
    %c8_33 = arith.constant 8 : index
    %30 = vector.load %arg5[%c8_32, %c8_33] : memref<176x128xf32, #tpu.memory_space<vmem>>, vector<56x8xf32>
    tpu.vector_store %arg5[%c8_32, %c8_33], %28 {strides = array<i32>} : memref<176x128xf32, #tpu.memory_space<vmem>>, vector<56x8xf32>,
    %c16_34 = arith.constant 16 : index
    %c16_35 = arith.constant 16 : index
    %31 = vector.load %arg5[%c16_34, %c16_35] : memref<176x128xf32, #tpu.memory_space<vmem>>, vector<56x8xf32>
    tpu.vector_store %arg5[%c16_34, %c16_35], %28 {strides = array<i32>} : memref<176x128xf32, #tpu.memory_space<vmem>>, vector<56x8xf32>,
    %c24_36 = arith.constant 24 : index
    %c24_37 = arith.constant 24 : index
    %32 = vector.load %arg5[%c24_36, %c24_37] : memref<176x128xf32, #tpu.memory_space<vmem>>, vector<56x8xf32>
    tpu.vector_store %arg5[%c24_36, %c24_37], %28 {strides = array<i32>} : memref<176x128xf32, #tpu.memory_space<vmem>>, vector<56x8xf32>,
    %c32_38 = arith.constant 32 : index
    %c32_39 = arith.constant 32 : index
    %33 = vector.load %arg5[%c32_38, %c32_39] : memref<176x128xf32, #tpu.memory_space<vmem>>, vector<56x8xf32>
    tpu.vector_store %arg5[%c32_38, %c32_39], %28 {strides = array<i32>} : memref<176x128xf32, #tpu.memory_space<vmem>>, vector<56x8xf32>,
    %c40_40 = arith.constant 40 : index
    %c40_41 = arith.constant 40 : index
    %34 = vector.load %arg5[%c40_40, %c40_41] : memref<176x128xf32, #tpu.memory_space<vmem>>, vector<56x8xf32>
    tpu.vector_store %arg5[%c40_40, %c40_41], %28 {strides = array<i32>} : memref<176x128xf32, #tpu.memory_space<vmem>>, vector<56x8xf32>,
    %c48_42 = arith.constant 48 : index
    %c48_43 = arith.constant 48 : index
    %35 = vector.load %arg5[%c48_42, %c48_43] : memref<176x128xf32, #tpu.memory_space<vmem>>, vector<56x8xf32>
    tpu.vector_store %arg5[%c48_42, %c48_43], %28 {strides = array<i32>} : memref<176x128xf32, #tpu.memory_space<vmem>>, vector<56x8xf32>,
    %c56_44 = arith.constant 56 : index
    %c56_45 = arith.constant 56 : index
    %36 = vector.load %arg5[%c56_44, %c56_45] : memref<176x128xf32, #tpu.memory_space<vmem>>, vector<56x8xf32>
    tpu.vector_store %arg5[%c56_44, %c56_45], %28 {strides = array<i32>} : memref<176x128xf32, #tpu.memory_space<vmem>>, vector<56x8xf32>,
    %c64_46 = arith.constant 64 : index
    %c64_47 = arith.constant 64 : index
    %37 = vector.load %arg5[%c64_46, %c64_47] : memref<176x128xf32, #tpu.memory_space<vmem>>, vector<56x8xf32>
    tpu.vector_store %arg5[%c64_46, %c64_47], %28 {strides = array<i32>} : memref<176x128xf32, #tpu.memory_space<vmem>>, vector<56x8xf32>,
    %c72_48 = arith.constant 72 : index
    %c72_49 = arith.constant 72 : index
    %38 = vector.load %arg5[%c72_48, %c72_49] : memref<176x128xf32, #tpu.memory_space<vmem>>, vector<56x8xf32>
    tpu.vector_store %arg5[%c72_48, %c72_49], %28 {strides = array<i32>} : memref<176x128xf32, #tpu.memory_space<vmem>>, vector<56x8xf32>,
    %c80_50 = arith.constant 80 : index
    %c80_51 = arith.constant 80 : index
    %39 = vector.load %arg5[%c80_50, %c80_51] : memref<176x128xf32, #tpu.memory_space<vmem>>, vector<56x8xf32>
    tpu.vector_store %arg5[%c80_50, %c80_51], %28 {strides = array<i32>} : memref<176x128xf32, #tpu.memory_space<vmem>>, vector<56x8xf32>,
    %c88_52 = arith.constant 88 : index
    %c88_53 = arith.constant 88 : index
    %40 = vector.load %arg5[%c88_52, %c88_53] : memref<176x128xf32, #tpu.memory_space<vmem>>, vector<56x8xf32>
    tpu.vector_store %arg5[%c88_52, %c88_53], %28 {strides = array<i32>} : memref<176x128xf32, #tpu.memory_space<vmem>>, vector<56x8xf32>,
    %c96_54 = arith.constant 96 : index
    %c96_55 = arith.constant 96 : index
    %41 = vector.load %arg5[%c96_54, %c96_55] : memref<176x128xf32, #tpu.memory_space<vmem>>, vector<56x8xf32>
    tpu.vector_store %arg5[%c96_54, %c96_55], %28 {strides = array<i32>} : memref<176x128xf32, #tpu.memory_space<vmem>>, vector<56x8xf32>,
    %c104_56 = arith.constant 104 : index
    %c104_57 = arith.constant 104 : index
    %42 = vector.load %arg5[%c104_56, %c104_57] : memref<176x128xf32, #tpu.memory_space<vmem>>, vector<56x8xf32>
    tpu.vector_store %arg5[%c104_56, %c104_57], %28 {strides = array<i32>} : memref<176x128xf32, #tpu.memory_space<vmem>>, vector<56x8xf32>,
    %c112_58 = arith.constant 112 : index
    %c112_59 = arith.constant 112 : index
    %43 = vector.load %arg5[%c112_58, %c112_59] : memref<176x128xf32, #tpu.memory_space<vmem>>, vector<56x8xf32>
    tpu.vector_store %arg5[%c112_58, %c112_59], %28 {strides = array<i32>} : memref<176x128xf32, #tpu.memory_space<vmem>>, vector<56x8xf32>,
    %c120_60 = arith.constant 120 : index
    %c120_61 = arith.constant 120 : index
    %44 = vector.load %arg5[%c120_60, %c120_61] : memref<176x128xf32, #tpu.memory_space<vmem>>, vector<56x8xf32>
    tpu.vector_store %arg5[%c120_60, %c120_61], %28 {strides = array<i32>} : memref<176x128xf32, #tpu.memory_space<vmem>>, vector<56x8xf32>,
    %c1_62 = arith.constant 1 : index
    %c0_63 = arith.constant 0 : index
    %45 = vector.load %arg1[%c1_62, %c0_63] : memref<44x176xf32, #tpu.memory_space<vmem>>, vector<16x176xf32>
    %c23 = arith.constant 23 : index
    %c0_64 = arith.constant 0 : index
    %46 = vector.load %arg1[%c23, %c0_64] : memref<44x176xf32, #tpu.memory_space<vmem>>, vector<16x176xf32>
    %47 = tpu.concatenate %45, %46 in 0 : vector<16x176xf32>, vector<16x176xf32> -> vector<32x176xf32>
    %c0_65 = arith.constant 0 : index
    %c0_66 = arith.constant 0 : index
    %48 = vector.load %arg5[%c0_65, %c0_66] : memref<176x128xf32, #tpu.memory_space<vmem>>, vector<176x128xf32>
    %cst_67 = arith.constant dense<0.000000e+00> : vector<32x128xf32>
    %49 = tpu.matmul %47, %48, %cst_67 {dimension_numbers = #tpu.dot_dimension_numbers<[1], [0], [0], [1], [0, 0, 1, 1], [], []>} : vector<32x176xf32>, vector<176x128xf32>, vector<32x128xf32> -> vector<32x128xf32>
    %50 = arith.addf %26, %49 : vector<32x128xf32>
    %c2 = arith.constant 2 : index
    %c0_68 = arith.constant 0 : index
    %c0_69 = arith.constant 0 : index
    %51 = vector.load %arg2[%c2, %c0_68, %c0_69] : memref<7x56x8xf32, #tpu.memory_space<vmem>>, vector<1x56x8xf32>
    %52 = vector.shape_cast %51 : vector<1x56x8xf32> to vector<56x8xf32>
    %c0_70 = arith.constant 0 : index
    %c0_71 = arith.constant 0 : index
    %53 = vector.load %arg5[%c0_70, %c0_71] : memref<176x128xf32, #tpu.memory_space<vmem>>, vector<56x8xf32>
    tpu.vector_store %arg5[%c0_70, %c0_71], %52 {strides = array<i32>} : memref<176x128xf32, #tpu.memory_space<vmem>>, vector<56x8xf32>,
    %c8_72 = arith.constant 8 : index
    %c8_73 = arith.constant 8 : index
    %54 = vector.load %arg5[%c8_72, %c8_73] : memref<176x128xf32, #tpu.memory_space<vmem>>, vector<56x8xf32>
    tpu.vector_store %arg5[%c8_72, %c8_73], %52 {strides = array<i32>} : memref<176x128xf32, #tpu.memory_space<vmem>>, vector<56x8xf32>,
    %c16_74 = arith.constant 16 : index
    %c16_75 = arith.constant 16 : index
    %55 = vector.load %arg5[%c16_74, %c16_75] : memref<176x128xf32, #tpu.memory_space<vmem>>, vector<56x8xf32>
    tpu.vector_store %arg5[%c16_74, %c16_75], %52 {strides = array<i32>} : memref<176x128xf32, #tpu.memory_space<vmem>>, vector<56x8xf32>,
    %c24_76 = arith.constant 24 : index
    %c24_77 = arith.constant 24 : index
    %56 = vector.load %arg5[%c24_76, %c24_77] : memref<176x128xf32, #tpu.memory_space<vmem>>, vector<56x8xf32>
    tpu.vector_store %arg5[%c24_76, %c24_77], %52 {strides = array<i32>} : memref<176x128xf32, #tpu.memory_space<vmem>>, vector<56x8xf32>,
    %c32_78 = arith.constant 32 : index
    %c32_79 = arith.constant 32 : index
    %57 = vector.load %arg5[%c32_78, %c32_79] : memref<176x128xf32, #tpu.memory_space<vmem>>, vector<56x8xf32>
    tpu.vector_store %arg5[%c32_78, %c32_79], %52 {strides = array<i32>} : memref<176x128xf32, #tpu.memory_space<vmem>>, vector<56x8xf32>,
    %c40_80 = arith.constant 40 : index
    %c40_81 = arith.constant 40 : index
    %58 = vector.load %arg5[%c40_80, %c40_81] : memref<176x128xf32, #tpu.memory_space<vmem>>, vector<56x8xf32>
    tpu.vector_store %arg5[%c40_80, %c40_81], %52 {strides = array<i32>} : memref<176x128xf32, #tpu.memory_space<vmem>>, vector<56x8xf32>,
    %c48_82 = arith.constant 48 : index
    %c48_83 = arith.constant 48 : index
    %59 = vector.load %arg5[%c48_82, %c48_83] : memref<176x128xf32, #tpu.memory_space<vmem>>, vector<56x8xf32>
    tpu.vector_store %arg5[%c48_82, %c48_83], %52 {strides = array<i32>} : memref<176x128xf32, #tpu.memory_space<vmem>>, vector<56x8xf32>,
    %c56_84 = arith.constant 56 : index
    %c56_85 = arith.constant 56 : index
    %60 = vector.load %arg5[%c56_84, %c56_85] : memref<176x128xf32, #tpu.memory_space<vmem>>, vector<56x8xf32>
    tpu.vector_store %arg5[%c56_84, %c56_85], %52 {strides = array<i32>} : memref<176x128xf32, #tpu.memory_space<vmem>>, vector<56x8xf32>,
    %c64_86 = arith.constant 64 : index
    %c64_87 = arith.constant 64 : index
    %61 = vector.load %arg5[%c64_86, %c64_87] : memref<176x128xf32, #tpu.memory_space<vmem>>, vector<56x8xf32>
    tpu.vector_store %arg5[%c64_86, %c64_87], %52 {strides = array<i32>} : memref<176x128xf32, #tpu.memory_space<vmem>>, vector<56x8xf32>,
    %c72_88 = arith.constant 72 : index
    %c72_89 = arith.constant 72 : index
    %62 = vector.load %arg5[%c72_88, %c72_89] : memref<176x128xf32, #tpu.memory_space<vmem>>, vector<56x8xf32>
    tpu.vector_store %arg5[%c72_88, %c72_89], %52 {strides = array<i32>} : memref<176x128xf32, #tpu.memory_space<vmem>>, vector<56x8xf32>,
    %c80_90 = arith.constant 80 : index
    %c80_91 = arith.constant 80 : index
    %63 = vector.load %arg5[%c80_90, %c80_91] : memref<176x128xf32, #tpu.memory_space<vmem>>, vector<56x8xf32>
    tpu.vector_store %arg5[%c80_90, %c80_91], %52 {strides = array<i32>} : memref<176x128xf32, #tpu.memory_space<vmem>>, vector<56x8xf32>,
    %c88_92 = arith.constant 88 : index
    %c88_93 = arith.constant 88 : index
    %64 = vector.load %arg5[%c88_92, %c88_93] : memref<176x128xf32, #tpu.memory_space<vmem>>, vector<56x8xf32>
    tpu.vector_store %arg5[%c88_92, %c88_93], %52 {strides = array<i32>} : memref<176x128xf32, #tpu.memory_space<vmem>>, vector<56x8xf32>,
    %c96_94 = arith.constant 96 : index
    %c96_95 = arith.constant 96 : index
    %65 = vector.load %arg5[%c96_94, %c96_95] : memref<176x128xf32, #tpu.memory_space<vmem>>, vector<56x8xf32>
    tpu.vector_store %arg5[%c96_94, %c96_95], %52 {strides = array<i32>} : memref<176x128xf32, #tpu.memory_space<vmem>>, vector<56x8xf32>,
    %c104_96 = arith.constant 104 : index
    %c104_97 = arith.constant 104 : index
    %66 = vector.load %arg5[%c104_96, %c104_97] : memref<176x128xf32, #tpu.memory_space<vmem>>, vector<56x8xf32>
    tpu.vector_store %arg5[%c104_96, %c104_97], %52 {strides = array<i32>} : memref<176x128xf32, #tpu.memory_space<vmem>>, vector<56x8xf32>,
    %c112_98 = arith.constant 112 : index
    %c112_99 = arith.constant 112 : index
    %67 = vector.load %arg5[%c112_98, %c112_99] : memref<176x128xf32, #tpu.memory_space<vmem>>, vector<56x8xf32>
    tpu.vector_store %arg5[%c112_98, %c112_99], %52 {strides = array<i32>} : memref<176x128xf32, #tpu.memory_space<vmem>>, vector<56x8xf32>,
    %c120_100 = arith.constant 120 : index
    %c120_101 = arith.constant 120 : index
    %68 = vector.load %arg5[%c120_100, %c120_101] : memref<176x128xf32, #tpu.memory_space<vmem>>, vector<56x8xf32>
    tpu.vector_store %arg5[%c120_100, %c120_101], %52 {strides = array<i32>} : memref<176x128xf32, #tpu.memory_space<vmem>>, vector<56x8xf32>,
    %c2_102 = arith.constant 2 : index
    %c0_103 = arith.constant 0 : index
    %69 = vector.load %arg1[%c2_102, %c0_103] : memref<44x176xf32, #tpu.memory_space<vmem>>, vector<16x176xf32>
    %c24_104 = arith.constant 24 : index
    %c0_105 = arith.constant 0 : index
    %70 = vector.load %arg1[%c24_104, %c0_105] : memref<44x176xf32, #tpu.memory_space<vmem>>, vector<16x176xf32>
    %71 = tpu.concatenate %69, %70 in 0 : vector<16x176xf32>, vector<16x176xf32> -> vector<32x176xf32>
    %c0_106 = arith.constant 0 : index
    %c0_107 = arith.constant 0 : index
    %72 = vector.load %arg5[%c0_106, %c0_107] : memref<176x128xf32, #tpu.memory_space<vmem>>, vector<176x128xf32>
    %cst_108 = arith.constant dense<0.000000e+00> : vector<32x128xf32>
    %73 = tpu.matmul %71, %72, %cst_108 {dimension_numbers = #tpu.dot_dimension_numbers<[1], [0], [0], [1], [0, 0, 1, 1], [], []>} : vector<32x176xf32>, vector<176x128xf32>, vector<32x128xf32> -> vector<32x128xf32>
    %74 = arith.addf %50, %73 : vector<32x128xf32>
    %c3 = arith.constant 3 : index
    %c0_109 = arith.constant 0 : index
    %c0_110 = arith.constant 0 : index
    %75 = vector.load %arg2[%c3, %c0_109, %c0_110] : memref<7x56x8xf32, #tpu.memory_space<vmem>>, vector<1x56x8xf32>
    %76 = vector.shape_cast %75 : vector<1x56x8xf32> to vector<56x8xf32>
    %c0_111 = arith.constant 0 : index
    %c0_112 = arith.constant 0 : index
    %77 = vector.load %arg5[%c0_111, %c0_112] : memref<176x128xf32, #tpu.memory_space<vmem>>, vector<56x8xf32>
    tpu.vector_store %arg5[%c0_111, %c0_112], %76 {strides = array<i32>} : memref<176x128xf32, #tpu.memory_space<vmem>>, vector<56x8xf32>,
    %c8_113 = arith.constant 8 : index
    %c8_114 = arith.constant 8 : index
    %78 = vector.load %arg5[%c8_113, %c8_114] : memref<176x128xf32, #tpu.memory_space<vmem>>, vector<56x8xf32>
    tpu.vector_store %arg5[%c8_113, %c8_114], %76 {strides = array<i32>} : memref<176x128xf32, #tpu.memory_space<vmem>>, vector<56x8xf32>,
    %c16_115 = arith.constant 16 : index
    %c16_116 = arith.constant 16 : index
    %79 = vector.load %arg5[%c16_115, %c16_116] : memref<176x128xf32, #tpu.memory_space<vmem>>, vector<56x8xf32>
    tpu.vector_store %arg5[%c16_115, %c16_116], %76 {strides = array<i32>} : memref<176x128xf32, #tpu.memory_space<vmem>>, vector<56x8xf32>,
    %c24_117 = arith.constant 24 : index
    %c24_118 = arith.constant 24 : index
    %80 = vector.load %arg5[%c24_117, %c24_118] : memref<176x128xf32, #tpu.memory_space<vmem>>, vector<56x8xf32>
    tpu.vector_store %arg5[%c24_117, %c24_118], %76 {strides = array<i32>} : memref<176x128xf32, #tpu.memory_space<vmem>>, vector<56x8xf32>,
    %c32_119 = arith.constant 32 : index
    %c32_120 = arith.constant 32 : index
    %81 = vector.load %arg5[%c32_119, %c32_120] : memref<176x128xf32, #tpu.memory_space<vmem>>, vector<56x8xf32>
    tpu.vector_store %arg5[%c32_119, %c32_120], %76 {strides = array<i32>} : memref<176x128xf32, #tpu.memory_space<vmem>>, vector<56x8xf32>,
    %c40_121 = arith.constant 40 : index
    %c40_122 = arith.constant 40 : index
    %82 = vector.load %arg5[%c40_121, %c40_122] : memref<176x128xf32, #tpu.memory_space<vmem>>, vector<56x8xf32>
    tpu.vector_store %arg5[%c40_121, %c40_122], %76 {strides = array<i32>} : memref<176x128xf32, #tpu.memory_space<vmem>>, vector<56x8xf32>,
    %c48_123 = arith.constant 48 : index
    %c48_124 = arith.constant 48 : index
    %83 = vector.load %arg5[%c48_123, %c48_124] : memref<176x128xf32, #tpu.memory_space<vmem>>, vector<56x8xf32>
    tpu.vector_store %arg5[%c48_123, %c48_124], %76 {strides = array<i32>} : memref<176x128xf32, #tpu.memory_space<vmem>>, vector<56x8xf32>,
    %c56_125 = arith.constant 56 : index
    %c56_126 = arith.constant 56 : index
    %84 = vector.load %arg5[%c56_125, %c56_126] : memref<176x128xf32, #tpu.memory_space<vmem>>, vector<56x8xf32>
    tpu.vector_store %arg5[%c56_125, %c56_126], %76 {strides = array<i32>} : memref<176x128xf32, #tpu.memory_space<vmem>>, vector<56x8xf32>,
    %c64_127 = arith.constant 64 : index
    %c64_128 = arith.constant 64 : index
    %85 = vector.load %arg5[%c64_127, %c64_128] : memref<176x128xf32, #tpu.memory_space<vmem>>, vector<56x8xf32>
    tpu.vector_store %arg5[%c64_127, %c64_128], %76 {strides = array<i32>} : memref<176x128xf32, #tpu.memory_space<vmem>>, vector<56x8xf32>,
    %c72_129 = arith.constant 72 : index
    %c72_130 = arith.constant 72 : index
    %86 = vector.load %arg5[%c72_129, %c72_130] : memref<176x128xf32, #tpu.memory_space<vmem>>, vector<56x8xf32>
    tpu.vector_store %arg5[%c72_129, %c72_130], %76 {strides = array<i32>} : memref<176x128xf32, #tpu.memory_space<vmem>>, vector<56x8xf32>,
    %c80_131 = arith.constant 80 : index
    %c80_132 = arith.constant 80 : index
    %87 = vector.load %arg5[%c80_131, %c80_132] : memref<176x128xf32, #tpu.memory_space<vmem>>, vector<56x8xf32>
    tpu.vector_store %arg5[%c80_131, %c80_132], %76 {strides = array<i32>} : memref<176x128xf32, #tpu.memory_space<vmem>>, vector<56x8xf32>,
    %c88_133 = arith.constant 88 : index
    %c88_134 = arith.constant 88 : index
    %88 = vector.load %arg5[%c88_133, %c88_134] : memref<176x128xf32, #tpu.memory_space<vmem>>, vector<56x8xf32>
    tpu.vector_store %arg5[%c88_133, %c88_134], %76 {strides = array<i32>} : memref<176x128xf32, #tpu.memory_space<vmem>>, vector<56x8xf32>,
    %c96_135 = arith.constant 96 : index
    %c96_136 = arith.constant 96 : index
    %89 = vector.load %arg5[%c96_135, %c96_136] : memref<176x128xf32, #tpu.memory_space<vmem>>, vector<56x8xf32>
    tpu.vector_store %arg5[%c96_135, %c96_136], %76 {strides = array<i32>} : memref<176x128xf32, #tpu.memory_space<vmem>>, vector<56x8xf32>,
    %c104_137 = arith.constant 104 : index
    %c104_138 = arith.constant 104 : index
    %90 = vector.load %arg5[%c104_137, %c104_138] : memref<176x128xf32, #tpu.memory_space<vmem>>, vector<56x8xf32>
    tpu.vector_store %arg5[%c104_137, %c104_138], %76 {strides = array<i32>} : memref<176x128xf32, #tpu.memory_space<vmem>>, vector<56x8xf32>,
    %c112_139 = arith.constant 112 : index
    %c112_140 = arith.constant 112 : index
    %91 = vector.load %arg5[%c112_139, %c112_140] : memref<176x128xf32, #tpu.memory_space<vmem>>, vector<56x8xf32>
    tpu.vector_store %arg5[%c112_139, %c112_140], %76 {strides = array<i32>} : memref<176x128xf32, #tpu.memory_space<vmem>>, vector<56x8xf32>,
    %c120_141 = arith.constant 120 : index
    %c120_142 = arith.constant 120 : index
    %92 = vector.load %arg5[%c120_141, %c120_142] : memref<176x128xf32, #tpu.memory_space<vmem>>, vector<56x8xf32>
    tpu.vector_store %arg5[%c120_141, %c120_142], %76 {strides = array<i32>} : memref<176x128xf32, #tpu.memory_space<vmem>>, vector<56x8xf32>,
    %c3_143 = arith.constant 3 : index
    %c0_144 = arith.constant 0 : index
    %93 = vector.load %arg1[%c3_143, %c0_144] : memref<44x176xf32, #tpu.memory_space<vmem>>, vector<16x176xf32>
    %c25 = arith.constant 25 : index
    %c0_145 = arith.constant 0 : index
    %94 = vector.load %arg1[%c25, %c0_145] : memref<44x176xf32, #tpu.memory_space<vmem>>, vector<16x176xf32>
    %95 = tpu.concatenate %93, %94 in 0 : vector<16x176xf32>, vector<16x176xf32> -> vector<32x176xf32>
    %c0_146 = arith.constant 0 : index
    %c0_147 = arith.constant 0 : index
    %96 = vector.load %arg5[%c0_146, %c0_147] : memref<176x128xf32, #tpu.memory_space<vmem>>, vector<176x128xf32>
    %cst_148 = arith.constant dense<0.000000e+00> : vector<32x128xf32>
    %97 = tpu.matmul %95, %96, %cst_148 {dimension_numbers = #tpu.dot_dimension_numbers<[1], [0], [0], [1], [0, 0, 1, 1], [], []>} : vector<32x176xf32>, vector<176x128xf32>, vector<32x128xf32> -> vector<32x128xf32>
    %98 = arith.addf %74, %97 : vector<32x128xf32>
    %c4 = arith.constant 4 : index
    %c0_149 = arith.constant 0 : index
    %c0_150 = arith.constant 0 : index
    %99 = vector.load %arg2[%c4, %c0_149, %c0_150] : memref<7x56x8xf32, #tpu.memory_space<vmem>>, vector<1x56x8xf32>
    %100 = vector.shape_cast %99 : vector<1x56x8xf32> to vector<56x8xf32>
    %c0_151 = arith.constant 0 : index
    %c0_152 = arith.constant 0 : index
    %101 = vector.load %arg5[%c0_151, %c0_152] : memref<176x128xf32, #tpu.memory_space<vmem>>, vector<56x8xf32>
    tpu.vector_store %arg5[%c0_151, %c0_152], %100 {strides = array<i32>} : memref<176x128xf32, #tpu.memory_space<vmem>>, vector<56x8xf32>,
    %c8_153 = arith.constant 8 : index
    %c8_154 = arith.constant 8 : index
    %102 = vector.load %arg5[%c8_153, %c8_154] : memref<176x128xf32, #tpu.memory_space<vmem>>, vector<56x8xf32>
    tpu.vector_store %arg5[%c8_153, %c8_154], %100 {strides = array<i32>} : memref<176x128xf32, #tpu.memory_space<vmem>>, vector<56x8xf32>,
    %c16_155 = arith.constant 16 : index
    %c16_156 = arith.constant 16 : index
    %103 = vector.load %arg5[%c16_155, %c16_156] : memref<176x128xf32, #tpu.memory_space<vmem>>, vector<56x8xf32>
    tpu.vector_store %arg5[%c16_155, %c16_156], %100 {strides = array<i32>} : memref<176x128xf32, #tpu.memory_space<vmem>>, vector<56x8xf32>,
    %c24_157 = arith.constant 24 : index
    %c24_158 = arith.constant 24 : index
    %104 = vector.load %arg5[%c24_157, %c24_158] : memref<176x128xf32, #tpu.memory_space<vmem>>, vector<56x8xf32>
    tpu.vector_store %arg5[%c24_157, %c24_158], %100 {strides = array<i32>} : memref<176x128xf32, #tpu.memory_space<vmem>>, vector<56x8xf32>,
    %c32_159 = arith.constant 32 : index
    %c32_160 = arith.constant 32 : index
    %105 = vector.load %arg5[%c32_159, %c32_160] : memref<176x128xf32, #tpu.memory_space<vmem>>, vector<56x8xf32>
    tpu.vector_store %arg5[%c32_159, %c32_160], %100 {strides = array<i32>} : memref<176x128xf32, #tpu.memory_space<vmem>>, vector<56x8xf32>,
    %c40_161 = arith.constant 40 : index
    %c40_162 = arith.constant 40 : index
    %106 = vector.load %arg5[%c40_161, %c40_162] : memref<176x128xf32, #tpu.memory_space<vmem>>, vector<56x8xf32>
    tpu.vector_store %arg5[%c40_161, %c40_162], %100 {strides = array<i32>} : memref<176x128xf32, #tpu.memory_space<vmem>>, vector<56x8xf32>,
    %c48_163 = arith.constant 48 : index
    %c48_164 = arith.constant 48 : index
    %107 = vector.load %arg5[%c48_163, %c48_164] : memref<176x128xf32, #tpu.memory_space<vmem>>, vector<56x8xf32>
    tpu.vector_store %arg5[%c48_163, %c48_164], %100 {strides = array<i32>} : memref<176x128xf32, #tpu.memory_space<vmem>>, vector<56x8xf32>,
    %c56_165 = arith.constant 56 : index
    %c56_166 = arith.constant 56 : index
    %108 = vector.load %arg5[%c56_165, %c56_166] : memref<176x128xf32, #tpu.memory_space<vmem>>, vector<56x8xf32>
    tpu.vector_store %arg5[%c56_165, %c56_166], %100 {strides = array<i32>} : memref<176x128xf32, #tpu.memory_space<vmem>>, vector<56x8xf32>,
    %c64_167 = arith.constant 64 : index
    %c64_168 = arith.constant 64 : index
    %109 = vector.load %arg5[%c64_167, %c64_168] : memref<176x128xf32, #tpu.memory_space<vmem>>, vector<56x8xf32>
    tpu.vector_store %arg5[%c64_167, %c64_168], %100 {strides = array<i32>} : memref<176x128xf32, #tpu.memory_space<vmem>>, vector<56x8xf32>,
    %c72_169 = arith.constant 72 : index
    %c72_170 = arith.constant 72 : index
    %110 = vector.load %arg5[%c72_169, %c72_170] : memref<176x128xf32, #tpu.memory_space<vmem>>, vector<56x8xf32>
    tpu.vector_store %arg5[%c72_169, %c72_170], %100 {strides = array<i32>} : memref<176x128xf32, #tpu.memory_space<vmem>>, vector<56x8xf32>,
    %c80_171 = arith.constant 80 : index
    %c80_172 = arith.constant 80 : index
    %111 = vector.load %arg5[%c80_171, %c80_172] : memref<176x128xf32, #tpu.memory_space<vmem>>, vector<56x8xf32>
    tpu.vector_store %arg5[%c80_171, %c80_172], %100 {strides = array<i32>} : memref<176x128xf32, #tpu.memory_space<vmem>>, vector<56x8xf32>,
    %c88_173 = arith.constant 88 : index
    %c88_174 = arith.constant 88 : index
    %112 = vector.load %arg5[%c88_173, %c88_174] : memref<176x128xf32, #tpu.memory_space<vmem>>, vector<56x8xf32>
    tpu.vector_store %arg5[%c88_173, %c88_174], %100 {strides = array<i32>} : memref<176x128xf32, #tpu.memory_space<vmem>>, vector<56x8xf32>,
    %c96_175 = arith.constant 96 : index
    %c96_176 = arith.constant 96 : index
    %113 = vector.load %arg5[%c96_175, %c96_176] : memref<176x128xf32, #tpu.memory_space<vmem>>, vector<56x8xf32>
    tpu.vector_store %arg5[%c96_175, %c96_176], %100 {strides = array<i32>} : memref<176x128xf32, #tpu.memory_space<vmem>>, vector<56x8xf32>,
    %c104_177 = arith.constant 104 : index
    %c104_178 = arith.constant 104 : index
    %114 = vector.load %arg5[%c104_177, %c104_178] : memref<176x128xf32, #tpu.memory_space<vmem>>, vector<56x8xf32>
    tpu.vector_store %arg5[%c104_177, %c104_178], %100 {strides = array<i32>} : memref<176x128xf32, #tpu.memory_space<vmem>>, vector<56x8xf32>,
    %c112_179 = arith.constant 112 : index
    %c112_180 = arith.constant 112 : index
    %115 = vector.load %arg5[%c112_179, %c112_180] : memref<176x128xf32, #tpu.memory_space<vmem>>, vector<56x8xf32>
    tpu.vector_store %arg5[%c112_179, %c112_180], %100 {strides = array<i32>} : memref<176x128xf32, #tpu.memory_space<vmem>>, vector<56x8xf32>,
    %c120_181 = arith.constant 120 : index
    %c120_182 = arith.constant 120 : index
    %116 = vector.load %arg5[%c120_181, %c120_182] : memref<176x128xf32, #tpu.memory_space<vmem>>, vector<56x8xf32>
    tpu.vector_store %arg5[%c120_181, %c120_182], %100 {strides = array<i32>} : memref<176x128xf32, #tpu.memory_space<vmem>>, vector<56x8xf32>,
    %c4_183 = arith.constant 4 : index
    %c0_184 = arith.constant 0 : index
    %117 = vector.load %arg1[%c4_183, %c0_184] : memref<44x176xf32, #tpu.memory_space<vmem>>, vector<16x176xf32>
    %c26 = arith.constant 26 : index
    %c0_185 = arith.constant 0 : index
    %118 = vector.load %arg1[%c26, %c0_185] : memref<44x176xf32, #tpu.memory_space<vmem>>, vector<16x176xf32>
    %119 = tpu.concatenate %117, %118 in 0 : vector<16x176xf32>, vector<16x176xf32> -> vector<32x176xf32>
    %c0_186 = arith.constant 0 : index
    %c0_187 = arith.constant 0 : index
    %120 = vector.load %arg5[%c0_186, %c0_187] : memref<176x128xf32, #tpu.memory_space<vmem>>, vector<176x128xf32>
    %cst_188 = arith.constant dense<0.000000e+00> : vector<32x128xf32>
    %121 = tpu.matmul %119, %120, %cst_188 {dimension_numbers = #tpu.dot_dimension_numbers<[1], [0], [0], [1], [0, 0, 1, 1], [], []>} : vector<32x176xf32>, vector<176x128xf32>, vector<32x128xf32> -> vector<32x128xf32>
    %122 = arith.addf %98, %121 : vector<32x128xf32>
    %c5 = arith.constant 5 : index
    %c0_189 = arith.constant 0 : index
    %c0_190 = arith.constant 0 : index
    %123 = vector.load %arg2[%c5, %c0_189, %c0_190] : memref<7x56x8xf32, #tpu.memory_space<vmem>>, vector<1x56x8xf32>
    %124 = vector.shape_cast %123 : vector<1x56x8xf32> to vector<56x8xf32>
    %c0_191 = arith.constant 0 : index
    %c0_192 = arith.constant 0 : index
    %125 = vector.load %arg5[%c0_191, %c0_192] : memref<176x128xf32, #tpu.memory_space<vmem>>, vector<56x8xf32>
    tpu.vector_store %arg5[%c0_191, %c0_192], %124 {strides = array<i32>} : memref<176x128xf32, #tpu.memory_space<vmem>>, vector<56x8xf32>,
    %c8_193 = arith.constant 8 : index
    %c8_194 = arith.constant 8 : index
    %126 = vector.load %arg5[%c8_193, %c8_194] : memref<176x128xf32, #tpu.memory_space<vmem>>, vector<56x8xf32>
    tpu.vector_store %arg5[%c8_193, %c8_194], %124 {strides = array<i32>} : memref<176x128xf32, #tpu.memory_space<vmem>>, vector<56x8xf32>,
    %c16_195 = arith.constant 16 : index
    %c16_196 = arith.constant 16 : index
    %127 = vector.load %arg5[%c16_195, %c16_196] : memref<176x128xf32, #tpu.memory_space<vmem>>, vector<56x8xf32>
    tpu.vector_store %arg5[%c16_195, %c16_196], %124 {strides = array<i32>} : memref<176x128xf32, #tpu.memory_space<vmem>>, vector<56x8xf32>,
    %c24_197 = arith.constant 24 : index
    %c24_198 = arith.constant 24 : index
    %128 = vector.load %arg5[%c24_197, %c24_198] : memref<176x128xf32, #tpu.memory_space<vmem>>, vector<56x8xf32>
    tpu.vector_store %arg5[%c24_197, %c24_198], %124 {strides = array<i32>} : memref<176x128xf32, #tpu.memory_space<vmem>>, vector<56x8xf32>,
    %c32_199 = arith.constant 32 : index
    %c32_200 = arith.constant 32 : index
    %129 = vector.load %arg5[%c32_199, %c32_200] : memref<176x128xf32, #tpu.memory_space<vmem>>, vector<56x8xf32>
    tpu.vector_store %arg5[%c32_199, %c32_200], %124 {strides = array<i32>} : memref<176x128xf32, #tpu.memory_space<vmem>>, vector<56x8xf32>,
    %c40_201 = arith.constant 40 : index
    %c40_202 = arith.constant 40 : index
    %130 = vector.load %arg5[%c40_201, %c40_202] : memref<176x128xf32, #tpu.memory_space<vmem>>, vector<56x8xf32>
    tpu.vector_store %arg5[%c40_201, %c40_202], %124 {strides = array<i32>} : memref<176x128xf32, #tpu.memory_space<vmem>>, vector<56x8xf32>,
    %c48_203 = arith.constant 48 : index
    %c48_204 = arith.constant 48 : index
    %131 = vector.load %arg5[%c48_203, %c48_204] : memref<176x128xf32, #tpu.memory_space<vmem>>, vector<56x8xf32>
    tpu.vector_store %arg5[%c48_203, %c48_204], %124 {strides = array<i32>} : memref<176x128xf32, #tpu.memory_space<vmem>>, vector<56x8xf32>,
    %c56_205 = arith.constant 56 : index
    %c56_206 = arith.constant 56 : index
    %132 = vector.load %arg5[%c56_205, %c56_206] : memref<176x128xf32, #tpu.memory_space<vmem>>, vector<56x8xf32>
    tpu.vector_store %arg5[%c56_205, %c56_206], %124 {strides = array<i32>} : memref<176x128xf32, #tpu.memory_space<vmem>>, vector<56x8xf32>,
    %c64_207 = arith.constant 64 : index
    %c64_208 = arith.constant 64 : index
    %133 = vector.load %arg5[%c64_207, %c64_208] : memref<176x128xf32, #tpu.memory_space<vmem>>, vector<56x8xf32>
    tpu.vector_store %arg5[%c64_207, %c64_208], %124 {strides = array<i32>} : memref<176x128xf32, #tpu.memory_space<vmem>>, vector<56x8xf32>,
    %c72_209 = arith.constant 72 : index
    %c72_210 = arith.constant 72 : index
    %134 = vector.load %arg5[%c72_209, %c72_210] : memref<176x128xf32, #tpu.memory_space<vmem>>, vector<56x8xf32>
    tpu.vector_store %arg5[%c72_209, %c72_210], %124 {strides = array<i32>} : memref<176x128xf32, #tpu.memory_space<vmem>>, vector<56x8xf32>,
    %c80_211 = arith.constant 80 : index
    %c80_212 = arith.constant 80 : index
    %135 = vector.load %arg5[%c80_211, %c80_212] : memref<176x128xf32, #tpu.memory_space<vmem>>, vector<56x8xf32>
    tpu.vector_store %arg5[%c80_211, %c80_212], %124 {strides = array<i32>} : memref<176x128xf32, #tpu.memory_space<vmem>>, vector<56x8xf32>,
    %c88_213 = arith.constant 88 : index
    %c88_214 = arith.constant 88 : index
    %136 = vector.load %arg5[%c88_213, %c88_214] : memref<176x128xf32, #tpu.memory_space<vmem>>, vector<56x8xf32>
    tpu.vector_store %arg5[%c88_213, %c88_214], %124 {strides = array<i32>} : memref<176x128xf32, #tpu.memory_space<vmem>>, vector<56x8xf32>,
    %c96_215 = arith.constant 96 : index
    %c96_216 = arith.constant 96 : index
    %137 = vector.load %arg5[%c96_215, %c96_216] : memref<176x128xf32, #tpu.memory_space<vmem>>, vector<56x8xf32>
    tpu.vector_store %arg5[%c96_215, %c96_216], %124 {strides = array<i32>} : memref<176x128xf32, #tpu.memory_space<vmem>>, vector<56x8xf32>,
    %c104_217 = arith.constant 104 : index
    %c104_218 = arith.constant 104 : index
    %138 = vector.load %arg5[%c104_217, %c104_218] : memref<176x128xf32, #tpu.memory_space<vmem>>, vector<56x8xf32>
    tpu.vector_store %arg5[%c104_217, %c104_218], %124 {strides = array<i32>} : memref<176x128xf32, #tpu.memory_space<vmem>>, vector<56x8xf32>,
    %c112_219 = arith.constant 112 : index
    %c112_220 = arith.constant 112 : index
    %139 = vector.load %arg5[%c112_219, %c112_220] : memref<176x128xf32, #tpu.memory_space<vmem>>, vector<56x8xf32>
    tpu.vector_store %arg5[%c112_219, %c112_220], %124 {strides = array<i32>} : memref<176x128xf32, #tpu.memory_space<vmem>>, vector<56x8xf32>,
    %c120_221 = arith.constant 120 : index
    %c120_222 = arith.constant 120 : index
    %140 = vector.load %arg5[%c120_221, %c120_222] : memref<176x128xf32, #tpu.memory_space<vmem>>, vector<56x8xf32>
    tpu.vector_store %arg5[%c120_221, %c120_222], %124 {strides = array<i32>} : memref<176x128xf32, #tpu.memory_space<vmem>>, vector<56x8xf32>,
    %c5_223 = arith.constant 5 : index
    %c0_224 = arith.constant 0 : index
    %141 = vector.load %arg1[%c5_223, %c0_224] : memref<44x176xf32, #tpu.memory_space<vmem>>, vector<16x176xf32>
    %c27 = arith.constant 27 : index
    %c0_225 = arith.constant 0 : index
    %142 = vector.load %arg1[%c27, %c0_225] : memref<44x176xf32, #tpu.memory_space<vmem>>, vector<16x176xf32>
    %143 = tpu.concatenate %141, %142 in 0 : vector<16x176xf32>, vector<16x176xf32> -> vector<32x176xf32>
    %c0_226 = arith.constant 0 : index
    %c0_227 = arith.constant 0 : index
    %144 = vector.load %arg5[%c0_226, %c0_227] : memref<176x128xf32, #tpu.memory_space<vmem>>, vector<176x128xf32>
    %cst_228 = arith.constant dense<0.000000e+00> : vector<32x128xf32>
    %145 = tpu.matmul %143, %144, %cst_228 {dimension_numbers = #tpu.dot_dimension_numbers<[1], [0], [0], [1], [0, 0, 1, 1], [], []>} : vector<32x176xf32>, vector<176x128xf32>, vector<32x128xf32> -> vector<32x128xf32>
    %146 = arith.addf %122, %145 : vector<32x128xf32>
    %c6 = arith.constant 6 : index
    %c0_229 = arith.constant 0 : index
    %c0_230 = arith.constant 0 : index
    %147 = vector.load %arg2[%c6, %c0_229, %c0_230] : memref<7x56x8xf32, #tpu.memory_space<vmem>>, vector<1x56x8xf32>
    %148 = vector.shape_cast %147 : vector<1x56x8xf32> to vector<56x8xf32>
    %c0_231 = arith.constant 0 : index
    %c0_232 = arith.constant 0 : index
    %149 = vector.load %arg5[%c0_231, %c0_232] : memref<176x128xf32, #tpu.memory_space<vmem>>, vector<56x8xf32>
    tpu.vector_store %arg5[%c0_231, %c0_232], %148 {strides = array<i32>} : memref<176x128xf32, #tpu.memory_space<vmem>>, vector<56x8xf32>,
    %c8_233 = arith.constant 8 : index
    %c8_234 = arith.constant 8 : index
    %150 = vector.load %arg5[%c8_233, %c8_234] : memref<176x128xf32, #tpu.memory_space<vmem>>, vector<56x8xf32>
    tpu.vector_store %arg5[%c8_233, %c8_234], %148 {strides = array<i32>} : memref<176x128xf32, #tpu.memory_space<vmem>>, vector<56x8xf32>,
    %c16_235 = arith.constant 16 : index
    %c16_236 = arith.constant 16 : index
    %151 = vector.load %arg5[%c16_235, %c16_236] : memref<176x128xf32, #tpu.memory_space<vmem>>, vector<56x8xf32>
    tpu.vector_store %arg5[%c16_235, %c16_236], %148 {strides = array<i32>} : memref<176x128xf32, #tpu.memory_space<vmem>>, vector<56x8xf32>,
    %c24_237 = arith.constant 24 : index
    %c24_238 = arith.constant 24 : index
    %152 = vector.load %arg5[%c24_237, %c24_238] : memref<176x128xf32, #tpu.memory_space<vmem>>, vector<56x8xf32>
    tpu.vector_store %arg5[%c24_237, %c24_238], %148 {strides = array<i32>} : memref<176x128xf32, #tpu.memory_space<vmem>>, vector<56x8xf32>,
    %c32_239 = arith.constant 32 : index
    %c32_240 = arith.constant 32 : index
    %153 = vector.load %arg5[%c32_239, %c32_240] : memref<176x128xf32, #tpu.memory_space<vmem>>, vector<56x8xf32>
    tpu.vector_store %arg5[%c32_239, %c32_240], %148 {strides = array<i32>} : memref<176x128xf32, #tpu.memory_space<vmem>>, vector<56x8xf32>,
    %c40_241 = arith.constant 40 : index
    %c40_242 = arith.constant 40 : index
    %154 = vector.load %arg5[%c40_241, %c40_242] : memref<176x128xf32, #tpu.memory_space<vmem>>, vector<56x8xf32>
    tpu.vector_store %arg5[%c40_241, %c40_242], %148 {strides = array<i32>} : memref<176x128xf32, #tpu.memory_space<vmem>>, vector<56x8xf32>,
    %c48_243 = arith.constant 48 : index
    %c48_244 = arith.constant 48 : index
    %155 = vector.load %arg5[%c48_243, %c48_244] : memref<176x128xf32, #tpu.memory_space<vmem>>, vector<56x8xf32>
    tpu.vector_store %arg5[%c48_243, %c48_244], %148 {strides = array<i32>} : memref<176x128xf32, #tpu.memory_space<vmem>>, vector<56x8xf32>,
    %c56_245 = arith.constant 56 : index
    %c56_246 = arith.constant 56 : index
    %156 = vector.load %arg5[%c56_245, %c56_246] : memref<176x128xf32, #tpu.memory_space<vmem>>, vector<56x8xf32>
    tpu.vector_store %arg5[%c56_245, %c56_246], %148 {strides = array<i32>} : memref<176x128xf32, #tpu.memory_space<vmem>>, vector<56x8xf32>,
    %c64_247 = arith.constant 64 : index
    %c64_248 = arith.constant 64 : index
    %157 = vector.load %arg5[%c64_247, %c64_248] : memref<176x128xf32, #tpu.memory_space<vmem>>, vector<56x8xf32>
    tpu.vector_store %arg5[%c64_247, %c64_248], %148 {strides = array<i32>} : memref<176x128xf32, #tpu.memory_space<vmem>>, vector<56x8xf32>,
    %c72_249 = arith.constant 72 : index
    %c72_250 = arith.constant 72 : index
    %158 = vector.load %arg5[%c72_249, %c72_250] : memref<176x128xf32, #tpu.memory_space<vmem>>, vector<56x8xf32>
    tpu.vector_store %arg5[%c72_249, %c72_250], %148 {strides = array<i32>} : memref<176x128xf32, #tpu.memory_space<vmem>>, vector<56x8xf32>,
    %c80_251 = arith.constant 80 : index
    %c80_252 = arith.constant 80 : index
    %159 = vector.load %arg5[%c80_251, %c80_252] : memref<176x128xf32, #tpu.memory_space<vmem>>, vector<56x8xf32>
    tpu.vector_store %arg5[%c80_251, %c80_252], %148 {strides = array<i32>} : memref<176x128xf32, #tpu.memory_space<vmem>>, vector<56x8xf32>,
    %c88_253 = arith.constant 88 : index
    %c88_254 = arith.constant 88 : index
    %160 = vector.load %arg5[%c88_253, %c88_254] : memref<176x128xf32, #tpu.memory_space<vmem>>, vector<56x8xf32>
    tpu.vector_store %arg5[%c88_253, %c88_254], %148 {strides = array<i32>} : memref<176x128xf32, #tpu.memory_space<vmem>>, vector<56x8xf32>,
    %c96_255 = arith.constant 96 : index
    %c96_256 = arith.constant 96 : index
    %161 = vector.load %arg5[%c96_255, %c96_256] : memref<176x128xf32, #tpu.memory_space<vmem>>, vector<56x8xf32>
    tpu.vector_store %arg5[%c96_255, %c96_256], %148 {strides = array<i32>} : memref<176x128xf32, #tpu.memory_space<vmem>>, vector<56x8xf32>,
    %c104_257 = arith.constant 104 : index
    %c104_258 = arith.constant 104 : index
    %162 = vector.load %arg5[%c104_257, %c104_258] : memref<176x128xf32, #tpu.memory_space<vmem>>, vector<56x8xf32>
    tpu.vector_store %arg5[%c104_257, %c104_258], %148 {strides = array<i32>} : memref<176x128xf32, #tpu.memory_space<vmem>>, vector<56x8xf32>,
    %c112_259 = arith.constant 112 : index
    %c112_260 = arith.constant 112 : index
    %163 = vector.load %arg5[%c112_259, %c112_260] : memref<176x128xf32, #tpu.memory_space<vmem>>, vector<56x8xf32>
    tpu.vector_store %arg5[%c112_259, %c112_260], %148 {strides = array<i32>} : memref<176x128xf32, #tpu.memory_space<vmem>>, vector<56x8xf32>,
    %c120_261 = arith.constant 120 : index
    %c120_262 = arith.constant 120 : index
    %164 = vector.load %arg5[%c120_261, %c120_262] : memref<176x128xf32, #tpu.memory_space<vmem>>, vector<56x8xf32>
    tpu.vector_store %arg5[%c120_261, %c120_262], %148 {strides = array<i32>} : memref<176x128xf32, #tpu.memory_space<vmem>>, vector<56x8xf32>,
    %c6_263 = arith.constant 6 : index
    %c0_264 = arith.constant 0 : index
    %165 = vector.load %arg1[%c6_263, %c0_264] : memref<44x176xf32, #tpu.memory_space<vmem>>, vector<16x176xf32>
    %c28 = arith.constant 28 : index
    %c0_265 = arith.constant 0 : index
    %166 = vector.load %arg1[%c28, %c0_265] : memref<44x176xf32, #tpu.memory_space<vmem>>, vector<16x176xf32>
    %167 = tpu.concatenate %165, %166 in 0 : vector<16x176xf32>, vector<16x176xf32> -> vector<32x176xf32>
    %c0_266 = arith.constant 0 : index
    %c0_267 = arith.constant 0 : index
    %168 = vector.load %arg5[%c0_266, %c0_267] : memref<176x128xf32, #tpu.memory_space<vmem>>, vector<176x128xf32>
    %cst_268 = arith.constant dense<0.000000e+00> : vector<32x128xf32>
    %169 = tpu.matmul %167, %168, %cst_268 {dimension_numbers = #tpu.dot_dimension_numbers<[1], [0], [0], [1], [0, 0, 1, 1], [], []>} : vector<32x176xf32>, vector<176x128xf32>, vector<32x128xf32> -> vector<32x128xf32>
    %170 = arith.addf %146, %169 : vector<32x128xf32>
    %c0_269 = arith.constant 0 : index
    %c0_270 = arith.constant 0 : index
    %171 = vector.load %arg3[%c0_269, %c0_270] : memref<1x128xf32, #tpu.memory_space<vmem>>, vector<1x128xf32>
    %172 = vector.broadcast %171 : vector<1x128xf32> to vector<32x128xf32>
    %173 = arith.addf %170, %172 : vector<32x128xf32>
    %c0_271 = arith.constant 0 : index
    %c0_272 = arith.constant 0 : index
    %174 = vector.load %arg4[%c0_271, %c0_272] : memref<32x128xf32, #tpu.memory_space<vmem>>, vector<32x128xf32>
    tpu.vector_store %arg4[%c0_271, %c0_272], %173 {strides = array<i32>} : memref<32x128xf32, #tpu.memory_space<vmem>>, vector<32x128xf32>,
    return
  }
  func.func @transform_0(%arg0: i32) -> (i32, i32) {
    %c0_i32 = arith.constant 0 : i32
    %c0_i32_0 = arith.constant 0 : i32
    %c0_i32_1 = arith.constant 0 : i32
    return %c0_i32, %c0_i32_0 : i32, i32
  }
  func.func @transform_1(%arg0: i32) -> (i32, i32, i32) {
    %c0_i32 = arith.constant 0 : i32
    %c0_i32_0 = arith.constant 0 : i32
    %c0_i32_1 = arith.constant 0 : i32
    %c0_i32_2 = arith.constant 0 : i32
    return %c0_i32, %c0_i32_0, %c0_i32_1 : i32, i32, i32
  }
  func.func @transform_2(%arg0: i32) -> (i32, i32) {
    %c0_i32 = arith.constant 0 : i32
    %c0_i32_0 = arith.constant 0 : i32
    %c0_i32_1 = arith.constant 0 : i32
    return %c0_i32, %c0_i32_0 : i32, i32
  }
  func.func @transform_3(%arg0: i32) -> (i32, i32) {
    %c0_i32 = arith.constant 0 : i32
    %c0_i32_0 = arith.constant 0 : i32
    %c0_i32_1 = arith.constant 0 : i32
    return %c0_i32, %c0_i32_0 : i32, i32
  }
}

</mosaic_0001>

<bundles_post_ra>
// kernel: tpu_custom_call.1
= control target key start
LH: loop header
LB: loop body
LE: loop exit
PB: predicated region body
PF: predicated region fallthrough
CT: control target
= control target key end

     0   :  { %vm44_vm0 = vcmask 64512   ;;  %s4679_s16 = smov 8   ;;  %v4680_v7 = vmov 0.0   ;;  %v4681_v8 = vmov 0.0|0.0   ;;  %s7761_s0 = inlined_call_operand.vmem [shape: f32[44,176], index: 0, kind: input, shape index: {}]   ;;  %s7762_s1 = inlined_call_operand.vmem [shape: f32[7,56,8], index: 1, kind: input, shape index: {}]   ;;  %s7763_s2 = inlined_call_operand.vmem [shape: f32[1,128], index: 2, kind: input, shape index: {}]   ;;  %s7764_s3 = inlined_call_operand.hbm [shape: f32[32,128], index: 3, kind: output, shape index: {}]  }
   0x1   :  { %v4721_v0 = vld [vmem:[%s7762_s1 + $0x10] sm:$0xff]  ;;  %v4726_v1 = vld [vmem:[%s7762_s1] sm:$0xff]  ;;  %v4735_v2 = vld [vmem:[%s7762_s1 + $0x18] sm:$0xff]  ;;  %18 = vst [vmem:[#allocation2 + $0x18] sm:$0xff] %v4680_v7  ;;  %4414 = vmatprep.subr.bf16.mxu1 %v4681_v8  ;;  %4381 = vmatprep.subr.bf16.mxu0 %v4681_v8 }
   0x2   :  { %63 = vrot.lane.b32.xlu1 %v4721_v0, %s4679_s16  ;;  %59 = vrot.lane.b32.xlu0 %v4726_v1, %s4679_s16  ;;  %v4740_v3 = vld [vmem:[%s7762_s1 + $0x8] sm:$0xff]  ;;  %v4750_v5 = vld [vmem:[%s7762_s1 + $0x20] sm:$0xff]  ;;  %15 = vst [vmem:[#allocation2] sm:$0xff] %v4680_v7  ;;  %16 = vst [vmem:[#allocation2 + $0x8] sm:$0xff] %v4680_v7 }
   0x3   :  { %v4745_v4 = vld [vmem:[%s7762_s1 + $0x28] sm:$0xff]  ;;  %v4755_v6 = vld [vmem:[%s7762_s1 + $0x30] sm:$0xff]  ;;  %17 = vst [vmem:[#allocation2 + $0x10] sm:$0xff] %v4680_v7  ;;  %19 = vst [vmem:[#allocation2 + $0x20] sm:$0xff] %v4680_v7 }
   0x4   :  { %20 = vst [vmem:[#allocation2 + $0x28] sm:$0xff] %v4680_v7  ;;  %21 = vst [vmem:[#allocation2 + $0x30] sm:$0xff] %v4680_v7 }
   0x5   :  { %22 = vst [vmem:[#allocation2 + $0x38] sm:$0xff] %v4680_v7  ;;  %23 = vst [vmem:[#allocation2 + $0x40] sm:$0xff] %v4680_v7 }
   0x6   :  { %24 = vst [vmem:[#allocation2 + $0x48] sm:$0xff] %v4680_v7  ;;  %25 = vst [vmem:[#allocation2 + $0x50] sm:$0xff] %v4680_v7 }
   0x7   :  { %26 = vst [vmem:[#allocation2 + $0x58] sm:$0xff] %v4680_v7  ;;  %27 = vst [vmem:[#allocation2 + $0x60] sm:$0xff] %v4680_v7 }
   0x8   :  { %28 = vst [vmem:[#allocation2 + $0x68] sm:$0xff] %v4680_v7  ;;  %29 = vst [vmem:[#allocation2 + $0x70] sm:$0xff] %v4680_v7 }
   0x9   :  { %30 = vst [vmem:[#allocation2 + $0x78] sm:$0xff] %v4680_v7  ;;  %31 = vst [vmem:[#allocation2 + $0x80] sm:$0xff] %v4680_v7 }
   0xa   :  { %32 = vst [vmem:[#allocation2 + $0x88] sm:$0xff] %v4680_v7  ;;  %33 = vst [vmem:[#allocation2 + $0x90] sm:$0xff] %v4680_v7 }
   0xb   :  { %34 = vst [vmem:[#allocation2 + $0x98] sm:$0xff] %v4680_v7  ;;  %35 = vst [vmem:[#allocation2 + $0xa0] sm:$0xff] %v4680_v7 }
   0xc   :  { %36 = vst [vmem:[#allocation2 + $0xa8] sm:$0xff] %v4680_v7  ;;  %48 = vst.msk [vmem:[#allocation2 + $0x18] sm:$0xff] %vm44_vm0, %v4735_v2 }
   0xd   :  { %46 = vst.msk [vmem:[#allocation2 + $0x8] sm:$0xff] %vm44_vm0, %v4740_v3  ;;  %45 = vst.msk [vmem:[#allocation2] sm:$0xff] %vm44_vm0, %v4726_v1 }
   0xe   :  { %47 = vst.msk [vmem:[#allocation2 + $0x10] sm:$0xff] %vm44_vm0, %v4721_v0  ;;  %49 = vst.msk [vmem:[#allocation2 + $0x20] sm:$0xff] %vm44_vm0, %v4750_v5 }
   0xf   :  { %50 = vst.msk [vmem:[#allocation2 + $0x28] sm:$0xff] %vm44_vm0, %v4745_v4  ;;  %51 = vst.msk [vmem:[#allocation2 + $0x30] sm:$0xff] %vm44_vm0, %v4755_v6 }
  0x10   :  { %8 = vsyncpa [#allocation4], 0  ;;  %65 = vrot.lane.b32.xlu1 %v4735_v2, %s4679_s16  ;;  %61 = vrot.lane.b32.xlu0 %v4740_v3, %s4679_s16  ;;  %v4786_v10 = vld [vmem:[%s7762_s1 + $0x38] sm:$0xff]  ;;  %s4682_s29 = smov 16   ;;  %s4683_s30 = smov 24   ;;  %vm7773_vm1 = vcmask 130112  }
  0x11   :  { %s4684_s4 = smov 32   ;;  %s4685_s5 = smov 40   ;;  %v4909_v18 = vld [vmem:[%s7762_s1 + $0x40] sm:$0xff]  ;;  %vm7770_vm2 = vcmask 195712   ;;  %v4936_v27 = vld [vmem:[%s7762_s1 + $0x48] sm:$0xff]  ;;  %vm7768_vm3 = vcmask 261312  }
  0x12   :  { %s4686_s6 = smov 48   ;;  %s4687_s7 = smov 56   ;;  %v4967_v37 = vld [vmem:[%s7762_s1 + $0x50] sm:$0xff]  ;;  %vm7769_vm4 = vcmask 326912   ;;  %v4993_v46 = vld [vmem:[%s7762_s1 + $0x58] sm:$0xff]  ;;  %vm7766_vm5 = vcmask 392512  }
  0x13   :  { %s4688_s8 = smov 64   ;;  %s4689_s9 = smov 72   ;;  %v5024_v56 = vld [vmem:[%s7762_s1 + $0x60] sm:$0xff]  ;;  %vm7765_vm6 = vcmask 458112   ;;  %vm254_vm7 = vcmask 523712   ;;  %vm283_vm8 = vcmask 589312  }
  0x14   :  { %69 = vrot.lane.b32.xlu1 %v4745_v4, %s4679_s16  ;;  %67 = vrot.lane.b32.xlu0 %v4750_v5, %s4679_s16  ;;  %v4781_v9 = vld [vmem:[#allocation2] sm:$0xff]  ;;  %s4690_s12 = smov 80   ;;  %s4691_s15 = smov 88   ;;  %vm312_vm9 = vcmask 654912   ;;  %vm341_vm10 = vcmask 720512   ;;  %vm370_vm11 = vcmask 786112  }
  0x15   :  { %553 = vst.msk [vmem:[#allocation2] sm:$0xff] %vm44_vm0, %v4786_v10  ;;  %s4692_s19 = smov 96   ;;  %s4693_s22 = smov 104   ;;  %vm399_vm12 = vcmask 851712   ;;  %vm428_vm13 = vcmask 917312   ;;  %vm457_vm14 = vcmask 982912  }
  0x16   :  { %s4694_s25 = smov 112   ;;  %s4695_s28 = smov 120   ;;  %vm7774_vm15 = vcmask 1048512  }
  0x18   :  { %88 = vrot.lane.b32.xlu1 %v4726_v1, %s4682_s29  ;;  %71 = vrot.lane.b32.xlu0 %v4755_v6, %s4679_s16 }
  0x1c   :  { %92 = vrot.lane.b32.xlu1 %v4721_v0, %s4682_s29  ;;  %90 = vrot.lane.b32.xlu0 %v4740_v3, %s4682_s29 }
  0x20   :  { %96 = vrot.lane.b32.xlu1 %v4750_v5, %s4682_s29  ;;  %94 = vrot.lane.b32.xlu0 %v4735_v2, %s4682_s29 }
  0x24   :  { %100 = vrot.lane.b32.xlu1 %v4755_v6, %s4682_s29  ;;  %98 = vrot.lane.b32.xlu0 %v4745_v4, %s4682_s29 }
  0x28   :  { %119 = vrot.lane.b32.xlu1 %v4740_v3, %s4683_s30  ;;  %117 = vrot.lane.b32.xlu0 %v4726_v1, %s4683_s30 }
  0x2c   :  { %123 = vrot.lane.b32.xlu1 %v4735_v2, %s4683_s30  ;;  %121 = vrot.lane.b32.xlu0 %v4721_v0, %s4683_s30 }
  0x30   :  { %127 = vrot.lane.b32.xlu1 %v4745_v4, %s4683_s30  ;;  %125 = vrot.lane.b32.xlu0 %v4750_v5, %s4683_s30 }
  0x34   :  { %146 = vrot.lane.b32.xlu1 %v4726_v1, %s4684_s4  ;;  %129 = vrot.lane.b32.xlu0 %v4755_v6, %s4683_s30 }
  0x38   :  { %150 = vrot.lane.b32.xlu1 %v4721_v0, %s4684_s4  ;;  %148 = vrot.lane.b32.xlu0 %v4740_v3, %s4684_s4 }
  0x3c   :  { %154 = vrot.lane.b32.xlu1 %v4750_v5, %s4684_s4  ;;  %152 = vrot.lane.b32.xlu0 %v4735_v2, %s4684_s4 }
  0x40   :  { %158 = vrot.lane.b32.xlu1 %v4755_v6, %s4684_s4  ;;  %156 = vrot.lane.b32.xlu0 %v4745_v4, %s4684_s4 }
  0x44   :  { %177 = vrot.lane.b32.xlu1 %v4740_v3, %s4685_s5  ;;  %175 = vrot.lane.b32.xlu0 %v4726_v1, %s4685_s5 }
  0x48   :  { %181 = vrot.lane.b32.xlu1 %v4735_v2, %s4685_s5  ;;  %179 = vrot.lane.b32.xlu0 %v4721_v0, %s4685_s5 }
  0x4c   :  { %185 = vrot.lane.b32.xlu1 %v4745_v4, %s4685_s5  ;;  %183 = vrot.lane.b32.xlu0 %v4750_v5, %s4685_s5 }
  0x50   :  { %204 = vrot.lane.b32.xlu1 %v4726_v1, %s4686_s6  ;;  %187 = vrot.lane.b32.xlu0 %v4755_v6, %s4685_s5 }
  0x54   :  { %208 = vrot.lane.b32.xlu1 %v4721_v0, %s4686_s6  ;;  %206 = vrot.lane.b32.xlu0 %v4740_v3, %s4686_s6 }
  0x58   :  { %212 = vrot.lane.b32.xlu1 %v4750_v5, %s4686_s6  ;;  %210 = vrot.lane.b32.xlu0 %v4735_v2, %s4686_s6 }
  0x5c   :  { %216 = vrot.lane.b32.xlu1 %v4755_v6, %s4686_s6  ;;  %214 = vrot.lane.b32.xlu0 %v4745_v4, %s4686_s6 }
  0x60   :  { %235 = vrot.lane.b32.xlu1 %v4740_v3, %s4687_s7  ;;  %233 = vrot.lane.b32.xlu0 %v4726_v1, %s4687_s7 }
  0x64   :  { %239 = vrot.lane.b32.xlu1 %v4735_v2, %s4687_s7  ;;  %237 = vrot.lane.b32.xlu0 %v4721_v0, %s4687_s7 }
  0x68   :  { %243 = vrot.lane.b32.xlu1 %v4745_v4, %s4687_s7  ;;  %241 = vrot.lane.b32.xlu0 %v4750_v5, %s4687_s7 }
  0x6c   :  { %262 = vrot.lane.b32.xlu1 %v4726_v1, %s4688_s8  ;;  %245 = vrot.lane.b32.xlu0 %v4755_v6, %s4687_s7 }
  0x70   :  { %266 = vrot.lane.b32.xlu1 %v4721_v0, %s4688_s8  ;;  %264 = vrot.lane.b32.xlu0 %v4740_v3, %s4688_s8 }
  0x74   :  { %270 = vrot.lane.b32.xlu1 %v4750_v5, %s4688_s8  ;;  %268 = vrot.lane.b32.xlu0 %v4735_v2, %s4688_s8  ;;  %v64_v11 = vpop.permute.xlu1 %63  ;;  %v60_v12 = vpop.permute.xlu0 %59 }
  0x75   :  { %83 = vst.msk [vmem:[#allocation2 + $0x18] sm:$0xff] %vm7773_vm1, %v64_v11  ;;  %81 = vst.msk [vmem:[#allocation2 + $0x8] sm:$0xff] %vm7773_vm1, %v60_v12 }
  0x78   :  { %274 = vrot.lane.b32.xlu1 %v4755_v6, %s4688_s8  ;;  %272 = vrot.lane.b32.xlu0 %v4745_v4, %s4688_s8 }
  0x7c   :  { %293 = vrot.lane.b32.xlu1 %v4740_v3, %s4689_s9  ;;  %291 = vrot.lane.b32.xlu0 %v4726_v1, %s4689_s9  ;;  %v524_v17 = vld [vmem:[#allocation2 + $0x8] sm:$0xff] }
  0x7d   :  { %v4415_v19 = vpack.c.bf16 %v524_v17, %v4781_v9  ;;  %554 = vst.msk [vmem:[#allocation2 + $0x8] sm:$0xff] %vm44_vm0, %v4909_v18  ;;  %v5050_v9 = vld [vmem:[%s7762_s1 + $0x68] sm:$0xff] }
  0x7f   :  { %4416 = vmatpush1.bf16.msra.mxu1 %v4415_v19 }
  0x80   :  { %297 = vrot.lane.b32.xlu1 %v4735_v2, %s4689_s9  ;;  %295 = vrot.lane.b32.xlu0 %v4721_v0, %s4689_s9 }
  0x81   :  { %4417 = vmatprep.subr.bf16.mxu1 %v4681_v8 }
  0x82   :  { %v66_v13 = vpop.permute.xlu1 %65  ;;  %v62_v14 = vpop.permute.xlu0 %61 }
  0x83   :  { %84 = vst.msk [vmem:[#allocation2 + $0x20] sm:$0xff] %vm7773_vm1, %v66_v13  ;;  %82 = vst.msk [vmem:[#allocation2 + $0x10] sm:$0xff] %vm7773_vm1, %v62_v14 }
  0x84   :  { %301 = vrot.lane.b32.xlu1 %v4745_v4, %s4689_s9  ;;  %299 = vrot.lane.b32.xlu0 %v4750_v5, %s4689_s9 }
  0x86   :  { %v70_v15 = vpop.permute.xlu1 %69  ;;  %v68_v16 = vpop.permute.xlu0 %67 }
  0x87   :  { %86 = vst.msk [vmem:[#allocation2 + $0x30] sm:$0xff] %vm7773_vm1, %v70_v15  ;;  %85 = vst.msk [vmem:[#allocation2 + $0x28] sm:$0xff] %vm7773_vm1, %v68_v16 }
  0x88   :  { %320 = vrot.lane.b32.xlu1 %v4726_v1, %s4690_s12  ;;  %303 = vrot.lane.b32.xlu0 %v4755_v6, %s4689_s9 }
  0x8a   :  { %v89_v20 = vpop.permute.xlu1 %88  ;;  %v72_v21 = vpop.permute.xlu0 %71 }
  0x8b   :  { %110 = vst.msk [vmem:[#allocation2 + $0x10] sm:$0xff] %vm7770_vm2, %v89_v20 }
  0x8c   :  { %87 = vst.msk [vmem:[#allocation2 + $0x38] sm:$0xff] %vm7773_vm1, %v72_v21  ;;  %324 = vrot.lane.b32.xlu1 %v4721_v0, %s4690_s12  ;;  %322 = vrot.lane.b32.xlu0 %v4740_v3, %s4690_s12 }
  0x8e   :  { %v93_v22 = vpop.permute.xlu1 %92  ;;  %v91_v23 = vpop.permute.xlu0 %90 }
  0x8f   :  { %112 = vst.msk [vmem:[#allocation2 + $0x20] sm:$0xff] %vm7770_vm2, %v93_v22  ;;  %111 = vst.msk [vmem:[#allocation2 + $0x18] sm:$0xff] %vm7770_vm2, %v91_v23 }
  0x90   :  { %328 = vrot.lane.b32.xlu1 %v4750_v5, %s4690_s12  ;;  %326 = vrot.lane.b32.xlu0 %v4735_v2, %s4690_s12 }
  0x92   :  { %v97_v24 = vpop.permute.xlu1 %96  ;;  %v95_v25 = vpop.permute.xlu0 %94  ;;  %v525_v26 = vld [vmem:[#allocation2 + $0x10] sm:$0xff] }
  0x93   :  { %114 = vst.msk [vmem:[#allocation2 + $0x30] sm:$0xff] %vm7770_vm2, %v97_v24  ;;  %113 = vst.msk [vmem:[#allocation2 + $0x28] sm:$0xff] %vm7770_vm2, %v95_v25 }
  0x94   :  { %555 = vst.msk [vmem:[#allocation2 + $0x10] sm:$0xff] %vm44_vm0, %v4936_v27  ;;  %332 = vrot.lane.b32.xlu1 %v4755_v6, %s4690_s12  ;;  %330 = vrot.lane.b32.xlu0 %v4745_v4, %s4690_s12 }
  0x96   :  { %v101_v28 = vpop.permute.xlu1 %100  ;;  %v99_v29 = vpop.permute.xlu0 %98 }
  0x97   :  { %116 = vst.msk [vmem:[#allocation2 + $0x40] sm:$0xff] %vm7770_vm2, %v101_v28  ;;  %115 = vst.msk [vmem:[#allocation2 + $0x38] sm:$0xff] %vm7770_vm2, %v99_v29 }
  0x98   :  { %351 = vrot.lane.b32.xlu1 %v4740_v3, %s4691_s15  ;;  %349 = vrot.lane.b32.xlu0 %v4726_v1, %s4691_s15 }
  0x9a   :  { %v120_v30 = vpop.permute.xlu1 %119  ;;  %v118_v31 = vpop.permute.xlu0 %117 }
  0x9b   :  { %140 = vst.msk [vmem:[#allocation2 + $0x20] sm:$0xff] %vm7768_vm3, %v120_v30  ;;  %139 = vst.msk [vmem:[#allocation2 + $0x18] sm:$0xff] %vm7768_vm3, %v118_v31 }
  0x9c   :  { %355 = vrot.lane.b32.xlu1 %v4735_v2, %s4691_s15  ;;  %353 = vrot.lane.b32.xlu0 %v4721_v0, %s4691_s15 }
  0x9e   :  { %v124_v32 = vpop.permute.xlu1 %123  ;;  %v122_v33 = vpop.permute.xlu0 %121 }
  0x9f   :  { %142 = vst.msk [vmem:[#allocation2 + $0x30] sm:$0xff] %vm7768_vm3, %v124_v32  ;;  %141 = vst.msk [vmem:[#allocation2 + $0x28] sm:$0xff] %vm7768_vm3, %v122_v33 }
  0xa0   :  { %359 = vrot.lane.b32.xlu1 %v4745_v4, %s4691_s15  ;;  %357 = vrot.lane.b32.xlu0 %v4750_v5, %s4691_s15 }
  0xa2   :  { %v128_v34 = vpop.permute.xlu1 %127  ;;  %v126_v35 = vpop.permute.xlu0 %125  ;;  %v526_v36 = vld [vmem:[#allocation2 + $0x18] sm:$0xff] }
  0xa3   :  { %144 = vst.msk [vmem:[#allocation2 + $0x40] sm:$0xff] %vm7768_vm3, %v128_v34  ;;  %143 = vst.msk [vmem:[#allocation2 + $0x38] sm:$0xff] %vm7768_vm3, %v126_v35  ;;  %v4418_v38 = vpack.c.bf16 %v526_v36, %v525_v26 }
  0xa4   :  { %556 = vst.msk [vmem:[#allocation2 + $0x18] sm:$0xff] %vm44_vm0, %v4967_v37  ;;  %378 = vrot.lane.b32.xlu1 %v4726_v1, %s4692_s19  ;;  %361 = vrot.lane.b32.xlu0 %v4755_v6, %s4691_s15 }
  0xa5   :  { %4419 = vmatpush1.bf16.msra.mxu1 %v4418_v38 }
  0xa6   :  { %v147_v39 = vpop.permute.xlu1 %146  ;;  %v130_v40 = vpop.permute.xlu0 %129  ;;  %4420 = vmatprep.subr.bf16.mxu1 %v4681_v8 }
  0xa7   :  { %168 = vst.msk [vmem:[#allocation2 + $0x20] sm:$0xff] %vm7769_vm4, %v147_v39 }
  0xa8   :  { %145 = vst.msk [vmem:[#allocation2 + $0x48] sm:$0xff] %vm7768_vm3, %v130_v40  ;;  %382 = vrot.lane.b32.xlu1 %v4721_v0, %s4692_s19  ;;  %380 = vrot.lane.b32.xlu0 %v4740_v3, %s4692_s19 }
  0xaa   :  { %v151_v41 = vpop.permute.xlu1 %150  ;;  %v149_v42 = vpop.permute.xlu0 %148 }
  0xab   :  { %170 = vst.msk [vmem:[#allocation2 + $0x30] sm:$0xff] %vm7769_vm4, %v151_v41  ;;  %169 = vst.msk [vmem:[#allocation2 + $0x28] sm:$0xff] %vm7769_vm4, %v149_v42 }
  0xac   :  { %386 = vrot.lane.b32.xlu1 %v4750_v5, %s4692_s19  ;;  %384 = vrot.lane.b32.xlu0 %v4735_v2, %s4692_s19 }
  0xae   :  { %v155_v43 = vpop.permute.xlu1 %154  ;;  %v153_v44 = vpop.permute.xlu0 %152  ;;  %v527_v45 = vld [vmem:[#allocation2 + $0x20] sm:$0xff] }
  0xaf   :  { %172 = vst.msk [vmem:[#allocation2 + $0x40] sm:$0xff] %vm7769_vm4, %v155_v43  ;;  %171 = vst.msk [vmem:[#allocation2 + $0x38] sm:$0xff] %vm7769_vm4, %v153_v44 }
  0xb0   :  { %557 = vst.msk [vmem:[#allocation2 + $0x20] sm:$0xff] %vm44_vm0, %v4993_v46  ;;  %390 = vrot.lane.b32.xlu1 %v4755_v6, %s4692_s19  ;;  %388 = vrot.lane.b32.xlu0 %v4745_v4, %s4692_s19 }
  0xb2   :  { %v159_v47 = vpop.permute.xlu1 %158  ;;  %v157_v48 = vpop.permute.xlu0 %156 }
  0xb3   :  { %174 = vst.msk [vmem:[#allocation2 + $0x50] sm:$0xff] %vm7769_vm4, %v159_v47  ;;  %173 = vst.msk [vmem:[#allocation2 + $0x48] sm:$0xff] %vm7769_vm4, %v157_v48 }
  0xb4   :  { %409 = vrot.lane.b32.xlu1 %v4740_v3, %s4693_s22  ;;  %407 = vrot.lane.b32.xlu0 %v4726_v1, %s4693_s22 }
  0xb6   :  { %v178_v49 = vpop.permute.xlu1 %177  ;;  %v176_v50 = vpop.permute.xlu0 %175 }
  0xb7   :  { %198 = vst.msk [vmem:[#allocation2 + $0x30] sm:$0xff] %vm7766_vm5, %v178_v49  ;;  %197 = vst.msk [vmem:[#allocation2 + $0x28] sm:$0xff] %vm7766_vm5, %v176_v50 }
  0xb8   :  { %413 = vrot.lane.b32.xlu1 %v4735_v2, %s4693_s22  ;;  %411 = vrot.lane.b32.xlu0 %v4721_v0, %s4693_s22 }
  0xba   :  { %v182_v51 = vpop.permute.xlu1 %181  ;;  %v180_v52 = vpop.permute.xlu0 %179 }
  0xbb   :  { %200 = vst.msk [vmem:[#allocation2 + $0x40] sm:$0xff] %vm7766_vm5, %v182_v51  ;;  %199 = vst.msk [vmem:[#allocation2 + $0x38] sm:$0xff] %vm7766_vm5, %v180_v52 }
  0xbc   :  { %417 = vrot.lane.b32.xlu1 %v4745_v4, %s4693_s22  ;;  %415 = vrot.lane.b32.xlu0 %v4750_v5, %s4693_s22 }
  0xbe   :  { %v186_v53 = vpop.permute.xlu1 %185  ;;  %v184_v54 = vpop.permute.xlu0 %183  ;;  %v528_v55 = vld [vmem:[#allocation2 + $0x28] sm:$0xff] }
  0xbf   :  { %202 = vst.msk [vmem:[#allocation2 + $0x50] sm:$0xff] %vm7766_vm5, %v186_v53  ;;  %201 = vst.msk [vmem:[#allocation2 + $0x48] sm:$0xff] %vm7766_vm5, %v184_v54  ;;  %v4421_v57 = vpack.c.bf16 %v528_v55, %v527_v45 }
  0xc0   :  { %558 = vst.msk [vmem:[#allocation2 + $0x28] sm:$0xff] %vm44_vm0, %v5024_v56  ;;  %436 = vrot.lane.b32.xlu1 %v4726_v1, %s4694_s25  ;;  %419 = vrot.lane.b32.xlu0 %v4755_v6, %s4693_s22 }
  0xc1   :  { %4422 = vmatpush1.bf16.msra.mxu1 %v4421_v57 }
  0xc2   :  { %v205_v58 = vpop.permute.xlu1 %204  ;;  %v188_v59 = vpop.permute.xlu0 %187  ;;  %4423 = vmatprep.subr.bf16.mxu1 %v4681_v8 }
  0xc3   :  { %226 = vst.msk [vmem:[#allocation2 + $0x30] sm:$0xff] %vm7765_vm6, %v205_v58 }
  0xc4   :  { %203 = vst.msk [vmem:[#allocation2 + $0x58] sm:$0xff] %vm7766_vm5, %v188_v59  ;;  %440 = vrot.lane.b32.xlu1 %v4721_v0, %s4694_s25  ;;  %438 = vrot.lane.b32.xlu0 %v4740_v3, %s4694_s25 }
  0xc6   :  { %v209_v60 = vpop.permute.xlu1 %208  ;;  %v207_v61 = vpop.permute.xlu0 %206 }
  0xc7   :  { %228 = vst.msk [vmem:[#allocation2 + $0x40] sm:$0xff] %vm7765_vm6, %v209_v60  ;;  %227 = vst.msk [vmem:[#allocation2 + $0x38] sm:$0xff] %vm7765_vm6, %v207_v61 }
  0xc8   :  { %444 = vrot.lane.b32.xlu1 %v4750_v5, %s4694_s25  ;;  %442 = vrot.lane.b32.xlu0 %v4735_v2, %s4694_s25 }
  0xca   :  { %v213_v62 = vpop.permute.xlu1 %212  ;;  %v211_v63 = vpop.permute.xlu0 %210  ;;  %v529_v7 = vld [vmem:[#allocation2 + $0x30] sm:$0xff] }
  0xcb   :  { %230 = vst.msk [vmem:[#allocation2 + $0x50] sm:$0xff] %vm7765_vm6, %v213_v62  ;;  %229 = vst.msk [vmem:[#allocation2 + $0x48] sm:$0xff] %vm7765_vm6, %v211_v63 }
  0xcc   :  { %559 = vst.msk [vmem:[#allocation2 + $0x30] sm:$0xff] %vm44_vm0, %v5050_v9  ;;  %448 = vrot.lane.b32.xlu1 %v4755_v6, %s4694_s25  ;;  %446 = vrot.lane.b32.xlu0 %v4745_v4, %s4694_s25 }
  0xce   :  { %v217_v11 = vpop.permute.xlu1 %216  ;;  %v215_v12 = vpop.permute.xlu0 %214 }
  0xcf   :  { %232 = vst.msk [vmem:[#allocation2 + $0x60] sm:$0xff] %vm7765_vm6, %v217_v11  ;;  %231 = vst.msk [vmem:[#allocation2 + $0x58] sm:$0xff] %vm7765_vm6, %v215_v12 }
  0xd0   :  { %467 = vrot.lane.b32.xlu1 %v4740_v3, %s4695_s28  ;;  %465 = vrot.lane.b32.xlu0 %v4726_v1, %s4695_s28 }
  0xd2   :  { %v236_v13 = vpop.permute.xlu1 %235  ;;  %v234_v14 = vpop.permute.xlu0 %233 }
  0xd3   :  { %256 = vst.msk [vmem:[#allocation2 + $0x40] sm:$0xff] %vm254_vm7, %v236_v13  ;;  %255 = vst.msk [vmem:[#allocation2 + $0x38] sm:$0xff] %vm254_vm7, %v234_v14 }
  0xd4   :  { %471 = vrot.lane.b32.xlu1 %v4735_v2, %s4695_s28  ;;  %469 = vrot.lane.b32.xlu0 %v4721_v0, %s4695_s28  ;;  %v5084_v2 = vld [vmem:[#allocation2] sm:$0xff] }
  0xd6   :  { %v240_v15 = vpop.permute.xlu1 %239  ;;  %v238_v16 = vpop.permute.xlu0 %237 }
  0xd7   :  { %258 = vst.msk [vmem:[#allocation2 + $0x50] sm:$0xff] %vm254_vm7, %v240_v15  ;;  %257 = vst.msk [vmem:[#allocation2 + $0x48] sm:$0xff] %vm254_vm7, %v238_v16 }
  0xd8   :  { %475 = vrot.lane.b32.xlu1 %v4745_v4, %s4695_s28  ;;  %473 = vrot.lane.b32.xlu0 %v4750_v5, %s4695_s28  ;;  %v5089_v4 = vld [vmem:[%s7762_s1 + $0x70] sm:$0xff] }
  0xd9   :  { %1256 = vst.msk [vmem:[#allocation2] sm:$0xff] %vm44_vm0, %v5089_v4 }
  0xda   :  { %v244_v1 = vpop.permute.xlu1 %243  ;;  %v242_v3 = vpop.permute.xlu0 %241  ;;  %v530_v17 = vld [vmem:[#allocation2 + $0x38] sm:$0xff] }
  0xdb   :  { %260 = vst.msk [vmem:[#allocation2 + $0x60] sm:$0xff] %vm254_vm7, %v244_v1  ;;  %259 = vst.msk [vmem:[#allocation2 + $0x58] sm:$0xff] %vm254_vm7, %v242_v3  ;;  %v4424_v0 = vpack.c.bf16 %v530_v17, %v529_v7 }
  0xdc   :  { %567 = vrot.lane.b32.xlu1 %v4786_v10, %s4679_s16  ;;  %477 = vrot.lane.b32.xlu0 %v4755_v6, %s4695_s28 }
  0xdd   :  { %4425 = vmatpush1.bf16.msra.mxu1 %v4424_v0 }
  0xde   :  { %v263_v5 = vpop.permute.xlu1 %262  ;;  %v246_v19 = vpop.permute.xlu0 %245  ;;  %4426 = vmatprep.subr.bf16.mxu1 %v4681_v8 }
  0xdf   :  { %284 = vst.msk [vmem:[#allocation2 + $0x40] sm:$0xff] %vm283_vm8, %v263_v5 }
  0xe0   :  { %261 = vst.msk [vmem:[#allocation2 + $0x68] sm:$0xff] %vm254_vm7, %v246_v19  ;;  %571 = vrot.lane.b32.xlu1 %v4936_v27, %s4679_s16  ;;  %569 = vrot.lane.b32.xlu0 %v4909_v18, %s4679_s16 }
  0xe2   :  { %v267_v6 = vpop.permute.xlu1 %266  ;;  %v265_v20 = vpop.permute.xlu0 %264 }
  0xe3   :  { %286 = vst.msk [vmem:[#allocation2 + $0x50] sm:$0xff] %vm283_vm8, %v267_v6  ;;  %285 = vst.msk [vmem:[#allocation2 + $0x48] sm:$0xff] %vm283_vm8, %v265_v20 }
  0xe4   :  { %575 = vrot.lane.b32.xlu1 %v4993_v46, %s4679_s16  ;;  %573 = vrot.lane.b32.xlu0 %v4967_v37, %s4679_s16 }
  0xe6   :  { %v271_v21 = vpop.permute.xlu1 %270  ;;  %v269_v22 = vpop.permute.xlu0 %268  ;;  %v531_v32 = vld [vmem:[#allocation2 + $0x40] sm:$0xff] }
  0xe7   :  { %288 = vst.msk [vmem:[#allocation2 + $0x60] sm:$0xff] %vm283_vm8, %v271_v21  ;;  %287 = vst.msk [vmem:[#allocation2 + $0x58] sm:$0xff] %vm283_vm8, %v269_v22 }
  0xe8   :  { %579 = vrot.lane.b32.xlu1 %v5050_v9, %s4679_s16  ;;  %577 = vrot.lane.b32.xlu0 %v5024_v56, %s4679_s16 }
  0xea   :  { %v275_v23 = vpop.permute.xlu1 %274  ;;  %v273_v24 = vpop.permute.xlu0 %272 }
  0xeb   :  { %290 = vst.msk [vmem:[#allocation2 + $0x70] sm:$0xff] %vm283_vm8, %v275_v23  ;;  %289 = vst.msk [vmem:[#allocation2 + $0x68] sm:$0xff] %vm283_vm8, %v273_v24 }
  0xec   :  { %597 = vrot.lane.b32.xlu1 %v4909_v18, %s4682_s29  ;;  %595 = vrot.lane.b32.xlu0 %v4786_v10, %s4682_s29 }
  0xee   :  { %v294_v25 = vpop.permute.xlu1 %293  ;;  %v292_v26 = vpop.permute.xlu0 %291 }
  0xef   :  { %314 = vst.msk [vmem:[#allocation2 + $0x50] sm:$0xff] %vm312_vm9, %v294_v25  ;;  %313 = vst.msk [vmem:[#allocation2 + $0x48] sm:$0xff] %vm312_vm9, %v292_v26 }
  0xf0   :  { %601 = vrot.lane.b32.xlu1 %v4967_v37, %s4682_s29  ;;  %599 = vrot.lane.b32.xlu0 %v4936_v27, %s4682_s29 }
  0xf2   :  { %v298_v28 = vpop.permute.xlu1 %297  ;;  %v296_v29 = vpop.permute.xlu0 %295 }
  0xf3   :  { %316 = vst.msk [vmem:[#allocation2 + $0x60] sm:$0xff] %vm312_vm9, %v298_v28  ;;  %315 = vst.msk [vmem:[#allocation2 + $0x58] sm:$0xff] %vm312_vm9, %v296_v29 }
  0xf4   :  { %605 = vrot.lane.b32.xlu1 %v5024_v56, %s4682_s29  ;;  %603 = vrot.lane.b32.xlu0 %v4993_v46, %s4682_s29 }
  0xf6   :  { %v302_v30 = vpop.permute.xlu1 %301  ;;  %v300_v31 = vpop.permute.xlu0 %299  ;;  %v532_v33 = vld [vmem:[#allocation2 + $0x48] sm:$0xff] }
  0xf7   :  { %318 = vst.msk [vmem:[#allocation2 + $0x70] sm:$0xff] %vm312_vm9, %v302_v30  ;;  %317 = vst.msk [vmem:[#allocation2 + $0x68] sm:$0xff] %vm312_vm9, %v300_v31  ;;  %v4427_v34 = vpack.c.bf16 %v532_v33, %v531_v32 }
  0xf8   :  { %623 = vrot.lane.b32.xlu1 %v4786_v10, %s4683_s30  ;;  %607 = vrot.lane.b32.xlu0 %v5050_v9, %s4682_s29 }
  0xf9   :  { %4428 = vmatpush1.bf16.msra.mxu1 %v4427_v34 }
  0xfa   :  { %v321_v35 = vpop.permute.xlu1 %320  ;;  %v304_v36 = vpop.permute.xlu0 %303  ;;  %4429 = vmatprep.subr.bf16.mxu1 %v4681_v8 }
  0xfb   :  { %342 = vst.msk [vmem:[#allocation2 + $0x50] sm:$0xff] %vm341_vm10, %v321_v35 }
  0xfc   :  { %319 = vst.msk [vmem:[#allocation2 + $0x78] sm:$0xff] %vm312_vm9, %v304_v36  ;;  %627 = vrot.lane.b32.xlu1 %v4936_v27, %s4683_s30  ;;  %625 = vrot.lane.b32.xlu0 %v4909_v18, %s4683_s30 }
  0xfe   :  { %v325_v38 = vpop.permute.xlu1 %324  ;;  %v323_v39 = vpop.permute.xlu0 %322 }
  0xff   :  { %344 = vst.msk [vmem:[#allocation2 + $0x60] sm:$0xff] %vm341_vm10, %v325_v38  ;;  %343 = vst.msk [vmem:[#allocation2 + $0x58] sm:$0xff] %vm341_vm10, %v323_v39 }
 0x100   :  { %631 = vrot.lane.b32.xlu1 %v4993_v46, %s4683_s30  ;;  %629 = vrot.lane.b32.xlu0 %v4967_v37, %s4683_s30 }
 0x102   :  { %v329_v40 = vpop.permute.xlu1 %328  ;;  %v327_v41 = vpop.permute.xlu0 %326  ;;  %v533_v51 = vld [vmem:[#allocation2 + $0x50] sm:$0xff] }
 0x103   :  { %346 = vst.msk [vmem:[#allocation2 + $0x70] sm:$0xff] %vm341_vm10, %v329_v40  ;;  %345 = vst.msk [vmem:[#allocation2 + $0x68] sm:$0xff] %vm341_vm10, %v327_v41 }
 0x104   :  { %635 = vrot.lane.b32.xlu1 %v5050_v9, %s4683_s30  ;;  %633 = vrot.lane.b32.xlu0 %v5024_v56, %s4683_s30 }
 0x106   :  { %v333_v42 = vpop.permute.xlu1 %332  ;;  %v331_v43 = vpop.permute.xlu0 %330 }
 0x107   :  { %348 = vst.msk [vmem:[#allocation2 + $0x80] sm:$0xff] %vm341_vm10, %v333_v42  ;;  %347 = vst.msk [vmem:[#allocation2 + $0x78] sm:$0xff] %vm341_vm10, %v331_v43 }
 0x108   :  { %653 = vrot.lane.b32.xlu1 %v4909_v18, %s4684_s4  ;;  %651 = vrot.lane.b32.xlu0 %v4786_v10, %s4684_s4 }
 0x10a   :  { %v352_v44 = vpop.permute.xlu1 %351  ;;  %v350_v45 = vpop.permute.xlu0 %349 }
 0x10b   :  { %372 = vst.msk [vmem:[#allocation2 + $0x60] sm:$0xff] %vm370_vm11, %v352_v44  ;;  %371 = vst.msk [vmem:[#allocation2 + $0x58] sm:$0xff] %vm370_vm11, %v350_v45 }
 0x10c   :  { %657 = vrot.lane.b32.xlu1 %v4967_v37, %s4684_s4  ;;  %655 = vrot.lane.b32.xlu0 %v4936_v27, %s4684_s4 }
 0x10e   :  { %v356_v47 = vpop.permute.xlu1 %355  ;;  %v354_v48 = vpop.permute.xlu0 %353 }
 0x10f   :  { %374 = vst.msk [vmem:[#allocation2 + $0x70] sm:$0xff] %vm370_vm11, %v356_v47  ;;  %373 = vst.msk [vmem:[#allocation2 + $0x68] sm:$0xff] %vm370_vm11, %v354_v48 }
 0x110   :  { %661 = vrot.lane.b32.xlu1 %v5024_v56, %s4684_s4  ;;  %659 = vrot.lane.b32.xlu0 %v4993_v46, %s4684_s4 }
 0x112   :  { %v360_v49 = vpop.permute.xlu1 %359  ;;  %v358_v50 = vpop.permute.xlu0 %357  ;;  %v534_v52 = vld [vmem:[#allocation2 + $0x58] sm:$0xff] }
 0x113   :  { %376 = vst.msk [vmem:[#allocation2 + $0x80] sm:$0xff] %vm370_vm11, %v360_v49  ;;  %375 = vst.msk [vmem:[#allocation2 + $0x78] sm:$0xff] %vm370_vm11, %v358_v50  ;;  %v4430_v53 = vpack.c.bf16 %v534_v52, %v533_v51  ;;  %v5283_v49 = vld [vmem:[%s7762_s1 + $0x78] sm:$0xff] }
 0x114   :  { %679 = vrot.lane.b32.xlu1 %v4786_v10, %s4685_s5  ;;  %663 = vrot.lane.b32.xlu0 %v5050_v9, %s4684_s4 }
 0x115   :  { %4431 = vmatpush1.bf16.msra.mxu1 %v4430_v53 }
 0x116   :  { %v379_v54 = vpop.permute.xlu1 %378  ;;  %v362_v55 = vpop.permute.xlu0 %361  ;;  %4432 = vmatprep.subr.bf16.mxu1 %v4681_v8 }
 0x117   :  { %400 = vst.msk [vmem:[#allocation2 + $0x60] sm:$0xff] %vm399_vm12, %v379_v54 }
 0x118   :  { %377 = vst.msk [vmem:[#allocation2 + $0x88] sm:$0xff] %vm370_vm11, %v362_v55  ;;  %683 = vrot.lane.b32.xlu1 %v4936_v27, %s4685_s5  ;;  %681 = vrot.lane.b32.xlu0 %v4909_v18, %s4685_s5 }
 0x11a   :  { %v383_v57 = vpop.permute.xlu1 %382  ;;  %v381_v58 = vpop.permute.xlu0 %380 }
 0x11b   :  { %402 = vst.msk [vmem:[#allocation2 + $0x70] sm:$0xff] %vm399_vm12, %v383_v57  ;;  %401 = vst.msk [vmem:[#allocation2 + $0x68] sm:$0xff] %vm399_vm12, %v381_v58 }
 0x11c   :  { %687 = vrot.lane.b32.xlu1 %v4993_v46, %s4685_s5  ;;  %685 = vrot.lane.b32.xlu0 %v4967_v37, %s4685_s5 }
 0x11e   :  { %v387_v59 = vpop.permute.xlu1 %386  ;;  %v385_v60 = vpop.permute.xlu0 %384  ;;  %v535_v15 = vld [vmem:[#allocation2 + $0x60] sm:$0xff] }
 0x11f   :  { %404 = vst.msk [vmem:[#allocation2 + $0x80] sm:$0xff] %vm399_vm12, %v387_v59  ;;  %403 = vst.msk [vmem:[#allocation2 + $0x78] sm:$0xff] %vm399_vm12, %v385_v60 }
 0x120   :  { %691 = vrot.lane.b32.xlu1 %v5050_v9, %s4685_s5  ;;  %689 = vrot.lane.b32.xlu0 %v5024_v56, %s4685_s5 }
 0x122   :  { %v391_v61 = vpop.permute.xlu1 %390  ;;  %v389_v62 = vpop.permute.xlu0 %388 }
 0x123   :  { %406 = vst.msk [vmem:[#allocation2 + $0x90] sm:$0xff] %vm399_vm12, %v391_v61  ;;  %405 = vst.msk [vmem:[#allocation2 + $0x88] sm:$0xff] %vm399_vm12, %v389_v62  ;;  %v5317_v61 = vld [vmem:[%s7762_s1 + $0x80] sm:$0xff] }
 0x124   :  { %709 = vrot.lane.b32.xlu1 %v4909_v18, %s4686_s6  ;;  %707 = vrot.lane.b32.xlu0 %v4786_v10, %s4686_s6 }
 0x126   :  { %v410_v63 = vpop.permute.xlu1 %409  ;;  %v408_v7 = vpop.permute.xlu0 %407 }
 0x127   :  { %430 = vst.msk [vmem:[#allocation2 + $0x70] sm:$0xff] %vm428_vm13, %v410_v63  ;;  %429 = vst.msk [vmem:[#allocation2 + $0x68] sm:$0xff] %vm428_vm13, %v408_v7 }
 0x128   :  { %713 = vrot.lane.b32.xlu1 %v4967_v37, %s4686_s6  ;;  %711 = vrot.lane.b32.xlu0 %v4936_v27, %s4686_s6 }
 0x12a   :  { %v414_v11 = vpop.permute.xlu1 %413  ;;  %v412_v12 = vpop.permute.xlu0 %411 }
 0x12b   :  { %432 = vst.msk [vmem:[#allocation2 + $0x80] sm:$0xff] %vm428_vm13, %v414_v11  ;;  %431 = vst.msk [vmem:[#allocation2 + $0x78] sm:$0xff] %vm428_vm13, %v412_v12 }
 0x12c   :  { %717 = vrot.lane.b32.xlu1 %v5024_v56, %s4686_s6  ;;  %715 = vrot.lane.b32.xlu0 %v4993_v46, %s4686_s6 }
 0x12e   :  { %v418_v13 = vpop.permute.xlu1 %417  ;;  %v416_v14 = vpop.permute.xlu0 %415  ;;  %v536_v16 = vld [vmem:[#allocation2 + $0x68] sm:$0xff] }
 0x12f   :  { %434 = vst.msk [vmem:[#allocation2 + $0x90] sm:$0xff] %vm428_vm13, %v418_v13  ;;  %433 = vst.msk [vmem:[#allocation2 + $0x88] sm:$0xff] %vm428_vm13, %v416_v14  ;;  %v4433_v1 = vpack.c.bf16 %v536_v16, %v535_v15  ;;  %v5342_v15 = vld [vmem:[%s7762_s1 + $0x88] sm:$0xff] }
 0x130   :  { %735 = vrot.lane.b32.xlu1 %v4786_v10, %s4687_s7  ;;  %719 = vrot.lane.b32.xlu0 %v5050_v9, %s4686_s6 }
 0x131   :  { %4434 = vmatpush1.bf16.msra.mxu1 %v4433_v1 }
 0x132   :  { %v437_v3 = vpop.permute.xlu1 %436  ;;  %v420_v17 = vpop.permute.xlu0 %419  ;;  %4435 = vmatprep.subr.bf16.mxu1 %v4681_v8 }
 0x133   :  { %458 = vst.msk [vmem:[#allocation2 + $0x70] sm:$0xff] %vm457_vm14, %v437_v3 }
 0x134   :  { %435 = vst.msk [vmem:[#allocation2 + $0x98] sm:$0xff] %vm428_vm13, %v420_v17  ;;  %739 = vrot.lane.b32.xlu1 %v4936_v27, %s4687_s7  ;;  %737 = vrot.lane.b32.xlu0 %v4909_v18, %s4687_s7 }
 0x136   :  { %v441_v0 = vpop.permute.xlu1 %440  ;;  %v439_v5 = vpop.permute.xlu0 %438 }
 0x137   :  { %460 = vst.msk [vmem:[#allocation2 + $0x80] sm:$0xff] %vm457_vm14, %v441_v0  ;;  %459 = vst.msk [vmem:[#allocation2 + $0x78] sm:$0xff] %vm457_vm14, %v439_v5 }
 0x138   :  { %743 = vrot.lane.b32.xlu1 %v4993_v46, %s4687_s7  ;;  %741 = vrot.lane.b32.xlu0 %v4967_v37, %s4687_s7 }
 0x13a   :  { %v445_v19 = vpop.permute.xlu1 %444  ;;  %v443_v6 = vpop.permute.xlu0 %442  ;;  %v537_v29 = vld [vmem:[#allocation2 + $0x70] sm:$0xff] }
 0x13b   :  { %462 = vst.msk [vmem:[#allocation2 + $0x90] sm:$0xff] %vm457_vm14, %v445_v19  ;;  %461 = vst.msk [vmem:[#allocation2 + $0x88] sm:$0xff] %vm457_vm14, %v443_v6 }
 0x13c   :  { %747 = vrot.lane.b32.xlu1 %v5050_v9, %s4687_s7  ;;  %745 = vrot.lane.b32.xlu0 %v5024_v56, %s4687_s7 }
 0x13e   :  { %v449_v20 = vpop.permute.xlu1 %448  ;;  %v447_v21 = vpop.permute.xlu0 %446 }
 0x13f   :  { %464 = vst.msk [vmem:[#allocation2 + $0xa0] sm:$0xff] %vm457_vm14, %v449_v20  ;;  %463 = vst.msk [vmem:[#allocation2 + $0x98] sm:$0xff] %vm457_vm14, %v447_v21 }
 0x140   :  { %765 = vrot.lane.b32.xlu1 %v4909_v18, %s4688_s8  ;;  %763 = vrot.lane.b32.xlu0 %v4786_v10, %s4688_s8 }
 0x142   :  { %v468_v22 = vpop.permute.xlu1 %467  ;;  %v466_v23 = vpop.permute.xlu0 %465 }
 0x143   :  { %488 = vst.msk [vmem:[#allocation2 + $0x80] sm:$0xff] %vm7774_vm15, %v468_v22  ;;  %487 = vst.msk [vmem:[#allocation2 + $0x78] sm:$0xff] %vm7774_vm15, %v466_v23  ;;  %v5374_v22 = vld [vmem:[%s7762_s1 + $0x90] sm:$0xff] }
 0x144   :  { %769 = vrot.lane.b32.xlu1 %v4967_v37, %s4688_s8  ;;  %767 = vrot.lane.b32.xlu0 %v4936_v27, %s4688_s8 }
 0x146   :  { %v472_v24 = vpop.permute.xlu1 %471  ;;  %v470_v25 = vpop.permute.xlu0 %469 }
 0x147   :  { %490 = vst.msk [vmem:[#allocation2 + $0x90] sm:$0xff] %vm7774_vm15, %v472_v24  ;;  %489 = vst.msk [vmem:[#allocation2 + $0x88] sm:$0xff] %vm7774_vm15, %v470_v25 }
 0x148   :  { %773 = vrot.lane.b32.xlu1 %v5024_v56, %s4688_s8  ;;  %771 = vrot.lane.b32.xlu0 %v4993_v46, %s4688_s8 }
 0x14a   :  { %v476_v26 = vpop.permute.xlu1 %475  ;;  %v474_v28 = vpop.permute.xlu0 %473  ;;  %v538_v30 = vld [vmem:[#allocation2 + $0x78] sm:$0xff]  ;;  %v539_v32 = vld [vmem:[#allocation2 + $0x80] sm:$0xff] }
 0x14b   :  { %492 = vst.msk [vmem:[#allocation2 + $0xa0] sm:$0xff] %vm7774_vm15, %v476_v26  ;;  %491 = vst.msk [vmem:[#allocation2 + $0x98] sm:$0xff] %vm7774_vm15, %v474_v28  ;;  %v4436_v31 = vpack.c.bf16 %v538_v30, %v537_v29 }
 0x14c   :  { %791 = vrot.lane.b32.xlu1 %v4786_v10, %s4689_s9  ;;  %775 = vrot.lane.b32.xlu0 %v5050_v9, %s4688_s8 }
 0x14d   :  { %4437 = vmatpush1.bf16.msra.mxu1 %v4436_v31  ;;  %v5399_v31 = vld [vmem:[%s7762_s1 + $0x98] sm:$0xff] }
 0x14e   :  { %v568_v33 = vpop.permute.xlu1 %567  ;;  %v478_v34 = vpop.permute.xlu0 %477  ;;  %4438 = vmatprep.subr.bf16.mxu1 %v4681_v8  ;;  %v540_v35 = vld [vmem:[#allocation2 + $0x88] sm:$0xff]  ;;  %v541_v38 = vld [vmem:[#allocation2 + $0x90] sm:$0xff] }
 0x14f   :  { %588 = vst.msk [vmem:[#allocation2 + $0x8] sm:$0xff] %vm7773_vm1, %v568_v33  ;;  %v4439_v36 = vpack.c.bf16 %v540_v35, %v539_v32 }
 0x150   :  { %493 = vst.msk [vmem:[#allocation2 + $0xa8] sm:$0xff] %vm7774_vm15, %v478_v34  ;;  %795 = vrot.lane.b32.xlu1 %v4936_v27, %s4689_s9  ;;  %793 = vrot.lane.b32.xlu0 %v4909_v18, %s4689_s9 }
 0x151   :  { %4440 = vmatpush1.bf16.msra.mxu1 %v4439_v36 }
 0x152   :  { %v572_v39 = vpop.permute.xlu1 %571  ;;  %v570_v40 = vpop.permute.xlu0 %569  ;;  %4441 = vmatprep.subr.bf16.mxu1 %v4681_v8  ;;  %v542_v41 = vld [vmem:[#allocation2 + $0x98] sm:$0xff]  ;;  %v543_v43 = vld [vmem:[#allocation2 + $0xa0] sm:$0xff] }
 0x153   :  { %590 = vst.msk [vmem:[#allocation2 + $0x18] sm:$0xff] %vm7773_vm1, %v572_v39  ;;  %589 = vst.msk [vmem:[#allocation2 + $0x10] sm:$0xff] %vm7773_vm1, %v570_v40  ;;  %v4442_v42 = vpack.c.bf16 %v542_v41, %v541_v38 }
 0x154   :  { %799 = vrot.lane.b32.xlu1 %v4993_v46, %s4689_s9  ;;  %797 = vrot.lane.b32.xlu0 %v4967_v37, %s4689_s9 }
 0x155   :  { %4443 = vmatpush1.bf16.msra.mxu1 %v4442_v42 }
 0x156   :  { %v576_v44 = vpop.permute.xlu1 %575  ;;  %v574_v45 = vpop.permute.xlu0 %573  ;;  %4444 = vmatprep.subr.bf16.mxu1 %v4681_v8  ;;  %v1038_v48 = vld [vmem:[#allocation2 + $0x8] sm:$0xff] }
 0x157   :  { %v544_v47 = vld [vmem:[#allocation2 + $0xa8] sm:$0xff]  ;;  %592 = vst.msk [vmem:[#allocation2 + $0x28] sm:$0xff] %vm7773_vm1, %v576_v44  ;;  %591 = vst.msk [vmem:[#allocation2 + $0x20] sm:$0xff] %vm7773_vm1, %v574_v45  ;;  %v4382_v51 = vpack.c.bf16 %v1038_v48, %v5084_v2 }
 0x158   :  { %v4445_v50 = vpack.c.bf16 %v544_v47, %v543_v43  ;;  %1257 = vst.msk [vmem:[#allocation2 + $0x8] sm:$0xff] %vm44_vm0, %v5283_v49  ;;  %803 = vrot.lane.b32.xlu1 %v5050_v9, %s4689_s9  ;;  %801 = vrot.lane.b32.xlu0 %v5024_v56, %s4689_s9  ;;  %v5431_v43 = vld [vmem:[%s7762_s1 + $0xa0] sm:$0xff] }
 0x159   :  { %4383 = vmatpush1.bf16.msra.mxu0 %v4382_v51 }
 0x15a   :  { %4446 = vmatpush1.bf16.msra.mxu1 %v4445_v50  ;;  %v580_v52 = vpop.permute.xlu1 %579  ;;  %v578_v53 = vpop.permute.xlu0 %577  ;;  %4384 = vmatprep.subr.bf16.mxu0 %v4681_v8 }
 0x15b   :  { %4480 = vmatprep.subr.bf16.mxu1 %v4681_v8  ;;  %594 = vst.msk [vmem:[#allocation2 + $0x38] sm:$0xff] %vm7773_vm1, %v580_v52  ;;  %593 = vst.msk [vmem:[#allocation2 + $0x30] sm:$0xff] %vm7773_vm1, %v578_v53 }
 0x15c   :  { %821 = vrot.lane.b32.xlu1 %v4909_v18, %s4690_s12  ;;  %819 = vrot.lane.b32.xlu0 %v4786_v10, %s4690_s12 }
 0x15e   :  { %v598_v2 = vpop.permute.xlu1 %597  ;;  %v596_v54 = vpop.permute.xlu0 %595 }
 0x15f   :  { %617 = vst.msk [vmem:[#allocation2 + $0x18] sm:$0xff] %vm7770_vm2, %v598_v2  ;;  %616 = vst.msk [vmem:[#allocation2 + $0x10] sm:$0xff] %vm7770_vm2, %v596_v54 }
 0x160   :  { %825 = vrot.lane.b32.xlu1 %v4967_v37, %s4690_s12  ;;  %823 = vrot.lane.b32.xlu0 %v4936_v27, %s4690_s12 }
 0x162   :  { %v602_v55 = vpop.permute.xlu1 %601  ;;  %v600_v57 = vpop.permute.xlu0 %599 }
 0x163   :  { %619 = vst.msk [vmem:[#allocation2 + $0x28] sm:$0xff] %vm7770_vm2, %v602_v55  ;;  %618 = vst.msk [vmem:[#allocation2 + $0x20] sm:$0xff] %vm7770_vm2, %v600_v57  ;;  %v5473_v55 = vld [vmem:[#allocation2] sm:$0xff]  ;;  %v5478_v57 = vld [vmem:[%s7762_s1 + $0xa8] sm:$0xff] }
 0x164   :  { %829 = vrot.lane.b32.xlu1 %v5024_v56, %s4690_s12  ;;  %827 = vrot.lane.b32.xlu0 %v4993_v46, %s4690_s12  ;;  %1848 = vst.msk [vmem:[#allocation2] sm:$0xff] %vm44_vm0, %v5478_v57 }
 0x166   :  { %v606_v58 = vpop.permute.xlu1 %605  ;;  %v604_v59 = vpop.permute.xlu0 %603  ;;  %v1039_v60 = vld [vmem:[#allocation2 + $0x10] sm:$0xff] }
 0x167   :  { %621 = vst.msk [vmem:[#allocation2 + $0x38] sm:$0xff] %vm7770_vm2, %v606_v58  ;;  %620 = vst.msk [vmem:[#allocation2 + $0x30] sm:$0xff] %vm7770_vm2, %v604_v59 }
 0x168   :  { %1258 = vst.msk [vmem:[#allocation2 + $0x10] sm:$0xff] %vm44_vm0, %v5317_v61  ;;  %847 = vrot.lane.b32.xlu1 %v4786_v10, %s4691_s15  ;;  %831 = vrot.lane.b32.xlu0 %v5050_v9, %s4690_s12 }
 0x16a   :  { %v624_v62 = vpop.permute.xlu1 %623  ;;  %v608_v63 = vpop.permute.xlu0 %607 }
 0x16b   :  { %644 = vst.msk [vmem:[#allocation2 + $0x18] sm:$0xff] %vm7768_vm3, %v624_v62 }
 0x16c   :  { %622 = vst.msk [vmem:[#allocation2 + $0x40] sm:$0xff] %vm7770_vm2, %v608_v63  ;;  %851 = vrot.lane.b32.xlu1 %v4936_v27, %s4691_s15  ;;  %849 = vrot.lane.b32.xlu0 %v4909_v18, %s4691_s15 }
 0x16e   :  { %v628_v7 = vpop.permute.xlu1 %627  ;;  %v626_v11 = vpop.permute.xlu0 %625 }
 0x16f   :  { %646 = vst.msk [vmem:[#allocation2 + $0x28] sm:$0xff] %vm7768_vm3, %v628_v7  ;;  %645 = vst.msk [vmem:[#allocation2 + $0x20] sm:$0xff] %vm7768_vm3, %v626_v11 }
 0x170   :  { %855 = vrot.lane.b32.xlu1 %v4993_v46, %s4691_s15  ;;  %853 = vrot.lane.b32.xlu0 %v4967_v37, %s4691_s15 }
 0x172   :  { %v632_v12 = vpop.permute.xlu1 %631  ;;  %v630_v13 = vpop.permute.xlu0 %629  ;;  %v1040_v14 = vld [vmem:[#allocation2 + $0x18] sm:$0xff] }
 0x173   :  { %648 = vst.msk [vmem:[#allocation2 + $0x38] sm:$0xff] %vm7768_vm3, %v632_v12  ;;  %647 = vst.msk [vmem:[#allocation2 + $0x30] sm:$0xff] %vm7768_vm3, %v630_v13  ;;  %v4385_v16 = vpack.c.bf16 %v1040_v14, %v1039_v60 }
 0x174   :  { %1259 = vst.msk [vmem:[#allocation2 + $0x18] sm:$0xff] %vm44_vm0, %v5342_v15  ;;  %859 = vrot.lane.b32.xlu1 %v5050_v9, %s4691_s15  ;;  %857 = vrot.lane.b32.xlu0 %v5024_v56, %s4691_s15 }
 0x175   :  { %4386 = vmatpush1.bf16.msra.mxu0 %v4385_v16 }
 0x176   :  { %v636_v1 = vpop.permute.xlu1 %635  ;;  %v634_v3 = vpop.permute.xlu0 %633  ;;  %4387 = vmatprep.subr.bf16.mxu0 %v4681_v8 }
 0x177   :  { %650 = vst.msk [vmem:[#allocation2 + $0x48] sm:$0xff] %vm7768_vm3, %v636_v1  ;;  %649 = vst.msk [vmem:[#allocation2 + $0x40] sm:$0xff] %vm7768_vm3, %v634_v3 }
 0x178   :  { %877 = vrot.lane.b32.xlu1 %v4909_v18, %s4692_s19  ;;  %875 = vrot.lane.b32.xlu0 %v4786_v10, %s4692_s19 }
 0x17a   :  { %v654_v17 = vpop.permute.xlu1 %653  ;;  %v652_v0 = vpop.permute.xlu0 %651 }
 0x17b   :  { %673 = vst.msk [vmem:[#allocation2 + $0x28] sm:$0xff] %vm7769_vm4, %v654_v17  ;;  %672 = vst.msk [vmem:[#allocation2 + $0x20] sm:$0xff] %vm7769_vm4, %v652_v0 }
 0x17c   :  { %881 = vrot.lane.b32.xlu1 %v4967_v37, %s4692_s19  ;;  %879 = vrot.lane.b32.xlu0 %v4936_v27, %s4692_s19 }
 0x17e   :  { %v658_v5 = vpop.permute.xlu1 %657  ;;  %v656_v19 = vpop.permute.xlu0 %655 }
 0x17f   :  { %675 = vst.msk [vmem:[#allocation2 + $0x38] sm:$0xff] %vm7769_vm4, %v658_v5  ;;  %674 = vst.msk [vmem:[#allocation2 + $0x30] sm:$0xff] %vm7769_vm4, %v656_v19 }
 0x180   :  { %885 = vrot.lane.b32.xlu1 %v5024_v56, %s4692_s19  ;;  %883 = vrot.lane.b32.xlu0 %v4993_v46, %s4692_s19 }
 0x182   :  { %v662_v6 = vpop.permute.xlu1 %661  ;;  %v660_v20 = vpop.permute.xlu0 %659  ;;  %v1041_v21 = vld [vmem:[#allocation2 + $0x20] sm:$0xff] }
 0x183   :  { %677 = vst.msk [vmem:[#allocation2 + $0x48] sm:$0xff] %vm7769_vm4, %v662_v6  ;;  %676 = vst.msk [vmem:[#allocation2 + $0x40] sm:$0xff] %vm7769_vm4, %v660_v20 }
 0x184   :  { %1260 = vst.msk [vmem:[#allocation2 + $0x20] sm:$0xff] %vm44_vm0, %v5374_v22  ;;  %903 = vrot.lane.b32.xlu1 %v4786_v10, %s4693_s22  ;;  %887 = vrot.lane.b32.xlu0 %v5050_v9, %s4692_s19 }
 0x186   :  { %v680_v23 = vpop.permute.xlu1 %679  ;;  %v664_v24 = vpop.permute.xlu0 %663 }
 0x187   :  { %700 = vst.msk [vmem:[#allocation2 + $0x28] sm:$0xff] %vm7766_vm5, %v680_v23 }
 0x188   :  { %678 = vst.msk [vmem:[#allocation2 + $0x50] sm:$0xff] %vm7769_vm4, %v664_v24  ;;  %907 = vrot.lane.b32.xlu1 %v4936_v27, %s4693_s22  ;;  %905 = vrot.lane.b32.xlu0 %v4909_v18, %s4693_s22 }
 0x18a   :  { %v684_v25 = vpop.permute.xlu1 %683  ;;  %v682_v26 = vpop.permute.xlu0 %681 }
 0x18b   :  { %702 = vst.msk [vmem:[#allocation2 + $0x38] sm:$0xff] %vm7766_vm5, %v684_v25  ;;  %701 = vst.msk [vmem:[#allocation2 + $0x30] sm:$0xff] %vm7766_vm5, %v682_v26 }
 0x18c   :  { %911 = vrot.lane.b32.xlu1 %v4993_v46, %s4693_s22  ;;  %909 = vrot.lane.b32.xlu0 %v4967_v37, %s4693_s22 }
 0x18e   :  { %v688_v28 = vpop.permute.xlu1 %687  ;;  %v686_v29 = vpop.permute.xlu0 %685  ;;  %v1042_v30 = vld [vmem:[#allocation2 + $0x28] sm:$0xff] }
 0x18f   :  { %704 = vst.msk [vmem:[#allocation2 + $0x48] sm:$0xff] %vm7766_vm5, %v688_v28  ;;  %703 = vst.msk [vmem:[#allocation2 + $0x40] sm:$0xff] %vm7766_vm5, %v686_v29  ;;  %v4388_v32 = vpack.c.bf16 %v1042_v30, %v1041_v21 }
 0x190   :  { %1261 = vst.msk [vmem:[#allocation2 + $0x28] sm:$0xff] %vm44_vm0, %v5399_v31  ;;  %915 = vrot.lane.b32.xlu1 %v5050_v9, %s4693_s22  ;;  %913 = vrot.lane.b32.xlu0 %v5024_v56, %s4693_s22 }
 0x191   :  { %4389 = vmatpush1.bf16.msra.mxu0 %v4388_v32 }
 0x192   :  { %v692_v33 = vpop.permute.xlu1 %691  ;;  %v690_v34 = vpop.permute.xlu0 %689  ;;  %4390 = vmatprep.subr.bf16.mxu0 %v4681_v8 }
 0x193   :  { %706 = vst.msk [vmem:[#allocation2 + $0x58] sm:$0xff] %vm7766_vm5, %v692_v33  ;;  %705 = vst.msk [vmem:[#allocation2 + $0x50] sm:$0xff] %vm7766_vm5, %v690_v34  ;;  %vm1059_vm5 = vcmask 392192  }
 0x194   :  { %933 = vrot.lane.b32.xlu1 %v4909_v18, %s4694_s25  ;;  %931 = vrot.lane.b32.xlu0 %v4786_v10, %s4694_s25 }
 0x196   :  { %v710_v35 = vpop.permute.xlu1 %709  ;;  %v708_v36 = vpop.permute.xlu0 %707 }
 0x197   :  { %729 = vst.msk [vmem:[#allocation2 + $0x38] sm:$0xff] %vm7765_vm6, %v710_v35  ;;  %728 = vst.msk [vmem:[#allocation2 + $0x30] sm:$0xff] %vm7765_vm6, %v708_v36 }
 0x198   :  { %937 = vrot.lane.b32.xlu1 %v4967_v37, %s4694_s25  ;;  %935 = vrot.lane.b32.xlu0 %v4936_v27, %s4694_s25 }
 0x19a   :  { %v714_v38 = vpop.permute.xlu1 %713  ;;  %v712_v39 = vpop.permute.xlu0 %711 }
 0x19b   :  { %731 = vst.msk [vmem:[#allocation2 + $0x48] sm:$0xff] %vm7765_vm6, %v714_v38  ;;  %730 = vst.msk [vmem:[#allocation2 + $0x40] sm:$0xff] %vm7765_vm6, %v712_v39 }
 0x19c   :  { %941 = vrot.lane.b32.xlu1 %v5024_v56, %s4694_s25  ;;  %939 = vrot.lane.b32.xlu0 %v4993_v46, %s4694_s25 }
 0x19e   :  { %v718_v40 = vpop.permute.xlu1 %717  ;;  %v716_v41 = vpop.permute.xlu0 %715  ;;  %v1043_v42 = vld [vmem:[#allocation2 + $0x30] sm:$0xff] }
 0x19f   :  { %733 = vst.msk [vmem:[#allocation2 + $0x58] sm:$0xff] %vm7765_vm6, %v718_v40  ;;  %732 = vst.msk [vmem:[#allocation2 + $0x50] sm:$0xff] %vm7765_vm6, %v716_v41 }
 0x1a0   :  { %1262 = vst.msk [vmem:[#allocation2 + $0x30] sm:$0xff] %vm44_vm0, %v5431_v43  ;;  %959 = vrot.lane.b32.xlu1 %v4786_v10, %s4695_s28  ;;  %943 = vrot.lane.b32.xlu0 %v5050_v9, %s4694_s25  ;;  %v988_v10 = vld [vmem:[%s7761_s0 + $0x8] sm:$0xfe] }
 0x1a2   :  { %v736_v44 = vpop.permute.xlu1 %735  ;;  %v720_v45 = vpop.permute.xlu0 %719 }
 0x1a3   :  { %756 = vst.msk [vmem:[#allocation2 + $0x38] sm:$0xff] %vm254_vm7, %v736_v44 }
 0x1a4   :  { %734 = vst.msk [vmem:[#allocation2 + $0x60] sm:$0xff] %vm7765_vm6, %v720_v45  ;;  %963 = vrot.lane.b32.xlu1 %v4936_v27, %s4695_s28  ;;  %961 = vrot.lane.b32.xlu0 %v4909_v18, %s4695_s28  ;;  %v5459_v18 = vld [vmem:[%s7761_s0 + $0x18] sm:$0xff]  ;;  %v1009_v27 = vrot.slane %v988_v10, 1  ;;  %vm7767_vm6 = vcmask 1046528  }
 0x1a5   :  { %v1010_v50 = vrot.slane %v5459_v18, 1 }
 0x1a6   :  { %v740_v47 = vpop.permute.xlu1 %739  ;;  %v738_v48 = vpop.permute.xlu0 %737 }
 0x1a7   :  { %758 = vst.msk [vmem:[#allocation2 + $0x48] sm:$0xff] %vm254_vm7, %v740_v47  ;;  %757 = vst.msk [vmem:[#allocation2 + $0x40] sm:$0xff] %vm254_vm7, %v738_v48 }
 0x1a8   :  { %967 = vrot.lane.b32.xlu1 %v4993_v46, %s4695_s28  ;;  %965 = vrot.lane.b32.xlu0 %v4967_v37, %s4695_s28  ;;  %v1011_v46 = vsel %vm7767_vm6, %v1009_v27, %v1010_v50 }
 0x1a9   :  { %4317 = vmatprep.mubr.msk.f32.mxu0 %vm1059_vm5, %v1011_v46 }
 0x1aa   :  { %v744_v51 = vpop.permute.xlu1 %743  ;;  %v742_v52 = vpop.permute.xlu0 %741  ;;  %v1044_v53 = vld [vmem:[#allocation2 + $0x38] sm:$0xff] }
 0x1ab   :  { %760 = vst.msk [vmem:[#allocation2 + $0x58] sm:$0xff] %vm254_vm7, %v744_v51  ;;  %759 = vst.msk [vmem:[#allocation2 + $0x50] sm:$0xff] %vm254_vm7, %v742_v52  ;;  %v4391_v37 = vpack.c.bf16 %v1044_v53, %v1043_v42 }
 0x1ac   :  { %971 = vrot.lane.b32.xlu1 %v5050_v9, %s4695_s28  ;;  %969 = vrot.lane.b32.xlu0 %v5024_v56, %s4695_s28 }
 0x1ad   :  { %4392 = vmatpush1.bf16.msra.mxu0 %v4391_v37 }
 0x1ae   :  { %v748_v2 = vpop.permute.xlu1 %747  ;;  %v746_v54 = vpop.permute.xlu0 %745  ;;  %4393 = vmatprep.subr.bf16.mxu0 %v4681_v8 }
 0x1af   :  { %762 = vst.msk [vmem:[#allocation2 + $0x68] sm:$0xff] %vm254_vm7, %v748_v2  ;;  %761 = vst.msk [vmem:[#allocation2 + $0x60] sm:$0xff] %vm254_vm7, %v746_v54 }
 0x1b0   :  { %1272 = vrot.lane.b32.xlu1 %v5283_v49, %s4679_s16  ;;  %1270 = vrot.lane.b32.xlu0 %v5089_v4, %s4679_s16 }
 0x1b2   :  { %v766_v56 = vpop.permute.xlu1 %765  ;;  %v764_v9 = vpop.permute.xlu0 %763 }
 0x1b3   :  { %785 = vst.msk [vmem:[#allocation2 + $0x48] sm:$0xff] %vm283_vm8, %v766_v56  ;;  %784 = vst.msk [vmem:[#allocation2 + $0x40] sm:$0xff] %vm283_vm8, %v764_v9 }
 0x1b4   :  { %1276 = vrot.lane.b32.xlu1 %v5342_v15, %s4679_s16  ;;  %1274 = vrot.lane.b32.xlu0 %v5317_v61, %s4679_s16 }
 0x1b6   :  { %v770_v58 = vpop.permute.xlu1 %769  ;;  %v768_v59 = vpop.permute.xlu0 %767 }
 0x1b7   :  { %787 = vst.msk [vmem:[#allocation2 + $0x58] sm:$0xff] %vm283_vm8, %v770_v58  ;;  %786 = vst.msk [vmem:[#allocation2 + $0x50] sm:$0xff] %vm283_vm8, %v768_v59 }
 0x1b8   :  { %1280 = vrot.lane.b32.xlu1 %v5399_v31, %s4679_s16  ;;  %1278 = vrot.lane.b32.xlu0 %v5374_v22, %s4679_s16 }
 0x1ba   :  { %v774_v60 = vpop.permute.xlu1 %773  ;;  %v772_v62 = vpop.permute.xlu0 %771  ;;  %v1045_v16 = vld [vmem:[#allocation2 + $0x40] sm:$0xff] }
 0x1bb   :  { %789 = vst.msk [vmem:[#allocation2 + $0x68] sm:$0xff] %vm283_vm8, %v774_v60  ;;  %788 = vst.msk [vmem:[#allocation2 + $0x60] sm:$0xff] %vm283_vm8, %v772_v62 }
 0x1bc   :  { %1298 = vrot.lane.b32.xlu1 %v5089_v4, %s4682_s29  ;;  %1282 = vrot.lane.b32.xlu0 %v5431_v43, %s4679_s16 }
 0x1be   :  { %v792_v63 = vpop.permute.xlu1 %791  ;;  %v776_v7 = vpop.permute.xlu0 %775 }
 0x1bf   :  { %812 = vst.msk [vmem:[#allocation2 + $0x48] sm:$0xff] %vm312_vm9, %v792_v63 }
 0x1c0   :  { %790 = vst.msk [vmem:[#allocation2 + $0x70] sm:$0xff] %vm283_vm8, %v776_v7  ;;  %1302 = vrot.lane.b32.xlu1 %v5317_v61, %s4682_s29  ;;  %1300 = vrot.lane.b32.xlu0 %v5283_v49, %s4682_s29 }
 0x1c2   :  { %v796_v11 = vpop.permute.xlu1 %795  ;;  %v794_v12 = vpop.permute.xlu0 %793 }
 0x1c3   :  { %814 = vst.msk [vmem:[#allocation2 + $0x58] sm:$0xff] %vm312_vm9, %v796_v11  ;;  %813 = vst.msk [vmem:[#allocation2 + $0x50] sm:$0xff] %vm312_vm9, %v794_v12 }
 0x1c4   :  { %1306 = vrot.lane.b32.xlu1 %v5374_v22, %s4682_s29  ;;  %1304 = vrot.lane.b32.xlu0 %v5342_v15, %s4682_s29 }
 0x1c6   :  { %v800_v13 = vpop.permute.xlu1 %799  ;;  %v798_v14 = vpop.permute.xlu0 %797  ;;  %v1046_v1 = vld [vmem:[#allocation2 + $0x48] sm:$0xff] }
 0x1c7   :  { %816 = vst.msk [vmem:[#allocation2 + $0x68] sm:$0xff] %vm312_vm9, %v800_v13  ;;  %815 = vst.msk [vmem:[#allocation2 + $0x60] sm:$0xff] %vm312_vm9, %v798_v14  ;;  %v4394_v3 = vpack.c.bf16 %v1046_v1, %v1045_v16 }
 0x1c8   :  { %1310 = vrot.lane.b32.xlu1 %v5431_v43, %s4682_s29  ;;  %1308 = vrot.lane.b32.xlu0 %v5399_v31, %s4682_s29 }
 0x1c9   :  { %4395 = vmatpush1.bf16.msra.mxu0 %v4394_v3 }
 0x1ca   :  { %v804_v17 = vpop.permute.xlu1 %803  ;;  %v802_v0 = vpop.permute.xlu0 %801  ;;  %4396 = vmatprep.subr.bf16.mxu0 %v4681_v8 }
 0x1cb   :  { %818 = vst.msk [vmem:[#allocation2 + $0x78] sm:$0xff] %vm312_vm9, %v804_v17  ;;  %817 = vst.msk [vmem:[#allocation2 + $0x70] sm:$0xff] %vm312_vm9, %v802_v0 }
 0x1cc   :  { %1328 = vrot.lane.b32.xlu1 %v5283_v49, %s4683_s30  ;;  %1326 = vrot.lane.b32.xlu0 %v5089_v4, %s4683_s30 }
 0x1ce   :  { %v822_v5 = vpop.permute.xlu1 %821  ;;  %v820_v19 = vpop.permute.xlu0 %819 }
 0x1cf   :  { %841 = vst.msk [vmem:[#allocation2 + $0x58] sm:$0xff] %vm341_vm10, %v822_v5  ;;  %840 = vst.msk [vmem:[#allocation2 + $0x50] sm:$0xff] %vm341_vm10, %v820_v19 }
 0x1d0   :  { %1332 = vrot.lane.b32.xlu1 %v5342_v15, %s4683_s30  ;;  %1330 = vrot.lane.b32.xlu0 %v5317_v61, %s4683_s30 }
 0x1d2   :  { %v826_v6 = vpop.permute.xlu1 %825  ;;  %v824_v20 = vpop.permute.xlu0 %823 }
 0x1d3   :  { %843 = vst.msk [vmem:[#allocation2 + $0x68] sm:$0xff] %vm341_vm10, %v826_v6  ;;  %842 = vst.msk [vmem:[#allocation2 + $0x60] sm:$0xff] %vm341_vm10, %v824_v20 }
 0x1d4   :  { %1336 = vrot.lane.b32.xlu1 %v5399_v31, %s4683_s30  ;;  %1334 = vrot.lane.b32.xlu0 %v5374_v22, %s4683_s30 }
 0x1d6   :  { %v830_v21 = vpop.permute.xlu1 %829  ;;  %v828_v23 = vpop.permute.xlu0 %827  ;;  %v1047_v32 = vld [vmem:[#allocation2 + $0x50] sm:$0xff] }
 0x1d7   :  { %845 = vst.msk [vmem:[#allocation2 + $0x78] sm:$0xff] %vm341_vm10, %v830_v21  ;;  %844 = vst.msk [vmem:[#allocation2 + $0x70] sm:$0xff] %vm341_vm10, %v828_v23 }
 0x1d8   :  { %1354 = vrot.lane.b32.xlu1 %v5089_v4, %s4684_s4  ;;  %1338 = vrot.lane.b32.xlu0 %v5431_v43, %s4683_s30 }
 0x1da   :  { %v848_v24 = vpop.permute.xlu1 %847  ;;  %v832_v25 = vpop.permute.xlu0 %831 }
 0x1db   :  { %868 = vst.msk [vmem:[#allocation2 + $0x58] sm:$0xff] %vm370_vm11, %v848_v24 }
 0x1dc   :  { %846 = vst.msk [vmem:[#allocation2 + $0x80] sm:$0xff] %vm341_vm10, %v832_v25  ;;  %1358 = vrot.lane.b32.xlu1 %v5317_v61, %s4684_s4  ;;  %1356 = vrot.lane.b32.xlu0 %v5283_v49, %s4684_s4  ;;  %v987_v25 = vld [vmem:[%s7761_s0] sm:$0xfe] }
 0x1de   :  { %v852_v26 = vpop.permute.xlu1 %851  ;;  %v850_v28 = vpop.permute.xlu0 %849 }
 0x1df   :  { %870 = vst.msk [vmem:[#allocation2 + $0x68] sm:$0xff] %vm370_vm11, %v852_v26  ;;  %869 = vst.msk [vmem:[#allocation2 + $0x60] sm:$0xff] %vm370_vm11, %v850_v28  ;;  %v5669_v26 = vld [vmem:[%s7761_s0 + $0x10] sm:$0xff] }
 0x1e0   :  { %1362 = vrot.lane.b32.xlu1 %v5374_v22, %s4684_s4  ;;  %1360 = vrot.lane.b32.xlu0 %v5342_v15, %s4684_s4 }
 0x1e2   :  { %v856_v29 = vpop.permute.xlu1 %855  ;;  %v854_v30 = vpop.permute.xlu0 %853  ;;  %v1048_v33 = vld [vmem:[#allocation2 + $0x58] sm:$0xff] }
 0x1e3   :  { %872 = vst.msk [vmem:[#allocation2 + $0x78] sm:$0xff] %vm370_vm11, %v856_v29  ;;  %871 = vst.msk [vmem:[#allocation2 + $0x70] sm:$0xff] %vm370_vm11, %v854_v30  ;;  %v4397_v34 = vpack.c.bf16 %v1048_v33, %v1047_v32  ;;  %v1006_v33 = vrot.slane %v987_v25, 1 }
 0x1e4   :  { %1366 = vrot.lane.b32.xlu1 %v5431_v43, %s4684_s4  ;;  %1364 = vrot.lane.b32.xlu0 %v5399_v31, %s4684_s4 }
 0x1e5   :  { %4398 = vmatpush1.bf16.msra.mxu0 %v4397_v34  ;;  %v1007_v34 = vrot.slane %v5669_v26, 1  ;;  %v993_v26 = vld [vmem:[%s7761_s0 + $0x20] sm:$0x80] }
 0x1e6   :  { %v860_v35 = vpop.permute.xlu1 %859  ;;  %v858_v36 = vpop.permute.xlu0 %857  ;;  %4399 = vmatprep.subr.bf16.mxu0 %v4681_v8 }
 0x1e7   :  { %874 = vst.msk [vmem:[#allocation2 + $0x88] sm:$0xff] %vm370_vm11, %v860_v35  ;;  %873 = vst.msk [vmem:[#allocation2 + $0x80] sm:$0xff] %vm370_vm11, %v858_v36 }
 0x1e8   :  { %1384 = vrot.lane.b32.xlu1 %v5283_v49, %s4685_s5  ;;  %1382 = vrot.lane.b32.xlu0 %v5089_v4, %s4685_s5 }
 0x1ea   :  { %v878_v38 = vpop.permute.xlu1 %877  ;;  %v876_v39 = vpop.permute.xlu0 %875 }
 0x1eb   :  { %897 = vst.msk [vmem:[#allocation2 + $0x68] sm:$0xff] %vm399_vm12, %v878_v38  ;;  %896 = vst.msk [vmem:[#allocation2 + $0x60] sm:$0xff] %vm399_vm12, %v876_v39  ;;  %v1008_v39 = vsel %vm7767_vm6, %v1006_v33, %v1007_v34  ;;  %vm7775_vm6 = vcmask 392512  }
 0x1ec   :  { %1388 = vrot.lane.b32.xlu1 %v5342_v15, %s4685_s5  ;;  %1386 = vrot.lane.b32.xlu0 %v5317_v61, %s4685_s5 }
 0x1ee   :  { %v882_v40 = vpop.permute.xlu1 %881  ;;  %v880_v41 = vpop.permute.xlu0 %879 }
 0x1ef   :  { %899 = vst.msk [vmem:[#allocation2 + $0x78] sm:$0xff] %vm399_vm12, %v882_v40  ;;  %898 = vst.msk [vmem:[#allocation2 + $0x70] sm:$0xff] %vm399_vm12, %v880_v41  ;;  %v5690_v41 = vld [vmem:[%s7762_s1 + $0xb0] sm:$0xff] }
 0x1f0   :  { %1392 = vrot.lane.b32.xlu1 %v5399_v31, %s4685_s5  ;;  %1390 = vrot.lane.b32.xlu0 %v5374_v22, %s4685_s5 }
 0x1f2   :  { %v886_v42 = vpop.permute.xlu1 %885  ;;  %v884_v44 = vpop.permute.xlu0 %883  ;;  %v1049_v52 = vld [vmem:[#allocation2 + $0x60] sm:$0xff] }
 0x1f3   :  { %901 = vst.msk [vmem:[#allocation2 + $0x88] sm:$0xff] %vm399_vm12, %v886_v42  ;;  %900 = vst.msk [vmem:[#allocation2 + $0x80] sm:$0xff] %vm399_vm12, %v884_v44 }
 0x1f4   :  { %1410 = vrot.lane.b32.xlu1 %v5089_v4, %s4686_s6  ;;  %1394 = vrot.lane.b32.xlu0 %v5431_v43, %s4685_s5 }
 0x1f6   :  { %v904_v45 = vpop.permute.xlu1 %903  ;;  %v888_v47 = vpop.permute.xlu0 %887 }
 0x1f7   :  { %924 = vst.msk [vmem:[#allocation2 + $0x68] sm:$0xff] %vm428_vm13, %v904_v45 }
 0x1f8   :  { %902 = vst.msk [vmem:[#allocation2 + $0x90] sm:$0xff] %vm399_vm12, %v888_v47  ;;  %1414 = vrot.lane.b32.xlu1 %v5317_v61, %s4686_s6  ;;  %1412 = vrot.lane.b32.xlu0 %v5283_v49, %s4686_s6 }
 0x1fa   :  { %v908_v48 = vpop.permute.xlu1 %907  ;;  %v906_v10 = vpop.permute.xlu0 %905 }
 0x1fb   :  { %926 = vst.msk [vmem:[#allocation2 + $0x78] sm:$0xff] %vm428_vm13, %v908_v48  ;;  %925 = vst.msk [vmem:[#allocation2 + $0x70] sm:$0xff] %vm428_vm13, %v906_v10 }
 0x1fc   :  { %1418 = vrot.lane.b32.xlu1 %v5374_v22, %s4686_s6  ;;  %1416 = vrot.lane.b32.xlu0 %v5342_v15, %s4686_s6 }
 0x1fe   :  { %v912_v27 = vpop.permute.xlu1 %911  ;;  %v910_v51 = vpop.permute.xlu0 %909  ;;  %v1050_v53 = vld [vmem:[#allocation2 + $0x68] sm:$0xff] }
 0x1ff   :  { %928 = vst.msk [vmem:[#allocation2 + $0x88] sm:$0xff] %vm428_vm13, %v912_v27  ;;  %927 = vst.msk [vmem:[#allocation2 + $0x80] sm:$0xff] %vm428_vm13, %v910_v51  ;;  %v4400_v37 = vpack.c.bf16 %v1050_v53, %v1049_v52  ;;  %v5717_v51 = vld [vmem:[%s7762_s1 + $0xb8] sm:$0xff] }
 0x200   :  { %1422 = vrot.lane.b32.xlu1 %v5431_v43, %s4686_s6  ;;  %1420 = vrot.lane.b32.xlu0 %v5399_v31, %s4686_s6 }
 0x201   :  { %4401 = vmatpush1.bf16.msra.mxu0 %v4400_v37 }
 0x202   :  { %v916_v46 = vpop.permute.xlu1 %915  ;;  %v914_v2 = vpop.permute.xlu0 %913  ;;  %4402 = vmatprep.subr.bf16.mxu0 %v4681_v8 }
 0x203   :  { %930 = vst.msk [vmem:[#allocation2 + $0x98] sm:$0xff] %vm428_vm13, %v916_v46  ;;  %929 = vst.msk [vmem:[#allocation2 + $0x90] sm:$0xff] %vm428_vm13, %v914_v2 }
 0x204   :  { %1440 = vrot.lane.b32.xlu1 %v5283_v49, %s4687_s7  ;;  %1438 = vrot.lane.b32.xlu0 %v5089_v4, %s4687_s7 }
 0x206   :  { %v934_v54 = vpop.permute.xlu1 %933  ;;  %v932_v56 = vpop.permute.xlu0 %931 }
 0x207   :  { %953 = vst.msk [vmem:[#allocation2 + $0x78] sm:$0xff] %vm457_vm14, %v934_v54  ;;  %952 = vst.msk [vmem:[#allocation2 + $0x70] sm:$0xff] %vm457_vm14, %v932_v56 }
 0x208   :  { %1444 = vrot.lane.b32.xlu1 %v5342_v15, %s4687_s7  ;;  %1442 = vrot.lane.b32.xlu0 %v5317_v61, %s4687_s7 }
 0x20a   :  { %v938_v9 = vpop.permute.xlu1 %937  ;;  %v936_v58 = vpop.permute.xlu0 %935 }
 0x20b   :  { %955 = vst.msk [vmem:[#allocation2 + $0x88] sm:$0xff] %vm457_vm14, %v938_v9  ;;  %954 = vst.msk [vmem:[#allocation2 + $0x80] sm:$0xff] %vm457_vm14, %v936_v58 }
 0x20c   :  { %1448 = vrot.lane.b32.xlu1 %v5399_v31, %s4687_s7  ;;  %1446 = vrot.lane.b32.xlu0 %v5374_v22, %s4687_s7 }
 0x20e   :  { %v942_v59 = vpop.permute.xlu1 %941  ;;  %v940_v60 = vpop.permute.xlu0 %939  ;;  %v1051_v14 = vld [vmem:[#allocation2 + $0x70] sm:$0xff] }
 0x20f   :  { %957 = vst.msk [vmem:[#allocation2 + $0x98] sm:$0xff] %vm457_vm14, %v942_v59  ;;  %956 = vst.msk [vmem:[#allocation2 + $0x90] sm:$0xff] %vm457_vm14, %v940_v60  ;;  %v5748_v59 = vld [vmem:[%s7762_s1 + $0xc0] sm:$0xff] }
 0x210   :  { %1466 = vrot.lane.b32.xlu1 %v5089_v4, %s4688_s8  ;;  %1450 = vrot.lane.b32.xlu0 %v5431_v43, %s4687_s7 }
 0x212   :  { %v960_v62 = vpop.permute.xlu1 %959  ;;  %v944_v63 = vpop.permute.xlu0 %943 }
 0x213   :  { %980 = vst.msk [vmem:[#allocation2 + $0x78] sm:$0xff] %vm7774_vm15, %v960_v62 }
 0x214   :  { %958 = vst.msk [vmem:[#allocation2 + $0xa0] sm:$0xff] %vm457_vm14, %v944_v63  ;;  %1470 = vrot.lane.b32.xlu1 %v5317_v61, %s4688_s8  ;;  %1468 = vrot.lane.b32.xlu0 %v5283_v49, %s4688_s8 }
 0x216   :  { %v964_v7 = vpop.permute.xlu1 %963  ;;  %v962_v11 = vpop.permute.xlu0 %961 }
 0x217   :  { %982 = vst.msk [vmem:[#allocation2 + $0x88] sm:$0xff] %vm7774_vm15, %v964_v7  ;;  %981 = vst.msk [vmem:[#allocation2 + $0x80] sm:$0xff] %vm7774_vm15, %v962_v11 }
 0x218   :  { %1474 = vrot.lane.b32.xlu1 %v5374_v22, %s4688_s8  ;;  %1472 = vrot.lane.b32.xlu0 %v5342_v15, %s4688_s8 }
 0x21a   :  { %v968_v12 = vpop.permute.xlu1 %967  ;;  %v966_v13 = vpop.permute.xlu0 %965  ;;  %v1052_v16 = vld [vmem:[#allocation2 + $0x78] sm:$0xff] }
 0x21b   :  { %984 = vst.msk [vmem:[#allocation2 + $0x98] sm:$0xff] %vm7774_vm15, %v968_v12  ;;  %983 = vst.msk [vmem:[#allocation2 + $0x90] sm:$0xff] %vm7774_vm15, %v966_v13  ;;  %v4403_v1 = vpack.c.bf16 %v1052_v16, %v1051_v14  ;;  %v5774_v16 = vld [vmem:[%s7762_s1 + $0xc8] sm:$0xff] }
 0x21c   :  { %1478 = vrot.lane.b32.xlu1 %v5431_v43, %s4688_s8  ;;  %1476 = vrot.lane.b32.xlu0 %v5399_v31, %s4688_s8 }
 0x21d   :  { %4404 = vmatpush1.bf16.msra.mxu0 %v4403_v1 }
 0x21e   :  { %v972_v3 = vpop.permute.xlu1 %971  ;;  %v970_v17 = vpop.permute.xlu0 %969  ;;  %4405 = vmatprep.subr.bf16.mxu0 %v4681_v8  ;;  %v1053_v0 = vld [vmem:[#allocation2 + $0x80] sm:$0xff]  ;;  %v1054_v5 = vld [vmem:[#allocation2 + $0x88] sm:$0xff] }
 0x21f   :  { %986 = vst.msk [vmem:[#allocation2 + $0xa8] sm:$0xff] %vm7774_vm15, %v972_v3  ;;  %985 = vst.msk [vmem:[#allocation2 + $0xa0] sm:$0xff] %vm7774_vm15, %v970_v17  ;;  %v4406_v19 = vpack.c.bf16 %v1054_v5, %v1053_v0 }
 0x220   :  { %1496 = vrot.lane.b32.xlu1 %v5283_v49, %s4689_s9  ;;  %1494 = vrot.lane.b32.xlu0 %v5089_v4, %s4689_s9 }
 0x221   :  { %4407 = vmatpush1.bf16.msra.mxu0 %v4406_v19 }
 0x222   :  { %v1273_v6 = vpop.permute.xlu1 %1272  ;;  %v1271_v20 = vpop.permute.xlu0 %1270  ;;  %4408 = vmatprep.subr.bf16.mxu0 %v4681_v8  ;;  %v1055_v21 = vld [vmem:[#allocation2 + $0x90] sm:$0xff]  ;;  %v1056_v23 = vld [vmem:[#allocation2 + $0x98] sm:$0xff] }
 0x223   :  { %1292 = vst.msk [vmem:[#allocation2 + $0x10] sm:$0xff] %vm7773_vm1, %v1273_v6  ;;  %1291 = vst.msk [vmem:[#allocation2 + $0x8] sm:$0xff] %vm7773_vm1, %v1271_v20  ;;  %v4409_v24 = vpack.c.bf16 %v1056_v23, %v1055_v21  ;;  %v5805_v23 = vld [vmem:[%s7762_s1 + $0xd0] sm:$0xff] }
 0x224   :  { %1500 = vrot.lane.b32.xlu1 %v5342_v15, %s4689_s9  ;;  %1498 = vrot.lane.b32.xlu0 %v5317_v61, %s4689_s9 }
 0x225   :  { %4410 = vmatpush1.bf16.msra.mxu0 %v4409_v24 }
 0x226   :  { %v1277_v28 = vpop.permute.xlu1 %1276  ;;  %v1275_v29 = vpop.permute.xlu0 %1274  ;;  %4411 = vmatprep.subr.bf16.mxu0 %v4681_v8  ;;  %v1057_v30 = vld [vmem:[#allocation2 + $0xa0] sm:$0xff]  ;;  %v1058_v32 = vld [vmem:[#allocation2 + $0xa8] sm:$0xff] }
 0x227   :  { %1294 = vst.msk [vmem:[#allocation2 + $0x20] sm:$0xff] %vm7773_vm1, %v1277_v28  ;;  %1293 = vst.msk [vmem:[#allocation2 + $0x18] sm:$0xff] %vm7773_vm1, %v1275_v29  ;;  %v4412_v35 = vpack.c.bf16 %v1058_v32, %v1057_v30 }
 0x228   :  { %1504 = vrot.lane.b32.xlu1 %v5399_v31, %s4689_s9  ;;  %1502 = vrot.lane.b32.xlu0 %v5374_v22, %s4689_s9 }
 0x229   :  { %4413 = vmatpush1.bf16.msra.mxu0 %v4412_v35 }
 0x22a   :  { %v1281_v36 = vpop.permute.xlu1 %1280  ;;  %v1279_v38 = vpop.permute.xlu0 %1278  ;;  %4447 = vmatprep.subr.bf16.mxu0 %v4681_v8  ;;  %v1720_v40 = vld [vmem:[#allocation2 + $0x8] sm:$0xff] }
 0x22b   :  { %1296 = vst.msk [vmem:[#allocation2 + $0x30] sm:$0xff] %vm7773_vm1, %v1281_v36  ;;  %1295 = vst.msk [vmem:[#allocation2 + $0x28] sm:$0xff] %vm7773_vm1, %v1279_v38  ;;  %v4448_v42 = vpack.c.bf16 %v1720_v40, %v5473_v55  ;;  %v5831_v36 = vld [vmem:[%s7762_s1 + $0xd8] sm:$0xff] }
 0x22c   :  { %1849 = vst.msk [vmem:[#allocation2 + $0x8] sm:$0xff] %vm44_vm0, %v5690_v41  ;;  %1522 = vrot.lane.b32.xlu1 %v5089_v4, %s4690_s12  ;;  %1506 = vrot.lane.b32.xlu0 %v5431_v43, %s4689_s9 }
 0x22d   :  { %1133 = vmatmul.mubr.f32.vlgmr.msra.gmra.mrb[0].mxu0 %v1008_v39 }
 0x22e   :  { %4449 = vmatpush1.bf16.msra.mxu0 %v4448_v42  ;;  %v1299_v44 = vpop.permute.xlu1 %1298  ;;  %v1283_v45 = vpop.permute.xlu0 %1282 }
 0x22f   :  { %1319 = vst.msk [vmem:[#allocation2 + $0x10] sm:$0xff] %vm7770_vm2, %v1299_v44  ;;  %4450 = vmatprep.subr.bf16.mxu0 %v4681_v8 }
 0x230   :  { %1297 = vst.msk [vmem:[#allocation2 + $0x38] sm:$0xff] %vm7773_vm1, %v1283_v45  ;;  %1526 = vrot.lane.b32.xlu1 %v5317_v61, %s4690_s12  ;;  %1524 = vrot.lane.b32.xlu0 %v5283_v49, %s4690_s12 }
 0x232   :  { %v1303_v55 = vpop.permute.xlu1 %1302  ;;  %v1301_v47 = vpop.permute.xlu0 %1300 }
 0x233   :  { %1321 = vst.msk [vmem:[#allocation2 + $0x20] sm:$0xff] %vm7770_vm2, %v1303_v55  ;;  %1320 = vst.msk [vmem:[#allocation2 + $0x18] sm:$0xff] %vm7770_vm2, %v1301_v47  ;;  %v5876_v47 = vld [vmem:[%s7762_s1 + $0xe0] sm:$0xff] }
 0x234   :  { %1530 = vrot.lane.b32.xlu1 %v5374_v22, %s4690_s12  ;;  %1528 = vrot.lane.b32.xlu0 %v5342_v15, %s4690_s12 }
 0x236   :  { %v1307_v48 = vpop.permute.xlu1 %1306  ;;  %v1305_v10 = vpop.permute.xlu0 %1304  ;;  %v1721_v27 = vld [vmem:[#allocation2 + $0x10] sm:$0xff] }
 0x237   :  { %1323 = vst.msk [vmem:[#allocation2 + $0x30] sm:$0xff] %vm7770_vm2, %v1307_v48  ;;  %1322 = vst.msk [vmem:[#allocation2 + $0x28] sm:$0xff] %vm7770_vm2, %v1305_v10 }
 0x238   :  { %1850 = vst.msk [vmem:[#allocation2 + $0x10] sm:$0xff] %vm44_vm0, %v5717_v51  ;;  %1534 = vrot.lane.b32.xlu1 %v5431_v43, %s4690_s12  ;;  %1532 = vrot.lane.b32.xlu0 %v5399_v31, %s4690_s12 }
 0x23a   :  { %v1311_v52 = vpop.permute.xlu1 %1310  ;;  %v1309_v53 = vpop.permute.xlu0 %1308 }
 0x23b   :  { %1325 = vst.msk [vmem:[#allocation2 + $0x40] sm:$0xff] %vm7770_vm2, %v1311_v52  ;;  %1324 = vst.msk [vmem:[#allocation2 + $0x38] sm:$0xff] %vm7770_vm2, %v1309_v53 }
 0x23c   :  { %1552 = vrot.lane.b32.xlu1 %v5283_v49, %s4691_s15  ;;  %1550 = vrot.lane.b32.xlu0 %v5089_v4, %s4691_s15 }
 0x23e   :  { %v1329_v37 = vpop.permute.xlu1 %1328  ;;  %v1327_v46 = vpop.permute.xlu0 %1326 }
 0x23f   :  { %1348 = vst.msk [vmem:[#allocation2 + $0x20] sm:$0xff] %vm7768_vm3, %v1329_v37  ;;  %1347 = vst.msk [vmem:[#allocation2 + $0x18] sm:$0xff] %vm7768_vm3, %v1327_v46 }
 0x240   :  { %1556 = vrot.lane.b32.xlu1 %v5342_v15, %s4691_s15  ;;  %1554 = vrot.lane.b32.xlu0 %v5317_v61, %s4691_s15 }
 0x242   :  { %v1333_v2 = vpop.permute.xlu1 %1332  ;;  %v1331_v54 = vpop.permute.xlu0 %1330 }
 0x243   :  { %1350 = vst.msk [vmem:[#allocation2 + $0x30] sm:$0xff] %vm7768_vm3, %v1333_v2  ;;  %1349 = vst.msk [vmem:[#allocation2 + $0x28] sm:$0xff] %vm7768_vm3, %v1331_v54 }
 0x244   :  { %1560 = vrot.lane.b32.xlu1 %v5399_v31, %s4691_s15  ;;  %1558 = vrot.lane.b32.xlu0 %v5374_v22, %s4691_s15 }
 0x246   :  { %v1337_v56 = vpop.permute.xlu1 %1336  ;;  %v1335_v9 = vpop.permute.xlu0 %1334  ;;  %v1722_v58 = vld [vmem:[#allocation2 + $0x18] sm:$0xff] }
 0x247   :  { %1352 = vst.msk [vmem:[#allocation2 + $0x40] sm:$0xff] %vm7768_vm3, %v1337_v56  ;;  %1351 = vst.msk [vmem:[#allocation2 + $0x38] sm:$0xff] %vm7768_vm3, %v1335_v9  ;;  %v4451_v60 = vpack.c.bf16 %v1722_v58, %v1721_v27 }
 0x248   :  { %1851 = vst.msk [vmem:[#allocation2 + $0x18] sm:$0xff] %vm44_vm0, %v5748_v59  ;;  %1578 = vrot.lane.b32.xlu1 %v5089_v4, %s4692_s19  ;;  %1562 = vrot.lane.b32.xlu0 %v5431_v43, %s4691_s15 }
 0x249   :  { %4452 = vmatpush1.bf16.msra.mxu0 %v4451_v60 }
 0x24a   :  { %v1355_v62 = vpop.permute.xlu1 %1354  ;;  %v1339_v63 = vpop.permute.xlu0 %1338  ;;  %4453 = vmatprep.subr.bf16.mxu0 %v4681_v8 }
 0x24b   :  { %1375 = vst.msk [vmem:[#allocation2 + $0x20] sm:$0xff] %vm7769_vm4, %v1355_v62 }
 0x24c   :  { %1353 = vst.msk [vmem:[#allocation2 + $0x48] sm:$0xff] %vm7768_vm3, %v1339_v63  ;;  %1582 = vrot.lane.b32.xlu1 %v5317_v61, %s4692_s19  ;;  %1580 = vrot.lane.b32.xlu0 %v5283_v49, %s4692_s19  ;;  %vm7776_vm3 = vmmov %vm7775_vm6 }
 0x24d   :  { %vm7778_vm2 = vmmov %vm7776_vm3 }
 0x24e   :  { %v1359_v7 = vpop.permute.xlu1 %1358  ;;  %v1357_v11 = vpop.permute.xlu0 %1356 }
 0x24f   :  { %1377 = vst.msk [vmem:[#allocation2 + $0x30] sm:$0xff] %vm7769_vm4, %v1359_v7  ;;  %1376 = vst.msk [vmem:[#allocation2 + $0x28] sm:$0xff] %vm7769_vm4, %v1357_v11 }
 0x250   :  { %1586 = vrot.lane.b32.xlu1 %v5374_v22, %s4692_s19  ;;  %1584 = vrot.lane.b32.xlu0 %v5342_v15, %s4692_s19 }
 0x252   :  { %v1363_v12 = vpop.permute.xlu1 %1362  ;;  %v1361_v13 = vpop.permute.xlu0 %1360  ;;  %v1723_v14 = vld [vmem:[#allocation2 + $0x20] sm:$0xff] }
 0x253   :  { %1379 = vst.msk [vmem:[#allocation2 + $0x40] sm:$0xff] %vm7769_vm4, %v1363_v12  ;;  %1378 = vst.msk [vmem:[#allocation2 + $0x38] sm:$0xff] %vm7769_vm4, %v1361_v13 }
 0x254   :  { %1852 = vst.msk [vmem:[#allocation2 + $0x20] sm:$0xff] %vm44_vm0, %v5774_v16  ;;  %1590 = vrot.lane.b32.xlu1 %v5431_v43, %s4692_s19  ;;  %1588 = vrot.lane.b32.xlu0 %v5399_v31, %s4692_s19 }
 0x256   :  { %v1367_v1 = vpop.permute.xlu1 %1366  ;;  %v1365_v3 = vpop.permute.xlu0 %1364 }
 0x257   :  { %1381 = vst.msk [vmem:[#allocation2 + $0x50] sm:$0xff] %vm7769_vm4, %v1367_v1  ;;  %1380 = vst.msk [vmem:[#allocation2 + $0x48] sm:$0xff] %vm7769_vm4, %v1365_v3 }
 0x258   :  { %1608 = vrot.lane.b32.xlu1 %v5283_v49, %s4693_s22  ;;  %1606 = vrot.lane.b32.xlu0 %v5089_v4, %s4693_s22  ;;  %vm7777_vm4 = vmmov %vm7776_vm3 }
 0x25a   :  { %v1385_v17 = vpop.permute.xlu1 %1384  ;;  %v1383_v0 = vpop.permute.xlu0 %1382 }
 0x25b   :  { %1404 = vst.msk [vmem:[#allocation2 + $0x30] sm:$0xff] %vm7775_vm6, %v1385_v17  ;;  %vm7780_vm6 = vmmov %vm7778_vm2 }
 0x25c   :  { %1403 = vst.msk [vmem:[#allocation2 + $0x28] sm:$0xff] %vm7776_vm3, %v1383_v0  ;;  %1612 = vrot.lane.b32.xlu1 %v5342_v15, %s4693_s22  ;;  %1610 = vrot.lane.b32.xlu0 %v5317_v61, %s4693_s22  ;;  %vm7779_vm3 = vmmov %vm7778_vm2 }
 0x25e   :  { %v1389_v5 = vpop.permute.xlu1 %1388  ;;  %v1387_v19 = vpop.permute.xlu0 %1386 }
 0x25f   :  { %1406 = vst.msk [vmem:[#allocation2 + $0x40] sm:$0xff] %vm7777_vm4, %v1389_v5  ;;  %vm7782_vm4 = vmmov %vm7779_vm3 }
 0x260   :  { %1405 = vst.msk [vmem:[#allocation2 + $0x38] sm:$0xff] %vm7778_vm2, %v1387_v19  ;;  %1616 = vrot.lane.b32.xlu1 %v5399_v31, %s4693_s22  ;;  %1614 = vrot.lane.b32.xlu0 %v5374_v22, %s4693_s22  ;;  %vm7781_vm2 = vcmask 458112  }
 0x262   :  { %v1393_v6 = vpop.permute.xlu1 %1392  ;;  %v1391_v20 = vpop.permute.xlu0 %1390 }
 0x263   :  { %v1724_v21 = vld [vmem:[#allocation2 + $0x28] sm:$0xff]  ;;  %1408 = vst.msk [vmem:[#allocation2 + $0x50] sm:$0xff] %vm7779_vm3, %v1393_v6  ;;  %vm7783_vm3 = vmmov %vm7781_vm2 }
 0x264   :  { %1407 = vst.msk [vmem:[#allocation2 + $0x48] sm:$0xff] %vm7780_vm6, %v1391_v20  ;;  %v4454_v24 = vpack.c.bf16 %v1724_v21, %v1723_v14  ;;  %1634 = vrot.lane.b32.xlu1 %v5089_v4, %s4694_s25  ;;  %1618 = vrot.lane.b32.xlu0 %v5431_v43, %s4693_s22  ;;  %vm7784_vm6 = vmmov %vm7781_vm2 }
 0x265   :  { %1853 = vst.msk [vmem:[#allocation2 + $0x28] sm:$0xff] %vm44_vm0, %v5805_v23 }
 0x266   :  { %4455 = vmatpush1.bf16.msra.mxu0 %v4454_v24  ;;  %v1411_v25 = vpop.permute.xlu1 %1410  ;;  %v1395_v28 = vpop.permute.xlu0 %1394 }
 0x267   :  { %4456 = vmatprep.subr.bf16.mxu0 %v4681_v8  ;;  %1431 = vst.msk [vmem:[#allocation2 + $0x30] sm:$0xff] %vm7781_vm2, %v1411_v25 }
 0x268   :  { %1409 = vst.msk [vmem:[#allocation2 + $0x58] sm:$0xff] %vm7782_vm4, %v1395_v28  ;;  %1638 = vrot.lane.b32.xlu1 %v5317_v61, %s4694_s25  ;;  %1636 = vrot.lane.b32.xlu0 %v5283_v49, %s4694_s25  ;;  %vm7785_vm4 = vmmov %vm7781_vm2 }
 0x26a   :  { %v1415_v29 = vpop.permute.xlu1 %1414  ;;  %v1413_v30 = vpop.permute.xlu0 %1412 }
 0x26b   :  { %1433 = vst.msk [vmem:[#allocation2 + $0x40] sm:$0xff] %vm7783_vm3, %v1415_v29  ;;  %vm7786_vm3 = vmmov %vm7781_vm2 }
 0x26c   :  { %1432 = vst.msk [vmem:[#allocation2 + $0x38] sm:$0xff] %vm7784_vm6, %v1413_v30  ;;  %1642 = vrot.lane.b32.xlu1 %v5374_v22, %s4694_s25  ;;  %1640 = vrot.lane.b32.xlu0 %v5342_v15, %s4694_s25  ;;  %vm7787_vm6 = vmmov %vm7781_vm2 }
 0x26e   :  { %v1419_v32 = vpop.permute.xlu1 %1418  ;;  %v1417_v33 = vpop.permute.xlu0 %1416  ;;  %v1725_v35 = vld [vmem:[#allocation2 + $0x30] sm:$0xff] }
 0x26f   :  { %1435 = vst.msk [vmem:[#allocation2 + $0x50] sm:$0xff] %vm7781_vm2, %v1419_v32  ;;  %vm7788_vm2 = vcmask 195712  }
 0x270   :  { %1434 = vst.msk [vmem:[#allocation2 + $0x48] sm:$0xff] %vm7785_vm4, %v1417_v33  ;;  %1646 = vrot.lane.b32.xlu1 %v5431_v43, %s4694_s25  ;;  %1644 = vrot.lane.b32.xlu0 %v5399_v31, %s4694_s25  ;;  %vm7789_vm4 = vmmov %vm7788_vm2 }
 0x271   :  { %1854 = vst.msk [vmem:[#allocation2 + $0x30] sm:$0xff] %vm44_vm0, %v5831_v36 }
 0x272   :  { %v1423_v38 = vpop.permute.xlu1 %1422  ;;  %v1421_v39 = vpop.permute.xlu0 %1420 }
 0x273   :  { %1437 = vst.msk [vmem:[#allocation2 + $0x60] sm:$0xff] %vm7786_vm3, %v1423_v38  ;;  %vm7790_vm3 = vmmov %vm7788_vm2 }
 0x274   :  { %1436 = vst.msk [vmem:[#allocation2 + $0x58] sm:$0xff] %vm7787_vm6, %v1421_v39  ;;  %1664 = vrot.lane.b32.xlu1 %v5283_v49, %s4695_s28  ;;  %1662 = vrot.lane.b32.xlu0 %v5089_v4, %s4695_s28  ;;  %vm7791_vm6 = vmmov %vm7788_vm2 }
 0x276   :  { %v1441_v40 = vpop.permute.xlu1 %1440  ;;  %v1439_v42 = vpop.permute.xlu0 %1438 }
 0x277   :  { %1460 = vst.msk [vmem:[#allocation2 + $0x40] sm:$0xff] %vm254_vm7, %v1441_v40  ;;  %1459 = vst.msk [vmem:[#allocation2 + $0x38] sm:$0xff] %vm254_vm7, %v1439_v42 }
 0x278   :  { %1668 = vrot.lane.b32.xlu1 %v5342_v15, %s4695_s28  ;;  %1666 = vrot.lane.b32.xlu0 %v5317_v61, %s4695_s28  ;;  %v495_v15 = vld [vmem:[%s7761_s0 + $0x8] sm:$0xff] }
 0x279   :  { %4321 = vmatprep.mubr.msk.f32.mxu1 %vm1059_vm5, %v495_v15 }
 0x27a   :  { %v1445_v44 = vpop.permute.xlu1 %1444  ;;  %v1443_v45 = vpop.permute.xlu0 %1442 }
 0x27b   :  { %1462 = vst.msk [vmem:[#allocation2 + $0x50] sm:$0xff] %vm254_vm7, %v1445_v44  ;;  %1461 = vst.msk [vmem:[#allocation2 + $0x48] sm:$0xff] %vm254_vm7, %v1443_v45 }
 0x27c   :  { %1672 = vrot.lane.b32.xlu1 %v5399_v31, %s4695_s28  ;;  %1670 = vrot.lane.b32.xlu0 %v5374_v22, %s4695_s28  ;;  %v494_v22 = vld [vmem:[%s7761_s0] sm:$0xff] }
 0x27d   :  { %v5871_v31 = vld [vmem:[#allocation2] sm:$0xff]  ;;  %1228 = vmatmul.mubr.f32.vlgmr.msra.gmra.mrb[0].mxu1 %v494_v22 }
 0x27e   :  { %v1449_v4 = vpop.permute.xlu1 %1448  ;;  %v1447_v49 = vpop.permute.xlu0 %1446  ;;  %v1726_v55 = vld [vmem:[#allocation2 + $0x38] sm:$0xff]  ;;  %2458 = vst.msk [vmem:[#allocation2] sm:$0xff] %vm44_vm0, %v5876_v47 }
 0x27f   :  { %1464 = vst.msk [vmem:[#allocation2 + $0x60] sm:$0xff] %vm254_vm7, %v1449_v4  ;;  %1463 = vst.msk [vmem:[#allocation2 + $0x58] sm:$0xff] %vm254_vm7, %v1447_v49  ;;  %v4457_v61 = vpack.c.bf16 %v1726_v55, %v1725_v35 }
 0x280   :  { %1862 = vrot.lane.b32.xlu1 %v5478_v57, %s4679_s16  ;;  %1674 = vrot.lane.b32.xlu0 %v5431_v43, %s4695_s28 }
 0x281   :  { %4458 = vmatpush1.bf16.msra.mxu0 %v4457_v61 }
 0x282   :  { %v1467_v48 = vpop.permute.xlu1 %1466  ;;  %v1451_v10 = vpop.permute.xlu0 %1450  ;;  %4459 = vmatprep.subr.bf16.mxu0 %v4681_v8 }
 0x283   :  { %1487 = vst.msk [vmem:[#allocation2 + $0x40] sm:$0xff] %vm283_vm8, %v1467_v48 }
 0x284   :  { %1465 = vst.msk [vmem:[#allocation2 + $0x68] sm:$0xff] %vm254_vm7, %v1451_v10  ;;  %1866 = vrot.lane.b32.xlu1 %v5717_v51, %s4679_s16  ;;  %1864 = vrot.lane.b32.xlu0 %v5690_v41, %s4679_s16 }
 0x286   :  { %v1471_v43 = vpop.permute.xlu1 %1470  ;;  %v1469_v27 = vpop.permute.xlu0 %1468 }
 0x287   :  { %1489 = vst.msk [vmem:[#allocation2 + $0x50] sm:$0xff] %vm283_vm8, %v1471_v43  ;;  %1488 = vst.msk [vmem:[#allocation2 + $0x48] sm:$0xff] %vm283_vm8, %v1469_v27 }
 0x288   :  { %1870 = vrot.lane.b32.xlu1 %v5774_v16, %s4679_s16  ;;  %1868 = vrot.lane.b32.xlu0 %v5748_v59, %s4679_s16 }
 0x28a   :  { %v1475_v52 = vpop.permute.xlu1 %1474  ;;  %v1473_v53 = vpop.permute.xlu0 %1472  ;;  %v1727_v62 = vld [vmem:[#allocation2 + $0x40] sm:$0xff] }
 0x28b   :  { %1491 = vst.msk [vmem:[#allocation2 + $0x60] sm:$0xff] %vm283_vm8, %v1475_v52  ;;  %1490 = vst.msk [vmem:[#allocation2 + $0x58] sm:$0xff] %vm283_vm8, %v1473_v53 }
 0x28c   :  { %1874 = vrot.lane.b32.xlu1 %v5831_v36, %s4679_s16  ;;  %1872 = vrot.lane.b32.xlu0 %v5805_v23, %s4679_s16 }
 0x28e   :  { %v1479_v37 = vpop.permute.xlu1 %1478  ;;  %v1477_v46 = vpop.permute.xlu0 %1476 }
 0x28f   :  { %1493 = vst.msk [vmem:[#allocation2 + $0x70] sm:$0xff] %vm283_vm8, %v1479_v37  ;;  %1492 = vst.msk [vmem:[#allocation2 + $0x68] sm:$0xff] %vm283_vm8, %v1477_v46 }
 0x290   :  { %1892 = vrot.lane.b32.xlu1 %v5690_v41, %s4682_s29  ;;  %1890 = vrot.lane.b32.xlu0 %v5478_v57, %s4682_s29 }
 0x292   :  { %v1497_v2 = vpop.permute.xlu1 %1496  ;;  %v1495_v54 = vpop.permute.xlu0 %1494 }
 0x293   :  { %1516 = vst.msk [vmem:[#allocation2 + $0x50] sm:$0xff] %vm312_vm9, %v1497_v2  ;;  %1515 = vst.msk [vmem:[#allocation2 + $0x48] sm:$0xff] %vm312_vm9, %v1495_v54 }
 0x294   :  { %1896 = vrot.lane.b32.xlu1 %v5748_v59, %s4682_s29  ;;  %1894 = vrot.lane.b32.xlu0 %v5717_v51, %s4682_s29 }
 0x296   :  { %v1501_v56 = vpop.permute.xlu1 %1500  ;;  %v1499_v9 = vpop.permute.xlu0 %1498 }
 0x297   :  { %1518 = vst.msk [vmem:[#allocation2 + $0x60] sm:$0xff] %vm312_vm9, %v1501_v56  ;;  %1517 = vst.msk [vmem:[#allocation2 + $0x58] sm:$0xff] %vm312_vm9, %v1499_v9 }
 0x298   :  { %1900 = vrot.lane.b32.xlu1 %v5805_v23, %s4682_s29  ;;  %1898 = vrot.lane.b32.xlu0 %v5774_v16, %s4682_s29 }
 0x29a   :  { %v1505_v58 = vpop.permute.xlu1 %1504  ;;  %v1503_v60 = vpop.permute.xlu0 %1502  ;;  %v1728_v63 = vld [vmem:[#allocation2 + $0x48] sm:$0xff] }
 0x29b   :  { %1520 = vst.msk [vmem:[#allocation2 + $0x70] sm:$0xff] %vm312_vm9, %v1505_v58  ;;  %1519 = vst.msk [vmem:[#allocation2 + $0x68] sm:$0xff] %vm312_vm9, %v1503_v60  ;;  %v4460_v7 = vpack.c.bf16 %v1728_v63, %v1727_v62 }
 0x29c   :  { %1918 = vrot.lane.b32.xlu1 %v5478_v57, %s4683_s30  ;;  %1902 = vrot.lane.b32.xlu0 %v5831_v36, %s4682_s29 }
 0x29d   :  { %4461 = vmatpush1.bf16.msra.mxu0 %v4460_v7 }
 0x29e   :  { %v1523_v11 = vpop.permute.xlu1 %1522  ;;  %v1507_v12 = vpop.permute.xlu0 %1506  ;;  %4462 = vmatprep.subr.bf16.mxu0 %v4681_v8 }
 0x29f   :  { %1543 = vst.msk [vmem:[#allocation2 + $0x50] sm:$0xff] %vm341_vm10, %v1523_v11 }
 0x2a0   :  { %1521 = vst.msk [vmem:[#allocation2 + $0x78] sm:$0xff] %vm312_vm9, %v1507_v12  ;;  %1922 = vrot.lane.b32.xlu1 %v5717_v51, %s4683_s30  ;;  %1920 = vrot.lane.b32.xlu0 %v5690_v41, %s4683_s30 }
 0x2a2   :  { %v1527_v13 = vpop.permute.xlu1 %1526  ;;  %v1525_v14 = vpop.permute.xlu0 %1524 }
 0x2a3   :  { %1545 = vst.msk [vmem:[#allocation2 + $0x60] sm:$0xff] %vm341_vm10, %v1527_v13  ;;  %1544 = vst.msk [vmem:[#allocation2 + $0x58] sm:$0xff] %vm341_vm10, %v1525_v14 }
 0x2a4   :  { %1926 = vrot.lane.b32.xlu1 %v5774_v16, %s4683_s30  ;;  %1924 = vrot.lane.b32.xlu0 %v5748_v59, %s4683_s30 }
 0x2a6   :  { %v1531_v1 = vpop.permute.xlu1 %1530  ;;  %v1529_v3 = vpop.permute.xlu0 %1528  ;;  %v1729_v25 = vld [vmem:[#allocation2 + $0x50] sm:$0xff] }
 0x2a7   :  { %1547 = vst.msk [vmem:[#allocation2 + $0x70] sm:$0xff] %vm341_vm10, %v1531_v1  ;;  %1546 = vst.msk [vmem:[#allocation2 + $0x68] sm:$0xff] %vm341_vm10, %v1529_v3 }
 0x2a8   :  { %1930 = vrot.lane.b32.xlu1 %v5831_v36, %s4683_s30  ;;  %1928 = vrot.lane.b32.xlu0 %v5805_v23, %s4683_s30 }
 0x2aa   :  { %v1535_v17 = vpop.permute.xlu1 %1534  ;;  %v1533_v0 = vpop.permute.xlu0 %1532 }
 0x2ab   :  { %1549 = vst.msk [vmem:[#allocation2 + $0x80] sm:$0xff] %vm341_vm10, %v1535_v17  ;;  %1548 = vst.msk [vmem:[#allocation2 + $0x78] sm:$0xff] %vm341_vm10, %v1533_v0 }
 0x2ac   :  { %1948 = vrot.lane.b32.xlu1 %v5690_v41, %s4684_s4  ;;  %1946 = vrot.lane.b32.xlu0 %v5478_v57, %s4684_s4 }
 0x2ae   :  { %v1553_v5 = vpop.permute.xlu1 %1552  ;;  %v1551_v19 = vpop.permute.xlu0 %1550 }
 0x2af   :  { %1572 = vst.msk [vmem:[#allocation2 + $0x60] sm:$0xff] %vm370_vm11, %v1553_v5  ;;  %1571 = vst.msk [vmem:[#allocation2 + $0x58] sm:$0xff] %vm370_vm11, %v1551_v19 }
 0x2b0   :  { %1952 = vrot.lane.b32.xlu1 %v5748_v59, %s4684_s4  ;;  %1950 = vrot.lane.b32.xlu0 %v5717_v51, %s4684_s4 }
 0x2b2   :  { %v1557_v6 = vpop.permute.xlu1 %1556  ;;  %v1555_v20 = vpop.permute.xlu0 %1554 }
 0x2b3   :  { %1574 = vst.msk [vmem:[#allocation2 + $0x70] sm:$0xff] %vm370_vm11, %v1557_v6  ;;  %1573 = vst.msk [vmem:[#allocation2 + $0x68] sm:$0xff] %vm370_vm11, %v1555_v20 }
 0x2b4   :  { %1956 = vrot.lane.b32.xlu1 %v5805_v23, %s4684_s4  ;;  %1954 = vrot.lane.b32.xlu0 %v5774_v16, %s4684_s4 }
 0x2b6   :  { %v1561_v21 = vpop.permute.xlu1 %1560  ;;  %v1559_v24 = vpop.permute.xlu0 %1558  ;;  %v1730_v28 = vld [vmem:[#allocation2 + $0x58] sm:$0xff] }
 0x2b7   :  { %1576 = vst.msk [vmem:[#allocation2 + $0x80] sm:$0xff] %vm370_vm11, %v1561_v21  ;;  %1575 = vst.msk [vmem:[#allocation2 + $0x78] sm:$0xff] %vm370_vm11, %v1559_v24  ;;  %v4463_v29 = vpack.c.bf16 %v1730_v28, %v1729_v25 }
 0x2b8   :  { %1974 = vrot.lane.b32.xlu1 %v5478_v57, %s4685_s5  ;;  %1958 = vrot.lane.b32.xlu0 %v5831_v36, %s4684_s4 }
 0x2b9   :  { %4464 = vmatpush1.bf16.msra.mxu0 %v4463_v29  ;;  %v6071_v29 = vld [vmem:[%s7762_s1 + $0xe8] sm:$0xff] }
 0x2ba   :  { %v1579_v30 = vpop.permute.xlu1 %1578  ;;  %v1563_v32 = vpop.permute.xlu0 %1562  ;;  %4465 = vmatprep.subr.bf16.mxu0 %v4681_v8 }
 0x2bb   :  { %1599 = vst.msk [vmem:[#allocation2 + $0x60] sm:$0xff] %vm399_vm12, %v1579_v30 }
 0x2bc   :  { %1577 = vst.msk [vmem:[#allocation2 + $0x88] sm:$0xff] %vm370_vm11, %v1563_v32  ;;  %1978 = vrot.lane.b32.xlu1 %v5717_v51, %s4685_s5  ;;  %1976 = vrot.lane.b32.xlu0 %v5690_v41, %s4685_s5 }
 0x2be   :  { %v1583_v33 = vpop.permute.xlu1 %1582  ;;  %v1581_v35 = vpop.permute.xlu0 %1580 }
 0x2bf   :  { %1601 = vst.msk [vmem:[#allocation2 + $0x70] sm:$0xff] %vm399_vm12, %v1583_v33  ;;  %1600 = vst.msk [vmem:[#allocation2 + $0x68] sm:$0xff] %vm399_vm12, %v1581_v35 }
 0x2c0   :  { %1982 = vrot.lane.b32.xlu1 %v5774_v16, %s4685_s5  ;;  %1980 = vrot.lane.b32.xlu0 %v5748_v59, %s4685_s5 }
 0x2c2   :  { %v1587_v38 = vpop.permute.xlu1 %1586  ;;  %v1585_v39 = vpop.permute.xlu0 %1584  ;;  %v1731_v15 = vld [vmem:[#allocation2 + $0x60] sm:$0xff] }
 0x2c3   :  { %1603 = vst.msk [vmem:[#allocation2 + $0x80] sm:$0xff] %vm399_vm12, %v1587_v38  ;;  %1602 = vst.msk [vmem:[#allocation2 + $0x78] sm:$0xff] %vm399_vm12, %v1585_v39 }
 0x2c4   :  { %1986 = vrot.lane.b32.xlu1 %v5831_v36, %s4685_s5  ;;  %1984 = vrot.lane.b32.xlu0 %v5805_v23, %s4685_s5 }
 0x2c6   :  { %v1591_v40 = vpop.permute.xlu1 %1590  ;;  %v1589_v42 = vpop.permute.xlu0 %1588 }
 0x2c7   :  { %1605 = vst.msk [vmem:[#allocation2 + $0x90] sm:$0xff] %vm399_vm12, %v1591_v40  ;;  %1604 = vst.msk [vmem:[#allocation2 + $0x88] sm:$0xff] %vm399_vm12, %v1589_v42 }
 0x2c8   :  { %2004 = vrot.lane.b32.xlu1 %v5690_v41, %s4686_s6  ;;  %2002 = vrot.lane.b32.xlu0 %v5478_v57, %s4686_s6 }
 0x2ca   :  { %v1609_v44 = vpop.permute.xlu1 %1608  ;;  %v1607_v45 = vpop.permute.xlu0 %1606 }
 0x2cb   :  { %1628 = vst.msk [vmem:[#allocation2 + $0x70] sm:$0xff] %vm428_vm13, %v1609_v44  ;;  %1627 = vst.msk [vmem:[#allocation2 + $0x68] sm:$0xff] %vm428_vm13, %v1607_v45 }
 0x2cc   :  { %2008 = vrot.lane.b32.xlu1 %v5748_v59, %s4686_s6  ;;  %2006 = vrot.lane.b32.xlu0 %v5717_v51, %s4686_s6 }
 0x2ce   :  { %v1613_v4 = vpop.permute.xlu1 %1612  ;;  %v1611_v49 = vpop.permute.xlu0 %1610 }
 0x2cf   :  { %1630 = vst.msk [vmem:[#allocation2 + $0x80] sm:$0xff] %vm428_vm13, %v1613_v4  ;;  %1629 = vst.msk [vmem:[#allocation2 + $0x78] sm:$0xff] %vm428_vm13, %v1611_v49  ;;  %v6105_v4 = vld [vmem:[%s7762_s1 + $0xf0] sm:$0xff] }
 0x2d0   :  { %2012 = vrot.lane.b32.xlu1 %v5805_v23, %s4686_s6  ;;  %2010 = vrot.lane.b32.xlu0 %v5774_v16, %s4686_s6 }
 0x2d2   :  { %v1617_v55 = vpop.permute.xlu1 %1616  ;;  %v1615_v61 = vpop.permute.xlu0 %1614  ;;  %v1732_v22 = vld [vmem:[#allocation2 + $0x68] sm:$0xff] }
 0x2d3   :  { %1632 = vst.msk [vmem:[#allocation2 + $0x90] sm:$0xff] %vm428_vm13, %v1617_v55  ;;  %1631 = vst.msk [vmem:[#allocation2 + $0x88] sm:$0xff] %vm428_vm13, %v1615_v61  ;;  %v4466_v48 = vpack.c.bf16 %v1732_v22, %v1731_v15 }
 0x2d4   :  { %2030 = vrot.lane.b32.xlu1 %v5478_v57, %s4687_s7  ;;  %2014 = vrot.lane.b32.xlu0 %v5831_v36, %s4686_s6 }
 0x2d5   :  { %4467 = vmatpush1.bf16.msra.mxu0 %v4466_v48 }
 0x2d6   :  { %v1635_v10 = vpop.permute.xlu1 %1634  ;;  %v1619_v43 = vpop.permute.xlu0 %1618  ;;  %4468 = vmatprep.subr.bf16.mxu0 %v4681_v8 }
 0x2d7   :  { %1655 = vst.msk [vmem:[#allocation2 + $0x70] sm:$0xff] %vm457_vm14, %v1635_v10 }
 0x2d8   :  { %1633 = vst.msk [vmem:[#allocation2 + $0x98] sm:$0xff] %vm428_vm13, %v1619_v43  ;;  %2034 = vrot.lane.b32.xlu1 %v5717_v51, %s4687_s7  ;;  %2032 = vrot.lane.b32.xlu0 %v5690_v41, %s4687_s7  ;;  %v6130_v43 = vld [vmem:[%s7762_s1 + $0xf8] sm:$0xff] }
 0x2da   :  { %v1639_v27 = vpop.permute.xlu1 %1638  ;;  %v1637_v52 = vpop.permute.xlu0 %1636 }
 0x2db   :  { %1657 = vst.msk [vmem:[#allocation2 + $0x80] sm:$0xff] %vm457_vm14, %v1639_v27  ;;  %1656 = vst.msk [vmem:[#allocation2 + $0x78] sm:$0xff] %vm457_vm14, %v1637_v52 }
 0x2dc   :  { %2038 = vrot.lane.b32.xlu1 %v5774_v16, %s4687_s7  ;;  %2036 = vrot.lane.b32.xlu0 %v5748_v59, %s4687_s7 }
 0x2de   :  { %v1643_v53 = vpop.permute.xlu1 %1642  ;;  %v1641_v37 = vpop.permute.xlu0 %1640  ;;  %v1733_v63 = vld [vmem:[#allocation2 + $0x70] sm:$0xff] }
 0x2df   :  { %1659 = vst.msk [vmem:[#allocation2 + $0x90] sm:$0xff] %vm457_vm14, %v1643_v53  ;;  %1658 = vst.msk [vmem:[#allocation2 + $0x88] sm:$0xff] %vm457_vm14, %v1641_v37 }
 0x2e0   :  { %2042 = vrot.lane.b32.xlu1 %v5831_v36, %s4687_s7  ;;  %2040 = vrot.lane.b32.xlu0 %v5805_v23, %s4687_s7 }
 0x2e2   :  { %v1647_v46 = vpop.permute.xlu1 %1646  ;;  %v1645_v2 = vpop.permute.xlu0 %1644 }
 0x2e3   :  { %1661 = vst.msk [vmem:[#allocation2 + $0xa0] sm:$0xff] %vm457_vm14, %v1647_v46  ;;  %1660 = vst.msk [vmem:[#allocation2 + $0x98] sm:$0xff] %vm457_vm14, %v1645_v2 }
 0x2e4   :  { %2060 = vrot.lane.b32.xlu1 %v5690_v41, %s4688_s8  ;;  %2058 = vrot.lane.b32.xlu0 %v5478_v57, %s4688_s8 }
 0x2e6   :  { %v1665_v54 = vpop.permute.xlu1 %1664  ;;  %v1663_v56 = vpop.permute.xlu0 %1662 }
 0x2e7   :  { %1684 = vst.msk [vmem:[#allocation2 + $0x80] sm:$0xff] %vm7774_vm15, %v1665_v54  ;;  %1683 = vst.msk [vmem:[#allocation2 + $0x78] sm:$0xff] %vm7774_vm15, %v1663_v56 }
 0x2e8   :  { %2064 = vrot.lane.b32.xlu1 %v5748_v59, %s4688_s8  ;;  %2062 = vrot.lane.b32.xlu0 %v5717_v51, %s4688_s8 }
 0x2ea   :  { %v1669_v9 = vpop.permute.xlu1 %1668  ;;  %v1667_v58 = vpop.permute.xlu0 %1666 }
 0x2eb   :  { %1686 = vst.msk [vmem:[#allocation2 + $0x90] sm:$0xff] %vm7774_vm15, %v1669_v9  ;;  %1685 = vst.msk [vmem:[#allocation2 + $0x88] sm:$0xff] %vm7774_vm15, %v1667_v58 }
 0x2ec   :  { %2068 = vrot.lane.b32.xlu1 %v5805_v23, %s4688_s8  ;;  %2066 = vrot.lane.b32.xlu0 %v5774_v16, %s4688_s8 }
 0x2ee   :  { %v1673_v60 = vpop.permute.xlu1 %1672  ;;  %v1671_v62 = vpop.permute.xlu0 %1670  ;;  %v1734_v7 = vld [vmem:[#allocation2 + $0x78] sm:$0xff]  ;;  %v1735_v12 = vld [vmem:[#allocation2 + $0x80] sm:$0xff] }
 0x2ef   :  { %1688 = vst.msk [vmem:[#allocation2 + $0xa0] sm:$0xff] %vm7774_vm15, %v1673_v60  ;;  %1687 = vst.msk [vmem:[#allocation2 + $0x98] sm:$0xff] %vm7774_vm15, %v1671_v62  ;;  %v4469_v11 = vpack.c.bf16 %v1734_v7, %v1733_v63  ;;  %v6162_v60 = vld [vmem:[%s7762_s1 + $0x100] sm:$0xff] }
 0x2f0   :  { %2086 = vrot.lane.b32.xlu1 %v5478_v57, %s4689_s9  ;;  %2070 = vrot.lane.b32.xlu0 %v5831_v36, %s4688_s8 }
 0x2f1   :  { %4470 = vmatpush1.bf16.msra.mxu0 %v4469_v11 }
 0x2f2   :  { %v1863_v13 = vpop.permute.xlu1 %1862  ;;  %v1675_v14 = vpop.permute.xlu0 %1674  ;;  %4471 = vmatprep.subr.bf16.mxu0 %v4681_v8  ;;  %v1736_v1 = vld [vmem:[#allocation2 + $0x88] sm:$0xff]  ;;  %v1737_v17 = vld [vmem:[#allocation2 + $0x90] sm:$0xff] }
 0x2f3   :  { %1883 = vst.msk [vmem:[#allocation2 + $0x8] sm:$0xff] %vm7773_vm1, %v1863_v13  ;;  %v4472_v3 = vpack.c.bf16 %v1736_v1, %v1735_v12  ;;  %v6187_v1 = vld [vmem:[%s7762_s1 + $0x108] sm:$0xff] }
 0x2f4   :  { %1689 = vst.msk [vmem:[#allocation2 + $0xa8] sm:$0xff] %vm7774_vm15, %v1675_v14  ;;  %2090 = vrot.lane.b32.xlu1 %v5717_v51, %s4689_s9  ;;  %2088 = vrot.lane.b32.xlu0 %v5690_v41, %s4689_s9 }
 0x2f5   :  { %4473 = vmatpush1.bf16.msra.mxu0 %v4472_v3 }
 0x2f6   :  { %v1867_v0 = vpop.permute.xlu1 %1866  ;;  %v1865_v5 = vpop.permute.xlu0 %1864  ;;  %4474 = vmatprep.subr.bf16.mxu0 %v4681_v8  ;;  %v1738_v19 = vld [vmem:[#allocation2 + $0x98] sm:$0xff]  ;;  %v1739_v20 = vld [vmem:[#allocation2 + $0xa0] sm:$0xff] }
 0x2f7   :  { %1885 = vst.msk [vmem:[#allocation2 + $0x18] sm:$0xff] %vm7773_vm1, %v1867_v0  ;;  %1884 = vst.msk [vmem:[#allocation2 + $0x10] sm:$0xff] %vm7773_vm1, %v1865_v5  ;;  %v4475_v6 = vpack.c.bf16 %v1738_v19, %v1737_v17 }
 0x2f8   :  { %2094 = vrot.lane.b32.xlu1 %v5774_v16, %s4689_s9  ;;  %2092 = vrot.lane.b32.xlu0 %v5748_v59, %s4689_s9 }
 0x2f9   :  { %4476 = vmatpush1.bf16.msra.mxu0 %v4475_v6 }
 0x2fa   :  { %v1871_v21 = vpop.permute.xlu1 %1870  ;;  %v1869_v24 = vpop.permute.xlu0 %1868  ;;  %4477 = vmatprep.subr.bf16.mxu0 %v4681_v8  ;;  %v2332_v28 = vld [vmem:[#allocation2 + $0x8] sm:$0xff] }
 0x2fb   :  { %v1740_v25 = vld [vmem:[#allocation2 + $0xa8] sm:$0xff]  ;;  %1887 = vst.msk [vmem:[#allocation2 + $0x28] sm:$0xff] %vm7773_vm1, %v1871_v21  ;;  %1886 = vst.msk [vmem:[#allocation2 + $0x20] sm:$0xff] %vm7773_vm1, %v1869_v24  ;;  %v4481_v32 = vpack.c.bf16 %v2332_v28, %v5871_v31 }
 0x2fc   :  { %v4478_v30 = vpack.c.bf16 %v1740_v25, %v1739_v20  ;;  %2459 = vst.msk [vmem:[#allocation2 + $0x8] sm:$0xff] %vm44_vm0, %v6071_v29  ;;  %2098 = vrot.lane.b32.xlu1 %v5831_v36, %s4689_s9  ;;  %2096 = vrot.lane.b32.xlu0 %v5805_v23, %s4689_s9  ;;  %v992_v21 = vld [vmem:[%s7761_s0 + $0x28] sm:$0x1] }
 0x2fd   :  { %4482 = vmatpush1.bf16.msra.mxu1 %v4481_v32  ;;  %v1014_v32 = vrot.slane %v992_v21, 1 }
 0x2fe   :  { %4479 = vmatpush1.bf16.msra.mxu0 %v4478_v30  ;;  %v1875_v33 = vpop.permute.xlu1 %1874  ;;  %v1873_v35 = vpop.permute.xlu0 %1872  ;;  %4483 = vmatprep.subr.bf16.mxu1 %v4681_v8  ;;  %v6224_v30 = vld [vmem:[%s7762_s1 + $0x110] sm:$0xff] }
 0x2ff   :  { %4513 = vmatprep.subr.bf16.mxu0 %v4681_v8  ;;  %1889 = vst.msk [vmem:[#allocation2 + $0x38] sm:$0xff] %vm7773_vm1, %v1875_v33  ;;  %1888 = vst.msk [vmem:[#allocation2 + $0x30] sm:$0xff] %vm7773_vm1, %v1873_v35  ;;  %v991_v33 = vld [vmem:[%s7761_s0 + $0x20] sm:$0x1] }
 0x300   :  { %2116 = vrot.lane.b32.xlu1 %v5690_v41, %s4690_s12  ;;  %2114 = vrot.lane.b32.xlu0 %v5478_v57, %s4690_s12  ;;  %v1012_v35 = vrot.slane %v991_v33, 1 }
 0x302   :  { %v1893_v31 = vpop.permute.xlu1 %1892  ;;  %v1891_v38 = vpop.permute.xlu0 %1890 }
 0x303   :  { %1912 = vst.msk [vmem:[#allocation2 + $0x18] sm:$0xff] %vm7788_vm2, %v1893_v31 }
 0x304   :  { %1911 = vst.msk [vmem:[#allocation2 + $0x10] sm:$0xff] %vm7789_vm4, %v1891_v38  ;;  %2120 = vrot.lane.b32.xlu1 %v5748_v59, %s4690_s12  ;;  %2118 = vrot.lane.b32.xlu0 %v5717_v51, %s4690_s12  ;;  %vm7792_vm4 = vmmov %vm7788_vm2 }
 0x306   :  { %v1897_v39 = vpop.permute.xlu1 %1896  ;;  %v1895_v40 = vpop.permute.xlu0 %1894 }
 0x307   :  { %1914 = vst.msk [vmem:[#allocation2 + $0x28] sm:$0xff] %vm7790_vm3, %v1897_v39  ;;  %vm7793_vm3 = vcmask 261312   ;;  %v994_v39 = vld [vmem:[%s7761_s0 + $0x28] sm:$0x80] }
 0x308   :  { %1913 = vst.msk [vmem:[#allocation2 + $0x20] sm:$0xff] %vm7791_vm6, %v1895_v40  ;;  %2124 = vrot.lane.b32.xlu1 %v5805_v23, %s4690_s12  ;;  %2122 = vrot.lane.b32.xlu0 %v5774_v16, %s4690_s12  ;;  %vm7794_vm6 = vmmov %vm7788_vm2  ;;  %v1028_v18 = vrot.slane %v994_v39, 7 }
 0x30a   :  { %v1901_v42 = vpop.permute.xlu1 %1900  ;;  %v1899_v44 = vpop.permute.xlu0 %1898 }
 0x30b   :  { %v2333_v45 = vld [vmem:[#allocation2 + $0x10] sm:$0xff]  ;;  %1916 = vst.msk [vmem:[#allocation2 + $0x38] sm:$0xff] %vm7788_vm2, %v1901_v42  ;;  %vm7795_vm2 = vmmov %vm7793_vm3 }
 0x30c   :  { %1915 = vst.msk [vmem:[#allocation2 + $0x30] sm:$0xff] %vm7792_vm4, %v1899_v44  ;;  %2142 = vrot.lane.b32.xlu1 %v5478_v57, %s4691_s15  ;;  %2126 = vrot.lane.b32.xlu0 %v5831_v36, %s4690_s12  ;;  %vm7796_vm4 = vmmov %vm7795_vm2  ;;  %v1025_v44 = vrot.slane %v993_v26, 7 }
 0x30d   :  { %2460 = vst.msk [vmem:[#allocation2 + $0x10] sm:$0xff] %vm44_vm0, %v6105_v4 }
 0x30e   :  { %v1919_v49 = vpop.permute.xlu1 %1918  ;;  %v1903_v55 = vpop.permute.xlu0 %1902 }
 0x30f   :  { %1939 = vst.msk [vmem:[#allocation2 + $0x18] sm:$0xff] %vm7793_vm3, %v1919_v49  ;;  %vm7797_vm3 = vmmov %vm7795_vm2 }
 0x310   :  { %1917 = vst.msk [vmem:[#allocation2 + $0x40] sm:$0xff] %vm7794_vm6, %v1903_v55  ;;  %2146 = vrot.lane.b32.xlu1 %v5717_v51, %s4691_s15  ;;  %2144 = vrot.lane.b32.xlu0 %v5690_v41, %s4691_s15  ;;  %vm7798_vm6 = vmmov %vm7795_vm2 }
 0x312   :  { %v1923_v61 = vpop.permute.xlu1 %1922  ;;  %v1921_v15 = vpop.permute.xlu0 %1920 }
 0x313   :  { %1941 = vst.msk [vmem:[#allocation2 + $0x28] sm:$0xff] %vm7795_vm2, %v1923_v61  ;;  %v998_v61 = vld [vmem:[%s7761_s0 + $0x48] sm:$0x7f] }
 0x314   :  { %1940 = vst.msk [vmem:[#allocation2 + $0x20] sm:$0xff] %vm7796_vm4, %v1921_v15  ;;  %2150 = vrot.lane.b32.xlu1 %v5774_v16, %s4691_s15  ;;  %2148 = vrot.lane.b32.xlu0 %v5748_v59, %s4691_s15  ;;  %vm7799_vm4 = vmmov %vm7795_vm2 }
 0x316   :  { %v1927_v22 = vpop.permute.xlu1 %1926  ;;  %v1925_v48 = vpop.permute.xlu0 %1924  ;;  %v2334_v10 = vld [vmem:[#allocation2 + $0x18] sm:$0xff] }
 0x317   :  { %1943 = vst.msk [vmem:[#allocation2 + $0x38] sm:$0xff] %vm7797_vm3, %v1927_v22  ;;  %v4484_v27 = vpack.c.bf16 %v2334_v10, %v2333_v45  ;;  %vm7800_vm3 = vcmask 326912  }
 0x318   :  { %1942 = vst.msk [vmem:[#allocation2 + $0x30] sm:$0xff] %vm7798_vm6, %v1925_v48  ;;  %2154 = vrot.lane.b32.xlu1 %v5831_v36, %s4691_s15  ;;  %2152 = vrot.lane.b32.xlu0 %v5805_v23, %s4691_s15  ;;  %vm7801_vm6 = vmmov %vm7800_vm3  ;;  %v1033_v48 = vrot.slane %v998_v61, 7 }
 0x319   :  { %2461 = vst.msk [vmem:[#allocation2 + $0x18] sm:$0xff] %vm44_vm0, %v6130_v43  ;;  %4485 = vmatpush1.bf16.msra.mxu1 %v4484_v27 }
 0x31a   :  { %v1931_v52 = vpop.permute.xlu1 %1930  ;;  %v1929_v53 = vpop.permute.xlu0 %1928  ;;  %4486 = vmatprep.subr.bf16.mxu1 %v4681_v8 }
 0x31b   :  { %1945 = vst.msk [vmem:[#allocation2 + $0x48] sm:$0xff] %vm7795_vm2, %v1931_v52  ;;  %vm7802_vm2 = vmmov %vm7800_vm3  ;;  %v1691_v52 = vld [vmem:[%s7761_s0 + $0x8] sm:$0xfc] }
 0x31c   :  { %1944 = vst.msk [vmem:[#allocation2 + $0x40] sm:$0xff] %vm7799_vm4, %v1929_v53  ;;  %2172 = vrot.lane.b32.xlu1 %v5690_v41, %s4692_s19  ;;  %2170 = vrot.lane.b32.xlu0 %v5478_v57, %s4692_s19  ;;  %vm7803_vm4 = vmmov %vm7802_vm2  ;;  %v6292_v53 = vld [vmem:[%s7761_s0 + $0x18] sm:$0xff] }
 0x31d   :  { %4322 = vmatprep.mubr.msk.f32.mxu1 %vm1059_vm5, %v6292_v53 }
 0x31e   :  { %v1949_v37 = vpop.permute.xlu1 %1948  ;;  %v1947_v46 = vpop.permute.xlu0 %1946 }
 0x31f   :  { %1968 = vst.msk [vmem:[#allocation2 + $0x28] sm:$0xff] %vm7800_vm3, %v1949_v37  ;;  %vm7804_vm3 = vmmov %vm7802_vm2 }
 0x320   :  { %1967 = vst.msk [vmem:[#allocation2 + $0x20] sm:$0xff] %vm7801_vm6, %v1947_v46  ;;  %2176 = vrot.lane.b32.xlu1 %v5748_v59, %s4692_s19  ;;  %2174 = vrot.lane.b32.xlu0 %v5717_v51, %s4692_s19  ;;  %vm7805_vm6 = vmmov %vm7802_vm2 }
 0x322   :  { %v1953_v2 = vpop.permute.xlu1 %1952  ;;  %v1951_v54 = vpop.permute.xlu0 %1950 }
 0x323   :  { %1970 = vst.msk [vmem:[#allocation2 + $0x38] sm:$0xff] %vm7802_vm2, %v1953_v2  ;;  %vm7806_vm2 = vcmask 392512   ;;  %v1711_v2 = vrot.slane %v6292_v53, 2 }
 0x324   :  { %1969 = vst.msk [vmem:[#allocation2 + $0x30] sm:$0xff] %vm7803_vm4, %v1951_v54  ;;  %2180 = vrot.lane.b32.xlu1 %v5805_v23, %s4692_s19  ;;  %2178 = vrot.lane.b32.xlu0 %v5774_v16, %s4692_s19  ;;  %vm7807_vm4 = vmmov %vm7804_vm3  ;;  %v1690_v54 = vld [vmem:[%s7761_s0] sm:$0xfc] }
 0x326   :  { %v1957_v56 = vpop.permute.xlu1 %1956  ;;  %v1955_v9 = vpop.permute.xlu0 %1954 }
 0x327   :  { %v2335_v58 = vld [vmem:[#allocation2 + $0x20] sm:$0xff]  ;;  %1972 = vst.msk [vmem:[#allocation2 + $0x48] sm:$0xff] %vm7804_vm3, %v1957_v56  ;;  %vm7808_vm3 = vmmov %vm7806_vm2  ;;  %v6301_v56 = vld [vmem:[%s7761_s0 + $0x10] sm:$0xff] }
 0x328   :  { %1971 = vst.msk [vmem:[#allocation2 + $0x40] sm:$0xff] %vm7805_vm6, %v1955_v9  ;;  %2198 = vrot.lane.b32.xlu1 %v5478_v57, %s4693_s22  ;;  %2182 = vrot.lane.b32.xlu0 %v5831_v36, %s4692_s19  ;;  %vm7809_vm6 = vmmov %vm7806_vm2 }
 0x329   :  { %2462 = vst.msk [vmem:[#allocation2 + $0x20] sm:$0xff] %vm44_vm0, %v6162_v60  ;;  %1233 = vmatmul.mubr.f32.gmra.mrb[2].mxu1 %v6301_v56 }
 0x32a   :  { %v1975_v62 = vpop.permute.xlu1 %1974  ;;  %v1959_v63 = vpop.permute.xlu0 %1958 }
 0x32b   :  { %1995 = vst.msk [vmem:[#allocation2 + $0x28] sm:$0xff] %vm7806_vm2, %v1975_v62  ;;  %v1708_v62 = vrot.slane %v6301_v56, 2 }
 0x32c   :  { %1973 = vst.msk [vmem:[#allocation2 + $0x50] sm:$0xff] %vm7807_vm4, %v1959_v63  ;;  %2202 = vrot.lane.b32.xlu1 %v5717_v51, %s4693_s22  ;;  %2200 = vrot.lane.b32.xlu0 %v5690_v41, %s4693_s22  ;;  %vm7810_vm4 = vmmov %vm7806_vm2 }
 0x32e   :  { %v1979_v7 = vpop.permute.xlu1 %1978  ;;  %v1977_v11 = vpop.permute.xlu0 %1976 }
 0x32f   :  { %1997 = vst.msk [vmem:[#allocation2 + $0x38] sm:$0xff] %vm7808_vm3, %v1979_v7  ;;  %vm7811_vm3 = vmmov %vm7806_vm2 }
 0x330   :  { %1996 = vst.msk [vmem:[#allocation2 + $0x30] sm:$0xff] %vm7809_vm6, %v1977_v11  ;;  %2206 = vrot.lane.b32.xlu1 %v5774_v16, %s4693_s22  ;;  %2204 = vrot.lane.b32.xlu0 %v5748_v59, %s4693_s22  ;;  %vm7812_vm6 = vmmov %vm7806_vm2  ;;  %v6321_v11 = vld [vmem:[#allocation2] sm:$0xff] }
 0x332   :  { %v1983_v12 = vpop.permute.xlu1 %1982  ;;  %v1981_v13 = vpop.permute.xlu0 %1980  ;;  %v2336_v14 = vld [vmem:[#allocation2 + $0x28] sm:$0xff] }
 0x333   :  { %1999 = vst.msk [vmem:[#allocation2 + $0x48] sm:$0xff] %vm7806_vm2, %v1983_v12  ;;  %v4487_v3 = vpack.c.bf16 %v2336_v14, %v2335_v58  ;;  %vm7813_vm2 = vcmask 458112   ;;  %v1707_v58 = vrot.slane %v1690_v54, 2 }
 0x334   :  { %1998 = vst.msk [vmem:[#allocation2 + $0x40] sm:$0xff] %vm7810_vm4, %v1981_v13  ;;  %2210 = vrot.lane.b32.xlu1 %v5831_v36, %s4693_s22  ;;  %2208 = vrot.lane.b32.xlu0 %v5805_v23, %s4693_s22  ;;  %vm7814_vm4 = vmmov %vm7813_vm2 }
 0x335   :  { %2463 = vst.msk [vmem:[#allocation2 + $0x28] sm:$0xff] %vm44_vm0, %v6187_v1  ;;  %4488 = vmatpush1.bf16.msra.mxu1 %v4487_v3 }
 0x336   :  { %v1987_v17 = vpop.permute.xlu1 %1986  ;;  %v1985_v0 = vpop.permute.xlu0 %1984  ;;  %4489 = vmatprep.subr.bf16.mxu1 %v4681_v8 }
 0x337   :  { %2001 = vst.msk [vmem:[#allocation2 + $0x58] sm:$0xff] %vm7811_vm3, %v1987_v17  ;;  %vm7815_vm3 = vmmov %vm7813_vm2 }
 0x338   :  { %2000 = vst.msk [vmem:[#allocation2 + $0x50] sm:$0xff] %vm7812_vm6, %v1985_v0  ;;  %2228 = vrot.lane.b32.xlu1 %v5690_v41, %s4694_s25  ;;  %2226 = vrot.lane.b32.xlu0 %v5478_v57, %s4694_s25  ;;  %vm7816_vm6 = vmmov %vm7813_vm2 }
 0x33a   :  { %v2005_v5 = vpop.permute.xlu1 %2004  ;;  %v2003_v19 = vpop.permute.xlu0 %2002 }
 0x33b   :  { %2024 = vst.msk [vmem:[#allocation2 + $0x38] sm:$0xff] %vm7813_vm2, %v2005_v5 }
 0x33c   :  { %2023 = vst.msk [vmem:[#allocation2 + $0x30] sm:$0xff] %vm7814_vm4, %v2003_v19  ;;  %2232 = vrot.lane.b32.xlu1 %v5748_v59, %s4694_s25  ;;  %2230 = vrot.lane.b32.xlu0 %v5717_v51, %s4694_s25  ;;  %vm7817_vm4 = vmmov %vm7813_vm2 }
 0x33e   :  { %v2009_v6 = vpop.permute.xlu1 %2008  ;;  %v2007_v20 = vpop.permute.xlu0 %2006 }
 0x33f   :  { %2026 = vst.msk [vmem:[#allocation2 + $0x48] sm:$0xff] %vm7815_vm3, %v2009_v6  ;;  %vm7818_vm3 = vcmask 1046528  }
 0x340   :  { %2025 = vst.msk [vmem:[#allocation2 + $0x40] sm:$0xff] %vm7816_vm6, %v2007_v20  ;;  %2236 = vrot.lane.b32.xlu1 %v5805_v23, %s4694_s25  ;;  %2234 = vrot.lane.b32.xlu0 %v5774_v16, %s4694_s25  ;;  %v1015_v31 = vsel %vm7818_vm3, %v1010_v50, %v1014_v32  ;;  %vm7819_vm6 = vmmov %vm7818_vm3  ;;  %vm7771_vm3 = vcmask 1045504  }
 0x341   :  { %4318 = vmatprep.mubr.msk.f32.mxu0 %vm1059_vm5, %v1015_v31  ;;  %v1013_v38 = vsel %vm7819_vm6, %v1007_v34, %v1012_v35  ;;  %v6259_v34 = vld [vmem:[%s7761_s0 + $0x30] sm:$0xff]  ;;  %v1709_v7 = vsel %vm7771_vm3, %v1707_v58, %v1708_v62  ;;  %vm7820_vm6 = vcmask 195712  }
 0x342   :  { %v2013_v24 = vpop.permute.xlu1 %2012  ;;  %v2011_v25 = vpop.permute.xlu0 %2010  ;;  %1138 = vmatmul.mubr.f32.gmra.mrb[2].mxu0 %v1013_v38  ;;  %v1026_v45 = vrot.slane %v6259_v34, 7 }
 0x343   :  { %v6219_v28 = vld [vmem:[#allocation2 + $0x30] sm:$0xff]  ;;  %2028 = vst.msk [vmem:[#allocation2 + $0x58] sm:$0xff] %vm7813_vm2, %v2013_v24 }
 0x344   :  { %2027 = vst.msk [vmem:[#allocation2 + $0x50] sm:$0xff] %vm7817_vm4, %v2011_v25  ;;  %2254 = vrot.lane.b32.xlu1 %v5478_v57, %s4695_s28  ;;  %2238 = vrot.lane.b32.xlu0 %v5831_v36, %s4694_s25  ;;  %v6250_v57 = vld [vmem:[%s7761_s0 + $0x38] sm:$0xff]  ;;  %vm1024_vm4 = vcmask 1040384  }
 0x345   :  { %2464 = vst.msk [vmem:[#allocation2 + $0x30] sm:$0xff] %vm44_vm0, %v6224_v30  ;;  %v1029_v50 = vrot.slane %v6250_v57, 7  ;;  %v1027_v55 = vsel %vm1024_vm4, %v1025_v44, %v1026_v45 }
 0x346   :  { %v2031_v40 = vpop.permute.xlu1 %2030  ;;  %v2015_v42 = vpop.permute.xlu0 %2014 }
 0x347   :  { %2051 = vst.msk [vmem:[#allocation2 + $0x38] sm:$0xff] %vm254_vm7, %v2031_v40  ;;  %v1030_v49 = vsel %vm1024_vm4, %v1028_v18, %v1029_v50  ;;  %v1034_v10 = vsel %vm1024_vm4, %v1029_v50, %v1033_v48 }
 0x348   :  { %2029 = vst.msk [vmem:[#allocation2 + $0x60] sm:$0xff] %vm7813_vm2, %v2015_v42  ;;  %2258 = vrot.lane.b32.xlu1 %v5717_v51, %s4695_s28  ;;  %2256 = vrot.lane.b32.xlu0 %v5690_v41, %s4695_s28  ;;  %v997_v51 = vld [vmem:[%s7761_s0 + $0x40] sm:$0x7f]  ;;  %vm7821_vm2 = vmmov %vm7820_vm6 }
 0x349   :  { %4319 = vmatprep.mubr.msk.f32.mxu0 %vm1059_vm5, %v1030_v49  ;;  %v1031_v41 = vrot.slane %v997_v51, 7 }
 0x34a   :  { %v2035_v15 = vpop.permute.xlu1 %2034  ;;  %v2033_v22 = vpop.permute.xlu0 %2032  ;;  %1143 = vmatmul.mubr.f32.gmra.mrb[4].mxu0 %v1027_v55 }
 0x34b   :  { %2053 = vst.msk [vmem:[#allocation2 + $0x48] sm:$0xff] %vm254_vm7, %v2035_v15  ;;  %2052 = vst.msk [vmem:[#allocation2 + $0x40] sm:$0xff] %vm254_vm7, %v2033_v22  ;;  %4320 = vmatprep.mubr.msk.f32.mxu0 %vm1059_vm5, %v1034_v10  ;;  %v1032_v27 = vsel %vm1024_vm4, %v1026_v45, %v1031_v41 }
 0x34c   :  { %2262 = vrot.lane.b32.xlu1 %v5774_v16, %s4695_s28  ;;  %2260 = vrot.lane.b32.xlu0 %v5748_v59, %s4695_s28  ;;  %v1710_v59 = vrot.slane %v1691_v52, 2  ;;  %vm7822_vm4 = vmmov %vm7821_vm2 }
 0x34e   :  { %v2039_v37 = vpop.permute.xlu1 %2038  ;;  %v2037_v16 = vpop.permute.xlu0 %2036  ;;  %v2338_v46 = vld [vmem:[#allocation2 + $0x38] sm:$0xff]  ;;  %1148 = vmatmul.mubr.f32.gmra.mrb[6].mxu0 %v1032_v27  ;;  %v1712_v63 = vsel %vm7771_vm3, %v1710_v59, %v1711_v2  ;;  %vm7824_vm3 = vmmov %vm7821_vm2 }
 0x34f   :  { %2055 = vst.msk [vmem:[#allocation2 + $0x58] sm:$0xff] %vm254_vm7, %v2039_v37  ;;  %2054 = vst.msk [vmem:[#allocation2 + $0x50] sm:$0xff] %vm254_vm7, %v2037_v16  ;;  %v4490_v9 = vpack.c.bf16 %v2338_v46, %v6219_v28  ;;  %4332 = vmatprep.mubr.msk.f32.mxu0 %vm1059_vm5, %v1712_v63 }
 0x350   :  { %2266 = vrot.lane.b32.xlu1 %v5831_v36, %s4695_s28  ;;  %2264 = vrot.lane.b32.xlu0 %v5805_v23, %s4695_s28  ;;  %v6326_v36 = vld [vmem:[%s7762_s1 + $0x118] sm:$0xff] }
 0x351   :  { %4491 = vmatpush1.bf16.msra.mxu1 %v4490_v9  ;;  %3068 = vst.msk [vmem:[#allocation2] sm:$0xff] %vm44_vm0, %v6326_v36 }
 0x352   :  { %v2043_v12 = vpop.permute.xlu1 %2042  ;;  %v2041_v23 = vpop.permute.xlu0 %2040  ;;  %4492 = vmatprep.subr.bf16.mxu1 %v4681_v8  ;;  %1816 = vmatmul.mubr.f32.vlgmr.msra.gmra.mrb[8].mxu0 %v1709_v7 }
 0x353   :  { %2057 = vst.msk [vmem:[#allocation2 + $0x68] sm:$0xff] %vm254_vm7, %v2043_v12  ;;  %2056 = vst.msk [vmem:[#allocation2 + $0x60] sm:$0xff] %vm254_vm7, %v2041_v23 }
 0x354   :  { %2474 = vrot.lane.b32.xlu1 %v6071_v29, %s4679_s16  ;;  %2472 = vrot.lane.b32.xlu0 %v5876_v47, %s4679_s16 }
 0x356   :  { %v2061_v13 = vpop.permute.xlu1 %2060  ;;  %v2059_v14 = vpop.permute.xlu0 %2058 }
 0x357   :  { %2080 = vst.msk [vmem:[#allocation2 + $0x48] sm:$0xff] %vm283_vm8, %v2061_v13  ;;  %2079 = vst.msk [vmem:[#allocation2 + $0x40] sm:$0xff] %vm283_vm8, %v2059_v14 }
 0x358   :  { %2478 = vrot.lane.b32.xlu1 %v6130_v43, %s4679_s16  ;;  %2476 = vrot.lane.b32.xlu0 %v6105_v4, %s4679_s16 }
 0x35a   :  { %v2065_v3 = vpop.permute.xlu1 %2064  ;;  %v2063_v17 = vpop.permute.xlu0 %2062 }
 0x35b   :  { %2082 = vst.msk [vmem:[#allocation2 + $0x58] sm:$0xff] %vm283_vm8, %v2065_v3  ;;  %2081 = vst.msk [vmem:[#allocation2 + $0x50] sm:$0xff] %vm283_vm8, %v2063_v17 }
 0x35c   :  { %2482 = vrot.lane.b32.xlu1 %v6187_v1, %s4679_s16  ;;  %2480 = vrot.lane.b32.xlu0 %v6162_v60, %s4679_s16 }
 0x35e   :  { %v2069_v0 = vpop.permute.xlu1 %2068  ;;  %v2067_v5 = vpop.permute.xlu0 %2066  ;;  %v2339_v28 = vld [vmem:[#allocation2 + $0x40] sm:$0xff] }
 0x35f   :  { %2084 = vst.msk [vmem:[#allocation2 + $0x68] sm:$0xff] %vm283_vm8, %v2069_v0  ;;  %2083 = vst.msk [vmem:[#allocation2 + $0x60] sm:$0xff] %vm283_vm8, %v2067_v5 }
 0x360   :  { %2500 = vrot.lane.b32.xlu1 %v5876_v47, %s4682_s29  ;;  %2484 = vrot.lane.b32.xlu0 %v6224_v30, %s4679_s16 }
 0x362   :  { %v2087_v19 = vpop.permute.xlu1 %2086  ;;  %v2071_v6 = vpop.permute.xlu0 %2070 }
 0x363   :  { %2107 = vst.msk [vmem:[#allocation2 + $0x48] sm:$0xff] %vm312_vm9, %v2087_v19 }
 0x364   :  { %2085 = vst.msk [vmem:[#allocation2 + $0x70] sm:$0xff] %vm283_vm8, %v2071_v6  ;;  %2504 = vrot.lane.b32.xlu1 %v6105_v4, %s4682_s29  ;;  %2502 = vrot.lane.b32.xlu0 %v6071_v29, %s4682_s29 }
 0x366   :  { %v2091_v20 = vpop.permute.xlu1 %2090  ;;  %v2089_v21 = vpop.permute.xlu0 %2088 }
 0x367   :  { %2109 = vst.msk [vmem:[#allocation2 + $0x58] sm:$0xff] %vm312_vm9, %v2091_v20  ;;  %2108 = vst.msk [vmem:[#allocation2 + $0x50] sm:$0xff] %vm312_vm9, %v2089_v21 }
 0x368   :  { %2508 = vrot.lane.b32.xlu1 %v6162_v60, %s4682_s29  ;;  %2506 = vrot.lane.b32.xlu0 %v6130_v43, %s4682_s29 }
 0x36a   :  { %v2095_v24 = vpop.permute.xlu1 %2094  ;;  %v2093_v25 = vpop.permute.xlu0 %2092  ;;  %v2340_v32 = vld [vmem:[#allocation2 + $0x48] sm:$0xff] }
 0x36b   :  { %2111 = vst.msk [vmem:[#allocation2 + $0x68] sm:$0xff] %vm312_vm9, %v2095_v24  ;;  %2110 = vst.msk [vmem:[#allocation2 + $0x60] sm:$0xff] %vm312_vm9, %v2093_v25  ;;  %v4493_v33 = vpack.c.bf16 %v2340_v32, %v2339_v28 }
 0x36c   :  { %2512 = vrot.lane.b32.xlu1 %v6224_v30, %s4682_s29  ;;  %2510 = vrot.lane.b32.xlu0 %v6187_v1, %s4682_s29 }
 0x36d   :  { %4494 = vmatpush1.bf16.msra.mxu1 %v4493_v33 }
 0x36e   :  { %v2099_v35 = vpop.permute.xlu1 %2098  ;;  %v2097_v31 = vpop.permute.xlu0 %2096  ;;  %4495 = vmatprep.subr.bf16.mxu1 %v4681_v8 }
 0x36f   :  { %2113 = vst.msk [vmem:[#allocation2 + $0x78] sm:$0xff] %vm312_vm9, %v2099_v35  ;;  %2112 = vst.msk [vmem:[#allocation2 + $0x70] sm:$0xff] %vm312_vm9, %v2097_v31 }
 0x370   :  { %2530 = vrot.lane.b32.xlu1 %v6071_v29, %s4683_s30  ;;  %2528 = vrot.lane.b32.xlu0 %v5876_v47, %s4683_s30 }
 0x372   :  { %v2117_v38 = vpop.permute.xlu1 %2116  ;;  %v2115_v39 = vpop.permute.xlu0 %2114 }
 0x373   :  { %2136 = vst.msk [vmem:[#allocation2 + $0x58] sm:$0xff] %vm341_vm10, %v2117_v38  ;;  %2135 = vst.msk [vmem:[#allocation2 + $0x50] sm:$0xff] %vm341_vm10, %v2115_v39 }
 0x374   :  { %2534 = vrot.lane.b32.xlu1 %v6130_v43, %s4683_s30  ;;  %2532 = vrot.lane.b32.xlu0 %v6105_v4, %s4683_s30 }
 0x376   :  { %v2121_v40 = vpop.permute.xlu1 %2120  ;;  %v2119_v42 = vpop.permute.xlu0 %2118 }
 0x377   :  { %2138 = vst.msk [vmem:[#allocation2 + $0x68] sm:$0xff] %vm341_vm10, %v2121_v40  ;;  %2137 = vst.msk [vmem:[#allocation2 + $0x60] sm:$0xff] %vm341_vm10, %v2119_v42 }
 0x378   :  { %2538 = vrot.lane.b32.xlu1 %v6187_v1, %s4683_s30  ;;  %2536 = vrot.lane.b32.xlu0 %v6162_v60, %s4683_s30 }
 0x37a   :  { %v2125_v18 = vpop.permute.xlu1 %2124  ;;  %v2123_v50 = vpop.permute.xlu0 %2122  ;;  %v2341_v15 = vld [vmem:[#allocation2 + $0x50] sm:$0xff] }
 0x37b   :  { %2140 = vst.msk [vmem:[#allocation2 + $0x78] sm:$0xff] %vm341_vm10, %v2125_v18  ;;  %2139 = vst.msk [vmem:[#allocation2 + $0x70] sm:$0xff] %vm341_vm10, %v2123_v50 }
 0x37c   :  { %2556 = vrot.lane.b32.xlu1 %v5876_v47, %s4684_s4  ;;  %2540 = vrot.lane.b32.xlu0 %v6224_v30, %s4683_s30 }
 0x37e   :  { %v2143_v26 = vpop.permute.xlu1 %2142  ;;  %v2127_v44 = vpop.permute.xlu0 %2126 }
 0x37f   :  { %2163 = vst.msk [vmem:[#allocation2 + $0x58] sm:$0xff] %vm370_vm11, %v2143_v26 }
 0x380   :  { %2141 = vst.msk [vmem:[#allocation2 + $0x80] sm:$0xff] %vm341_vm10, %v2127_v44  ;;  %2560 = vrot.lane.b32.xlu1 %v6105_v4, %s4684_s4  ;;  %2558 = vrot.lane.b32.xlu0 %v6071_v29, %s4684_s4 }
 0x382   :  { %v2147_v45 = vpop.permute.xlu1 %2146  ;;  %v2145_v49 = vpop.permute.xlu0 %2144 }
 0x383   :  { %2165 = vst.msk [vmem:[#allocation2 + $0x68] sm:$0xff] %vm370_vm11, %v2147_v45  ;;  %2164 = vst.msk [vmem:[#allocation2 + $0x60] sm:$0xff] %vm370_vm11, %v2145_v49 }
 0x384   :  { %2564 = vrot.lane.b32.xlu1 %v6162_v60, %s4684_s4  ;;  %2562 = vrot.lane.b32.xlu0 %v6130_v43, %s4684_s4 }
 0x386   :  { %v2151_v55 = vpop.permute.xlu1 %2150  ;;  %v2149_v61 = vpop.permute.xlu0 %2148  ;;  %v2342_v22 = vld [vmem:[#allocation2 + $0x58] sm:$0xff] }
 0x387   :  { %2167 = vst.msk [vmem:[#allocation2 + $0x78] sm:$0xff] %vm370_vm11, %v2151_v55  ;;  %2166 = vst.msk [vmem:[#allocation2 + $0x70] sm:$0xff] %vm370_vm11, %v2149_v61  ;;  %v4496_v48 = vpack.c.bf16 %v2342_v22, %v2341_v15 }
 0x388   :  { %2568 = vrot.lane.b32.xlu1 %v6224_v30, %s4684_s4  ;;  %2566 = vrot.lane.b32.xlu0 %v6187_v1, %s4684_s4 }
 0x389   :  { %4497 = vmatpush1.bf16.msra.mxu1 %v4496_v48 }
 0x38a   :  { %v2155_v51 = vpop.permute.xlu1 %2154  ;;  %v2153_v41 = vpop.permute.xlu0 %2152  ;;  %4498 = vmatprep.subr.bf16.mxu1 %v4681_v8 }
 0x38b   :  { %2169 = vst.msk [vmem:[#allocation2 + $0x88] sm:$0xff] %vm370_vm11, %v2155_v51  ;;  %2168 = vst.msk [vmem:[#allocation2 + $0x80] sm:$0xff] %vm370_vm11, %v2153_v41 }
 0x38c   :  { %2586 = vrot.lane.b32.xlu1 %v6071_v29, %s4685_s5  ;;  %2584 = vrot.lane.b32.xlu0 %v5876_v47, %s4685_s5 }
 0x38e   :  { %v2173_v10 = vpop.permute.xlu1 %2172  ;;  %v2171_v27 = vpop.permute.xlu0 %2170 }
 0x38f   :  { %2192 = vst.msk [vmem:[#allocation2 + $0x68] sm:$0xff] %vm399_vm12, %v2173_v10  ;;  %2191 = vst.msk [vmem:[#allocation2 + $0x60] sm:$0xff] %vm399_vm12, %v2171_v27 }
 0x390   :  { %2590 = vrot.lane.b32.xlu1 %v6130_v43, %s4685_s5  ;;  %2588 = vrot.lane.b32.xlu0 %v6105_v4, %s4685_s5 }
 0x392   :  { %v2177_v52 = vpop.permute.xlu1 %2176  ;;  %v2175_v37 = vpop.permute.xlu0 %2174 }
 0x393   :  { %2194 = vst.msk [vmem:[#allocation2 + $0x78] sm:$0xff] %vm399_vm12, %v2177_v52  ;;  %2193 = vst.msk [vmem:[#allocation2 + $0x70] sm:$0xff] %vm399_vm12, %v2175_v37  ;;  %v6526_v52 = vld [vmem:[%s7762_s1 + $0x120] sm:$0xff] }
 0x394   :  { %2594 = vrot.lane.b32.xlu1 %v6187_v1, %s4685_s5  ;;  %2592 = vrot.lane.b32.xlu0 %v6162_v60, %s4685_s5 }
 0x396   :  { %v2181_v16 = vpop.permute.xlu1 %2180  ;;  %v2179_v46 = vpop.permute.xlu0 %2178  ;;  %v2343_v12 = vld [vmem:[#allocation2 + $0x60] sm:$0xff] }
 0x397   :  { %2196 = vst.msk [vmem:[#allocation2 + $0x88] sm:$0xff] %vm399_vm12, %v2181_v16  ;;  %2195 = vst.msk [vmem:[#allocation2 + $0x80] sm:$0xff] %vm399_vm12, %v2179_v46 }
 0x398   :  { %2612 = vrot.lane.b32.xlu1 %v5876_v47, %s4686_s6  ;;  %2596 = vrot.lane.b32.xlu0 %v6224_v30, %s4685_s5 }
 0x39a   :  { %v2199_v59 = vpop.permute.xlu1 %2198  ;;  %v2183_v54 = vpop.permute.xlu0 %2182 }
 0x39b   :  { %2219 = vst.msk [vmem:[#allocation2 + $0x68] sm:$0xff] %vm428_vm13, %v2199_v59 }
 0x39c   :  { %2197 = vst.msk [vmem:[#allocation2 + $0x90] sm:$0xff] %vm399_vm12, %v2183_v54  ;;  %2616 = vrot.lane.b32.xlu1 %v6105_v4, %s4686_s6  ;;  %2614 = vrot.lane.b32.xlu0 %v6071_v29, %s4686_s6 }
 0x39e   :  { %v2203_v9 = vpop.permute.xlu1 %2202  ;;  %v2201_v58 = vpop.permute.xlu0 %2200 }
 0x39f   :  { %2221 = vst.msk [vmem:[#allocation2 + $0x78] sm:$0xff] %vm428_vm13, %v2203_v9  ;;  %2220 = vst.msk [vmem:[#allocation2 + $0x70] sm:$0xff] %vm428_vm13, %v2201_v58 }
 0x3a0   :  { %2620 = vrot.lane.b32.xlu1 %v6162_v60, %s4686_s6  ;;  %2618 = vrot.lane.b32.xlu0 %v6130_v43, %s4686_s6 }
 0x3a2   :  { %v2207_v63 = vpop.permute.xlu1 %2206  ;;  %v2205_v7 = vpop.permute.xlu0 %2204  ;;  %v2344_v23 = vld [vmem:[#allocation2 + $0x68] sm:$0xff] }
 0x3a3   :  { %2223 = vst.msk [vmem:[#allocation2 + $0x88] sm:$0xff] %vm428_vm13, %v2207_v63  ;;  %2222 = vst.msk [vmem:[#allocation2 + $0x80] sm:$0xff] %vm428_vm13, %v2205_v7  ;;  %v4499_v13 = vpack.c.bf16 %v2344_v23, %v2343_v12  ;;  %v6554_v63 = vld [vmem:[%s7762_s1 + $0x128] sm:$0xff] }
 0x3a4   :  { %2624 = vrot.lane.b32.xlu1 %v6224_v30, %s4686_s6  ;;  %2622 = vrot.lane.b32.xlu0 %v6187_v1, %s4686_s6 }
 0x3a5   :  { %4500 = vmatpush1.bf16.msra.mxu1 %v4499_v13 }
 0x3a6   :  { %v2211_v14 = vpop.permute.xlu1 %2210  ;;  %v2209_v3 = vpop.permute.xlu0 %2208  ;;  %4501 = vmatprep.subr.bf16.mxu1 %v4681_v8 }
 0x3a7   :  { %2225 = vst.msk [vmem:[#allocation2 + $0x98] sm:$0xff] %vm428_vm13, %v2211_v14  ;;  %2224 = vst.msk [vmem:[#allocation2 + $0x90] sm:$0xff] %vm428_vm13, %v2209_v3 }
 0x3a8   :  { %2642 = vrot.lane.b32.xlu1 %v6071_v29, %s4687_s7  ;;  %2640 = vrot.lane.b32.xlu0 %v5876_v47, %s4687_s7 }
 0x3aa   :  { %v2229_v17 = vpop.permute.xlu1 %2228  ;;  %v2227_v0 = vpop.permute.xlu0 %2226 }
 0x3ab   :  { %2248 = vst.msk [vmem:[#allocation2 + $0x78] sm:$0xff] %vm457_vm14, %v2229_v17  ;;  %2247 = vst.msk [vmem:[#allocation2 + $0x70] sm:$0xff] %vm457_vm14, %v2227_v0 }
 0x3ac   :  { %2646 = vrot.lane.b32.xlu1 %v6130_v43, %s4687_s7  ;;  %2644 = vrot.lane.b32.xlu0 %v6105_v4, %s4687_s7 }
 0x3ae   :  { %v2233_v5 = vpop.permute.xlu1 %2232  ;;  %v2231_v19 = vpop.permute.xlu0 %2230 }
 0x3af   :  { %2250 = vst.msk [vmem:[#allocation2 + $0x88] sm:$0xff] %vm457_vm14, %v2233_v5  ;;  %2249 = vst.msk [vmem:[#allocation2 + $0x80] sm:$0xff] %vm457_vm14, %v2231_v19  ;;  %v6585_v19 = vld [vmem:[%s7762_s1 + $0x130] sm:$0xff] }
 0x3b0   :  { %2650 = vrot.lane.b32.xlu1 %v6187_v1, %s4687_s7  ;;  %2648 = vrot.lane.b32.xlu0 %v6162_v60, %s4687_s7 }
 0x3b2   :  { %v2237_v6 = vpop.permute.xlu1 %2236  ;;  %v2235_v20 = vpop.permute.xlu0 %2234  ;;  %v2345_v35 = vld [vmem:[#allocation2 + $0x70] sm:$0xff] }
 0x3b3   :  { %2252 = vst.msk [vmem:[#allocation2 + $0x98] sm:$0xff] %vm457_vm14, %v2237_v6  ;;  %2251 = vst.msk [vmem:[#allocation2 + $0x90] sm:$0xff] %vm457_vm14, %v2235_v20 }
 0x3b4   :  { %2668 = vrot.lane.b32.xlu1 %v5876_v47, %s4688_s8  ;;  %2652 = vrot.lane.b32.xlu0 %v6224_v30, %s4687_s7 }
 0x3b6   :  { %v2255_v21 = vpop.permute.xlu1 %2254  ;;  %v2239_v24 = vpop.permute.xlu0 %2238 }
 0x3b7   :  { %2275 = vst.msk [vmem:[#allocation2 + $0x78] sm:$0xff] %vm7774_vm15, %v2255_v21 }
 0x3b8   :  { %2253 = vst.msk [vmem:[#allocation2 + $0xa0] sm:$0xff] %vm457_vm14, %v2239_v24  ;;  %2672 = vrot.lane.b32.xlu1 %v6105_v4, %s4688_s8  ;;  %2670 = vrot.lane.b32.xlu0 %v6071_v29, %s4688_s8 }
 0x3ba   :  { %v2259_v25 = vpop.permute.xlu1 %2258  ;;  %v2257_v28 = vpop.permute.xlu0 %2256 }
 0x3bb   :  { %2277 = vst.msk [vmem:[#allocation2 + $0x88] sm:$0xff] %vm7774_vm15, %v2259_v25  ;;  %2276 = vst.msk [vmem:[#allocation2 + $0x80] sm:$0xff] %vm7774_vm15, %v2257_v28 }
 0x3bc   :  { %2676 = vrot.lane.b32.xlu1 %v6162_v60, %s4688_s8  ;;  %2674 = vrot.lane.b32.xlu0 %v6130_v43, %s4688_s8 }
 0x3be   :  { %v2263_v32 = vpop.permute.xlu1 %2262  ;;  %v2261_v33 = vpop.permute.xlu0 %2260  ;;  %v2346_v31 = vld [vmem:[#allocation2 + $0x78] sm:$0xff] }
 0x3bf   :  { %2279 = vst.msk [vmem:[#allocation2 + $0x98] sm:$0xff] %vm7774_vm15, %v2263_v32  ;;  %2278 = vst.msk [vmem:[#allocation2 + $0x90] sm:$0xff] %vm7774_vm15, %v2261_v33  ;;  %v4502_v38 = vpack.c.bf16 %v2346_v31, %v2345_v35  ;;  %v6611_v35 = vld [vmem:[%s7762_s1 + $0x138] sm:$0xff] }
 0x3c0   :  { %2680 = vrot.lane.b32.xlu1 %v6224_v30, %s4688_s8  ;;  %2678 = vrot.lane.b32.xlu0 %v6187_v1, %s4688_s8 }
 0x3c1   :  { %4503 = vmatpush1.bf16.msra.mxu1 %v4502_v38 }
 0x3c2   :  { %v2267_v39 = vpop.permute.xlu1 %2266  ;;  %v2265_v40 = vpop.permute.xlu0 %2264  ;;  %4504 = vmatprep.subr.bf16.mxu1 %v4681_v8  ;;  %v2347_v42 = vld [vmem:[#allocation2 + $0x80] sm:$0xff]  ;;  %v2348_v18 = vld [vmem:[#allocation2 + $0x88] sm:$0xff] }
 0x3c3   :  { %2281 = vst.msk [vmem:[#allocation2 + $0xa8] sm:$0xff] %vm7774_vm15, %v2267_v39  ;;  %2280 = vst.msk [vmem:[#allocation2 + $0xa0] sm:$0xff] %vm7774_vm15, %v2265_v40  ;;  %v4505_v50 = vpack.c.bf16 %v2348_v18, %v2347_v42 }
 0x3c4   :  { %2698 = vrot.lane.b32.xlu1 %v6071_v29, %s4689_s9  ;;  %2696 = vrot.lane.b32.xlu0 %v5876_v47, %s4689_s9 }
 0x3c5   :  { %4506 = vmatpush1.bf16.msra.mxu1 %v4505_v50 }
 0x3c6   :  { %v2475_v26 = vpop.permute.xlu1 %2474  ;;  %v2473_v44 = vpop.permute.xlu0 %2472  ;;  %4507 = vmatprep.subr.bf16.mxu1 %v4681_v8  ;;  %v2349_v45 = vld [vmem:[#allocation2 + $0x90] sm:$0xff]  ;;  %v2350_v49 = vld [vmem:[#allocation2 + $0x98] sm:$0xff] }
 0x3c7   :  { %2494 = vst.msk [vmem:[#allocation2 + $0x10] sm:$0xff] %vm7773_vm1, %v2475_v26  ;;  %2493 = vst.msk [vmem:[#allocation2 + $0x8] sm:$0xff] %vm7773_vm1, %v2473_v44  ;;  %v4508_v55 = vpack.c.bf16 %v2350_v49, %v2349_v45  ;;  %v6642_v45 = vld [vmem:[%s7762_s1 + $0x140] sm:$0xff] }
 0x3c8   :  { %2702 = vrot.lane.b32.xlu1 %v6130_v43, %s4689_s9  ;;  %2700 = vrot.lane.b32.xlu0 %v6105_v4, %s4689_s9 }
 0x3c9   :  { %4509 = vmatpush1.bf16.msra.mxu1 %v4508_v55 }
 0x3ca   :  { %v2479_v61 = vpop.permute.xlu1 %2478  ;;  %v2477_v15 = vpop.permute.xlu0 %2476  ;;  %4510 = vmatprep.subr.bf16.mxu1 %v4681_v8  ;;  %v2351_v22 = vld [vmem:[#allocation2 + $0xa0] sm:$0xff]  ;;  %v2352_v48 = vld [vmem:[#allocation2 + $0xa8] sm:$0xff] }
 0x3cb   :  { %2496 = vst.msk [vmem:[#allocation2 + $0x20] sm:$0xff] %vm7773_vm1, %v2479_v61  ;;  %2495 = vst.msk [vmem:[#allocation2 + $0x18] sm:$0xff] %vm7773_vm1, %v2477_v15  ;;  %v4511_v51 = vpack.c.bf16 %v2352_v48, %v2351_v22 }
 0x3cc   :  { %2706 = vrot.lane.b32.xlu1 %v6187_v1, %s4689_s9  ;;  %2704 = vrot.lane.b32.xlu0 %v6162_v60, %s4689_s9 }
 0x3cd   :  { %4512 = vmatpush1.bf16.msra.mxu1 %v4511_v51 }
 0x3ce   :  { %v2483_v41 = vpop.permute.xlu1 %2482  ;;  %v2481_v10 = vpop.permute.xlu0 %2480  ;;  %v2942_v27 = vld [vmem:[#allocation2 + $0x8] sm:$0xff]  ;;  %4546 = vmatprep.subr.bf16.mxu1 %v4681_v8 }
 0x3cf   :  { %2498 = vst.msk [vmem:[#allocation2 + $0x30] sm:$0xff] %vm7773_vm1, %v2483_v41  ;;  %2497 = vst.msk [vmem:[#allocation2 + $0x28] sm:$0xff] %vm7773_vm1, %v2481_v10  ;;  %v4514_v37 = vpack.c.bf16 %v2942_v27, %v6321_v11  ;;  %v6668_v10 = vld [vmem:[%s7762_s1 + $0x148] sm:$0xff] }
 0x3d0   :  { %3069 = vst.msk [vmem:[#allocation2 + $0x8] sm:$0xff] %vm44_vm0, %v6526_v52  ;;  %2724 = vrot.lane.b32.xlu1 %v5876_v47, %s4690_s12  ;;  %2708 = vrot.lane.b32.xlu0 %v6224_v30, %s4689_s9 }
 0x3d1   :  { %4515 = vmatpush1.bf16.msra.mxu0 %v4514_v37 }
 0x3d2   :  { %v2501_v16 = vpop.permute.xlu1 %2500  ;;  %v2485_v46 = vpop.permute.xlu0 %2484  ;;  %4516 = vmatprep.subr.bf16.mxu0 %v4681_v8 }
 0x3d3   :  { %2521 = vst.msk [vmem:[#allocation2 + $0x10] sm:$0xff] %vm7820_vm6, %v2501_v16  ;;  %vm7823_vm6 = vmmov %vm7821_vm2  ;;  %v499_v16 = vld [vmem:[%s7761_s0 + $0x28] sm:$0xc0] }
 0x3d4   :  { %2499 = vst.msk [vmem:[#allocation2 + $0x38] sm:$0xff] %vm7773_vm1, %v2485_v46  ;;  %2728 = vrot.lane.b32.xlu1 %v6105_v4, %s4690_s12  ;;  %2726 = vrot.lane.b32.xlu0 %v6071_v29, %s4690_s12 }
 0x3d6   :  { %v2505_v11 = vpop.permute.xlu1 %2504  ;;  %v2503_v59 = vpop.permute.xlu0 %2502 }
 0x3d7   :  { %2523 = vst.msk [vmem:[#allocation2 + $0x20] sm:$0xff] %vm7821_vm2, %v2505_v11 }
 0x3d8   :  { %2522 = vst.msk [vmem:[#allocation2 + $0x18] sm:$0xff] %vm7822_vm4, %v2503_v59  ;;  %2732 = vrot.lane.b32.xlu1 %v6162_v60, %s4690_s12  ;;  %2730 = vrot.lane.b32.xlu0 %v6130_v43, %s4690_s12  ;;  %vm7825_vm4 = vmmov %vm7821_vm2  ;;  %v514_v59 = vrot.slane %v499_v16, 6 }
 0x3da   :  { %v2509_v54 = vpop.permute.xlu1 %2508  ;;  %v2507_v9 = vpop.permute.xlu0 %2506  ;;  %v2943_v58 = vld [vmem:[#allocation2 + $0x10] sm:$0xff] }
 0x3db   :  { %2525 = vst.msk [vmem:[#allocation2 + $0x30] sm:$0xff] %vm7823_vm6, %v2509_v54  ;;  %v515_v54 = vrot.slane %v6250_v57, 6 }
 0x3dc   :  { %2524 = vst.msk [vmem:[#allocation2 + $0x28] sm:$0xff] %vm7824_vm3, %v2507_v9  ;;  %2736 = vrot.lane.b32.xlu1 %v6224_v30, %s4690_s12  ;;  %2734 = vrot.lane.b32.xlu0 %v6187_v1, %s4690_s12  ;;  %vm7826_vm3 = vcmask 261312   ;;  %v498_v9 = vld [vmem:[%s7761_s0 + $0x20] sm:$0xc0] }
 0x3dd   :  { %3070 = vst.msk [vmem:[#allocation2 + $0x10] sm:$0xff] %vm44_vm0, %v6554_v63  ;;  %vm7827_vm6 = vmmov %vm7826_vm3 }
 0x3de   :  { %v2513_v7 = vpop.permute.xlu1 %2512  ;;  %v2511_v12 = vpop.permute.xlu0 %2510 }
 0x3df   :  { %2527 = vst.msk [vmem:[#allocation2 + $0x40] sm:$0xff] %vm7821_vm2, %v2513_v7  ;;  %vm7828_vm2 = vmmov %vm7826_vm3  ;;  %v503_v7 = vld [vmem:[%s7761_s0 + $0x48] sm:$0x3f] }
 0x3e0   :  { %2526 = vst.msk [vmem:[#allocation2 + $0x38] sm:$0xff] %vm7825_vm4, %v2511_v12  ;;  %2754 = vrot.lane.b32.xlu1 %v6071_v29, %s4691_s15  ;;  %2752 = vrot.lane.b32.xlu0 %v5876_v47, %s4691_s15  ;;  %vm7829_vm4 = vmmov %vm7828_vm2 }
 0x3e2   :  { %v2531_v23 = vpop.permute.xlu1 %2530  ;;  %v2529_v13 = vpop.permute.xlu0 %2528 }
 0x3e3   :  { %2550 = vst.msk [vmem:[#allocation2 + $0x20] sm:$0xff] %vm7826_vm3, %v2531_v23  ;;  %vm7830_vm3 = vmmov %vm7828_vm2 }
 0x3e4   :  { %2549 = vst.msk [vmem:[#allocation2 + $0x18] sm:$0xff] %vm7827_vm6, %v2529_v13  ;;  %2758 = vrot.lane.b32.xlu1 %v6130_v43, %s4691_s15  ;;  %2756 = vrot.lane.b32.xlu0 %v6105_v4, %s4691_s15  ;;  %vm7831_vm6 = vmmov %vm7828_vm2 }
 0x3e6   :  { %v2535_v14 = vpop.permute.xlu1 %2534  ;;  %v2533_v3 = vpop.permute.xlu0 %2532 }
 0x3e7   :  { %2552 = vst.msk [vmem:[#allocation2 + $0x30] sm:$0xff] %vm7828_vm2, %v2535_v14  ;;  %vm7832_vm2 = vcmask 326912  }
 0x3e8   :  { %2551 = vst.msk [vmem:[#allocation2 + $0x28] sm:$0xff] %vm7829_vm4, %v2533_v3  ;;  %2762 = vrot.lane.b32.xlu1 %v6187_v1, %s4691_s15  ;;  %2760 = vrot.lane.b32.xlu0 %v6162_v60, %s4691_s15  ;;  %vm7833_vm4 = vmmov %vm7830_vm3  ;;  %v2283_v3 = vld [vmem:[%s7761_s0 + $0x8] sm:$0xf8] }
 0x3ea   :  { %v2539_v17 = vpop.permute.xlu1 %2538  ;;  %v2537_v0 = vpop.permute.xlu0 %2536 }
 0x3eb   :  { %v2944_v5 = vld [vmem:[#allocation2 + $0x18] sm:$0xff]  ;;  %2554 = vst.msk [vmem:[#allocation2 + $0x40] sm:$0xff] %vm7830_vm3, %v2539_v17  ;;  %vm7834_vm3 = vmmov %vm7832_vm2 }
 0x3ec   :  { %2553 = vst.msk [vmem:[#allocation2 + $0x38] sm:$0xff] %vm7831_vm6, %v2537_v0  ;;  %v4517_v6 = vpack.c.bf16 %v2944_v5, %v2943_v58  ;;  %2780 = vrot.lane.b32.xlu1 %v5876_v47, %s4692_s19  ;;  %2764 = vrot.lane.b32.xlu0 %v6224_v30, %s4691_s15  ;;  %vm7835_vm6 = vmmov %vm7832_vm2 }
 0x3ed   :  { %3071 = vst.msk [vmem:[#allocation2 + $0x18] sm:$0xff] %vm44_vm0, %v6585_v19 }
 0x3ee   :  { %4518 = vmatpush1.bf16.msra.mxu0 %v4517_v6  ;;  %v2557_v20 = vpop.permute.xlu1 %2556  ;;  %v2541_v21 = vpop.permute.xlu0 %2540  ;;  %v2304_v6 = vrot.slane %v2283_v3, 3 }
 0x3ef   :  { %4519 = vmatprep.subr.bf16.mxu0 %v4681_v8  ;;  %2577 = vst.msk [vmem:[#allocation2 + $0x20] sm:$0xff] %vm7832_vm2, %v2557_v20 }
 0x3f0   :  { %2555 = vst.msk [vmem:[#allocation2 + $0x48] sm:$0xff] %vm7833_vm4, %v2541_v21  ;;  %2784 = vrot.lane.b32.xlu1 %v6105_v4, %s4692_s19  ;;  %2782 = vrot.lane.b32.xlu0 %v6071_v29, %s4692_s19  ;;  %vm7836_vm4 = vmmov %vm7832_vm2 }
 0x3f2   :  { %v2561_v24 = vpop.permute.xlu1 %2560  ;;  %v2559_v25 = vpop.permute.xlu0 %2558 }
 0x3f3   :  { %2579 = vst.msk [vmem:[#allocation2 + $0x30] sm:$0xff] %vm7834_vm3, %v2561_v24  ;;  %vm7837_vm3 = vmmov %vm7832_vm2  ;;  %v2302_v24 = vrot.slane %v6301_v56, 3  ;;  %v2288_v56 = vld [vmem:[%s7761_s0 + $0x30] sm:$0xfe] }
 0x3f4   :  { %2578 = vst.msk [vmem:[#allocation2 + $0x28] sm:$0xff] %vm7835_vm6, %v2559_v25  ;;  %2788 = vrot.lane.b32.xlu1 %v6162_v60, %s4692_s19  ;;  %2786 = vrot.lane.b32.xlu0 %v6130_v43, %s4692_s19  ;;  %vm7838_vm6 = vmmov %vm7832_vm2 }
 0x3f6   :  { %v2565_v28 = vpop.permute.xlu1 %2564  ;;  %v2563_v32 = vpop.permute.xlu0 %2562  ;;  %v2945_v33 = vld [vmem:[#allocation2 + $0x20] sm:$0xff] }
 0x3f7   :  { %2581 = vst.msk [vmem:[#allocation2 + $0x40] sm:$0xff] %vm7832_vm2, %v2565_v28  ;;  %vm7839_vm2 = vcmask 392512   ;;  %v6733_v28 = vld [vmem:[#allocation2] sm:$0xff] }
 0x3f8   :  { %2580 = vst.msk [vmem:[#allocation2 + $0x38] sm:$0xff] %vm7836_vm4, %v2563_v32  ;;  %2792 = vrot.lane.b32.xlu1 %v6224_v30, %s4692_s19  ;;  %2790 = vrot.lane.b32.xlu0 %v6187_v1, %s4692_s19  ;;  %vm7840_vm4 = vmmov %vm7839_vm2  ;;  %v6738_v32 = vld [vmem:[%s7762_s1 + $0x150] sm:$0xff] }
 0x3f9   :  { %3072 = vst.msk [vmem:[#allocation2 + $0x20] sm:$0xff] %vm44_vm0, %v6611_v35  ;;  %3678 = vst.msk [vmem:[#allocation2] sm:$0xff] %vm44_vm0, %v6738_v32 }
 0x3fa   :  { %v2569_v31 = vpop.permute.xlu1 %2568  ;;  %v2567_v38 = vpop.permute.xlu0 %2566 }
 0x3fb   :  { %2583 = vst.msk [vmem:[#allocation2 + $0x50] sm:$0xff] %vm7837_vm3, %v2569_v31  ;;  %vm7841_vm3 = vmmov %vm7839_vm2 }
 0x3fc   :  { %2582 = vst.msk [vmem:[#allocation2 + $0x48] sm:$0xff] %vm7838_vm6, %v2567_v38  ;;  %2810 = vrot.lane.b32.xlu1 %v6071_v29, %s4693_s22  ;;  %2808 = vrot.lane.b32.xlu0 %v5876_v47, %s4693_s22  ;;  %vm7842_vm6 = vmmov %vm7839_vm2 }
 0x3fe   :  { %v2587_v39 = vpop.permute.xlu1 %2586  ;;  %v2585_v40 = vpop.permute.xlu0 %2584 }
 0x3ff   :  { %2606 = vst.msk [vmem:[#allocation2 + $0x30] sm:$0xff] %vm7839_vm2, %v2587_v39 }
 0x400   :  { %2605 = vst.msk [vmem:[#allocation2 + $0x28] sm:$0xff] %vm7840_vm4, %v2585_v40  ;;  %2814 = vrot.lane.b32.xlu1 %v6130_v43, %s4693_s22  ;;  %2812 = vrot.lane.b32.xlu0 %v6105_v4, %s4693_s22  ;;  %vm7843_vm4 = vmmov %vm7839_vm2 }
 0x402   :  { %v2591_v42 = vpop.permute.xlu1 %2590  ;;  %v2589_v18 = vpop.permute.xlu0 %2588 }
 0x403   :  { %2608 = vst.msk [vmem:[#allocation2 + $0x40] sm:$0xff] %vm7841_vm3, %v2591_v42  ;;  %vm7844_vm3 = vcmask 458112  }
 0x404   :  { %2607 = vst.msk [vmem:[#allocation2 + $0x38] sm:$0xff] %vm7842_vm6, %v2589_v18  ;;  %2818 = vrot.lane.b32.xlu1 %v6187_v1, %s4693_s22  ;;  %2816 = vrot.lane.b32.xlu0 %v6162_v60, %s4693_s22  ;;  %vm7845_vm6 = vmmov %vm7839_vm2 }
 0x406   :  { %v2595_v50 = vpop.permute.xlu1 %2594  ;;  %v2593_v26 = vpop.permute.xlu0 %2592 }
 0x407   :  { %v2946_v44 = vld [vmem:[#allocation2 + $0x28] sm:$0xff]  ;;  %2610 = vst.msk [vmem:[#allocation2 + $0x50] sm:$0xff] %vm7839_vm2, %v2595_v50  ;;  %vm7846_vm2 = vmmov %vm7844_vm3 }
 0x408   :  { %2609 = vst.msk [vmem:[#allocation2 + $0x48] sm:$0xff] %vm7843_vm4, %v2593_v26  ;;  %v4520_v49 = vpack.c.bf16 %v2946_v44, %v2945_v33  ;;  %2836 = vrot.lane.b32.xlu1 %v5876_v47, %s4694_s25  ;;  %2820 = vrot.lane.b32.xlu0 %v6224_v30, %s4693_s22  ;;  %vm7847_vm4 = vmmov %vm7846_vm2 }
 0x409   :  { %3073 = vst.msk [vmem:[#allocation2 + $0x28] sm:$0xff] %vm44_vm0, %v6642_v45 }
 0x40a   :  { %4521 = vmatpush1.bf16.msra.mxu0 %v4520_v49  ;;  %v2613_v55 = vpop.permute.xlu1 %2612  ;;  %v2597_v61 = vpop.permute.xlu0 %2596 }
 0x40b   :  { %4522 = vmatprep.subr.bf16.mxu0 %v4681_v8  ;;  %2633 = vst.msk [vmem:[#allocation2 + $0x30] sm:$0xff] %vm7844_vm3, %v2613_v55  ;;  %vm7848_vm3 = vmmov %vm7846_vm2 }
 0x40c   :  { %2611 = vst.msk [vmem:[#allocation2 + $0x58] sm:$0xff] %vm7845_vm6, %v2597_v61  ;;  %2840 = vrot.lane.b32.xlu1 %v6105_v4, %s4694_s25  ;;  %2838 = vrot.lane.b32.xlu0 %v6071_v29, %s4694_s25  ;;  %vm7849_vm6 = vmmov %vm7846_vm2 }
 0x40e   :  { %v2617_v15 = vpop.permute.xlu1 %2616  ;;  %v2615_v22 = vpop.permute.xlu0 %2614 }
 0x40f   :  { %2635 = vst.msk [vmem:[#allocation2 + $0x40] sm:$0xff] %vm7846_vm2, %v2617_v15 }
 0x410   :  { %2634 = vst.msk [vmem:[#allocation2 + $0x38] sm:$0xff] %vm7847_vm4, %v2615_v22  ;;  %2844 = vrot.lane.b32.xlu1 %v6162_v60, %s4694_s25  ;;  %2842 = vrot.lane.b32.xlu0 %v6130_v43, %s4694_s25  ;;  %vm7850_vm4 = vmmov %vm7846_vm2 }
 0x412   :  { %v2621_v48 = vpop.permute.xlu1 %2620  ;;  %v2619_v51 = vpop.permute.xlu0 %2618  ;;  %v2947_v41 = vld [vmem:[#allocation2 + $0x30] sm:$0xff] }
 0x413   :  { %2637 = vst.msk [vmem:[#allocation2 + $0x50] sm:$0xff] %vm7848_vm3, %v2621_v48  ;;  %vm7772_vm3 = vcmask 1041408  }
 0x414   :  { %2636 = vst.msk [vmem:[#allocation2 + $0x48] sm:$0xff] %vm7849_vm6, %v2619_v51  ;;  %2848 = vrot.lane.b32.xlu1 %v6224_v30, %s4694_s25  ;;  %2846 = vrot.lane.b32.xlu0 %v6187_v1, %s4694_s25  ;;  %v516_v57 = vsel %vm7772_vm3, %v514_v59, %v515_v54  ;;  %vm2300_vm6 = vcmask 1044480  }
 0x415   :  { %3074 = vst.msk [vmem:[#allocation2 + $0x30] sm:$0xff] %vm44_vm0, %v6668_v10  ;;  %4323 = vmatprep.mubr.msk.f32.mxu1 %vm1059_vm5, %v516_v57 }
 0x416   :  { %v2625_v27 = vpop.permute.xlu1 %2624  ;;  %v2623_v37 = vpop.permute.xlu0 %2622 }
 0x417   :  { %2639 = vst.msk [vmem:[#allocation2 + $0x60] sm:$0xff] %vm7846_vm2, %v2625_v27  ;;  %vm7851_vm2 = vcmask 195712  }
 0x418   :  { %2638 = vst.msk [vmem:[#allocation2 + $0x58] sm:$0xff] %vm7850_vm4, %v2623_v37  ;;  %2866 = vrot.lane.b32.xlu1 %v6071_v29, %s4695_s28  ;;  %2864 = vrot.lane.b32.xlu0 %v5876_v47, %s4695_s28  ;;  %v511_v29 = vrot.slane %v498_v9, 6  ;;  %v512_v47 = vrot.slane %v6259_v34, 6  ;;  %v519_v34 = vrot.slane %v503_v7, 6  ;;  %vm7852_vm4 = vmmov %vm7851_vm2 }
 0x41a   :  { %v2643_v46 = vpop.permute.xlu1 %2642  ;;  %v2641_v11 = vpop.permute.xlu0 %2640  ;;  %v513_v58 = vsel %vm7772_vm3, %v511_v29, %v512_v47  ;;  %v520_v13 = vsel %vm7772_vm3, %v515_v54, %v519_v34 }
 0x41b   :  { %2662 = vst.msk [vmem:[#allocation2 + $0x40] sm:$0xff] %vm254_vm7, %v2643_v46  ;;  %2661 = vst.msk [vmem:[#allocation2 + $0x38] sm:$0xff] %vm254_vm7, %v2641_v11  ;;  %1238 = vmatmul.mubr.f32.gmra.mrb[4].mxu1 %v513_v58 }
 0x41c   :  { %2870 = vrot.lane.b32.xlu1 %v6130_v43, %s4695_s28  ;;  %2868 = vrot.lane.b32.xlu0 %v6105_v4, %s4695_s28  ;;  %v502_v43 = vld [vmem:[%s7761_s0 + $0x40] sm:$0x3f] }
 0x41d   :  { %v517_v4 = vrot.slane %v502_v43, 6  ;;  %4324 = vmatprep.mubr.msk.f32.mxu1 %vm1059_vm5, %v520_v13 }
 0x41e   :  { %v2647_v12 = vpop.permute.xlu1 %2646  ;;  %v2645_v23 = vpop.permute.xlu0 %2644 }
 0x41f   :  { %2664 = vst.msk [vmem:[#allocation2 + $0x50] sm:$0xff] %vm254_vm7, %v2647_v12  ;;  %2663 = vst.msk [vmem:[#allocation2 + $0x48] sm:$0xff] %vm254_vm7, %v2645_v23  ;;  %v518_v14 = vsel %vm7772_vm3, %v512_v47, %v517_v4 }
 0x420   :  { %2874 = vrot.lane.b32.xlu1 %v6187_v1, %s4695_s28  ;;  %2872 = vrot.lane.b32.xlu0 %v6162_v60, %s4695_s28  ;;  %v2305_v1 = vrot.slane %v6292_v53, 3  ;;  %v2282_v60 = vld [vmem:[%s7761_s0] sm:$0xf8]  ;;  %vm7853_vm3 = vmmov %vm7851_vm2  ;;  %v7127_v53 = vld [vmem:[%s7761_s0 + $0x48] sm:$0xff] }
 0x421   :  { %1243 = vmatmul.mubr.f32.gmra.mrb[6].mxu1 %v518_v14  ;;  %v2301_v21 = vrot.slane %v2282_v60, 3 }
 0x422   :  { %v2651_v17 = vpop.permute.xlu1 %2650  ;;  %v2649_v0 = vpop.permute.xlu0 %2648  ;;  %v2948_v5 = vld [vmem:[#allocation2 + $0x38] sm:$0xff]  ;;  %v2306_v25 = vsel %vm2300_vm6, %v2304_v6, %v2305_v1 }
 0x423   :  { %2666 = vst.msk [vmem:[#allocation2 + $0x60] sm:$0xff] %vm254_vm7, %v2651_v17  ;;  %2665 = vst.msk [vmem:[#allocation2 + $0x58] sm:$0xff] %vm254_vm7, %v2649_v0  ;;  %v4523_v20 = vpack.c.bf16 %v2948_v5, %v2947_v41  ;;  %4343 = vmatprep.mubr.msk.f32.mxu1 %vm1059_vm5, %v2306_v25  ;;  %v2303_v33 = vsel %vm2300_vm6, %v2301_v21, %v2302_v24 }
 0x424   :  { %3082 = vrot.lane.b32.xlu1 %v6326_v36, %s4679_s16  ;;  %2876 = vrot.lane.b32.xlu0 %v6224_v30, %s4695_s28 }
 0x425   :  { %4524 = vmatpush1.bf16.msra.mxu0 %v4523_v20  ;;  %2426 = vmatmul.mubr.f32.vlgmr.msra.gmra.mrb[8].mxu1 %v2303_v33 }
 0x426   :  { %v2669_v30 = vpop.permute.xlu1 %2668  ;;  %v2653_v31 = vpop.permute.xlu0 %2652  ;;  %4525 = vmatprep.subr.bf16.mxu0 %v4681_v8 }
 0x427   :  { %2689 = vst.msk [vmem:[#allocation2 + $0x40] sm:$0xff] %vm283_vm8, %v2669_v30 }
 0x428   :  { %2667 = vst.msk [vmem:[#allocation2 + $0x68] sm:$0xff] %vm254_vm7, %v2653_v31  ;;  %3086 = vrot.lane.b32.xlu1 %v6554_v63, %s4679_s16  ;;  %3084 = vrot.lane.b32.xlu0 %v6526_v52, %s4679_s16 }
 0x42a   :  { %v2673_v38 = vpop.permute.xlu1 %2672  ;;  %v2671_v39 = vpop.permute.xlu0 %2670 }
 0x42b   :  { %2691 = vst.msk [vmem:[#allocation2 + $0x50] sm:$0xff] %vm283_vm8, %v2673_v38  ;;  %2690 = vst.msk [vmem:[#allocation2 + $0x48] sm:$0xff] %vm283_vm8, %v2671_v39 }
 0x42c   :  { %3090 = vrot.lane.b32.xlu1 %v6611_v35, %s4679_s16  ;;  %3088 = vrot.lane.b32.xlu0 %v6585_v19, %s4679_s16 }
 0x42e   :  { %v2677_v40 = vpop.permute.xlu1 %2676  ;;  %v2675_v42 = vpop.permute.xlu0 %2674  ;;  %v2949_v22 = vld [vmem:[#allocation2 + $0x40] sm:$0xff] }
 0x42f   :  { %2693 = vst.msk [vmem:[#allocation2 + $0x60] sm:$0xff] %vm283_vm8, %v2677_v40  ;;  %2692 = vst.msk [vmem:[#allocation2 + $0x58] sm:$0xff] %vm283_vm8, %v2675_v42 }
 0x430   :  { %3094 = vrot.lane.b32.xlu1 %v6668_v10, %s4679_s16  ;;  %3092 = vrot.lane.b32.xlu0 %v6642_v45, %s4679_s16 }
 0x432   :  { %v2681_v18 = vpop.permute.xlu1 %2680  ;;  %v2679_v50 = vpop.permute.xlu0 %2678 }
 0x433   :  { %2695 = vst.msk [vmem:[#allocation2 + $0x70] sm:$0xff] %vm283_vm8, %v2681_v18  ;;  %2694 = vst.msk [vmem:[#allocation2 + $0x68] sm:$0xff] %vm283_vm8, %v2679_v50 }
 0x434   :  { %3112 = vrot.lane.b32.xlu1 %v6526_v52, %s4682_s29  ;;  %3110 = vrot.lane.b32.xlu0 %v6326_v36, %s4682_s29 }
 0x436   :  { %v2699_v26 = vpop.permute.xlu1 %2698  ;;  %v2697_v44 = vpop.permute.xlu0 %2696 }
 0x437   :  { %2718 = vst.msk [vmem:[#allocation2 + $0x50] sm:$0xff] %vm312_vm9, %v2699_v26  ;;  %2717 = vst.msk [vmem:[#allocation2 + $0x48] sm:$0xff] %vm312_vm9, %v2697_v44 }
 0x438   :  { %3116 = vrot.lane.b32.xlu1 %v6585_v19, %s4682_s29  ;;  %3114 = vrot.lane.b32.xlu0 %v6554_v63, %s4682_s29 }
 0x43a   :  { %v2703_v49 = vpop.permute.xlu1 %2702  ;;  %v2701_v55 = vpop.permute.xlu0 %2700 }
 0x43b   :  { %2720 = vst.msk [vmem:[#allocation2 + $0x60] sm:$0xff] %vm312_vm9, %v2703_v49  ;;  %2719 = vst.msk [vmem:[#allocation2 + $0x58] sm:$0xff] %vm312_vm9, %v2701_v55 }
 0x43c   :  { %3120 = vrot.lane.b32.xlu1 %v6642_v45, %s4682_s29  ;;  %3118 = vrot.lane.b32.xlu0 %v6611_v35, %s4682_s29 }
 0x43e   :  { %v2707_v61 = vpop.permute.xlu1 %2706  ;;  %v2705_v15 = vpop.permute.xlu0 %2704  ;;  %v2950_v48 = vld [vmem:[#allocation2 + $0x48] sm:$0xff] }
 0x43f   :  { %2722 = vst.msk [vmem:[#allocation2 + $0x70] sm:$0xff] %vm312_vm9, %v2707_v61  ;;  %2721 = vst.msk [vmem:[#allocation2 + $0x68] sm:$0xff] %vm312_vm9, %v2705_v15  ;;  %v4526_v51 = vpack.c.bf16 %v2950_v48, %v2949_v22 }
 0x440   :  { %3138 = vrot.lane.b32.xlu1 %v6326_v36, %s4683_s30  ;;  %3122 = vrot.lane.b32.xlu0 %v6668_v10, %s4682_s29 }
 0x441   :  { %4527 = vmatpush1.bf16.msra.mxu0 %v4526_v51 }
 0x442   :  { %v2725_v41 = vpop.permute.xlu1 %2724  ;;  %v2709_v27 = vpop.permute.xlu0 %2708  ;;  %4528 = vmatprep.subr.bf16.mxu0 %v4681_v8 }
 0x443   :  { %2745 = vst.msk [vmem:[#allocation2 + $0x50] sm:$0xff] %vm341_vm10, %v2725_v41 }
 0x444   :  { %2723 = vst.msk [vmem:[#allocation2 + $0x78] sm:$0xff] %vm312_vm9, %v2709_v27  ;;  %3142 = vrot.lane.b32.xlu1 %v6554_v63, %s4683_s30  ;;  %3140 = vrot.lane.b32.xlu0 %v6526_v52, %s4683_s30 }
 0x446   :  { %v2729_v37 = vpop.permute.xlu1 %2728  ;;  %v2727_v16 = vpop.permute.xlu0 %2726 }
 0x447   :  { %2747 = vst.msk [vmem:[#allocation2 + $0x60] sm:$0xff] %vm341_vm10, %v2729_v37  ;;  %2746 = vst.msk [vmem:[#allocation2 + $0x58] sm:$0xff] %vm341_vm10, %v2727_v16 }
 0x448   :  { %3146 = vrot.lane.b32.xlu1 %v6611_v35, %s4683_s30  ;;  %3144 = vrot.lane.b32.xlu0 %v6585_v19, %s4683_s30 }
 0x44a   :  { %v2733_v46 = vpop.permute.xlu1 %2732  ;;  %v2731_v11 = vpop.permute.xlu0 %2730  ;;  %v2951_v12 = vld [vmem:[#allocation2 + $0x50] sm:$0xff] }
 0x44b   :  { %2749 = vst.msk [vmem:[#allocation2 + $0x70] sm:$0xff] %vm341_vm10, %v2733_v46  ;;  %2748 = vst.msk [vmem:[#allocation2 + $0x68] sm:$0xff] %vm341_vm10, %v2731_v11 }
 0x44c   :  { %3150 = vrot.lane.b32.xlu1 %v6668_v10, %s4683_s30  ;;  %3148 = vrot.lane.b32.xlu0 %v6642_v45, %s4683_s30 }
 0x44e   :  { %v2737_v59 = vpop.permute.xlu1 %2736  ;;  %v2735_v54 = vpop.permute.xlu0 %2734 }
 0x44f   :  { %2751 = vst.msk [vmem:[#allocation2 + $0x80] sm:$0xff] %vm341_vm10, %v2737_v59  ;;  %2750 = vst.msk [vmem:[#allocation2 + $0x78] sm:$0xff] %vm341_vm10, %v2735_v54 }
 0x450   :  { %3168 = vrot.lane.b32.xlu1 %v6526_v52, %s4684_s4  ;;  %3166 = vrot.lane.b32.xlu0 %v6326_v36, %s4684_s4 }
 0x452   :  { %v2755_v9 = vpop.permute.xlu1 %2754  ;;  %v2753_v29 = vpop.permute.xlu0 %2752 }
 0x453   :  { %2774 = vst.msk [vmem:[#allocation2 + $0x60] sm:$0xff] %vm370_vm11, %v2755_v9  ;;  %2773 = vst.msk [vmem:[#allocation2 + $0x58] sm:$0xff] %vm370_vm11, %v2753_v29 }
 0x454   :  { %3172 = vrot.lane.b32.xlu1 %v6585_v19, %s4684_s4  ;;  %3170 = vrot.lane.b32.xlu0 %v6554_v63, %s4684_s4 }
 0x456   :  { %v2759_v47 = vpop.permute.xlu1 %2758  ;;  %v2757_v57 = vpop.permute.xlu0 %2756 }
 0x457   :  { %2776 = vst.msk [vmem:[#allocation2 + $0x70] sm:$0xff] %vm370_vm11, %v2759_v47  ;;  %2775 = vst.msk [vmem:[#allocation2 + $0x68] sm:$0xff] %vm370_vm11, %v2757_v57 }
 0x458   :  { %3194 = vrot.lane.b32.xlu1 %v6326_v36, %s4685_s5  ;;  %3174 = vrot.lane.b32.xlu0 %v6611_v35, %s4684_s4 }
 0x45a   :  { %v2763_v58 = vpop.permute.xlu1 %2762  ;;  %v2761_v7 = vpop.permute.xlu0 %2760  ;;  %v2952_v23 = vld [vmem:[#allocation2 + $0x58] sm:$0xff] }
 0x45b   :  { %2778 = vst.msk [vmem:[#allocation2 + $0x80] sm:$0xff] %vm370_vm11, %v2763_v58  ;;  %2777 = vst.msk [vmem:[#allocation2 + $0x78] sm:$0xff] %vm370_vm11, %v2761_v7  ;;  %v4529_v34 = vpack.c.bf16 %v2952_v23, %v2951_v12 }
 0x45c   :  { %3176 = vrot.lane.b32.xlu1 %v6642_v45, %s4684_s4  ;;  %3198 = vrot.lane.b32.xlu0 %v6554_v63, %s4685_s5 }
 0x45d   :  { %4530 = vmatpush1.bf16.msra.mxu0 %v4529_v34 }
 0x45e   :  { %v2781_v43 = vpop.permute.xlu1 %2780  ;;  %v2765_v4 = vpop.permute.xlu0 %2764  ;;  %4531 = vmatprep.subr.bf16.mxu0 %v4681_v8 }
 0x45f   :  { %2801 = vst.msk [vmem:[#allocation2 + $0x60] sm:$0xff] %vm399_vm12, %v2781_v43 }
 0x460   :  { %2779 = vst.msk [vmem:[#allocation2 + $0x88] sm:$0xff] %vm370_vm11, %v2765_v4  ;;  %3224 = vrot.lane.b32.xlu1 %v6526_v52, %s4686_s6  ;;  %3196 = vrot.lane.b32.xlu0 %v6526_v52, %s4685_s5  ;;  %v6936_v4 = vld [vmem:[%s7762_s1 + $0x158] sm:$0xff] }
 0x462   :  { %v2785_v13 = vpop.permute.xlu1 %2784  ;;  %v2783_v14 = vpop.permute.xlu0 %2782 }
 0x463   :  { %2803 = vst.msk [vmem:[#allocation2 + $0x70] sm:$0xff] %vm399_vm12, %v2785_v13  ;;  %2802 = vst.msk [vmem:[#allocation2 + $0x68] sm:$0xff] %vm399_vm12, %v2783_v14 }
 0x464   :  { %3222 = vrot.lane.b32.xlu1 %v6326_v36, %s4686_s6  ;;  %3202 = vrot.lane.b32.xlu0 %v6611_v35, %s4685_s5 }
 0x466   :  { %v2789_v3 = vpop.permute.xlu1 %2788  ;;  %v2787_v17 = vpop.permute.xlu0 %2786  ;;  %v2953_v30 = vld [vmem:[#allocation2 + $0x60] sm:$0xff] }
 0x467   :  { %2805 = vst.msk [vmem:[#allocation2 + $0x80] sm:$0xff] %vm399_vm12, %v2789_v3  ;;  %2804 = vst.msk [vmem:[#allocation2 + $0x78] sm:$0xff] %vm399_vm12, %v2787_v17 }
 0x468   :  { %3200 = vrot.lane.b32.xlu1 %v6585_v19, %s4685_s5  ;;  %3250 = vrot.lane.b32.xlu0 %v6326_v36, %s4687_s7 }
 0x46a   :  { %v2793_v0 = vpop.permute.xlu1 %2792  ;;  %v2791_v5 = vpop.permute.xlu0 %2790 }
 0x46b   :  { %2807 = vst.msk [vmem:[#allocation2 + $0x90] sm:$0xff] %vm399_vm12, %v2793_v0  ;;  %2806 = vst.msk [vmem:[#allocation2 + $0x88] sm:$0xff] %vm399_vm12, %v2791_v5 }
 0x46c   :  { %3178 = vrot.lane.b32.xlu1 %v6668_v10, %s4684_s4  ;;  %3228 = vrot.lane.b32.xlu0 %v6585_v19, %s4686_s6 }
 0x46e   :  { %v2811_v6 = vpop.permute.xlu1 %2810  ;;  %v2809_v60 = vpop.permute.xlu0 %2808 }
 0x46f   :  { %2830 = vst.msk [vmem:[#allocation2 + $0x70] sm:$0xff] %vm428_vm13, %v2811_v6  ;;  %2829 = vst.msk [vmem:[#allocation2 + $0x68] sm:$0xff] %vm428_vm13, %v2809_v60 }
 0x470   :  { %3226 = vrot.lane.b32.xlu1 %v6554_v63, %s4686_s6  ;;  %3206 = vrot.lane.b32.xlu0 %v6668_v10, %s4685_s5 }
 0x472   :  { %v2815_v20 = vpop.permute.xlu1 %2814  ;;  %v2813_v21 = vpop.permute.xlu0 %2812 }
 0x473   :  { %2832 = vst.msk [vmem:[#allocation2 + $0x80] sm:$0xff] %vm428_vm13, %v2815_v20  ;;  %2831 = vst.msk [vmem:[#allocation2 + $0x78] sm:$0xff] %vm428_vm13, %v2813_v21 }
 0x474   :  { %3204 = vrot.lane.b32.xlu1 %v6642_v45, %s4685_s5  ;;  %3254 = vrot.lane.b32.xlu0 %v6554_v63, %s4687_s7 }
 0x476   :  { %v2819_v25 = vpop.permute.xlu1 %2818  ;;  %v2817_v33 = vpop.permute.xlu0 %2816  ;;  %v2954_v31 = vld [vmem:[#allocation2 + $0x68] sm:$0xff] }
 0x477   :  { %2834 = vst.msk [vmem:[#allocation2 + $0x90] sm:$0xff] %vm428_vm13, %v2819_v25  ;;  %2833 = vst.msk [vmem:[#allocation2 + $0x88] sm:$0xff] %vm428_vm13, %v2817_v33  ;;  %v4532_v38 = vpack.c.bf16 %v2954_v31, %v2953_v30  ;;  %v6970_v25 = vld [vmem:[%s7762_s1 + $0x160] sm:$0xff] }
 0x478   :  { %3252 = vrot.lane.b32.xlu1 %v6526_v52, %s4687_s7  ;;  %3232 = vrot.lane.b32.xlu0 %v6642_v45, %s4686_s6 }
 0x479   :  { %4533 = vmatpush1.bf16.msra.mxu0 %v4532_v38 }
 0x47a   :  { %v2837_v39 = vpop.permute.xlu1 %2836  ;;  %v2821_v40 = vpop.permute.xlu0 %2820  ;;  %4534 = vmatprep.subr.bf16.mxu0 %v4681_v8 }
 0x47b   :  { %2857 = vst.msk [vmem:[#allocation2 + $0x70] sm:$0xff] %vm457_vm14, %v2837_v39 }
 0x47c   :  { %2835 = vst.msk [vmem:[#allocation2 + $0x98] sm:$0xff] %vm428_vm13, %v2821_v40  ;;  %3230 = vrot.lane.b32.xlu1 %v6611_v35, %s4686_s6  ;;  %3280 = vrot.lane.b32.xlu0 %v6526_v52, %s4688_s8 }
 0x47e   :  { %v2841_v42 = vpop.permute.xlu1 %2840  ;;  %v2839_v18 = vpop.permute.xlu0 %2838 }
 0x47f   :  { %2859 = vst.msk [vmem:[#allocation2 + $0x80] sm:$0xff] %vm457_vm14, %v2841_v42  ;;  %2858 = vst.msk [vmem:[#allocation2 + $0x78] sm:$0xff] %vm457_vm14, %v2839_v18  ;;  %v6995_v18 = vld [vmem:[%s7762_s1 + $0x168] sm:$0xff] }
 0x480   :  { %3278 = vrot.lane.b32.xlu1 %v6326_v36, %s4688_s8  ;;  %3258 = vrot.lane.b32.xlu0 %v6611_v35, %s4687_s7 }
 0x482   :  { %v2845_v50 = vpop.permute.xlu1 %2844  ;;  %v2843_v26 = vpop.permute.xlu0 %2842  ;;  %v2955_v41 = vld [vmem:[#allocation2 + $0x70] sm:$0xff] }
 0x483   :  { %2861 = vst.msk [vmem:[#allocation2 + $0x90] sm:$0xff] %vm457_vm14, %v2845_v50  ;;  %2860 = vst.msk [vmem:[#allocation2 + $0x88] sm:$0xff] %vm457_vm14, %v2843_v26 }
 0x484   :  { %3256 = vrot.lane.b32.xlu1 %v6585_v19, %s4687_s7  ;;  %3306 = vrot.lane.b32.xlu0 %v6326_v36, %s4689_s9 }
 0x486   :  { %v2849_v44 = vpop.permute.xlu1 %2848  ;;  %v2847_v49 = vpop.permute.xlu0 %2846 }
 0x487   :  { %2863 = vst.msk [vmem:[#allocation2 + $0xa0] sm:$0xff] %vm457_vm14, %v2849_v44  ;;  %2862 = vst.msk [vmem:[#allocation2 + $0x98] sm:$0xff] %vm457_vm14, %v2847_v49 }
 0x488   :  { %3234 = vrot.lane.b32.xlu1 %v6668_v10, %s4686_s6  ;;  %3284 = vrot.lane.b32.xlu0 %v6585_v19, %s4688_s8 }
 0x48a   :  { %v2867_v55 = vpop.permute.xlu1 %2866  ;;  %v2865_v61 = vpop.permute.xlu0 %2864 }
 0x48b   :  { %2886 = vst.msk [vmem:[#allocation2 + $0x80] sm:$0xff] %vm7774_vm15, %v2867_v55  ;;  %2885 = vst.msk [vmem:[#allocation2 + $0x78] sm:$0xff] %vm7774_vm15, %v2865_v61 }
 0x48c   :  { %3282 = vrot.lane.b32.xlu1 %v6554_v63, %s4688_s8  ;;  %3262 = vrot.lane.b32.xlu0 %v6668_v10, %s4687_s7 }
 0x48e   :  { %v2871_v15 = vpop.permute.xlu1 %2870  ;;  %v2869_v22 = vpop.permute.xlu0 %2868 }
 0x48f   :  { %2888 = vst.msk [vmem:[#allocation2 + $0x90] sm:$0xff] %vm7774_vm15, %v2871_v15  ;;  %2887 = vst.msk [vmem:[#allocation2 + $0x88] sm:$0xff] %vm7774_vm15, %v2869_v22 }
 0x490   :  { %3260 = vrot.lane.b32.xlu1 %v6642_v45, %s4687_s7  ;;  %3310 = vrot.lane.b32.xlu0 %v6554_v63, %s4689_s9 }
 0x492   :  { %v2875_v48 = vpop.permute.xlu1 %2874  ;;  %v2873_v51 = vpop.permute.xlu0 %2872  ;;  %v2956_v27 = vld [vmem:[#allocation2 + $0x78] sm:$0xff]  ;;  %v2957_v16 = vld [vmem:[#allocation2 + $0x80] sm:$0xff] }
 0x493   :  { %2890 = vst.msk [vmem:[#allocation2 + $0xa0] sm:$0xff] %vm7774_vm15, %v2875_v48  ;;  %2889 = vst.msk [vmem:[#allocation2 + $0x98] sm:$0xff] %vm7774_vm15, %v2873_v51  ;;  %v4535_v37 = vpack.c.bf16 %v2956_v27, %v2955_v41  ;;  %v7027_v41 = vld [vmem:[%s7762_s1 + $0x170] sm:$0xff] }
 0x494   :  { %3308 = vrot.lane.b32.xlu1 %v6526_v52, %s4689_s9  ;;  %3288 = vrot.lane.b32.xlu0 %v6642_v45, %s4688_s8 }
 0x495   :  { %4536 = vmatpush1.bf16.msra.mxu0 %v4535_v37 }
 0x496   :  { %v3083_v46 = vpop.permute.xlu1 %3082  ;;  %v2877_v11 = vpop.permute.xlu0 %2876  ;;  %4537 = vmatprep.subr.bf16.mxu0 %v4681_v8  ;;  %v2958_v59 = vld [vmem:[#allocation2 + $0x88] sm:$0xff]  ;;  %v2959_v9 = vld [vmem:[#allocation2 + $0x90] sm:$0xff] }
 0x497   :  { %3103 = vst.msk [vmem:[#allocation2 + $0x8] sm:$0xff] %vm7773_vm1, %v3083_v46  ;;  %v4538_v54 = vpack.c.bf16 %v2958_v59, %v2957_v16  ;;  %v7046_v59 = vld [vmem:[%s7762_s1 + $0x178] sm:$0xff] }
 0x498   :  { %2891 = vst.msk [vmem:[#allocation2 + $0xa8] sm:$0xff] %vm7774_vm15, %v2877_v11  ;;  %3286 = vrot.lane.b32.xlu1 %v6611_v35, %s4688_s8  ;;  %3336 = vrot.lane.b32.xlu0 %v6526_v52, %s4690_s12 }
 0x499   :  { %4539 = vmatpush1.bf16.msra.mxu0 %v4538_v54 }
 0x49a   :  { %v3087_v29 = vpop.permute.xlu1 %3086  ;;  %v3085_v47 = vpop.permute.xlu0 %3084  ;;  %4540 = vmatprep.subr.bf16.mxu0 %v4681_v8  ;;  %v2960_v57 = vld [vmem:[#allocation2 + $0x98] sm:$0xff]  ;;  %v2961_v7 = vld [vmem:[#allocation2 + $0xa0] sm:$0xff] }
 0x49b   :  { %3105 = vst.msk [vmem:[#allocation2 + $0x18] sm:$0xff] %vm7773_vm1, %v3087_v29  ;;  %3104 = vst.msk [vmem:[#allocation2 + $0x10] sm:$0xff] %vm7773_vm1, %v3085_v47  ;;  %v4541_v58 = vpack.c.bf16 %v2960_v57, %v2959_v9 }
 0x49c   :  { %3334 = vrot.lane.b32.xlu1 %v6326_v36, %s4690_s12  ;;  %3314 = vrot.lane.b32.xlu0 %v6611_v35, %s4689_s9 }
 0x49d   :  { %4542 = vmatpush1.bf16.msra.mxu0 %v4541_v58 }
 0x49e   :  { %v3091_v12 = vpop.permute.xlu1 %3090  ;;  %v3089_v23 = vpop.permute.xlu0 %3088  ;;  %4543 = vmatprep.subr.bf16.mxu0 %v4681_v8  ;;  %v3552_v43 = vld [vmem:[#allocation2 + $0x8] sm:$0xff] }
 0x49f   :  { %v2962_v34 = vld [vmem:[#allocation2 + $0xa8] sm:$0xff]  ;;  %3107 = vst.msk [vmem:[#allocation2 + $0x28] sm:$0xff] %vm7773_vm1, %v3091_v12  ;;  %3106 = vst.msk [vmem:[#allocation2 + $0x20] sm:$0xff] %vm7773_vm1, %v3089_v23  ;;  %v4547_v14 = vpack.c.bf16 %v3552_v43, %v6733_v28  ;;  %v7072_v12 = vld [vmem:[%s7762_s1 + $0x180] sm:$0xff] }
 0x4a0   :  { %v4544_v13 = vpack.c.bf16 %v2962_v34, %v2961_v7  ;;  %3679 = vst.msk [vmem:[#allocation2 + $0x8] sm:$0xff] %vm44_vm0, %v6936_v4  ;;  %3312 = vrot.lane.b32.xlu1 %v6585_v19, %s4689_s9  ;;  %3362 = vrot.lane.b32.xlu0 %v6326_v36, %s4691_s15 }
 0x4a1   :  { %4548 = vmatpush1.bf16.msra.mxu1 %v4547_v14 }
 0x4a2   :  { %4545 = vmatpush1.bf16.msra.mxu0 %v4544_v13  ;;  %v3095_v3 = vpop.permute.xlu1 %3094  ;;  %v3093_v17 = vpop.permute.xlu0 %3092  ;;  %4549 = vmatprep.subr.bf16.mxu1 %v4681_v8 }
 0x4a3   :  { %4579 = vmatprep.subr.bf16.mxu0 %v4681_v8  ;;  %3109 = vst.msk [vmem:[#allocation2 + $0x38] sm:$0xff] %vm7773_vm1, %v3095_v3  ;;  %3108 = vst.msk [vmem:[#allocation2 + $0x30] sm:$0xff] %vm7773_vm1, %v3093_v17 }
 0x4a4   :  { %3290 = vrot.lane.b32.xlu1 %v6668_v10, %s4688_s8  ;;  %3340 = vrot.lane.b32.xlu0 %v6585_v19, %s4690_s12  ;;  %vm7854_vm1 = vmmov %vm7851_vm2 }
 0x4a6   :  { %v3113_v28 = vpop.permute.xlu1 %3112  ;;  %v3111_v0 = vpop.permute.xlu0 %3110 }
 0x4a7   :  { %3132 = vst.msk [vmem:[#allocation2 + $0x18] sm:$0xff] %vm7851_vm2, %v3113_v28  ;;  %vm7855_vm2 = vmmov %vm7854_vm1 }
 0x4a8   :  { %3131 = vst.msk [vmem:[#allocation2 + $0x10] sm:$0xff] %vm7852_vm4, %v3111_v0  ;;  %3338 = vrot.lane.b32.xlu1 %v6554_v63, %s4690_s12  ;;  %3318 = vrot.lane.b32.xlu0 %v6668_v10, %s4689_s9  ;;  %vm7856_vm4 = vmmov %vm7854_vm1  ;;  %v1694_v0 = vld [vmem:[%s7761_s0 + $0x20] sm:$0x3] }
 0x4aa   :  { %v3117_v5 = vpop.permute.xlu1 %3116  ;;  %v3115_v6 = vpop.permute.xlu0 %3114 }
 0x4ab   :  { %3134 = vst.msk [vmem:[#allocation2 + $0x28] sm:$0xff] %vm7853_vm3, %v3117_v5  ;;  %vm7858_vm3 = vmmov %vm7855_vm2  ;;  %v2286_v5 = vld [vmem:[%s7761_s0 + $0x20] sm:$0x7] }
 0x4ac   :  { %3133 = vst.msk [vmem:[#allocation2 + $0x20] sm:$0xff] %vm7854_vm1, %v3115_v6  ;;  %3316 = vrot.lane.b32.xlu1 %v6642_v45, %s4689_s9  ;;  %3366 = vrot.lane.b32.xlu0 %v6554_v63, %s4691_s15  ;;  %vm7857_vm1 = vcmask 261312   ;;  %v1713_v6 = vrot.slane %v1694_v0, 2 }
 0x4ae   :  { %v3121_v60 = vpop.permute.xlu1 %3120  ;;  %v3119_v20 = vpop.permute.xlu0 %3118 }
 0x4af   :  { %v3553_v21 = vld [vmem:[#allocation2 + $0x10] sm:$0xff]  ;;  %3136 = vst.msk [vmem:[#allocation2 + $0x38] sm:$0xff] %vm7855_vm2, %v3121_v60  ;;  %vm7859_vm2 = vmmov %vm7857_vm1  ;;  %v2307_v60 = vrot.slane %v2286_v5, 3 }
 0x4b0   :  { %3135 = vst.msk [vmem:[#allocation2 + $0x30] sm:$0xff] %vm7856_vm4, %v3119_v20  ;;  %3364 = vrot.lane.b32.xlu1 %v6526_v52, %s4691_s15  ;;  %3344 = vrot.lane.b32.xlu0 %v6642_v45, %s4690_s12  ;;  %vm7860_vm4 = vmmov %vm7857_vm1 }
 0x4b1   :  { %3680 = vst.msk [vmem:[#allocation2 + $0x10] sm:$0xff] %vm44_vm0, %v6970_v25 }
 0x4b2   :  { %v3139_v33 = vpop.permute.xlu1 %3138  ;;  %v3123_v30 = vpop.permute.xlu0 %3122 }
 0x4b3   :  { %3159 = vst.msk [vmem:[#allocation2 + $0x18] sm:$0xff] %vm7857_vm1, %v3139_v33 }
 0x4b4   :  { %3137 = vst.msk [vmem:[#allocation2 + $0x40] sm:$0xff] %vm7858_vm3, %v3123_v30  ;;  %3342 = vrot.lane.b32.xlu1 %v6611_v35, %s4690_s12  ;;  %3392 = vrot.lane.b32.xlu0 %v6526_v52, %s4692_s19  ;;  %vm7861_vm3 = vmmov %vm7857_vm1  ;;  %v2308_v30 = vsel %vm2300_vm6, %v2302_v24, %v2307_v60  ;;  %v7136_v24 = vld [vmem:[%s7761_s0 + $0x40] sm:$0xff] }
 0x4b6   :  { %v3143_v31 = vpop.permute.xlu1 %3142  ;;  %v3141_v38 = vpop.permute.xlu0 %3140 }
 0x4b7   :  { %3161 = vst.msk [vmem:[#allocation2 + $0x28] sm:$0xff] %vm7859_vm2, %v3143_v31  ;;  %vm7862_vm2 = vmmov %vm7857_vm1 }
 0x4b8   :  { %3160 = vst.msk [vmem:[#allocation2 + $0x20] sm:$0xff] %vm7860_vm4, %v3141_v38  ;;  %3390 = vrot.lane.b32.xlu1 %v6326_v36, %s4692_s19  ;;  %3370 = vrot.lane.b32.xlu0 %v6611_v35, %s4691_s15  ;;  %vm7863_vm4 = vmmov %vm7857_vm1 }
 0x4ba   :  { %v3147_v39 = vpop.permute.xlu1 %3146  ;;  %v3145_v40 = vpop.permute.xlu0 %3144  ;;  %v3554_v42 = vld [vmem:[#allocation2 + $0x18] sm:$0xff] }
 0x4bb   :  { %3163 = vst.msk [vmem:[#allocation2 + $0x38] sm:$0xff] %vm7857_vm1, %v3147_v39  ;;  %v4550_v50 = vpack.c.bf16 %v3554_v42, %v3553_v21  ;;  %vm7864_vm1 = vcmask 326912   ;;  %v2319_v39 = vrot.slane %v2288_v56, 1  ;;  %v1697_v42 = vld [vmem:[%s7761_s0 + $0x38] sm:$0xff] }
 0x4bc   :  { %3162 = vst.msk [vmem:[#allocation2 + $0x30] sm:$0xff] %vm7861_vm3, %v3145_v40  ;;  %3368 = vrot.lane.b32.xlu1 %v6585_v19, %s4691_s15  ;;  %3418 = vrot.lane.b32.xlu0 %v6326_v36, %s4693_s22  ;;  %vm7865_vm3 = vmmov %vm7864_vm1  ;;  %v2320_v40 = vrot.slane %v7136_v24, 1 }
 0x4bd   :  { %3681 = vst.msk [vmem:[#allocation2 + $0x18] sm:$0xff] %vm44_vm0, %v6995_v18  ;;  %4551 = vmatpush1.bf16.msra.mxu1 %v4550_v50 }
 0x4be   :  { %v3151_v26 = vpop.permute.xlu1 %3150  ;;  %v3149_v44 = vpop.permute.xlu0 %3148  ;;  %4552 = vmatprep.subr.bf16.mxu1 %v4681_v8 }
 0x4bf   :  { %3165 = vst.msk [vmem:[#allocation2 + $0x48] sm:$0xff] %vm7862_vm2, %v3151_v26  ;;  %vm7866_vm2 = vmmov %vm7864_vm1  ;;  %v1696_v26 = vld [vmem:[%s7761_s0 + $0x30] sm:$0xff] }
 0x4c0   :  { %3164 = vst.msk [vmem:[#allocation2 + $0x40] sm:$0xff] %vm7863_vm4, %v3149_v44  ;;  %3394 = vrot.lane.b32.xlu1 %v6554_v63, %s4692_s19  ;;  %3396 = vrot.lane.b32.xlu0 %v6585_v19, %s4692_s19  ;;  %vm7867_vm4 = vmmov %vm7864_vm1 }
 0x4c2   :  { %v3169_v49 = vpop.permute.xlu1 %3168  ;;  %v3167_v55 = vpop.permute.xlu0 %3166 }
 0x4c3   :  { %3188 = vst.msk [vmem:[#allocation2 + $0x28] sm:$0xff] %vm7864_vm1, %v3169_v49  ;;  %vm7868_vm1 = vcmask 392512  }
 0x4c4   :  { %3187 = vst.msk [vmem:[#allocation2 + $0x20] sm:$0xff] %vm7865_vm3, %v3167_v55  ;;  %3346 = vrot.lane.b32.xlu1 %v6668_v10, %s4690_s12  ;;  %3422 = vrot.lane.b32.xlu0 %v6554_v63, %s4693_s22  ;;  %vm7869_vm3 = vmmov %vm7866_vm2 }
 0x4c6   :  { %v3173_v61 = vpop.permute.xlu1 %3172  ;;  %v3171_v15 = vpop.permute.xlu0 %3170 }
 0x4c7   :  { %3190 = vst.msk [vmem:[#allocation2 + $0x38] sm:$0xff] %vm7866_vm2, %v3173_v61 }
 0x4c8   :  { %3189 = vst.msk [vmem:[#allocation2 + $0x30] sm:$0xff] %vm7867_vm4, %v3171_v15  ;;  %3448 = vrot.lane.b32.xlu1 %v6526_v52, %s4694_s25  ;;  %3420 = vrot.lane.b32.xlu0 %v6526_v52, %s4693_s22  ;;  %vm7870_vm4 = vmmov %vm7868_vm1  ;;  %v2292_v15 = vld [vmem:[%s7761_s0 + $0x50] sm:$0x1] }
 0x4ca   :  { %v3195_v22 = vpop.permute.xlu1 %3194  ;;  %v3175_v48 = vpop.permute.xlu0 %3174 }
 0x4cb   :  { %v3555_v51 = vld [vmem:[#allocation2 + $0x20] sm:$0xff]  ;;  %3215 = vst.msk [vmem:[#allocation2 + $0x28] sm:$0xff] %vm7868_vm1, %v3195_v22  ;;  %vm7871_vm1 = vcmask 458112   ;;  %v2325_v22 = vrot.slane %v2292_v15, 1 }
 0x4cc   :  { %3191 = vst.msk [vmem:[#allocation2 + $0x40] sm:$0xff] %vm7869_vm3, %v3175_v48  ;;  %3374 = vrot.lane.b32.xlu1 %v6668_v10, %s4691_s15  ;;  %3372 = vrot.lane.b32.xlu0 %v6642_v45, %s4691_s15  ;;  %vm7872_vm3 = vmmov %vm7870_vm4 }
 0x4cd   :  { %3682 = vst.msk [vmem:[#allocation2 + $0x20] sm:$0xff] %vm44_vm0, %v7027_v41 }
 0x4ce   :  { %v3177_v27 = vpop.permute.xlu1 %3176  ;;  %v3199_v37 = vpop.permute.xlu0 %3198 }
 0x4cf   :  { %3192 = vst.msk [vmem:[#allocation2 + $0x48] sm:$0xff] %vm7866_vm2, %v3177_v27  ;;  %vm7873_vm2 = vmmov %vm7871_vm1  ;;  %v2893_v27 = vld [vmem:[%s7761_s0 + $0x8] sm:$0xf0] }
 0x4d0   :  { %3217 = vst.msk [vmem:[#allocation2 + $0x38] sm:$0xff] %vm7870_vm4, %v3199_v37  ;;  %3474 = vrot.lane.b32.xlu1 %v6326_v36, %s4695_s28  ;;  %3446 = vrot.lane.b32.xlu0 %v6326_v36, %s4694_s25  ;;  %vm7874_vm4 = vmmov %vm7872_vm3  ;;  %v7178_v37 = vld [vmem:[%s7761_s0 + $0x18] sm:$0xff] }
 0x4d2   :  { %v3225_v16 = vpop.permute.xlu1 %3224  ;;  %v3197_v46 = vpop.permute.xlu0 %3196  ;;  %v3556_v11 = vld [vmem:[#allocation2 + $0x28] sm:$0xff] }
 0x4d3   :  { %3244 = vst.msk [vmem:[#allocation2 + $0x38] sm:$0xff] %vm7871_vm1, %v3225_v16  ;;  %v4553_v54 = vpack.c.bf16 %v3556_v11, %v3555_v51  ;;  %vm7875_vm1 = vmmov %vm7872_vm3  ;;  %v3503_v16 = vld [vmem:[%s7761_s0 + $0x8] sm:$0xe0]  ;;  %v2914_v11 = vrot.slane %v2893_v27, 4 }
 0x4d4   :  { %3216 = vst.msk [vmem:[#allocation2 + $0x30] sm:$0xff] %vm7872_vm3, %v3197_v46  ;;  %3400 = vrot.lane.b32.xlu1 %v6642_v45, %s4692_s19  ;;  %3398 = vrot.lane.b32.xlu0 %v6611_v35, %s4692_s19  ;;  %vm7876_vm3 = vcmask 326912  }
 0x4d5   :  { %3683 = vst.msk [vmem:[#allocation2 + $0x28] sm:$0xff] %vm44_vm0, %v7046_v59  ;;  %4554 = vmatpush1.bf16.msra.mxu1 %v4553_v54  ;;  %v2915_v54 = vrot.slane %v7178_v37, 4 }
 0x4d6   :  { %v3223_v36 = vpop.permute.xlu1 %3222  ;;  %v3203_v9 = vpop.permute.xlu0 %3202  ;;  %4555 = vmatprep.subr.bf16.mxu1 %v4681_v8 }
 0x4d7   :  { %3243 = vst.msk [vmem:[#allocation2 + $0x30] sm:$0xff] %vm7873_vm2, %v3223_v36  ;;  %v3524_v36 = vrot.slane %v3503_v16, 5 }
 0x4d8   :  { %3219 = vst.msk [vmem:[#allocation2 + $0x48] sm:$0xff] %vm7874_vm4, %v3203_v9  ;;  %3426 = vrot.lane.b32.xlu1 %v6611_v35, %s4693_s22  ;;  %3424 = vrot.lane.b32.xlu0 %v6585_v19, %s4693_s22  ;;  %vm7877_vm4 = vmmov %vm7873_vm2  ;;  %v3525_v9 = vrot.slane %v7178_v37, 5 }
 0x4da   :  { %v3201_v29 = vpop.permute.xlu1 %3200  ;;  %v3251_v47 = vpop.permute.xlu0 %3250 }
 0x4db   :  { %3218 = vst.msk [vmem:[#allocation2 + $0x40] sm:$0xff] %vm7875_vm1, %v3201_v29  ;;  %v2892_v29 = vld [vmem:[%s7761_s0] sm:$0xf0] }
 0x4dc   :  { %3271 = vst.msk [vmem:[#allocation2 + $0x38] sm:$0xff] %vm254_vm7, %v3251_v47  ;;  %3452 = vrot.lane.b32.xlu1 %v6585_v19, %s4694_s25  ;;  %3450 = vrot.lane.b32.xlu0 %v6554_v63, %s4694_s25  ;;  %v7194_v47 = vld [vmem:[%s7761_s0 + $0x10] sm:$0xff] }
 0x4de   :  { %v3179_v57 = vpop.permute.xlu1 %3178  ;;  %v3229_v58 = vpop.permute.xlu0 %3228  ;;  %v3557_v7 = vld [vmem:[#allocation2 + $0x30] sm:$0xff] }
 0x4df   :  { %3193 = vst.msk [vmem:[#allocation2 + $0x50] sm:$0xff] %vm7876_vm3, %v3179_v57  ;;  %vm7879_vm3 = vcmask 1045504   ;;  %v2911_v57 = vrot.slane %v2892_v29, 4 }
 0x4e0   :  { %3246 = vst.msk [vmem:[#allocation2 + $0x48] sm:$0xff] %vm7873_vm2, %v3229_v58  ;;  %3478 = vrot.lane.b32.xlu1 %v6554_v63, %s4695_s28  ;;  %3476 = vrot.lane.b32.xlu0 %v6526_v52, %s4695_s28  ;;  %v1695_v63 = vld [vmem:[%s7761_s0 + $0x28] sm:$0x3]  ;;  %vm7880_vm2 = vmmov %vm7879_vm3 }
 0x4e1   :  { %3684 = vst.msk [vmem:[#allocation2 + $0x30] sm:$0xff] %vm44_vm0, %v7072_v12  ;;  %v2287_v52 = vld [vmem:[%s7761_s0 + $0x28] sm:$0x7]  ;;  %v1715_v17 = vrot.slane %v1695_v63, 2  ;;  %vm7878_vm0 = vmmov %vm7875_vm1  ;;  %v1714_v33 = vsel %vm7880_vm2, %v1708_v62, %v1713_v6  ;;  %v2323_v62 = vrot.slane %v7127_v53, 1 }
 0x4e2   :  { %v3227_v23 = vpop.permute.xlu1 %3226  ;;  %v3207_v34 = vpop.permute.xlu0 %3206  ;;  %v2309_v28 = vrot.slane %v2287_v52, 3 }
 0x4e3   :  { %v3558_v43 = vld [vmem:[#allocation2 + $0x38] sm:$0xff]  ;;  %3245 = vst.msk [vmem:[#allocation2 + $0x40] sm:$0xff] %vm7877_vm4, %v3227_v23  ;;  %v1716_v20 = vsel %vm7879_vm3, %v1711_v2, %v1715_v17  ;;  %vm7883_vm3 = vmmov %vm7877_vm4  ;;  %v2912_v23 = vrot.slane %v7194_v47, 4 }
 0x4e4   :  { %3221 = vst.msk [vmem:[#allocation2 + $0x58] sm:$0xff] %vm7875_vm1, %v3207_v34  ;;  %v4556_v13 = vpack.c.bf16 %v3558_v43, %v3557_v7  ;;  %3428 = vrot.lane.b32.xlu1 %v6642_v45, %s4693_s22  ;;  %3402 = vrot.lane.b32.xlu0 %v6668_v10, %s4692_s19  ;;  %v2310_v21 = vsel %vm2300_vm6, %v2305_v1, %v2309_v28  ;;  %v2289_v2 = vld [vmem:[%s7761_s0 + $0x38] sm:$0xfe]  ;;  %vm7881_vm1 = vcmask 1046528  }
 0x4e5   :  { %4333 = vmatprep.mubr.msk.f32.mxu0 %vm1059_vm5, %v1716_v20  ;;  %4344 = vmatprep.mubr.msk.f32.mxu1 %vm1059_vm5, %v2310_v21  ;;  %v2322_v38 = vrot.slane %v2289_v2, 1 }
 0x4e6   :  { %4557 = vmatpush1.bf16.msra.mxu1 %v4556_v13  ;;  %v3205_v14 = vpop.permute.xlu1 %3204  ;;  %v3255_v3 = vpop.permute.xlu0 %3254  ;;  %1821 = vmatmul.mubr.f32.gmra.mrb[10].mxu0 %v1714_v33 }
 0x4e7   :  { %4558 = vmatprep.subr.bf16.mxu1 %v4681_v8  ;;  %3220 = vst.msk [vmem:[#allocation2 + $0x50] sm:$0xff] %vm7878_vm0, %v3205_v14  ;;  %2431 = vmatmul.mubr.f32.gmra.mrb[10].mxu1 %v2308_v30  ;;  %v2324_v50 = vsel %vm7881_vm1, %v2322_v38, %v2323_v62  ;;  %vm7882_vm0 = vmmov %vm7881_vm1  ;;  %vm2910_vm1 = vcmask 1043456  }
 0x4e8   :  { %3273 = vst.msk [vmem:[#allocation2 + $0x48] sm:$0xff] %vm254_vm7, %v3255_v3  ;;  %3454 = vrot.lane.b32.xlu1 %v6611_v35, %s4694_s25  ;;  %3430 = vrot.lane.b32.xlu0 %v6668_v10, %s4693_s22  ;;  %v2321_v44 = vsel %vm7882_vm0, %v2319_v39, %v2320_v40  ;;  %vm7884_vm2 = vmmov %vm7882_vm0  ;;  %v2916_v58 = vsel %vm2910_vm1, %v2914_v11, %v2915_v54 }
 0x4e9   :  { %4334 = vmatprep.mubr.msk.f32.mxu0 %vm1059_vm5, %v1697_v42  ;;  %4345 = vmatprep.mubr.msk.f32.mxu1 %vm1059_vm5, %v2324_v50 }
 0x4ea   :  { %v3253_v1 = vpop.permute.xlu1 %3252  ;;  %v3233_v31 = vpop.permute.xlu0 %3232  ;;  %1826 = vmatmul.mubr.f32.gmra.mrb[12].mxu0 %v1696_v26 }
 0x4eb   :  { %3272 = vst.msk [vmem:[#allocation2 + $0x40] sm:$0xff] %vm254_vm7, %v3253_v1  ;;  %2436 = vmatmul.mubr.f32.gmra.mrb[12].mxu1 %v2321_v44  ;;  %4335 = vmatprep.mubr.msk.f32.mxu0 %vm1059_vm5, %v7127_v53 }
 0x4ec   :  { %3248 = vst.msk [vmem:[#allocation2 + $0x58] sm:$0xff] %vm7877_vm4, %v3233_v31  ;;  %3480 = vrot.lane.b32.xlu1 %v6585_v19, %s4695_s28  ;;  %3456 = vrot.lane.b32.xlu0 %v6642_v45, %s4694_s25  ;;  %v2293_v19 = vld [vmem:[%s7761_s0 + $0x58] sm:$0x1]  ;;  %vm7885_vm4 = vmmov %vm7882_vm0  ;;  %vm3520_vm0 = vcmask 1042432  }
 0x4ed   :  { %v2327_v61 = vrot.slane %v2293_v19, 1  ;;  %v2326_v51 = vsel %vm7885_vm4, %v2320_v40, %v2325_v22  ;;  %v3526_v7 = vsel %vm3520_vm0, %v3524_v36, %v3525_v9 }
 0x4ee   :  { %v3231_v49 = vpop.permute.xlu1 %3230  ;;  %v3281_v55 = vpop.permute.xlu0 %3280  ;;  %1831 = vmatmul.mubr.f32.gmra.mrb[14].mxu0 %v7136_v24 }
 0x4ef   :  { %3247 = vst.msk [vmem:[#allocation2 + $0x50] sm:$0xff] %vm7883_vm3, %v3231_v49  ;;  %v2328_v48 = vsel %vm7884_vm2, %v2323_v62, %v2327_v61  ;;  %4354 = vmatprep.mubr.msk.f32.mxu0 %vm1059_vm5, %v2916_v58  ;;  %vm7886_vm2 = vcmask 130112  }
 0x4f0   :  { %3300 = vst.msk [vmem:[#allocation2 + $0x48] sm:$0xff] %vm283_vm8, %v3281_v55  ;;  %3458 = vrot.lane.b32.xlu1 %v6668_v10, %s4694_s25  ;;  %3482 = vrot.lane.b32.xlu0 %v6611_v35, %s4695_s28  ;;  %vm7887_vm4 = vmmov %vm7886_vm2 }
 0x4f1   :  { %4346 = vmatprep.mubr.msk.f32.mxu1 %vm1059_vm5, %v2328_v48 }
 0x4f2   :  { %v3279_v35 = vpop.permute.xlu1 %3278  ;;  %v3259_v46 = vpop.permute.xlu0 %3258  ;;  %2441 = vmatmul.mubr.f32.gmra.mrb[14].mxu1 %v2326_v51 }
 0x4f3   :  { %3299 = vst.msk [vmem:[#allocation2 + $0x40] sm:$0xff] %vm283_vm8, %v3279_v35  ;;  %4365 = vmatprep.mubr.msk.f32.mxu1 %vm1059_vm5, %v3526_v7 }
 0x4f4   :  { %3275 = vst.msk [vmem:[#allocation2 + $0x58] sm:$0xff] %vm254_vm7, %v3259_v46  ;;  %3486 = vrot.lane.b32.xlu1 %v6668_v10, %s4695_s28  ;;  %3484 = vrot.lane.b32.xlu0 %v6642_v45, %s4695_s28  ;;  %v2913_v45 = vsel %vm2910_vm1, %v2911_v57, %v2912_v23 }
 0x4f5   :  { %3036 = vmatmul.mubr.f32.vlgmr.msra.gmra.mrb[16].mxu0 %v2913_v45 }
 0x4f6   :  { %v3257_v34 = vpop.permute.xlu1 %3256  ;;  %v3307_v43 = vpop.permute.xlu0 %3306 }
 0x4f7   :  { %3274 = vst.msk [vmem:[#allocation2 + $0x50] sm:$0xff] %vm254_vm7, %v3257_v34 }
 0x4f8   :  { %3327 = vst.msk [vmem:[#allocation2 + $0x48] sm:$0xff] %vm312_vm9, %v3307_v43  ;;  %3696 = vrot.lane.b32.xlu1 %v6970_v25, %s4679_s16  ;;  %3692 = vrot.lane.b32.xlu0 %v6738_v32, %s4679_s16 }
 0x4fa   :  { %v3235_v10 = vpop.permute.xlu1 %3234  ;;  %v3285_v13 = vpop.permute.xlu0 %3284  ;;  %v3559_v63 = vld [vmem:[#allocation2 + $0x40] sm:$0xff] }
 0x4fb   :  { %3249 = vst.msk [vmem:[#allocation2 + $0x60] sm:$0xff] %vm7883_vm3, %v3235_v10  ;;  %vm7888_vm3 = vcmask 1045504  }
 0x4fc   :  { %3302 = vst.msk [vmem:[#allocation2 + $0x58] sm:$0xff] %vm283_vm8, %v3285_v13  ;;  %3722 = vrot.lane.b32.xlu1 %v6936_v4, %s4682_s29  ;;  %3694 = vrot.lane.b32.xlu0 %v6936_v4, %s4679_s16 }
 0x4fe   :  { %v3283_v52 = vpop.permute.xlu1 %3282  ;;  %v3263_v14 = vpop.permute.xlu0 %3262 }
 0x4ff   :  { %v3560_v3 = vld [vmem:[#allocation2 + $0x48] sm:$0xff]  ;;  %3301 = vst.msk [vmem:[#allocation2 + $0x50] sm:$0xff] %vm283_vm8, %v3283_v52 }
 0x500   :  { %3277 = vst.msk [vmem:[#allocation2 + $0x68] sm:$0xff] %vm254_vm7, %v3263_v14  ;;  %v4559_v17 = vpack.c.bf16 %v3560_v3, %v3559_v63  ;;  %3720 = vrot.lane.b32.xlu1 %v6738_v32, %s4682_s29  ;;  %3700 = vrot.lane.b32.xlu0 %v7027_v41, %s4679_s16 }
 0x502   :  { %4560 = vmatpush1.bf16.msra.mxu1 %v4559_v17  ;;  %v3261_v28 = vpop.permute.xlu1 %3260  ;;  %v3311_v0 = vpop.permute.xlu0 %3310 }
 0x503   :  { %4561 = vmatprep.subr.bf16.mxu1 %v4681_v8  ;;  %3276 = vst.msk [vmem:[#allocation2 + $0x60] sm:$0xff] %vm254_vm7, %v3261_v28 }
 0x504   :  { %3329 = vst.msk [vmem:[#allocation2 + $0x58] sm:$0xff] %vm312_vm9, %v3311_v0  ;;  %3698 = vrot.lane.b32.xlu1 %v6995_v18, %s4679_s16  ;;  %3748 = vrot.lane.b32.xlu0 %v6738_v32, %s4683_s30 }
 0x506   :  { %v3309_v5 = vpop.permute.xlu1 %3308  ;;  %v3289_v6 = vpop.permute.xlu0 %3288 }
 0x507   :  { %3328 = vst.msk [vmem:[#allocation2 + $0x50] sm:$0xff] %vm312_vm9, %v3309_v5 }
 0x508   :  { %3304 = vst.msk [vmem:[#allocation2 + $0x68] sm:$0xff] %vm283_vm8, %v3289_v6  ;;  %3704 = vrot.lane.b32.xlu1 %v7072_v12, %s4679_s16  ;;  %3726 = vrot.lane.b32.xlu0 %v6995_v18, %s4682_s29 }
 0x50a   :  { %v3287_v60 = vpop.permute.xlu1 %3286  ;;  %v3337_v20 = vpop.permute.xlu0 %3336 }
 0x50b   :  { %3303 = vst.msk [vmem:[#allocation2 + $0x60] sm:$0xff] %vm283_vm8, %v3287_v60 }
 0x50c   :  { %3356 = vst.msk [vmem:[#allocation2 + $0x58] sm:$0xff] %vm341_vm10, %v3337_v20  ;;  %3752 = vrot.lane.b32.xlu1 %v6970_v25, %s4683_s30  ;;  %3724 = vrot.lane.b32.xlu0 %v6970_v25, %s4682_s29 }
 0x50e   :  { %v3335_v21 = vpop.permute.xlu1 %3334  ;;  %v3315_v33 = vpop.permute.xlu0 %3314 }
 0x50f   :  { %3355 = vst.msk [vmem:[#allocation2 + $0x50] sm:$0xff] %vm341_vm10, %v3335_v21 }
 0x510   :  { %3331 = vst.msk [vmem:[#allocation2 + $0x68] sm:$0xff] %vm312_vm9, %v3315_v33  ;;  %3730 = vrot.lane.b32.xlu1 %v7046_v59, %s4682_s29  ;;  %3702 = vrot.lane.b32.xlu0 %v7046_v59, %s4679_s16 }
 0x512   :  { %v3313_v30 = vpop.permute.xlu1 %3312  ;;  %v3363_v2 = vpop.permute.xlu0 %3362 }
 0x513   :  { %3330 = vst.msk [vmem:[#allocation2 + $0x60] sm:$0xff] %vm312_vm9, %v3313_v30 }
 0x514   :  { %3383 = vst.msk [vmem:[#allocation2 + $0x58] sm:$0xff] %vm370_vm11, %v3363_v2  ;;  %3778 = vrot.lane.b32.xlu1 %v6936_v4, %s4684_s4  ;;  %3750 = vrot.lane.b32.xlu0 %v6936_v4, %s4683_s30 }
 0x516   :  { %v3291_v1 = vpop.permute.xlu1 %3290  ;;  %v3341_v31 = vpop.permute.xlu0 %3340  ;;  %v3561_v38 = vld [vmem:[#allocation2 + $0x50] sm:$0xff] }
 0x517   :  { %3305 = vst.msk [vmem:[#allocation2 + $0x70] sm:$0xff] %vm283_vm8, %v3291_v1 }
 0x518   :  { %3358 = vst.msk [vmem:[#allocation2 + $0x68] sm:$0xff] %vm341_vm10, %v3341_v31  ;;  %3756 = vrot.lane.b32.xlu1 %v7027_v41, %s4683_s30  ;;  %3728 = vrot.lane.b32.xlu0 %v7027_v41, %s4682_s29 }
 0x51a   :  { %v3339_v62 = vpop.permute.xlu1 %3338  ;;  %v3319_v56 = vpop.permute.xlu0 %3318 }
 0x51b   :  { %v3562_v39 = vld [vmem:[#allocation2 + $0x58] sm:$0xff]  ;;  %3357 = vst.msk [vmem:[#allocation2 + $0x60] sm:$0xff] %vm341_vm10, %v3339_v62 }
 0x51c   :  { %3333 = vst.msk [vmem:[#allocation2 + $0x78] sm:$0xff] %vm312_vm9, %v3319_v56  ;;  %v4562_v40 = vpack.c.bf16 %v3562_v39, %v3561_v38  ;;  %3804 = vrot.lane.b32.xlu1 %v6738_v32, %s4685_s5  ;;  %3776 = vrot.lane.b32.xlu0 %v6738_v32, %s4684_s4  ;;  %v2897_v39 = vld [vmem:[%s7761_s0 + $0x28] sm:$0xf] }
 0x51e   :  { %4563 = vmatpush1.bf16.msra.mxu1 %v4562_v40  ;;  %v3317_v42 = vpop.permute.xlu1 %3316  ;;  %v3367_v50 = vpop.permute.xlu0 %3366 }
 0x51f   :  { %4564 = vmatprep.subr.bf16.mxu1 %v4681_v8  ;;  %3332 = vst.msk [vmem:[#allocation2 + $0x70] sm:$0xff] %vm312_vm9, %v3317_v42  ;;  %v2919_v42 = vrot.slane %v2897_v39, 4  ;;  %v3540_v39 = vrot.slane %v7136_v24, 3 }
 0x520   :  { %3385 = vst.msk [vmem:[#allocation2 + $0x68] sm:$0xff] %vm370_vm11, %v3367_v50  ;;  %3782 = vrot.lane.b32.xlu1 %v6995_v18, %s4684_s4  ;;  %3754 = vrot.lane.b32.xlu0 %v6995_v18, %s4683_s30  ;;  %v2896_v50 = vld [vmem:[%s7761_s0 + $0x20] sm:$0xf] }
 0x522   :  { %v3365_v26 = vpop.permute.xlu1 %3364  ;;  %v3345_v44 = vpop.permute.xlu0 %3344 }
 0x523   :  { %3384 = vst.msk [vmem:[#allocation2 + $0x60] sm:$0xff] %vm370_vm11, %v3365_v26  ;;  %v2917_v26 = vrot.slane %v2896_v50, 4 }
 0x524   :  { %3360 = vst.msk [vmem:[#allocation2 + $0x78] sm:$0xff] %vm341_vm10, %v3345_v44  ;;  %3760 = vrot.lane.b32.xlu1 %v7072_v12, %s4683_s30  ;;  %3732 = vrot.lane.b32.xlu0 %v7072_v12, %s4682_s29 }
 0x526   :  { %v3343_v19 = vpop.permute.xlu1 %3342  ;;  %v3393_v49 = vpop.permute.xlu0 %3392 }
 0x527   :  { %3359 = vst.msk [vmem:[#allocation2 + $0x70] sm:$0xff] %vm341_vm10, %v3343_v19 }
 0x528   :  { %3412 = vst.msk [vmem:[#allocation2 + $0x68] sm:$0xff] %vm399_vm12, %v3393_v49  ;;  %3808 = vrot.lane.b32.xlu1 %v6970_v25, %s4685_s5  ;;  %3780 = vrot.lane.b32.xlu0 %v6970_v25, %s4684_s4 }
 0x52a   :  { %v3391_v55 = vpop.permute.xlu1 %3390  ;;  %v3371_v61 = vpop.permute.xlu0 %3370 }
 0x52b   :  { %3411 = vst.msk [vmem:[#allocation2 + $0x60] sm:$0xff] %vm399_vm12, %v3391_v55  ;;  %v2920_v55 = vsel %vm2910_vm1, %v2915_v54, %v2919_v42 }
 0x52c   :  { %3387 = vst.msk [vmem:[#allocation2 + $0x78] sm:$0xff] %vm370_vm11, %v3371_v61  ;;  %3786 = vrot.lane.b32.xlu1 %v7046_v59, %s4684_s4  ;;  %3758 = vrot.lane.b32.xlu0 %v7046_v59, %s4683_s30  ;;  %s4696_s30 = smov [#allocation3]  }
 0x52d   :  { %4355 = vmatprep.mubr.msk.f32.mxu0 %vm1059_vm5, %v2920_v55 }
 0x52e   :  { %v3369_v15 = vpop.permute.xlu1 %3368  ;;  %v3419_v22 = vpop.permute.xlu0 %3418 }
 0x52f   :  { %3386 = vst.msk [vmem:[#allocation2 + $0x70] sm:$0xff] %vm370_vm11, %v3369_v15  ;;  %v3502_v15 = vld [vmem:[%s7761_s0] sm:$0xe0] }
 0x530   :  { %3439 = vst.msk [vmem:[#allocation2 + $0x68] sm:$0xff] %vm428_vm13, %v3419_v22  ;;  %3834 = vrot.lane.b32.xlu1 %v6936_v4, %s4686_s6  ;;  %3806 = vrot.lane.b32.xlu0 %v6936_v4, %s4685_s5  ;;  %v2918_v22 = vsel %vm2910_vm1, %v2912_v23, %v2917_v26  ;;  %v3507_v23 = vld [vmem:[%s7761_s0 + $0x28] sm:$0x1f] }
 0x531   :  { %3041 = vmatmul.mubr.f32.gmra.mrb[18].mxu0 %v2918_v22 }
 0x532   :  { %v3395_v48 = vpop.permute.xlu1 %3394  ;;  %v3397_v51 = vpop.permute.xlu0 %3396  ;;  %v3563_v27 = vld [vmem:[#allocation2 + $0x60] sm:$0xff] }
 0x533   :  { %3413 = vst.msk [vmem:[#allocation2 + $0x70] sm:$0xff] %vm399_vm12, %v3395_v48  ;;  %3414 = vst.msk [vmem:[#allocation2 + $0x78] sm:$0xff] %vm399_vm12, %v3397_v51  ;;  %v2899_v48 = vld [vmem:[%s7761_s0 + $0x38] sm:$0xfc]  ;;  %v2933_v51 = vrot.slane %v7127_v53, 2 }
 0x534   :  { %3812 = vrot.lane.b32.xlu1 %v7027_v41, %s4685_s5  ;;  %3784 = vrot.lane.b32.xlu0 %v7027_v41, %s4684_s4  ;;  %v2932_v54 = vrot.slane %v2899_v48, 2 }
 0x536   :  { %v3347_v16 = vpop.permute.xlu1 %3346  ;;  %v3423_v35 = vpop.permute.xlu0 %3422 }
 0x537   :  { %v3564_v46 = vld [vmem:[#allocation2 + $0x68] sm:$0xff]  ;;  %3361 = vst.msk [vmem:[#allocation2 + $0x80] sm:$0xff] %vm341_vm10, %v3347_v16 }
 0x538   :  { %3441 = vst.msk [vmem:[#allocation2 + $0x78] sm:$0xff] %vm428_vm13, %v3423_v35  ;;  %v4565_v11 = vpack.c.bf16 %v3564_v46, %v3563_v27  ;;  %3860 = vrot.lane.b32.xlu1 %v6738_v32, %s4687_s7  ;;  %3832 = vrot.lane.b32.xlu0 %v6738_v32, %s4686_s6  ;;  %v2898_v27 = vld [vmem:[%s7761_s0 + $0x30] sm:$0xfc]  ;;  %v2930_v35 = vrot.slane %v7136_v24, 2 }
 0x539   :  { %v2929_v16 = vrot.slane %v2898_v27, 2  ;;  %v3512_v24 = vld [vmem:[%s7761_s0 + $0x50] sm:$0x7] }
 0x53a   :  { %4566 = vmatpush1.bf16.msra.mxu1 %v4565_v11  ;;  %v3449_v36 = vpop.permute.xlu1 %3448  ;;  %v3421_v29 = vpop.permute.xlu0 %3420  ;;  %v3545_v55 = vrot.slane %v3512_v24, 3 }
 0x53b   :  { %4567 = vmatprep.subr.bf16.mxu1 %v4681_v8  ;;  %3468 = vst.msk [vmem:[#allocation2 + $0x78] sm:$0xff] %vm457_vm14, %v3449_v36 }
 0x53c   :  { %3440 = vst.msk [vmem:[#allocation2 + $0x70] sm:$0xff] %vm428_vm13, %v3421_v29  ;;  %3838 = vrot.lane.b32.xlu1 %v6995_v18, %s4686_s6  ;;  %3810 = vrot.lane.b32.xlu0 %v6995_v18, %s4685_s5 }
 0x53e   :  { %v3375_v57 = vpop.permute.xlu1 %3374  ;;  %v3373_v58 = vpop.permute.xlu0 %3372 }
 0x53f   :  { %3389 = vst.msk [vmem:[#allocation2 + $0x88] sm:$0xff] %vm370_vm11, %v3375_v57  ;;  %3388 = vst.msk [vmem:[#allocation2 + $0x80] sm:$0xff] %vm370_vm11, %v3373_v58  ;;  %v3521_v57 = vrot.slane %v3502_v15, 5  ;;  %v3522_v58 = vrot.slane %v7194_v47, 5  ;;  %v2903_v47 = vld [vmem:[%s7761_s0 + $0x58] sm:$0x3] }
 0x540   :  { %3816 = vrot.lane.b32.xlu1 %v7072_v12, %s4685_s5  ;;  %3788 = vrot.lane.b32.xlu0 %v7072_v12, %s4684_s4  ;;  %s4299_s4 = sshll.u32 %s4696_s30, 4  ;;  %s4300_s4 = int_to_ptr.vmem [resolvable:$true] %s4299_s4 }
 0x541   :  { %p4660_p1 = scmp.lt.s32.totalorder %s4300_s4, %s4300_s4 }
 0x542   :  { %v3475_v7 = vpop.permute.xlu1 %3474  ;;  %v3447_v34 = vpop.permute.xlu0 %3446 }
 0x543   :  { %3495 = vst.msk [vmem:[#allocation2 + $0x78] sm:$0xff] %vm7774_vm15, %v3475_v7  ;;  %v2934_v7 = vsel %vm7888_vm3, %v2932_v54, %v2933_v51  ;;  %v3546_v54 = vsel %vm2300_vm6, %v3540_v39, %v3545_v55 }
 0x544   :  { %3467 = vst.msk [vmem:[#allocation2 + $0x70] sm:$0xff] %vm457_vm14, %v3447_v34  ;;  %3864 = vrot.lane.b32.xlu1 %v6970_v25, %s4687_s7  ;;  %3836 = vrot.lane.b32.xlu0 %v6970_v25, %s4686_s6 }
 0x545   :  { %4356 = vmatprep.mubr.msk.f32.mxu0 %vm1059_vm5, %v2934_v7 }
 0x546   :  { %v3401_v43 = vpop.permute.xlu1 %3400  ;;  %v3399_v45 = vpop.permute.xlu0 %3398 }
 0x547   :  { %3416 = vst.msk [vmem:[#allocation2 + $0x88] sm:$0xff] %vm399_vm12, %v3401_v43  ;;  %3415 = vst.msk [vmem:[#allocation2 + $0x80] sm:$0xff] %vm399_vm12, %v3399_v45  ;;  %v4160_v43 = vld [vmem:[#allocation2] sm:$0xff] }
 0x548   :  { %3842 = vrot.lane.b32.xlu1 %v7046_v59, %s4686_s6  ;;  %3814 = vrot.lane.b32.xlu0 %v7046_v59, %s4685_s5  ;;  %v3506_v45 = vld [vmem:[%s7761_s0 + $0x20] sm:$0x1f] }
 0x54a   :  { %v3427_v10 = vpop.permute.xlu1 %3426  ;;  %v3425_v13 = vpop.permute.xlu0 %3424  ;;  %v3566_v52 = vld [vmem:[#allocation2 + $0x78] sm:$0xff] }
 0x54b   :  { %v3565_v63 = vld [vmem:[#allocation2 + $0x70] sm:$0xff]  ;;  %3443 = vst.msk [vmem:[#allocation2 + $0x88] sm:$0xff] %vm428_vm13, %v3427_v10  ;;  %3442 = vst.msk [vmem:[#allocation2 + $0x80] sm:$0xff] %vm428_vm13, %v3425_v13  ;;  %v3529_v13 = vrot.slane %v3507_v23, 5 }
 0x54c   :  { %v4568_v14 = vpack.c.bf16 %v3566_v52, %v3565_v63  ;;  %3890 = vrot.lane.b32.xlu1 %v6936_v4, %s4688_s8  ;;  %3862 = vrot.lane.b32.xlu0 %v6936_v4, %s4687_s7  ;;  %v3509_v63 = vld [vmem:[%s7761_s0 + $0x38] sm:$0xf8]  ;;  %v2937_v52 = vrot.slane %v2903_v47, 2 }
 0x54e   :  { %4569 = vmatpush1.bf16.msra.mxu1 %v4568_v14  ;;  %v3453_v3 = vpop.permute.xlu1 %3452  ;;  %v3451_v17 = vpop.permute.xlu0 %3450  ;;  %v2902_v14 = vld [vmem:[%s7761_s0 + $0x50] sm:$0x3] }
 0x54f   :  { %4570 = vmatprep.subr.bf16.mxu1 %v4681_v8  ;;  %3470 = vst.msk [vmem:[#allocation2 + $0x88] sm:$0xff] %vm457_vm14, %v3453_v3  ;;  %3469 = vst.msk [vmem:[#allocation2 + $0x80] sm:$0xff] %vm457_vm14, %v3451_v17 }
 0x550   :  { %3868 = vrot.lane.b32.xlu1 %v7027_v41, %s4687_s7  ;;  %3840 = vrot.lane.b32.xlu0 %v7027_v41, %s4686_s6 }
 0x552   :  { %v3479_v28 = vpop.permute.xlu1 %3478  ;;  %v3477_v0 = vpop.permute.xlu0 %3476 }
 0x553   :  { %3497 = vst.msk [vmem:[#allocation2 + $0x88] sm:$0xff] %vm7774_vm15, %v3479_v28  ;;  %3496 = vst.msk [vmem:[#allocation2 + $0x80] sm:$0xff] %vm7774_vm15, %v3477_v0  ;;  %v3523_v28 = vsel %vm3520_vm0, %v3521_v57, %v3522_v58 }
 0x554   :  { %3916 = vrot.lane.b32.xlu1 %v6738_v32, %s4689_s9  ;;  %3888 = vrot.lane.b32.xlu0 %v6738_v32, %s4688_s8 }
 0x556   :  { %v3429_v5 = vpop.permute.xlu1 %3428  ;;  %v3403_v6 = vpop.permute.xlu0 %3402 }
 0x557   :  { %3417 = vst.msk [vmem:[#allocation2 + $0x90] sm:$0xff] %vm399_vm12, %v3403_v6 }
 0x558   :  { %3444 = vst.msk [vmem:[#allocation2 + $0x90] sm:$0xff] %vm428_vm13, %v3429_v5  ;;  %3894 = vrot.lane.b32.xlu1 %v6995_v18, %s4688_s8  ;;  %3866 = vrot.lane.b32.xlu0 %v6995_v18, %s4687_s7  ;;  %v3527_v5 = vrot.slane %v3506_v45, 5 }
 0x55a   :  { %v3455_v60 = vpop.permute.xlu1 %3454  ;;  %v3431_v20 = vpop.permute.xlu0 %3430  ;;  %v3567_v21 = vld [vmem:[#allocation2 + $0x80] sm:$0xff]  ;;  %v3568_v33 = vld [vmem:[#allocation2 + $0x88] sm:$0xff] }
 0x55b   :  { %3471 = vst.msk [vmem:[#allocation2 + $0x90] sm:$0xff] %vm457_vm14, %v3455_v60  ;;  %v4571_v30 = vpack.c.bf16 %v3568_v33, %v3567_v21  ;;  %v2935_v60 = vrot.slane %v2902_v14, 2  ;;  %v3542_v21 = vrot.slane %v3509_v63, 3  ;;  %v3543_v33 = vrot.slane %v7127_v53, 3 }
 0x55c   :  { %3445 = vst.msk [vmem:[#allocation2 + $0x98] sm:$0xff] %vm428_vm13, %v3431_v20  ;;  %3872 = vrot.lane.b32.xlu1 %v7072_v12, %s4687_s7  ;;  %3844 = vrot.lane.b32.xlu0 %v7072_v12, %s4686_s6 }
 0x55d   :  { %4572 = vmatpush1.bf16.msra.mxu1 %v4571_v30  ;;  %v3508_v30 = vld [vmem:[%s7761_s0 + $0x30] sm:$0xf8] }
 0x55e   :  { %v3481_v2 = vpop.permute.xlu1 %3480  ;;  %v3457_v1 = vpop.permute.xlu0 %3456  ;;  %4573 = vmatprep.subr.bf16.mxu1 %v4681_v8 }
 0x55f   :  { %3498 = vst.msk [vmem:[#allocation2 + $0x90] sm:$0xff] %vm7774_vm15, %v3481_v2  ;;  %v3530_v2 = vsel %vm3520_vm0, %v3525_v9, %v3529_v13  ;;  %v3544_v9 = vsel %vm2300_vm6, %v3542_v21, %v3543_v33 }
 0x560   :  { %3472 = vst.msk [vmem:[#allocation2 + $0x98] sm:$0xff] %vm457_vm14, %v3457_v1  ;;  %3920 = vrot.lane.b32.xlu1 %v6970_v25, %s4689_s9  ;;  %3892 = vrot.lane.b32.xlu0 %v6970_v25, %s4688_s8  ;;  %v3513_v1 = vld [vmem:[%s7761_s0 + $0x58] sm:$0x7] }
 0x561   :  { %v3547_v42 = vrot.slane %v3513_v1, 3 }
 0x562   :  { %v3459_v31 = vpop.permute.xlu1 %3458  ;;  %v3483_v38 = vpop.permute.xlu0 %3482 }
 0x563   :  { %3473 = vst.msk [vmem:[#allocation2 + $0xa0] sm:$0xff] %vm457_vm14, %v3459_v31 }
 0x564   :  { %3499 = vst.msk [vmem:[#allocation2 + $0x98] sm:$0xff] %vm7774_vm15, %v3483_v38  ;;  %3898 = vrot.lane.b32.xlu1 %v7046_v59, %s4688_s8  ;;  %3870 = vrot.lane.b32.xlu0 %v7046_v59, %s4687_s7 }
 0x566   :  { %v3487_v62 = vpop.permute.xlu1 %3486  ;;  %v3485_v56 = vpop.permute.xlu0 %3484  ;;  %v3569_v40 = vld [vmem:[#allocation2 + $0x90] sm:$0xff] }
 0x567   :  { %3501 = vst.msk [vmem:[#allocation2 + $0xa8] sm:$0xff] %vm7774_vm15, %v3487_v62  ;;  %3500 = vst.msk [vmem:[#allocation2 + $0xa0] sm:$0xff] %vm7774_vm15, %v3485_v56  ;;  %v3528_v62 = vsel %vm3520_vm0, %v3522_v58, %v3527_v5  ;;  %v3539_v56 = vrot.slane %v3508_v30, 3 }
 0x568   :  { %3946 = vrot.lane.b32.xlu1 %v6936_v4, %s4690_s12  ;;  %3918 = vrot.lane.b32.xlu0 %v6936_v4, %s4689_s9  ;;  %vm7890_vm15 = vmmov %vm7888_vm3 }
 0x569   :  { %v2931_v10 = vsel %vm7890_vm15, %v2929_v16, %v2930_v35  ;;  %vm7891_vm15 = vmmov %vm7888_vm3 }
 0x56a   :  { %v3697_v44 = vpop.permute.xlu1 %3696  ;;  %v3693_v19 = vpop.permute.xlu0 %3692  ;;  %3046 = vmatmul.mubr.f32.gmra.mrb[20].mxu0 %v2931_v10  ;;  %v2938_v6 = vsel %vm7891_vm15, %v2933_v51, %v2937_v52 }
 0x56b   :  { %v3570_v49 = vld [vmem:[#allocation2 + $0x98] sm:$0xff]  ;;  %3715 = vst.msk [vmem:[#allocation2 + $0x18] sm:$0xff] %vm7886_vm2, %v3697_v44  ;;  %vm7889_vm2 = vcmask 195712   ;;  %4357 = vmatprep.mubr.msk.f32.mxu0 %vm1059_vm5, %v2938_v6  ;;  %v3541_v44 = vsel %vm2300_vm6, %v3539_v56, %v3540_v39  ;;  %v4113_v56 = vld [vmem:[%s7761_s0 + $0x8] sm:$0xc0]  ;;  %v4134_v39 = vrot.slane %v7178_v37, 6 }
 0x56c   :  { %3713 = vst.msk [vmem:[#allocation2 + $0x8] sm:$0xff] %vm7887_vm4, %v3693_v19  ;;  %v4574_v61 = vpack.c.bf16 %v3570_v49, %v3569_v40  ;;  %3924 = vrot.lane.b32.xlu1 %v7027_v41, %s4689_s9  ;;  %3896 = vrot.lane.b32.xlu0 %v7027_v41, %s4688_s8  ;;  %vm7892_vm3 = vmmov %vm7889_vm2  ;;  %v3548_v19 = vsel %vm2300_vm6, %v3543_v33, %v3547_v42  ;;  %vm7902_vm6 = vcmask 326912  }
 0x56e   :  { %4575 = vmatpush1.bf16.msra.mxu1 %v4574_v61  ;;  %v3723_v46 = vpop.permute.xlu1 %3722  ;;  %v3695_v11 = vpop.permute.xlu0 %3694  ;;  %v3571_v36 = vld [vmem:[#allocation2 + $0xa0] sm:$0xff]  ;;  %v3572_v29 = vld [vmem:[#allocation2 + $0xa8] sm:$0xff] }
 0x56f   :  { %4576 = vmatprep.subr.bf16.mxu1 %v4681_v8  ;;  %3742 = vst.msk [vmem:[#allocation2 + $0x18] sm:$0xff] %vm7889_vm2, %v3723_v46  ;;  %v4577_v34 = vpack.c.bf16 %v3572_v29, %v3571_v36  ;;  %vm7893_vm2 = vmmov %vm7887_vm4 }
 0x570   :  { %3714 = vst.msk [vmem:[#allocation2 + $0x10] sm:$0xff] %vm7887_vm4, %v3695_v11  ;;  %3972 = vrot.lane.b32.xlu1 %v6738_v32, %s4691_s15  ;;  %3944 = vrot.lane.b32.xlu0 %v6738_v32, %s4690_s12  ;;  %vm7894_vm4 = vmmov %vm7891_vm15 }
 0x571   :  { %v2936_v40 = vsel %vm7894_vm4, %v2930_v35, %v2935_v60  ;;  %vm7895_vm15 = vmmov %vm7893_vm2 }
 0x572   :  { %4578 = vmatpush1.bf16.msra.mxu1 %v4577_v34  ;;  %v3721_v3 = vpop.permute.xlu1 %3720  ;;  %v3701_v17 = vpop.permute.xlu0 %3700  ;;  %3051 = vmatmul.mubr.f32.gmra.mrb[22].mxu0 %v2936_v40  ;;  %vm7897_vm0 = vmmov %vm7893_vm2 }
 0x573   :  { %4612 = vmatprep.subr.bf16.mxu1 %v4681_v8  ;;  %v4161_v0 = vld [vmem:[#allocation2 + $0x8] sm:$0xff]  ;;  %3741 = vst.msk [vmem:[#allocation2 + $0x10] sm:$0xff] %vm7892_vm3, %v3721_v3  ;;  %vm7896_vm3 = vcmask 261312  }
 0x574   :  { %3717 = vst.msk [vmem:[#allocation2 + $0x28] sm:$0xff] %vm7893_vm2, %v3701_v17  ;;  %v4580_v20 = vpack.c.bf16 %v4161_v0, %v4160_v43  ;;  %3950 = vrot.lane.b32.xlu1 %v6995_v18, %s4690_s12  ;;  %3922 = vrot.lane.b32.xlu0 %v6995_v18, %s4689_s9  ;;  %vm7898_vm2 = vcmask 195712   ;;  %vm7899_vm4 = vmmov %vm7896_vm3 }
 0x575   :  { %3646 = vmatmul.mubr.f32.vlgmr.msra.gmra.mrb[16].mxu1 %v3523_v28 }
 0x576   :  { %4581 = vmatpush1.bf16.msra.mxu0 %v4580_v20  ;;  %4623 = vmatpush1.bf16.msra.mxu1 %v4580_v20  ;;  %v3699_v31 = vpop.permute.xlu1 %3698  ;;  %v3749_v38 = vpop.permute.xlu0 %3748 }
 0x577   :  { %4582 = vmatprep.subr.bf16.mxu0 %v4681_v8  ;;  %3716 = vst.msk [vmem:[#allocation2 + $0x20] sm:$0xff] %vm7895_vm15, %v3699_v31  ;;  %4613 = vmatprep.subr.bf16.mxu1 %v4681_v8  ;;  %vm7900_vm15 = vmmov %vm7898_vm2 }
 0x578   :  { %3769 = vst.msk [vmem:[#allocation2 + $0x18] sm:$0xff] %vm7896_vm3, %v3749_v38  ;;  %4366 = vmatprep.mubr.msk.f32.mxu1 %vm1059_vm5, %v3530_v2  ;;  %3928 = vrot.lane.b32.xlu1 %v7072_v12, %s4689_s9  ;;  %vm7901_vm3 = vmmov %vm7898_vm2 }
 0x579   :  { %3900 = vrot.lane.b32.xlu0 %v7072_v12, %s4688_s8  ;;  %3651 = vmatmul.mubr.f32.gmra.mrb[18].mxu1 %v3528_v62 }
 0x57a   :  { %v3705_v50 = vpop.permute.xlu1 %3704  ;;  %v3727_v26 = vpop.permute.xlu0 %3726  ;;  %4367 = vmatprep.mubr.msk.f32.mxu1 %vm1059_vm5, %v3544_v9  ;;  %v4162_v49 = vld [vmem:[#allocation2 + $0x10] sm:$0xff]  ;;  %v4152_v9 = vrot.slane %v7127_v53, 4 }
 0x57b   :  { %3719 = vst.msk [vmem:[#allocation2 + $0x38] sm:$0xff] %vm7897_vm0, %v3705_v50 }
 0x57c   :  { %3744 = vst.msk [vmem:[#allocation2 + $0x28] sm:$0xff] %vm7898_vm2, %v3727_v26  ;;  %3976 = vrot.lane.b32.xlu1 %v6970_v25, %s4691_s15  ;;  %vm7903_vm2 = vmmov %vm7899_vm4 }
 0x57d   :  { %3948 = vrot.lane.b32.xlu0 %v6970_v25, %s4690_s12  ;;  %3656 = vmatmul.mubr.f32.gmra.mrb[20].mxu1 %v3541_v44 }
 0x57e   :  { %v3753_v61 = vpop.permute.xlu1 %3752  ;;  %v3725_v15 = vpop.permute.xlu0 %3724  ;;  %4368 = vmatprep.mubr.msk.f32.mxu1 %vm1059_vm5, %v3548_v19 }
 0x57f   :  { %v4163_v22 = vld [vmem:[#allocation2 + $0x18] sm:$0xff]  ;;  %3771 = vst.msk [vmem:[#allocation2 + $0x28] sm:$0xff] %vm7899_vm4, %v3753_v61  ;;  %vm7904_vm4 = vmmov %vm7903_vm2  ;;  %v1134_v19 = vpop.f32.mrb[0].mxu0 }
 0x580   :  { %3743 = vst.msk [vmem:[#allocation2 + $0x20] sm:$0xff] %vm7900_vm15, %v3725_v15  ;;  %v4583_v48 = vpack.c.bf16 %v4163_v22, %v4162_v49  ;;  %3954 = vrot.lane.b32.xlu1 %v7046_v59, %s4690_s12  ;;  %vm7905_vm15 = vmmov %vm7901_vm3  ;;  %v1229_v49 = vpop.f32.mrb[0].mxu1  ;;  %v1136_v55 = vpop.f32.mrb[1].mxu0 }
 0x581   :  { %3926 = vrot.lane.b32.xlu0 %v7046_v59, %s4689_s9  ;;  %3661 = vmatmul.mubr.f32.gmra.mrb[22].mxu1 %v3546_v54  ;;  %v1230_v61 = vadd.f32 %v1229_v49, %v1134_v19  ;;  %v1231_v15 = vpop.f32.mrb[1].mxu1 }
 0x582   :  { %4584 = vmatpush1.bf16.msra.mxu0 %v4583_v48  ;;  %4624 = vmatpush1.bf16.msra.mxu1 %v4583_v48  ;;  %v3731_v51 = vpop.permute.xlu1 %3730  ;;  %v3703_v27 = vpop.permute.xlu0 %3702 }
 0x583   :  { %4585 = vmatprep.subr.bf16.mxu0 %v4681_v8  ;;  %4614 = vmatprep.subr.bf16.mxu1 %v4681_v8  ;;  %3746 = vst.msk [vmem:[#allocation2 + $0x38] sm:$0xff] %vm7901_vm3, %v3731_v51  ;;  %vm7906_vm3 = vcmask 392512  }
 0x584   :  { %3718 = vst.msk [vmem:[#allocation2 + $0x30] sm:$0xff] %vm7897_vm0, %v3703_v27  ;;  %4002 = vrot.lane.b32.xlu1 %v6936_v4, %s4692_s19  ;;  %vm7907_vm0 = vmmov %vm7902_vm6  ;;  %v1139_v27 = vpop.f32.mrb[2].mxu0 }
 0x585   :  { %3974 = vrot.lane.b32.xlu0 %v6936_v4, %s4691_s15 }
 0x586   :  { %v3779_v23 = vpop.permute.xlu1 %3778  ;;  %v3751_v16 = vpop.permute.xlu0 %3750 }
 0x587   :  { %3798 = vst.msk [vmem:[#allocation2 + $0x28] sm:$0xff] %vm7902_vm6, %v3779_v23  ;;  %vm7908_vm6 = vmmov %vm7907_vm0  ;;  %v1234_v23 = vpop.f32.mrb[2].mxu1 }
 0x588   :  { %3770 = vst.msk [vmem:[#allocation2 + $0x20] sm:$0xff] %vm7903_vm2, %v3751_v16  ;;  %3980 = vrot.lane.b32.xlu1 %v7027_v41, %s4691_s15  ;;  %v1141_v16 = vpop.f32.mrb[3].mxu0 }
 0x589   :  { %3952 = vrot.lane.b32.xlu0 %v7027_v41, %s4690_s12 }
 0x58a   :  { %v3757_v35 = vpop.permute.xlu1 %3756  ;;  %v3729_v46 = vpop.permute.xlu0 %3728 }
 0x58b   :  { %3773 = vst.msk [vmem:[#allocation2 + $0x38] sm:$0xff] %vm7904_vm4, %v3757_v35  ;;  %vm7909_vm4 = vmmov %vm7903_vm2  ;;  %v1235_v35 = vadd.f32 %v1234_v23, %v1139_v27 }
 0x58c   :  { %3745 = vst.msk [vmem:[#allocation2 + $0x30] sm:$0xff] %vm7905_vm15, %v3729_v46  ;;  %4028 = vrot.lane.b32.xlu1 %v6738_v32, %s4693_s22  ;;  %v1236_v46 = vpop.f32.mrb[3].mxu1 }
 0x58d   :  { %4000 = vrot.lane.b32.xlu0 %v6738_v32, %s4692_s19 }
 0x58e   :  { %v3805_v11 = vpop.permute.xlu1 %3804  ;;  %v3777_v36 = vpop.permute.xlu0 %3776 }
 0x58f   :  { %3825 = vst.msk [vmem:[#allocation2 + $0x28] sm:$0xff] %vm7906_vm3, %v3805_v11  ;;  %v1144_v11 = vpop.f32.mrb[4].mxu0 }
 0x590   :  { %3797 = vst.msk [vmem:[#allocation2 + $0x20] sm:$0xff] %vm7907_vm0, %v3777_v36  ;;  %4006 = vrot.lane.b32.xlu1 %v6995_v18, %s4692_s19  ;;  %v1239_v36 = vpop.f32.mrb[4].mxu1 }
 0x591   :  { %3978 = vrot.lane.b32.xlu0 %v6995_v18, %s4691_s15 }
 0x592   :  { %v3783_v29 = vpop.permute.xlu1 %3782  ;;  %v3755_v57 = vpop.permute.xlu0 %3754 }
 0x593   :  { %3800 = vst.msk [vmem:[#allocation2 + $0x38] sm:$0xff] %vm7908_vm6, %v3783_v29  ;;  %vm7910_vm6 = vmmov %vm7907_vm0 }
 0x594   :  { %3772 = vst.msk [vmem:[#allocation2 + $0x30] sm:$0xff] %vm7903_vm2, %v3755_v57  ;;  %4032 = vrot.lane.b32.xlu1 %v6970_v25, %s4693_s22 }
 0x595   :  { %4004 = vrot.lane.b32.xlu0 %v6970_v25, %s4692_s19 }
 0x596   :  { %v3761_v58 = vpop.permute.xlu1 %3760  ;;  %v3733_v7 = vpop.permute.xlu0 %3732  ;;  %v4165_v43 = vld [vmem:[#allocation2 + $0x28] sm:$0xff] }
 0x597   :  { %v4164_v34 = vld [vmem:[#allocation2 + $0x20] sm:$0xff]  ;;  %3775 = vst.msk [vmem:[#allocation2 + $0x48] sm:$0xff] %vm7909_vm4, %v3761_v58  ;;  %vm7911_vm4 = vcmask 458112   ;;  %v1240_v58 = vadd.f32 %v1239_v36, %v1144_v11 }
 0x598   :  { %3747 = vst.msk [vmem:[#allocation2 + $0x40] sm:$0xff] %vm7905_vm15, %v3733_v7  ;;  %v4586_v45 = vpack.c.bf16 %v4165_v43, %v4164_v34  ;;  %4030 = vrot.lane.b32.xlu1 %v6936_v4, %s4693_s22  ;;  %vm7912_vm15 = vmmov %vm7906_vm3  ;;  %v1146_v7 = vpop.f32.mrb[5].mxu0  ;;  %v1241_v34 = vpop.f32.mrb[5].mxu1 }
 0x599   :  { %3956 = vrot.lane.b32.xlu0 %v7072_v12, %s4690_s12  ;;  %v1149_v43 = vpop.f32.mrb[6].mxu0 }
 0x59a   :  { %4587 = vmatpush1.bf16.msra.mxu0 %v4586_v45  ;;  %4625 = vmatpush1.bf16.msra.mxu1 %v4586_v45  ;;  %v3809_v10 = vpop.permute.xlu1 %3808  ;;  %v3781_v47 = vpop.permute.xlu0 %3780 }
 0x59b   :  { %4588 = vmatprep.subr.bf16.mxu0 %v4681_v8  ;;  %4615 = vmatprep.subr.bf16.mxu1 %v4681_v8  ;;  %3827 = vst.msk [vmem:[#allocation2 + $0x38] sm:$0xff] %vm7906_vm3, %v3809_v10  ;;  %v1244_v45 = vpop.f32.mrb[6].mxu1  ;;  %v1151_v10 = vpop.f32.mrb[7].mxu0 }
 0x59c   :  { %3799 = vst.msk [vmem:[#allocation2 + $0x30] sm:$0xff] %vm7907_vm0, %v3781_v47  ;;  %3982 = vrot.lane.b32.xlu1 %v7046_v59, %s4691_s15  ;;  %v1245_v47 = vadd.f32 %v1244_v45, %v1149_v43 }
 0x59d   :  { %4058 = vrot.lane.b32.xlu0 %v6936_v4, %s4694_s25 }
 0x59e   :  { %v3787_v13 = vpop.permute.xlu1 %3786  ;;  %v3759_v63 = vpop.permute.xlu0 %3758 }
 0x59f   :  { %3802 = vst.msk [vmem:[#allocation2 + $0x48] sm:$0xff] %vm7910_vm6, %v3787_v13  ;;  %vm7913_vm6 = vmmov %vm7911_vm4  ;;  %v1246_v13 = vpop.f32.mrb[7].mxu1 }
 0x5a0   :  { %3774 = vst.msk [vmem:[#allocation2 + $0x40] sm:$0xff] %vm7903_vm2, %v3759_v63  ;;  %4056 = vrot.lane.b32.xlu1 %v6738_v32, %s4694_s25  ;;  %vm7914_vm2 = vmmov %vm7911_vm4 }
 0x5a1   :  { %3984 = vrot.lane.b32.xlu0 %v7072_v12, %s4691_s15 }
 0x5a2   :  { %v3835_v52 = vpop.permute.xlu1 %3834  ;;  %v3807_v14 = vpop.permute.xlu0 %3806 }
 0x5a3   :  { %3854 = vst.msk [vmem:[#allocation2 + $0x38] sm:$0xff] %vm7911_vm4, %v3835_v52  ;;  %vm7915_vm4 = vmmov %vm7906_vm3 }
 0x5a4   :  { %3826 = vst.msk [vmem:[#allocation2 + $0x30] sm:$0xff] %vm7912_vm15, %v3807_v14  ;;  %4008 = vrot.lane.b32.xlu1 %v7027_v41, %s4692_s19  ;;  %vm7916_vm15 = vmmov %vm7906_vm3  ;;  %v1817_v14 = vpop.f32.mrb[8].mxu0 }
 0x5a5   :  { %4084 = vrot.lane.b32.xlu0 %v6738_v32, %s4695_s28 }
 0x5a6   :  { %v3813_v3 = vpop.permute.xlu1 %3812  ;;  %v3785_v17 = vpop.permute.xlu0 %3784 }
 0x5a7   :  { %3829 = vst.msk [vmem:[#allocation2 + $0x48] sm:$0xff] %vm7906_vm3, %v3813_v3  ;;  %vm7917_vm3 = vmmov %vm7907_vm0  ;;  %v2427_v3 = vpop.f32.mrb[8].mxu1 }
 0x5a8   :  { %3801 = vst.msk [vmem:[#allocation2 + $0x40] sm:$0xff] %vm7907_vm0, %v3785_v17  ;;  %4034 = vrot.lane.b32.xlu1 %v6995_v18, %s4693_s22  ;;  %vm7918_vm0 = vmmov %vm7914_vm2  ;;  %v1836_v17 = vadd.f32 %v1817_v14, %v1230_v61 }
 0x5a9   :  { %4010 = vrot.lane.b32.xlu0 %v7046_v59, %s4692_s19 }
 0x5aa   :  { %v3861_v28 = vpop.permute.xlu1 %3860  ;;  %v3833_v0 = vpop.permute.xlu0 %3832 }
 0x5ab   :  { %3881 = vst.msk [vmem:[#allocation2 + $0x38] sm:$0xff] %vm254_vm7, %v3861_v28  ;;  %v1819_v28 = vpop.f32.mrb[9].mxu0 }
 0x5ac   :  { %3853 = vst.msk [vmem:[#allocation2 + $0x30] sm:$0xff] %vm7913_vm6, %v3833_v0  ;;  %4060 = vrot.lane.b32.xlu1 %v6970_v25, %s4694_s25  ;;  %vm7919_vm6 = vmmov %vm7918_vm0  ;;  %v2429_v0 = vpop.f32.mrb[9].mxu1 }
 0x5ad   :  { %4036 = vrot.lane.b32.xlu0 %v7027_v41, %s4693_s22 }
 0x5ae   :  { %v3839_v32 = vpop.permute.xlu1 %3838  ;;  %v3811_v5 = vpop.permute.xlu0 %3810 }
 0x5af   :  { %3856 = vst.msk [vmem:[#allocation2 + $0x48] sm:$0xff] %vm7914_vm2, %v3839_v32  ;;  %vm7920_vm2 = vmmov %vm7915_vm4 }
 0x5b0   :  { %3828 = vst.msk [vmem:[#allocation2 + $0x40] sm:$0xff] %vm7915_vm4, %v3811_v5  ;;  %4086 = vrot.lane.b32.xlu1 %v6936_v4, %s4695_s28  ;;  %vm7921_vm4 = vmmov %vm7918_vm0 }
 0x5b1   :  { %4062 = vrot.lane.b32.xlu0 %v6995_v18, %s4694_s25 }
 0x5b2   :  { %v3817_v6 = vpop.permute.xlu1 %3816  ;;  %v3789_v60 = vpop.permute.xlu0 %3788  ;;  %v4167_v21 = vld [vmem:[#allocation2 + $0x38] sm:$0xff] }
 0x5b3   :  { %v4166_v20 = vld [vmem:[#allocation2 + $0x30] sm:$0xff]  ;;  %3831 = vst.msk [vmem:[#allocation2 + $0x58] sm:$0xff] %vm7916_vm15, %v3817_v6  ;;  %vm7922_vm15 = vcmask 1041408  }
 0x5b4   :  { %3803 = vst.msk [vmem:[#allocation2 + $0x50] sm:$0xff] %vm7917_vm3, %v3789_v60  ;;  %v4589_v33 = vpack.c.bf16 %v4167_v21, %v4166_v20  ;;  %4012 = vrot.lane.b32.xlu1 %v7072_v12, %s4692_s19  ;;  %vm7923_vm3 = vmmov %vm7918_vm0  ;;  %v2446_v21 = vadd.f32 %v2427_v3, %v1836_v17 }
 0x5b5   :  { %4088 = vrot.lane.b32.xlu0 %v6970_v25, %s4695_s28 }
 0x5b6   :  { %4590 = vmatpush1.bf16.msra.mxu0 %v4589_v33  ;;  %4626 = vmatpush1.bf16.msra.mxu1 %v4589_v33  ;;  %v3865_v4 = vpop.permute.xlu1 %3864  ;;  %v3837_v30 = vpop.permute.xlu0 %3836 }
 0x5b7   :  { %4591 = vmatprep.subr.bf16.mxu0 %v4681_v8  ;;  %4616 = vmatprep.subr.bf16.mxu1 %v4681_v8  ;;  %3883 = vst.msk [vmem:[#allocation2 + $0x48] sm:$0xff] %vm254_vm7, %v3865_v4 }
 0x5b8   :  { %3855 = vst.msk [vmem:[#allocation2 + $0x40] sm:$0xff] %vm7918_vm0, %v3837_v30  ;;  %4040 = vrot.lane.b32.xlu1 %v7072_v12, %s4693_s22 }
 0x5b9   :  { %4038 = vrot.lane.b32.xlu0 %v7046_v59, %s4693_s22  ;;  %v1822_v32 = vpop.f32.mrb[10].mxu0 }
 0x5ba   :  { %v3843_v2 = vpop.permute.xlu1 %3842  ;;  %v3815_v25 = vpop.permute.xlu0 %3814  ;;  %v1837_v20 = vadd.f32 %v1822_v32, %v1235_v35 }
 0x5bb   :  { %3858 = vst.msk [vmem:[#allocation2 + $0x58] sm:$0xff] %vm7919_vm6, %v3843_v2  ;;  %v2432_v5 = vpop.f32.mrb[10].mxu1  ;;  %v1824_v33 = vpop.f32.mrb[11].mxu0 }
 0x5bc   :  { %3830 = vst.msk [vmem:[#allocation2 + $0x50] sm:$0xff] %vm7920_vm2, %v3815_v25  ;;  %4066 = vrot.lane.b32.xlu1 %v7046_v59, %s4694_s25  ;;  %v2434_v4 = vpop.f32.mrb[11].mxu1  ;;  %v7640_v2 = vadd.f32 %v2432_v5, %v1837_v20 }
 0x5bd   :  { %4064 = vrot.lane.b32.xlu0 %v7027_v41, %s4694_s25  ;;  %v1827_v30 = vpop.f32.mrb[12].mxu0 }
 0x5be   :  { %v3891_v1 = vpop.permute.xlu1 %3890  ;;  %v3863_v31 = vpop.permute.xlu0 %3862 }
 0x5bf   :  { %3910 = vst.msk [vmem:[#allocation2 + $0x48] sm:$0xff] %vm283_vm8, %v3891_v1  ;;  %v2437_v25 = vpop.f32.mrb[12].mxu1  ;;  %v1838_v1 = vadd.f32 %v1827_v30, %v1240_v58 }
 0x5c0   :  { %3882 = vst.msk [vmem:[#allocation2 + $0x40] sm:$0xff] %vm254_vm7, %v3863_v31  ;;  %4092 = vrot.lane.b32.xlu1 %v7027_v41, %s4695_s28  ;;  %v4133_v41 = vrot.slane %v4113_v56, 6  ;;  %v1829_v31 = vpop.f32.mrb[13].mxu0 }
 0x5c1   :  { %4090 = vrot.lane.b32.xlu0 %v6995_v18, %s4695_s28  ;;  %v4119_v18 = vld [vmem:[%s7761_s0 + $0x38] sm:$0xf0] }
 0x5c2   :  { %v3869_v38 = vpop.permute.xlu1 %3868  ;;  %v3841_v62 = vpop.permute.xlu0 %3840  ;;  %v4151_v40 = vrot.slane %v4119_v18, 4 }
 0x5c3   :  { %3885 = vst.msk [vmem:[#allocation2 + $0x58] sm:$0xff] %vm254_vm7, %v3869_v38  ;;  %v2439_v38 = vpop.f32.mrb[13].mxu1  ;;  %v1832_v18 = vpop.f32.mrb[14].mxu0 }
 0x5c4   :  { %3857 = vst.msk [vmem:[#allocation2 + $0x50] sm:$0xff] %vm7921_vm4, %v3841_v62  ;;  %4094 = vrot.lane.b32.xlu1 %v7046_v59, %s4695_s28  ;;  %v4135_v59 = vsel %vm7922_vm15, %v4133_v41, %v4134_v39  ;;  %v4153_v50 = vsel %vm2910_vm1, %v4151_v40, %v4152_v9  ;;  %v7644_v41 = vadd.f32 %v2437_v25, %v1838_v1 }
 0x5c5   :  { %4068 = vrot.lane.b32.xlu0 %v7072_v12, %s4694_s25  ;;  %4376 = vmatprep.mubr.msk.f32.mxu0 %vm1059_vm5, %v4135_v59  ;;  %v2442_v40 = vpop.f32.mrb[14].mxu1 }
 0x5c6   :  { %v3917_v42 = vpop.permute.xlu1 %3916  ;;  %v3889_v24 = vpop.permute.xlu0 %3888  ;;  %4378 = vmatprep.mubr.msk.f32.mxu1 %vm1059_vm5, %v4153_v50 }
 0x5c7   :  { %3937 = vst.msk [vmem:[#allocation2 + $0x48] sm:$0xff] %vm312_vm9, %v3917_v42  ;;  %v1839_v42 = vadd.f32 %v1832_v18, %v1245_v47  ;;  %v2444_v59 = vpop.f32.mrb[15].mxu1 }
 0x5c8   :  { %3909 = vst.msk [vmem:[#allocation2 + $0x40] sm:$0xff] %vm283_vm8, %v3889_v24  ;;  %v1834_v24 = vpop.f32.mrb[15].mxu0 }
 0x5c9   :  { %4096 = vrot.lane.b32.xlu0 %v7072_v12, %s4695_s28  ;;  %v3037_v50 = vpop.f32.mrb[16].mxu0  ;;  %v7646_v19 = vadd.f32 %v2442_v40, %v1839_v42 }
 0x5ca   :  { %v3895_v26 = vpop.permute.xlu1 %3894  ;;  %v3867_v44 = vpop.permute.xlu0 %3866  ;;  %v7648_v49 = vadd.f32 %v3037_v50, %v2446_v21 }
 0x5cb   :  { %3912 = vst.msk [vmem:[#allocation2 + $0x58] sm:$0xff] %vm283_vm8, %v3895_v26  ;;  %v3039_v55 = vpop.f32.mrb[17].mxu0 }
 0x5cc   :  { %3884 = vst.msk [vmem:[#allocation2 + $0x50] sm:$0xff] %vm254_vm7, %v3867_v44 }
 0x5ce   :  { %v3873_v22 = vpop.permute.xlu1 %3872  ;;  %v3845_v48 = vpop.permute.xlu0 %3844  ;;  %v4169_v51 = vld [vmem:[#allocation2 + $0x48] sm:$0xff] }
 0x5cf   :  { %v4168_v54 = vld [vmem:[#allocation2 + $0x40] sm:$0xff]  ;;  %3887 = vst.msk [vmem:[#allocation2 + $0x68] sm:$0xff] %vm254_vm7, %v3873_v22 }
 0x5d0   :  { %3859 = vst.msk [vmem:[#allocation2 + $0x60] sm:$0xff] %vm7923_vm3, %v3845_v48  ;;  %v4592_v12 = vpack.c.bf16 %v4169_v51, %v4168_v54 }
 0x5d2   :  { %4593 = vmatpush1.bf16.msra.mxu0 %v4592_v12  ;;  %4627 = vmatpush1.bf16.msra.mxu1 %v4592_v12  ;;  %v3921_v29 = vpop.permute.xlu1 %3920  ;;  %v3893_v57 = vpop.permute.xlu0 %3892 }
 0x5d3   :  { %4594 = vmatprep.subr.bf16.mxu0 %v4681_v8  ;;  %4617 = vmatprep.subr.bf16.mxu1 %v4681_v8  ;;  %3939 = vst.msk [vmem:[#allocation2 + $0x58] sm:$0xff] %vm312_vm9, %v3921_v29 }
 0x5d4   :  { %3911 = vst.msk [vmem:[#allocation2 + $0x50] sm:$0xff] %vm283_vm8, %v3893_v57 }
 0x5d6   :  { %v3899_v63 = vpop.permute.xlu1 %3898  ;;  %v3871_v52 = vpop.permute.xlu0 %3870 }
 0x5d7   :  { %3914 = vst.msk [vmem:[#allocation2 + $0x68] sm:$0xff] %vm283_vm8, %v3899_v63 }
 0x5d8   :  { %3886 = vst.msk [vmem:[#allocation2 + $0x60] sm:$0xff] %vm254_vm7, %v3871_v52  ;;  %vm7924_vm7 = vcmask 1048512  }
 0x5da   :  { %v3947_v6 = vpop.permute.xlu1 %3946  ;;  %v3919_v60 = vpop.permute.xlu0 %3918 }
 0x5db   :  { %3966 = vst.msk [vmem:[#allocation2 + $0x58] sm:$0xff] %vm341_vm10, %v3947_v6 }
 0x5dc   :  { %3938 = vst.msk [vmem:[#allocation2 + $0x50] sm:$0xff] %vm312_vm9, %v3919_v60 }
 0x5de   :  { %v3925_v62 = vpop.permute.xlu1 %3924  ;;  %v3897_v56 = vpop.permute.xlu0 %3896 }
 0x5df   :  { %3941 = vst.msk [vmem:[#allocation2 + $0x68] sm:$0xff] %vm312_vm9, %v3925_v62 }
 0x5e0   :  { %3913 = vst.msk [vmem:[#allocation2 + $0x60] sm:$0xff] %vm283_vm8, %v3897_v56 }
 0x5e2   :  { %v3973_v26 = vpop.permute.xlu1 %3972  ;;  %v3945_v44 = vpop.permute.xlu0 %3944 }
 0x5e3   :  { %3993 = vst.msk [vmem:[#allocation2 + $0x58] sm:$0xff] %vm370_vm11, %v3973_v26 }
 0x5e4   :  { %3965 = vst.msk [vmem:[#allocation2 + $0x50] sm:$0xff] %vm341_vm10, %v3945_v44 }
 0x5e6   :  { %v3951_v61 = vpop.permute.xlu1 %3950  ;;  %v3923_v15 = vpop.permute.xlu0 %3922 }
 0x5e7   :  { %3968 = vst.msk [vmem:[#allocation2 + $0x68] sm:$0xff] %vm341_vm10, %v3951_v61 }
 0x5e8   :  { %3940 = vst.msk [vmem:[#allocation2 + $0x60] sm:$0xff] %vm312_vm9, %v3923_v15 }
 0x5ea   :  { %v3929_v22 = vpop.permute.xlu1 %3928  ;;  %v4171_v51 = vld [vmem:[#allocation2 + $0x58] sm:$0xff] }
 0x5eb   :  { %v3901_v48 = vpop.permute.xlu0 %3900  ;;  %v4170_v54 = vld [vmem:[#allocation2 + $0x50] sm:$0xff]  ;;  %3943 = vst.msk [vmem:[#allocation2 + $0x78] sm:$0xff] %vm312_vm9, %v3929_v22 }
 0x5ec   :  { %3915 = vst.msk [vmem:[#allocation2 + $0x70] sm:$0xff] %vm283_vm8, %v3901_v48  ;;  %v4595_v12 = vpack.c.bf16 %v4171_v51, %v4170_v54  ;;  %vm7925_vm8 = vmmov %vm7924_vm7  ;;  %v4112_v48 = vld [vmem:[%s7761_s0] sm:$0xc0]  ;;  %v4118_v54 = vld [vmem:[%s7761_s0 + $0x30] sm:$0xf0] }
 0x5ed   :  { %v4117_v51 = vld [vmem:[%s7761_s0 + $0x28] sm:$0x3f] }
 0x5ee   :  { %4596 = vmatpush1.bf16.msra.mxu0 %v4595_v12  ;;  %4628 = vmatpush1.bf16.msra.mxu1 %v4595_v12  ;;  %v3977_v27 = vpop.permute.xlu1 %3976  ;;  %v4123_v12 = vld [vmem:[%s7761_s0 + $0x58] sm:$0xf] }
 0x5ef   :  { %v3949_v23 = vpop.permute.xlu0 %3948  ;;  %4597 = vmatprep.subr.bf16.mxu0 %v4681_v8  ;;  %4618 = vmatprep.subr.bf16.mxu1 %v4681_v8  ;;  %3995 = vst.msk [vmem:[#allocation2 + $0x68] sm:$0xff] %vm370_vm11, %v3977_v27 }
 0x5f0   :  { %3967 = vst.msk [vmem:[#allocation2 + $0x60] sm:$0xff] %vm341_vm10, %v3949_v23  ;;  %v4130_v23 = vrot.slane %v4112_v48, 6 }
 0x5f2   :  { %v3955_v16 = vpop.permute.xlu1 %3954 }
 0x5f3   :  { %v3927_v35 = vpop.permute.xlu0 %3926  ;;  %3970 = vst.msk [vmem:[#allocation2 + $0x78] sm:$0xff] %vm341_vm10, %v3955_v16  ;;  %v4653_v16 = vld [vmem:[%s7761_s0 + $0x10] sm:$0xff] }
 0x5f4   :  { %3942 = vst.msk [vmem:[#allocation2 + $0x70] sm:$0xff] %vm312_vm9, %v3927_v35  ;;  %vm7926_vm9 = vmmov %vm7924_vm7  ;;  %v4131_v35 = vrot.slane %v4653_v16, 6 }
 0x5f6   :  { %v4003_v46 = vpop.permute.xlu1 %4002 }
 0x5f7   :  { %v3975_v11 = vpop.permute.xlu0 %3974  ;;  %4022 = vst.msk [vmem:[#allocation2 + $0x68] sm:$0xff] %vm399_vm12, %v4003_v46  ;;  %v4148_v46 = vrot.slane %v4118_v54, 4 }
 0x5f8   :  { %3994 = vst.msk [vmem:[#allocation2 + $0x60] sm:$0xff] %vm370_vm11, %v3975_v11  ;;  %v4654_v11 = vld [vmem:[%s7761_s0 + $0x40] sm:$0xff] }
 0x5fa   :  { %v3981_v36 = vpop.permute.xlu1 %3980 }
 0x5fb   :  { %v3953_v29 = vpop.permute.xlu0 %3952  ;;  %3997 = vst.msk [vmem:[#allocation2 + $0x78] sm:$0xff] %vm370_vm11, %v3981_v36  ;;  %v4149_v36 = vrot.slane %v4654_v11, 4 }
 0x5fc   :  { %3969 = vst.msk [vmem:[#allocation2 + $0x70] sm:$0xff] %vm341_vm10, %v3953_v29  ;;  %v4138_v29 = vrot.slane %v4117_v51, 6 }
 0x5fe   :  { %v4029_v57 = vpop.permute.xlu1 %4028 }
 0x5ff   :  { %v4001_v58 = vpop.permute.xlu0 %4000  ;;  %4049 = vst.msk [vmem:[#allocation2 + $0x68] sm:$0xff] %vm428_vm13, %v4029_v57 }
 0x600   :  { %4021 = vst.msk [vmem:[#allocation2 + $0x60] sm:$0xff] %vm399_vm12, %v4001_v58 }
 0x602   :  { %v4007_v7 = vpop.permute.xlu1 %4006 }
 0x603   :  { %v3979_v34 = vpop.permute.xlu0 %3978  ;;  %4024 = vst.msk [vmem:[#allocation2 + $0x78] sm:$0xff] %vm399_vm12, %v4007_v7 }
 0x604   :  { %3996 = vst.msk [vmem:[#allocation2 + $0x70] sm:$0xff] %vm370_vm11, %v3979_v34  ;;  %v4156_v34 = vrot.slane %v4123_v12, 4 }
 0x606   :  { %v4033_v43 = vpop.permute.xlu1 %4032  ;;  %v4173_v47 = vld [vmem:[#allocation2 + $0x68] sm:$0xff] }
 0x607   :  { %v4005_v45 = vpop.permute.xlu0 %4004  ;;  %v4172_v10 = vld [vmem:[#allocation2 + $0x60] sm:$0xff]  ;;  %4051 = vst.msk [vmem:[#allocation2 + $0x78] sm:$0xff] %vm428_vm13, %v4033_v43 }
 0x608   :  { %4023 = vst.msk [vmem:[#allocation2 + $0x70] sm:$0xff] %vm399_vm12, %v4005_v45  ;;  %v4598_v13 = vpack.c.bf16 %v4173_v47, %v4172_v10  ;;  %v4116_v43 = vld [vmem:[%s7761_s0 + $0x20] sm:$0x3f]  ;;  %v4122_v45 = vld [vmem:[%s7761_s0 + $0x50] sm:$0xf] }
 0x60a   :  { %4599 = vmatpush1.bf16.msra.mxu0 %v4598_v13  ;;  %4629 = vmatpush1.bf16.msra.mxu1 %v4598_v13  ;;  %v4031_v63 = vpop.permute.xlu1 %4030 }
 0x60b   :  { %v3957_v52 = vpop.permute.xlu0 %3956  ;;  %4600 = vmatprep.subr.bf16.mxu0 %v4681_v8  ;;  %4619 = vmatprep.subr.bf16.mxu1 %v4681_v8  ;;  %4050 = vst.msk [vmem:[#allocation2 + $0x70] sm:$0xff] %vm428_vm13, %v4031_v63  ;;  %v4150_v63 = vsel %vm2910_vm1, %v4148_v46, %v4149_v36 }
 0x60c   :  { %3971 = vst.msk [vmem:[#allocation2 + $0x80] sm:$0xff] %vm341_vm10, %v3957_v52  ;;  %vm7927_vm10 = vmmov %vm7924_vm7  ;;  %v4154_v52 = vrot.slane %v4122_v45, 4 }
 0x60e   :  { %v3983_v14 = vpop.permute.xlu1 %3982 }
 0x60f   :  { %v4059_v3 = vpop.permute.xlu0 %4058  ;;  %3998 = vst.msk [vmem:[#allocation2 + $0x80] sm:$0xff] %vm370_vm11, %v3983_v14 }
 0x610   :  { %4078 = vst.msk [vmem:[#allocation2 + $0x78] sm:$0xff] %vm457_vm14, %v4059_v3 }
 0x612   :  { %v4057_v17 = vpop.permute.xlu1 %4056 }
 0x613   :  { %v3985_v28 = vpop.permute.xlu0 %3984  ;;  %4077 = vst.msk [vmem:[#allocation2 + $0x70] sm:$0xff] %vm457_vm14, %v4057_v17 }
 0x614   :  { %3999 = vst.msk [vmem:[#allocation2 + $0x88] sm:$0xff] %vm370_vm11, %v3985_v28  ;;  %vm7928_vm11 = vmmov %vm7924_vm7  ;;  %v4157_v28 = vsel %vm2910_vm1, %v4152_v9, %v4156_v34 }
 0x616   :  { %v4009_v0 = vpop.permute.xlu1 %4008 }
 0x617   :  { %v4085_v32 = vpop.permute.xlu0 %4084  ;;  %4025 = vst.msk [vmem:[#allocation2 + $0x80] sm:$0xff] %vm399_vm12, %v4009_v0 }
 0x618   :  { %4105 = vst.msk [vmem:[#allocation2 + $0x78] sm:$0xff] %vm7924_vm7, %v4085_v32 }
 0x61a   :  { %v4035_v5 = vpop.permute.xlu1 %4034  ;;  %v4174_v60 = vld [vmem:[#allocation2 + $0x70] sm:$0xff] }
 0x61b   :  { %v4011_v6 = vpop.permute.xlu0 %4010  ;;  %4052 = vst.msk [vmem:[#allocation2 + $0x80] sm:$0xff] %vm428_vm13, %v4035_v5 }
 0x61c   :  { %4026 = vst.msk [vmem:[#allocation2 + $0x88] sm:$0xff] %vm399_vm12, %v4011_v6 }
 0x61e   :  { %v4061_v20 = vpop.permute.xlu1 %4060 }
 0x61f   :  { %v4037_v21 = vpop.permute.xlu0 %4036  ;;  %v4175_v33 = vld [vmem:[#allocation2 + $0x78] sm:$0xff]  ;;  %4079 = vst.msk [vmem:[#allocation2 + $0x80] sm:$0xff] %vm457_vm14, %v4061_v20 }
 0x620   :  { %4053 = vst.msk [vmem:[#allocation2 + $0x88] sm:$0xff] %vm428_vm13, %v4037_v21  ;;  %v4601_v4 = vpack.c.bf16 %v4175_v33, %v4174_v60 }
 0x622   :  { %4602 = vmatpush1.bf16.msra.mxu0 %v4601_v4  ;;  %4630 = vmatpush1.bf16.msra.mxu1 %v4601_v4  ;;  %v4087_v30 = vpop.permute.xlu1 %4086 }
 0x623   :  { %v4063_v25 = vpop.permute.xlu0 %4062  ;;  %4603 = vmatprep.subr.bf16.mxu0 %v4681_v8  ;;  %4620 = vmatprep.subr.bf16.mxu1 %v4681_v8  ;;  %4106 = vst.msk [vmem:[#allocation2 + $0x80] sm:$0xff] %vm7925_vm8, %v4087_v30 }
 0x624   :  { %4080 = vst.msk [vmem:[#allocation2 + $0x88] sm:$0xff] %vm457_vm14, %v4063_v25 }
 0x626   :  { %v4013_v1 = vpop.permute.xlu1 %4012 }
 0x627   :  { %v4089_v31 = vpop.permute.xlu0 %4088  ;;  %4027 = vst.msk [vmem:[#allocation2 + $0x90] sm:$0xff] %vm399_vm12, %v4013_v1  ;;  %vm7929_vm12 = vmmov %vm7924_vm7 }
 0x628   :  { %4107 = vst.msk [vmem:[#allocation2 + $0x88] sm:$0xff] %vm7926_vm9, %v4089_v31 }
 0x62a   :  { %v4041_v38 = vpop.permute.xlu1 %4040  ;;  %v4176_v56 = vld [vmem:[#allocation2 + $0x80] sm:$0xff] }
 0x62b   :  { %v4039_v62 = vpop.permute.xlu0 %4038  ;;  %4055 = vst.msk [vmem:[#allocation2 + $0x98] sm:$0xff] %vm428_vm13, %v4041_v38 }
 0x62c   :  { %4054 = vst.msk [vmem:[#allocation2 + $0x90] sm:$0xff] %vm428_vm13, %v4039_v62  ;;  %vm7930_vm13 = vmmov %vm7924_vm7 }
 0x62e   :  { %v4067_v18 = vpop.permute.xlu1 %4066 }
 0x62f   :  { %v4065_v40 = vpop.permute.xlu0 %4064  ;;  %v4177_v42 = vld [vmem:[#allocation2 + $0x88] sm:$0xff]  ;;  %4082 = vst.msk [vmem:[#allocation2 + $0x98] sm:$0xff] %vm457_vm14, %v4067_v18 }
 0x630   :  { %4081 = vst.msk [vmem:[#allocation2 + $0x90] sm:$0xff] %vm457_vm14, %v4065_v40  ;;  %v4604_v24 = vpack.c.bf16 %v4177_v42, %v4176_v56 }
 0x632   :  { %4605 = vmatpush1.bf16.msra.mxu0 %v4604_v24  ;;  %4631 = vmatpush1.bf16.msra.mxu1 %v4604_v24  ;;  %v4093_v59 = vpop.permute.xlu1 %4092 }
 0x633   :  { %v4091_v50 = vpop.permute.xlu0 %4090  ;;  %4606 = vmatprep.subr.bf16.mxu0 %v4681_v8  ;;  %4621 = vmatprep.subr.bf16.mxu1 %v4681_v8  ;;  %4109 = vst.msk [vmem:[#allocation2 + $0x98] sm:$0xff] %vm7927_vm10, %v4093_v59 }
 0x634   :  { %4108 = vst.msk [vmem:[#allocation2 + $0x90] sm:$0xff] %vm7928_vm11, %v4091_v50 }
 0x636   :  { %v4095_v44 = vpop.permute.xlu1 %4094 }
 0x637   :  { %v4069_v26 = vpop.permute.xlu0 %4068 }
 0x638   :  { %4083 = vst.msk [vmem:[#allocation2 + $0xa0] sm:$0xff] %vm457_vm14, %v4069_v26  ;;  %vm7931_vm14 = vmmov %vm7922_vm15 }
 0x639   :  { %4110 = vst.msk [vmem:[#allocation2 + $0xa0] sm:$0xff] %vm7929_vm12, %v4095_v44  ;;  %v4132_v47 = vsel %vm7931_vm14, %v4130_v23, %v4131_v35  ;;  %vm7932_vm0 = vmmov %vm7931_vm14 }
 0x63a   :  { %v4179_v15 = vld [vmem:[#allocation2 + $0x98] sm:$0xff]  ;;  %v4139_v17 = vsel %vm7932_vm0, %v4134_v39, %v4138_v29  ;;  %vm7933_vm6 = vmmov %vm7932_vm0 }
 0x63b   :  { %v4097_v55 = vpop.permute.xlu0 %4096  ;;  %v4178_v61 = vld [vmem:[#allocation2 + $0x90] sm:$0xff] }
 0x63c   :  { %4111 = vst.msk [vmem:[#allocation2 + $0xa8] sm:$0xff] %vm7930_vm13, %v4097_v55  ;;  %v4607_v22 = vpack.c.bf16 %v4179_v15, %v4178_v61 }
 0x63e   :  { %4608 = vmatpush1.bf16.msra.mxu0 %v4607_v22  ;;  %4632 = vmatpush1.bf16.msra.mxu1 %v4607_v22 }
 0x63f   :  { %4609 = vmatprep.subr.bf16.mxu0 %v4681_v8  ;;  %4622 = vmatprep.subr.bf16.mxu1 %v4681_v8  ;;  %v3042_v8 = vpop.f32.mrb[18].mxu0 }
 0x640   :  { %v4180_v27 = vld [vmem:[#allocation2 + $0xa0] sm:$0xff]  ;;  %v3057_v57 = vadd.f32 %v3042_v8, %v7640_v2  ;;  %v3044_v58 = vpop.f32.mrb[19].mxu0  ;;  %v4136_v2 = vrot.slane %v4116_v43, 6 }
 0x641   :  { %v3047_v13 = vpop.f32.mrb[20].mxu0 }
 0x642   :  { %v3058_v14 = vadd.f32 %v3047_v13, %v7644_v41  ;;  %v3049_v3 = vpop.f32.mrb[21].mxu0  ;;  %v4137_v32 = vsel %vm7933_vm6, %v4131_v35, %v4136_v2  ;;  %v4155_v41 = vsel %vm2910_vm1, %v4149_v36, %v4154_v52 }
 0x643   :  { %v4181_v7 = vld [vmem:[#allocation2 + $0xa8] sm:$0xff] }
 0x644   :  { %v4610_v10 = vpack.c.bf16 %v4181_v7, %v4180_v27 }
 0x645   :  { %v3052_v53 = vpop.f32.mrb[22].mxu0 }
 0x646   :  { %4611 = vmatpush1.bf16.msra.mxu0 %v4610_v10  ;;  %4633 = vmatpush1.bf16.msra.mxu1 %v4610_v10  ;;  %v3059_v60 = vadd.f32 %v3052_v53, %v7646_v19  ;;  %v3054_v20 = vpop.f32.mrb[23].mxu0 }
 0x648   :  { %v3647_v0 = vpop.f32.mrb[16].mxu1 }
 0x649   :  { %4255 = vmatmul.mubr.f32.vlgmr.msra.gmra.mrb[24].mxu0 %v4132_v47  ;;  %4265 = vmatmul.mubr.f32.vlgmr.msra.gmra.mrb[24].mxu1 %v4150_v63  ;;  %v3666_v5 = vadd.f32 %v3647_v0, %v7648_v49  ;;  %v3649_v37 = vpop.f32.mrb[17].mxu1  ;;  %v4380_v49 = vld [vmem:[%s7763_s2] ss:$0 sm:$0xff]  ;;  %s4655_s2 = scalar_lea.vmem %s4300_s4, 512 }
 0x64a   :  { %4377 = vmatprep.mubr.msk.f32.mxu0 %vm1059_vm5, %v4139_v17  ;;  %4379 = vmatprep.mubr.msk.f32.mxu1 %vm1059_vm5, %v4157_v28  ;;  %p4656_p0 = scmp.ne.s32.totalorder %s4300_s4, %s4655_s2  ;;  %p4661_p2 = scmp.lt.s32.totalorder %s4655_s2, %s4655_s2 }
 0x64c   :  { %v3652_v39 = vpop.f32.mrb[18].mxu1  ;;  %p4662_p3 = por %p4661_p2, %p4660_p1 }
 0x64d   :  { %4260 = vmatmul.mubr.f32.gmra.mrb[26].mxu0 %v4137_v32  ;;  %4270 = vmatmul.mubr.f32.gmra.mrb[26].mxu1 %v4155_v41  ;;  %v3667_v6 = vadd.f32 %v3652_v39, %v3057_v57  ;;  %v3654_v9 = vpop.f32.mrb[19].mxu1 }
 0x64e   :  { %p4663_p4 = pnand %p4662_p3, %p4656_p0 }
 0x650   :  { %v3657_v21 = vpop.f32.mrb[20].mxu1 }
 0x651   :  { %v3668_v33 = vadd.f32 %v3657_v21, %v3058_v14  ;;  %v3659_v4 = vpop.f32.mrb[21].mxu1 }
 0x654   :  { %v3662_v30 = vpop.f32.mrb[22].mxu1 }
 0x655   :  { %v3669_v25 = vadd.f32 %v3662_v30, %v3059_v60  ;;  %v3664_v1 = vpop.f32.mrb[23].mxu1 }
 0x71c   :  { %v4256_v31 = vpop.f32.mrb[24].mxu0  ;;  %v4266_v38 = vpop.f32.mrb[24].mxu1 }
 0x71d   :  { %v4275_v62 = vadd.f32 %v4256_v31, %v3666_v5  ;;  %v4277_v56 = vadd.f32 %v4266_v38, %v3668_v33  ;;  %v4258_v18 = vpop.f32.mrb[25].mxu0  ;;  %v4268_v40 = vpop.f32.mrb[25].mxu1 }
 0x71f   :  { %v4286_v42 = vadd.f32 %v4380_v49, %v4275_v62  ;;  %v4288_v24 = vadd.f32 %v4380_v49, %v4277_v56 }
 0x720   :  { %v4261_v19 = vpop.f32.mrb[26].mxu0  ;;  %v4271_v59 = vpop.f32.mrb[26].mxu1 }
 0x721   :  { %4290 = vst [vmem:[#allocation3] sm:$0xff] %v4286_v42  ;;  %4292 = vst [vmem:[#allocation3 + $0x10] sm:$0xff] %v4288_v24  ;;  %v4276_v50 = vadd.f32 %v4261_v19, %v3667_v6  ;;  %v4278_v26 = vadd.f32 %v4271_v59, %v3669_v25  ;;  %v4263_v44 = vpop.f32.mrb[27].mxu0  ;;  %v4273_v55 = vpop.f32.mrb[27].mxu1 }
 0x723   :  { %v4287_v61 = vadd.f32 %v4380_v49, %v4276_v50  ;;  %v4289_v15 = vadd.f32 %v4380_v49, %v4278_v26 }
 0x725   :  { %4291 = vst [vmem:[#allocation3 + $0x8] sm:$0xff] %v4287_v61  ;;  %4293 = vst [vmem:[#allocation3 + $0x18] sm:$0xff] %v4289_v15 }
 0x726   :  { %4666 = shalt.err (!%p4663_p4)
}
 0x727   :  { %s4667_s7 = scalar_lea.hbm %s7764_s3, 512 }
 0x728   :  { %p4668_p5 = scmp.ne.s32.totalorder %s7764_s3, %s4667_s7  ;;  %p4671_p6 = scmp.lt.u32.totalorder %s4667_s7, %s7764_s3 }
 0x72a   :  { %p4673_p7 = pnand %p4671_p6, %p4668_p5 }
 0x72c   :  { %4676 = shalt.err (!%p4673_p7)
}
 0x72d   :  { %s4697_s15 = smov 128  }
 0x72e   :  { %4305 = dma.vmem_to_hbm [thread:$0]  %s4300_s4, 512, %s7764_s3, [#allocation4], %s4697_s15, %s4697_s15, %s4679_s16  }
 0x72f   :  { %4677 = dma.done.wait [#allocation4], 512  }
 0x730   :  { %4678 = vsyncadd [#allocation4], 4294966784 }
 0x731   :  { %4309 = vsyncpa [#allocation4], 1 }

</bundles_post_ra>
